<compile_context>
chip_gen: v5e
topology: v5e:2x2
jax: 0.10.0
libtpu: 0.0.40
codegen_flags: <defaults>
</compile_context>

<pallas_src>
import functools

import jax
import jax.numpy as jnp
from jax.experimental import pallas as pl
from jax.experimental.pallas import tpu as pltpu

LRELU_SLOPE = 0.1


def _round_up(n, m):
    return ((n + m - 1) // m) * m


# ---------------------------------------------------------------------------
# The single fused Pallas kernel:
#   leaky_relu prologue -> K-tap bf16 MXU conv (f32 acc) -> bias (+residual)
# One grid step per batch element.
# ---------------------------------------------------------------------------
def _fused_conv_kernel(x_ref, w_ref, b_ref, *rest, K, dilation, prelu, has_res):
    if has_res:
        res_ref, o_ref = rest
    else:
        (o_ref,) = rest

    x = x_ref[0]                                     # (Cin, Lp) f32
    if prelu:                                        # fused activation prologue (f32)
        x = jnp.where(x >= 0.0, x, LRELU_SLOPE * x)
    xb = x.astype(jnp.bfloat16)                      # bf16 MXU operand

    lout = o_ref.shape[-1]
    acc = jnp.zeros(o_ref.shape[1:], jnp.float32)    # (Cout_p, Lout) f32 accumulator
    for k in range(K):                               # K <= 3, statically unrolled
        off = k * dilation
        acc = acc + jnp.dot(w_ref[k], xb[:, off:off + lout],
                            preferred_element_type=jnp.float32)

    y = acc + b_ref[...]                             # bias broadcast (f32)
    if has_res:
        y = y + res_ref[0]                           # fused residual add (f32)
    o_ref[0] = y


def fused_conv(x, w_taps, bias, residual=None, *, dilation=1, prelu=False):
    """Stride-1 multi-tap conv.

    x        : (B, Cin, Lp)  f32, pre-padded so Lout = Lp - (K-1)*dilation
    w_taps   : (K, Cout, Cin) f32
    bias     : (Cout,)        f32
    residual : optional (B, Cout, Lout) f32, added in the kernel epilogue
    returns  : (B, Cout, Lout) f32
    """
    B, Cin, Lp = x.shape
    K, Cout, _ = w_taps.shape
    Lout = Lp - (K - 1) * dilation
    Cout_p = max(8, _round_up(Cout, 8))              # pad M to full sublanes

    if Cout_p != Cout:
        w_taps = jnp.pad(w_taps, ((0, 0), (0, Cout_p - Cout), (0, 0)))
        bias = jnp.pad(bias, (0, Cout_p - Cout))
        if residual is not None:
            residual = jnp.pad(residual, ((0, 0), (0, Cout_p - Cout), (0, 0)))

    has_res = residual is not None
    kernel = functools.partial(_fused_conv_kernel, K=K, dilation=dilation,
                               prelu=prelu, has_res=has_res)

    in_specs = [
        pl.BlockSpec((1, Cin, Lp), lambda b: (b, 0, 0)),       # activations (per batch)
        pl.BlockSpec((K, Cout_p, Cin), lambda b: (0, 0, 0)),   # weights (resident)
        pl.BlockSpec((Cout_p, 1), lambda b: (0, 0)),           # bias (resident)
    ]
    args = [x, w_taps.astype(jnp.bfloat16),
            bias.reshape(Cout_p, 1).astype(jnp.float32)]
    if has_res:
        in_specs.append(pl.BlockSpec((1, Cout_p, Lout), lambda b: (b, 0, 0)))
        args.append(residual)

    out = pl.pallas_call(
        kernel,
        grid=(B,),
        in_specs=in_specs,
        out_specs=pl.BlockSpec((1, Cout_p, Lout), lambda b: (b, 0, 0)),
        out_shape=jax.ShapeDtypeStruct((B, Cout_p, Lout), jnp.float32),
        compiler_params=pltpu.CompilerParams(
            dimension_semantics=("parallel",),
            vmem_limit_bytes=32 * 1024 * 1024),
    )(*args)

    if Cout_p != Cout:
        out = out[:, :Cout, :]
    return out


# ---------------------------------------------------------------------------
# Conv wrappers (thin glue: pad / reshape / weight re-layout only)
# ---------------------------------------------------------------------------
def conv1x1(x, w, b, residual=None, prelu=False):
    """PyTorch Conv1d(kernel_size=1) with fused activation / residual."""
    w_taps = jnp.transpose(w, (2, 0, 1))             # (1, Cout, Cin)
    return fused_conv(x, w_taps, b, residual, dilation=1, prelu=prelu)


def conv_k3(x, w, b, residual=None, *, dilation, prelu=True):
    """'same' Conv1d, kernel 3, given dilation (ResBlock convs)."""
    xp = jnp.pad(x, ((0, 0), (0, 0), (dilation, dilation)))
    w_taps = jnp.transpose(w, (2, 0, 1))             # (3, Cout, Cin)
    return fused_conv(xp, w_taps, b, residual, dilation=dilation, prelu=prelu)


def downsample_conv(x, w, b, r, prelu=True):
    """Conv1d(ch, 2ch, 2r, stride=r, padding=r//2) as a K=2 stride-1 conv over a
    (Cin*r, L/r+1) block-reshape of the padded input."""
    B, Cin, L = x.shape
    Cout, _, K2 = w.shape
    assert K2 == 2 * r and r % 2 == 0 and L % r == 0
    pad = r // 2
    xp = jnp.pad(x, ((0, 0), (0, 0), (pad, pad)))    # (B, Cin, L + r)
    M = (L + 2 * pad) // r                           # = L//r + 1
    xb = xp.reshape(B, Cin, M, r).transpose(0, 1, 3, 2).reshape(B, Cin * r, M)
    w_taps = w.reshape(Cout, Cin, 2, r).transpose(2, 0, 1, 3).reshape(2, Cout, Cin * r)
    return fused_conv(xb, w_taps, b, dilation=1, prelu=prelu)


def upsample_convT(x, w, b, r, prelu=True):
    """ConvTranspose1d(ch, ch//2, 2r, stride=r, padding=r//2), phase-decomposed into
    one K=3 stride-1 conv with r*Cout stacked phase channels + de-interleave."""
    B, Cin, L = x.shape
    _, Cout, K2 = w.shape
    assert K2 == 2 * r and r % 2 == 0
    r2 = r // 2
    xp = jnp.pad(x, ((0, 0), (0, 0), (1, 1)))        # (B, Cin, L + 2)
    wt = jnp.transpose(w, (1, 0, 2))                 # (Cout, Cin, 2r)
    zeros = jnp.zeros((r2, Cout, Cin), w.dtype)
    tap1 = jnp.transpose(wt[:, :, r2:r2 + r], (2, 0, 1))                 # hits x[s]
    tap0 = jnp.concatenate(
        [jnp.transpose(wt[:, :, r + r2:2 * r], (2, 0, 1)), zeros], 0)    # hits x[s-1]
    tap2 = jnp.concatenate(
        [zeros, jnp.transpose(wt[:, :, 0:r2], (2, 0, 1))], 0)            # hits x[s+1]
    w_eff = jnp.stack([tap0, tap1, tap2], axis=0).reshape(3, r * Cout, Cin)
    b_eff = jnp.tile(b, r)
    y = fused_conv(xp, w_eff, b_eff, dilation=1, prelu=prelu)            # (B, r*Cout, L)
    return y.reshape(B, r, Cout, L).transpose(0, 2, 3, 1).reshape(B, Cout, L * r)


# ---------------------------------------------------------------------------
# Parameter construction (deterministic, synthetic) — weight_norm applied here
# ---------------------------------------------------------------------------
def _weight_norm(v, g):
    norm = jnp.sqrt(jnp.sum(v * v, axis=tuple(range(1, v.ndim)), keepdims=True))
    return g.reshape((-1,) + (1,) * (v.ndim - 1)) * v / norm


def _init_wn_conv(key, cout, cin, k):
    k1, k2, k3 = jax.random.split(key, 3)
    v = jax.random.normal(k1, (cout, cin, k), jnp.float32) * 0.05
    g = jax.random.uniform(k2, (cout,), jnp.float32, 0.5, 1.5)
    b = jax.random.normal(k3, (cout,), jnp.float32) * 0.01
    return _weight_norm(v, g), b


def _init_wn_convT(key, cin, cout, k):
    k1, k2, k3 = jax.random.split(key, 3)
    v = jax.random.normal(k1, (cin, cout, k), jnp.float32) * 0.05
    g = jax.random.uniform(k2, (cin,), jnp.float32, 0.5, 1.5)   # weight_norm dim=0
    b = jax.random.normal(k3, (cout,), jnp.float32) * 0.01
    return _weight_norm(v, g), b


def _init_plain_conv(key, cout, cin, k):
    k1, k2 = jax.random.split(key)
    w = jax.random.normal(k1, (cout, cin, k), jnp.float32) * 0.05
    b = jax.random.normal(k2, (cout,), jnp.float32) * 0.01
    return w, b


def _init_resblock(key, ch):
    k1, k2 = jax.random.split(key)
    return [_init_wn_conv(k1, ch, ch, 3), _init_wn_conv(k2, ch, ch, 3)]


def make_params(key, input_ch, unet_ch, up_rates, condition_channel):
    keys = iter(jax.random.split(key, 64))
    params = {"start": _init_wn_conv(next(keys), unet_ch, input_ch, 1)}
    ch = unet_ch
    mel = [_init_wn_conv(next(keys), ch, condition_channel, 1)]
    downs, down_res = [], []
    for r in up_rates:
        downs.append(_init_wn_conv(next(keys), ch * 2, ch, r * 2))
        mel.append(_init_wn_conv(next(keys), ch * 2, condition_channel, 1))
        down_res.append(_init_resblock(next(keys), ch * 2))
        ch *= 2
    up_res = [_init_resblock(next(keys), ch)]
    ups = []
    for i in range(len(up_rates)):
        r = up_rates[len(up_rates) - i - 1]
        ups.append(_init_wn_convT(next(keys), ch, ch // 2, r * 2))
        up_res.append(_init_resblock(next(keys), ch // 2))
        ch //= 2
    params["unet"] = dict(mel=mel, downs=downs, down_res=down_res, ups=ups, up_res=up_res)
    params["end"] = _init_plain_conv(next(keys), input_ch, unet_ch, 1)
    return params


# ---------------------------------------------------------------------------
# Forward passes (mirror the PyTorch modules; activation/bias/residual fused)
# ---------------------------------------------------------------------------
def resblock_fwd(p, x):
    # x = conv(leaky_relu(x)) + x, twice (dilations 1, 3) — fully fused in-kernel.
    for (w, b), d in zip(p, (1, 3)):
        x = conv_k3(x, w, b, residual=x, dilation=d, prelu=True)
    return x


def unet_fwd(p, x, c_list, up_rates):
    n = len(up_rates)
    mel = p["mel"]
    residual = [x]
    x = conv1x1(c_list[0], *mel[0], residual=x)                 # x + mel0(c0), fused
    for i in range(n):
        x = downsample_conv(x, *p["downs"][i], r=up_rates[i], prelu=True)
        x = conv1x1(c_list[i + 1], *mel[i + 1], residual=x)     # x + mel(c), fused
        x = resblock_fwd(p["down_res"][i], x)
        residual.append(x)
    x = conv1x1(c_list[n], *mel[n], residual=x + residual[n])
    x = resblock_fwd(p["up_res"][0], x)
    for i in range(n):
        r = up_rates[n - i - 1]
        x = upsample_convT(x, *p["ups"][i], r=r, prelu=True)
        x = conv1x1(c_list[n - i - 1], *mel[n - i - 1],
                    residual=x + residual[n - i - 1])
        x = resblock_fwd(p["up_res"][i + 1], x)
    return x


def affine_layer_fwd(params, x, c_list, up_rates):
    x = conv1x1(x, *params["start"])
    x = unet_fwd(params["unet"], x, c_list, up_rates)
    x = conv1x1(x, *params["end"], prelu=True)     # leaky_relu fused into end conv
    return x


# ---------------------------------------------------------------------------
# Pure-jnp f32 reference (mirrors the PyTorch forward) for a sanity check
# ---------------------------------------------------------------------------
def _ref_lrelu(x):
    return jnp.where(x >= 0, x, LRELU_SLOPE * x)


def _ref_conv1d(x, w, b, stride=1, padding=0, dilation=1):
    B, Cin, L = x.shape
    Cout, _, K = w.shape
    xp = jnp.pad(x, ((0, 0), (0, 0), (padding, padding)))
    Lout = (L + 2 * padding - dilation * (K - 1) - 1) // stride + 1
    idx = (jnp.arange(Lout) * stride)[None, :] + (jnp.arange(K) * dilation)[:, None]
    patches = xp[:, :, idx]                                # (B, Cin, K, Lout)
    return jnp.einsum("ock,bckl->bol", w, patches) + b[None, :, None]


def _ref_convT1d(x, w, b, stride, padding):
    B, Cin, L = x.shape
    _, Cout, K = w.shape
    xd = jnp.zeros((B, Cin, (L - 1) * stride + 1), x.dtype).at[:, :, ::stride].set(x)
    w_eq = jnp.flip(w, axis=-1).transpose(1, 0, 2)
    return _ref_conv1d(xd, w_eq, b, stride=1, padding=K - 1 - padding)


def _ref_resblock(p, x):
    for (w, b), d in zip(p, (1, 3)):
        x = _ref_conv1d(_ref_lrelu(x), w, b, padding=d, dilation=d) + x
    return x


def _ref_unet(p, x, c_list, up_rates):
    n = len(up_rates)
    c_map = [_ref_conv1d(c, w, b) for c, (w, b) in zip(c_list, p["mel"])]
    residual = [x]
    x = x + c_map[0]
    for i in range(n):
        r = up_rates[i]
        w, b = p["downs"][i]
        x = _ref_conv1d(_ref_lrelu(x), w, b, stride=r, padding=r // 2)
        x = _ref_resblock(p["down_res"][i], x + c_map[i + 1])
        residual.append(x)
    x = _ref_resblock(p["up_res"][0], x + c_map[n] + residual[n])
    for i in range(n):
        r = up_rates[n - i - 1]
        w, b = p["ups"][i]
        x = _ref_convT1d(_ref_lrelu(x), w, b, stride=r, padding=r // 2)
        x = _ref_resblock(p["up_res"][i + 1], x + c_map[n - i - 1] + residual[n - i - 1])
    return x


def _ref_affine(params, x, c_list, up_rates):
    x = _ref_conv1d(x, *params["start"])
    x = _ref_unet(params["unet"], x, c_list, up_rates)
    x = _ref_conv1d(_ref_lrelu(x), *params["end"])
    return x


# ---------------------------------------------------------------------------
if __name__ == "__main__":
    # AffineLayer(input_ch=4, unet_ch=8, up_rates=[4,4,4], condition_channel=16)
    # x: (B=2, 4, T=64); c_list lengths: T, T/4, T/16, T/64.
    B, IC, UC, CC, T = 2, 4, 8, 16, 64
    up_rates = [4, 4, 4]

    key = jax.random.PRNGKey(0)
    kp, kx, *kc = jax.random.split(key, 6)
    params = make_params(kp, IC, UC, up_rates, CC)

    x = jax.random.normal(kx, (B, IC, T), jnp.float32)
    c_list = [
        jax.random.normal(kc[0], (B, CC, T), jnp.float32),
        jax.random.normal(kc[1], (B, CC, T // 4), jnp.float32),
        jax.random.normal(kc[2], (B, CC, T // 16), jnp.float32),
        jax.random.normal(kc[3], (B, CC, T // 64), jnp.float32),
    ]

    fwd = jax.jit(functools.partial(affine_layer_fwd, up_rates=up_rates))
    out = fwd(params, x, c_list)
    jax.block_until_ready(out)
    assert out.shape == (B, IC, T), out.shape

    # Sanity check vs. the pure-jnp f32 reference (loose: kernel MXU inputs are bf16).
    ref = _ref_affine(params, x, c_list, up_rates)
    rel = float(jnp.max(jnp.abs(out - ref)) / (jnp.max(jnp.abs(ref)) + 1e-6))
    assert rel < 0.15, f"mismatch vs reference: rel_max_err={rel}"
    print("KERNEL_OK")
</pallas_src>

<mosaic_0001>
module attributes {stable_mosaic.version = 11 : i64} {
  func.func @_fused_conv_kernel(%arg0: i32, %arg1: memref<1x4x64xf32, #tpu.memory_space<vmem>>, %arg2: memref<1x8x4xbf16, #tpu.memory_space<vmem>>, %arg3: memref<8x1xf32, #tpu.memory_space<vmem>>, %arg4: memref<1x8x64xf32, #tpu.memory_space<vmem>>) attributes {dimension_semantics = [#tpu.dimension_semantics<parallel>], iteration_bounds = array<i64: 2>, scalar_prefetch = 0 : i64, scratch_operands = 0 : i64, tpu.core_type = #tpu.core_type<tc>, window_params = [{transform_indices = @transform_0, window_bounds = array<i64: 1, 4, 64>}, {pipeline_mode = #tpu.pipeline_mode<synchronous>, transform_indices = @transform_1, window_bounds = array<i64: 1, 8, 4>}, {pipeline_mode = #tpu.pipeline_mode<synchronous>, transform_indices = @transform_2, window_bounds = array<i64: 8, 1>}, {transform_indices = @transform_3, window_bounds = array<i64: 1, 8, 64>}]} {
    %c0 = arith.constant 0 : index
    %c0_0 = arith.constant 0 : index
    %c0_1 = arith.constant 0 : index
    %0 = vector.load %arg1[%c0, %c0_0, %c0_1] : memref<1x4x64xf32, #tpu.memory_space<vmem>>, vector<1x4x64xf32>
    %1 = vector.shape_cast %0 : vector<1x4x64xf32> to vector<4x64xf32>
    %2 = arith.truncf %1 : vector<4x64xf32> to vector<4x64xbf16>
    %cst = arith.constant 0.000000e+00 : f32
    %3 = vector.broadcast %cst : f32 to vector<8x64xf32>
    %c0_2 = arith.constant 0 : index
    %c0_3 = arith.constant 0 : index
    %c0_4 = arith.constant 0 : index
    %4 = vector.load %arg2[%c0_2, %c0_3, %c0_4] : memref<1x8x4xbf16, #tpu.memory_space<vmem>>, vector<1x8x4xbf16>
    %5 = vector.shape_cast %4 : vector<1x8x4xbf16> to vector<8x4xbf16>
    %cst_5 = arith.constant dense<0.000000e+00> : vector<8x64xf32>
    %6 = tpu.matmul %5, %2, %cst_5 {dimension_numbers = #tpu.dot_dimension_numbers<[1], [0], [0], [1], [0, 0, 1, 1], [], []>} : vector<8x4xbf16>, vector<4x64xbf16>, vector<8x64xf32> -> vector<8x64xf32>
    %7 = arith.addf %3, %6 : vector<8x64xf32>
    %c0_6 = arith.constant 0 : index
    %c0_7 = arith.constant 0 : index
    %8 = vector.load %arg3[%c0_6, %c0_7] : memref<8x1xf32, #tpu.memory_space<vmem>>, vector<8x1xf32>
    %9 = vector.broadcast %8 : vector<8x1xf32> to vector<8x64xf32>
    %10 = arith.addf %7, %9 : vector<8x64xf32>
    %c0_8 = arith.constant 0 : index
    %c0_9 = arith.constant 0 : index
    %c0_10 = arith.constant 0 : index
    %11 = vector.load %arg4[%c0_8, %c0_9, %c0_10] : memref<1x8x64xf32, #tpu.memory_space<vmem>>, vector<1x8x64xf32>
    %12 = vector.shape_cast %11 : vector<1x8x64xf32> to vector<8x64xf32>
    %13 = vector.shape_cast %10 : vector<8x64xf32> to vector<1x8x64xf32>
    tpu.vector_store %arg4[%c0_8, %c0_9, %c0_10], %13 {strides = array<i32>} : memref<1x8x64xf32, #tpu.memory_space<vmem>>, vector<1x8x64xf32>,
    return
  }
  func.func @transform_0(%arg0: i32) -> (i32, i32, i32) {
    %c0_i32 = arith.constant 0 : i32
    %c0_i32_0 = arith.constant 0 : i32
    %c0_i32_1 = arith.constant 0 : i32
    return %arg0, %c0_i32, %c0_i32_0 : i32, i32, i32
  }
  func.func @transform_1(%arg0: i32) -> (i32, i32, i32) {
    %c0_i32 = arith.constant 0 : i32
    %c0_i32_0 = arith.constant 0 : i32
    %c0_i32_1 = arith.constant 0 : i32
    %c0_i32_2 = arith.constant 0 : i32
    return %c0_i32, %c0_i32_0, %c0_i32_1 : i32, i32, i32
  }
  func.func @transform_2(%arg0: i32) -> (i32, i32) {
    %c0_i32 = arith.constant 0 : i32
    %c0_i32_0 = arith.constant 0 : i32
    %c0_i32_1 = arith.constant 0 : i32
    return %c0_i32, %c0_i32_0 : i32, i32
  }
  func.func @transform_3(%arg0: i32) -> (i32, i32, i32) {
    %c0_i32 = arith.constant 0 : i32
    %c0_i32_0 = arith.constant 0 : i32
    %c0_i32_1 = arith.constant 0 : i32
    return %arg0, %c0_i32, %c0_i32_0 : i32, i32, i32
  }
}

module attributes {stable_mosaic.version = 11 : i64} {
  func.func @_fused_conv_kernel(%arg0: i32, %arg1: memref<1x16x64xf32, #tpu.memory_space<vmem>>, %arg2: memref<1x8x16xbf16, #tpu.memory_space<vmem>>, %arg3: memref<8x1xf32, #tpu.memory_space<vmem>>, %arg4: memref<1x8x64xf32, #tpu.memory_space<vmem>>, %arg5: memref<1x8x64xf32, #tpu.memory_space<vmem>>) attributes {dimension_semantics = [#tpu.dimension_semantics<parallel>], iteration_bounds = array<i64: 2>, scalar_prefetch = 0 : i64, scratch_operands = 0 : i64, tpu.core_type = #tpu.core_type<tc>, window_params = [{transform_indices = @transform_0, window_bounds = array<i64: 1, 16, 64>}, {pipeline_mode = #tpu.pipeline_mode<synchronous>, transform_indices = @transform_1, window_bounds = array<i64: 1, 8, 16>}, {pipeline_mode = #tpu.pipeline_mode<synchronous>, transform_indices = @transform_2, window_bounds = array<i64: 8, 1>}, {transform_indices = @transform_3, window_bounds = array<i64: 1, 8, 64>}, {transform_indices = @transform_4, window_bounds = array<i64: 1, 8, 64>}]} {
    %c0 = arith.constant 0 : index
    %c0_0 = arith.constant 0 : index
    %c0_1 = arith.constant 0 : index
    %0 = vector.load %arg1[%c0, %c0_0, %c0_1] : memref<1x16x64xf32, #tpu.memory_space<vmem>>, vector<1x16x64xf32>
    %1 = vector.shape_cast %0 : vector<1x16x64xf32> to vector<16x64xf32>
    %2 = arith.truncf %1 : vector<16x64xf32> to vector<16x64xbf16>
    %cst = arith.constant 0.000000e+00 : f32
    %3 = vector.broadcast %cst : f32 to vector<8x64xf32>
    %c0_2 = arith.constant 0 : index
    %c0_3 = arith.constant 0 : index
    %c0_4 = arith.constant 0 : index
    %4 = vector.load %arg2[%c0_2, %c0_3, %c0_4] : memref<1x8x16xbf16, #tpu.memory_space<vmem>>, vector<1x8x16xbf16>
    %5 = vector.shape_cast %4 : vector<1x8x16xbf16> to vector<8x16xbf16>
    %cst_5 = arith.constant dense<0.000000e+00> : vector<8x64xf32>
    %6 = tpu.matmul %5, %2, %cst_5 {dimension_numbers = #tpu.dot_dimension_numbers<[1], [0], [0], [1], [0, 0, 1, 1], [], []>} : vector<8x16xbf16>, vector<16x64xbf16>, vector<8x64xf32> -> vector<8x64xf32>
    %7 = arith.addf %3, %6 : vector<8x64xf32>
    %c0_6 = arith.constant 0 : index
    %c0_7 = arith.constant 0 : index
    %8 = vector.load %arg3[%c0_6, %c0_7] : memref<8x1xf32, #tpu.memory_space<vmem>>, vector<8x1xf32>
    %9 = vector.broadcast %8 : vector<8x1xf32> to vector<8x64xf32>
    %10 = arith.addf %7, %9 : vector<8x64xf32>
    %c0_8 = arith.constant 0 : index
    %c0_9 = arith.constant 0 : index
    %c0_10 = arith.constant 0 : index
    %11 = vector.load %arg4[%c0_8, %c0_9, %c0_10] : memref<1x8x64xf32, #tpu.memory_space<vmem>>, vector<1x8x64xf32>
    %12 = vector.shape_cast %11 : vector<1x8x64xf32> to vector<8x64xf32>
    %13 = arith.addf %10, %12 : vector<8x64xf32>
    %c0_11 = arith.constant 0 : index
    %c0_12 = arith.constant 0 : index
    %c0_13 = arith.constant 0 : index
    %14 = vector.load %arg5[%c0_11, %c0_12, %c0_13] : memref<1x8x64xf32, #tpu.memory_space<vmem>>, vector<1x8x64xf32>
    %15 = vector.shape_cast %14 : vector<1x8x64xf32> to vector<8x64xf32>
    %16 = vector.shape_cast %13 : vector<8x64xf32> to vector<1x8x64xf32>
    tpu.vector_store %arg5[%c0_11, %c0_12, %c0_13], %16 {strides = array<i32>} : memref<1x8x64xf32, #tpu.memory_space<vmem>>, vector<1x8x64xf32>,
    return
  }
  func.func @transform_0(%arg0: i32) -> (i32, i32, i32) {
    %c0_i32 = arith.constant 0 : i32
    %c0_i32_0 = arith.constant 0 : i32
    %c0_i32_1 = arith.constant 0 : i32
    return %arg0, %c0_i32, %c0_i32_0 : i32, i32, i32
  }
  func.func @transform_1(%arg0: i32) -> (i32, i32, i32) {
    %c0_i32 = arith.constant 0 : i32
    %c0_i32_0 = arith.constant 0 : i32
    %c0_i32_1 = arith.constant 0 : i32
    %c0_i32_2 = arith.constant 0 : i32
    return %c0_i32, %c0_i32_0, %c0_i32_1 : i32, i32, i32
  }
  func.func @transform_2(%arg0: i32) -> (i32, i32) {
    %c0_i32 = arith.constant 0 : i32
    %c0_i32_0 = arith.constant 0 : i32
    %c0_i32_1 = arith.constant 0 : i32
    return %c0_i32, %c0_i32_0 : i32, i32
  }
  func.func @transform_3(%arg0: i32) -> (i32, i32, i32) {
    %c0_i32 = arith.constant 0 : i32
    %c0_i32_0 = arith.constant 0 : i32
    %c0_i32_1 = arith.constant 0 : i32
    return %arg0, %c0_i32, %c0_i32_0 : i32, i32, i32
  }
  func.func @transform_4(%arg0: i32) -> (i32, i32, i32) {
    %c0_i32 = arith.constant 0 : i32
    %c0_i32_0 = arith.constant 0 : i32
    %c0_i32_1 = arith.constant 0 : i32
    return %arg0, %c0_i32, %c0_i32_0 : i32, i32, i32
  }
}

module attributes {stable_mosaic.version = 11 : i64} {
  func.func @_fused_conv_kernel(%arg0: i32, %arg1: memref<1x16x18xf32, #tpu.memory_space<vmem>>, %arg2: memref<3x16x16xbf16, #tpu.memory_space<vmem>>, %arg3: memref<16x1xf32, #tpu.memory_space<vmem>>, %arg4: memref<1x16x16xf32, #tpu.memory_space<vmem>>, %arg5: memref<1x16x16xf32, #tpu.memory_space<vmem>>) attributes {dimension_semantics = [#tpu.dimension_semantics<parallel>], iteration_bounds = array<i64: 2>, scalar_prefetch = 0 : i64, scratch_operands = 0 : i64, tpu.core_type = #tpu.core_type<tc>, window_params = [{transform_indices = @transform_0, window_bounds = array<i64: 1, 16, 18>}, {pipeline_mode = #tpu.pipeline_mode<synchronous>, transform_indices = @transform_1, window_bounds = array<i64: 3, 16, 16>}, {pipeline_mode = #tpu.pipeline_mode<synchronous>, transform_indices = @transform_2, window_bounds = array<i64: 16, 1>}, {transform_indices = @transform_3, window_bounds = array<i64: 1, 16, 16>}, {transform_indices = @transform_4, window_bounds = array<i64: 1, 16, 16>}]} {
    %c0 = arith.constant 0 : index
    %c0_0 = arith.constant 0 : index
    %c0_1 = arith.constant 0 : index
    %0 = vector.load %arg1[%c0, %c0_0, %c0_1] : memref<1x16x18xf32, #tpu.memory_space<vmem>>, vector<1x16x18xf32>
    %1 = vector.shape_cast %0 : vector<1x16x18xf32> to vector<16x18xf32>
    %cst = arith.constant 0.000000e+00 : f32
    %2 = vector.broadcast %cst : f32 to vector<16x18xf32>
    %3 = arith.cmpf oge, %1, %2 : vector<16x18xf32>
    %cst_2 = arith.constant 1.000000e-01 : f32
    %4 = vector.broadcast %cst_2 : f32 to vector<16x18xf32>
    %5 = arith.mulf %4, %1 : vector<16x18xf32>
    %6 = arith.select %3, %1, %5 : vector<16x18xi1>, vector<16x18xf32>
    %7 = arith.truncf %6 : vector<16x18xf32> to vector<16x18xbf16>
    %cst_3 = arith.constant 0.000000e+00 : f32
    %8 = vector.broadcast %cst_3 : f32 to vector<16x16xf32>
    %c0_4 = arith.constant 0 : index
    %c0_5 = arith.constant 0 : index
    %c0_6 = arith.constant 0 : index
    %9 = vector.load %arg2[%c0_4, %c0_5, %c0_6] : memref<3x16x16xbf16, #tpu.memory_space<vmem>>, vector<1x16x16xbf16>
    %10 = vector.shape_cast %9 : vector<1x16x16xbf16> to vector<16x16xbf16>
    %11 = vector.extract_strided_slice %7 {offsets = [0, 0], sizes = [16, 16], strides = [1, 1]} : vector<16x18xbf16> to vector<16x16xbf16>
    %cst_7 = arith.constant dense<0.000000e+00> : vector<16x16xf32>
    %12 = tpu.matmul %10, %11, %cst_7 {dimension_numbers = #tpu.dot_dimension_numbers<[1], [0], [0], [1], [0, 0, 1, 1], [], []>} : vector<16x16xbf16>, vector<16x16xbf16>, vector<16x16xf32> -> vector<16x16xf32>
    %13 = arith.addf %8, %12 : vector<16x16xf32>
    %c1 = arith.constant 1 : index
    %c0_8 = arith.constant 0 : index
    %c0_9 = arith.constant 0 : index
    %14 = vector.load %arg2[%c1, %c0_8, %c0_9] : memref<3x16x16xbf16, #tpu.memory_space<vmem>>, vector<1x16x16xbf16>
    %15 = vector.shape_cast %14 : vector<1x16x16xbf16> to vector<16x16xbf16>
    %16 = vector.extract_strided_slice %7 {offsets = [0, 1], sizes = [16, 16], strides = [1, 1]} : vector<16x18xbf16> to vector<16x16xbf16>
    %cst_10 = arith.constant dense<0.000000e+00> : vector<16x16xf32>
    %17 = tpu.matmul %15, %16, %cst_10 {dimension_numbers = #tpu.dot_dimension_numbers<[1], [0], [0], [1], [0, 0, 1, 1], [], []>} : vector<16x16xbf16>, vector<16x16xbf16>, vector<16x16xf32> -> vector<16x16xf32>
    %18 = arith.addf %13, %17 : vector<16x16xf32>
    %c2 = arith.constant 2 : index
    %c0_11 = arith.constant 0 : index
    %c0_12 = arith.constant 0 : index
    %19 = vector.load %arg2[%c2, %c0_11, %c0_12] : memref<3x16x16xbf16, #tpu.memory_space<vmem>>, vector<1x16x16xbf16>
    %20 = vector.shape_cast %19 : vector<1x16x16xbf16> to vector<16x16xbf16>
    %21 = vector.extract_strided_slice %7 {offsets = [0, 2], sizes = [16, 16], strides = [1, 1]} : vector<16x18xbf16> to vector<16x16xbf16>
    %cst_13 = arith.constant dense<0.000000e+00> : vector<16x16xf32>
    %22 = tpu.matmul %20, %21, %cst_13 {dimension_numbers = #tpu.dot_dimension_numbers<[1], [0], [0], [1], [0, 0, 1, 1], [], []>} : vector<16x16xbf16>, vector<16x16xbf16>, vector<16x16xf32> -> vector<16x16xf32>
    %23 = arith.addf %18, %22 : vector<16x16xf32>
    %c0_14 = arith.constant 0 : index
    %c0_15 = arith.constant 0 : index
    %24 = vector.load %arg3[%c0_14, %c0_15] : memref<16x1xf32, #tpu.memory_space<vmem>>, vector<16x1xf32>
    %25 = vector.broadcast %24 : vector<16x1xf32> to vector<16x16xf32>
    %26 = arith.addf %23, %25 : vector<16x16xf32>
    %c0_16 = arith.constant 0 : index
    %c0_17 = arith.constant 0 : index
    %c0_18 = arith.constant 0 : index
    %27 = vector.load %arg4[%c0_16, %c0_17, %c0_18] : memref<1x16x16xf32, #tpu.memory_space<vmem>>, vector<1x16x16xf32>
    %28 = vector.shape_cast %27 : vector<1x16x16xf32> to vector<16x16xf32>
    %29 = arith.addf %26, %28 : vector<16x16xf32>
    %c0_19 = arith.constant 0 : index
    %c0_20 = arith.constant 0 : index
    %c0_21 = arith.constant 0 : index
    %30 = vector.load %arg5[%c0_19, %c0_20, %c0_21] : memref<1x16x16xf32, #tpu.memory_space<vmem>>, vector<1x16x16xf32>
    %31 = vector.shape_cast %30 : vector<1x16x16xf32> to vector<16x16xf32>
    %32 = vector.shape_cast %29 : vector<16x16xf32> to vector<1x16x16xf32>
    tpu.vector_store %arg5[%c0_19, %c0_20, %c0_21], %32 {strides = array<i32>} : memref<1x16x16xf32, #tpu.memory_space<vmem>>, vector<1x16x16xf32>,
    return
  }
  func.func @transform_0(%arg0: i32) -> (i32, i32, i32) {
    %c0_i32 = arith.constant 0 : i32
    %c0_i32_0 = arith.constant 0 : i32
    %c0_i32_1 = arith.constant 0 : i32
    return %arg0, %c0_i32, %c0_i32_0 : i32, i32, i32
  }
  func.func @transform_1(%arg0: i32) -> (i32, i32, i32) {
    %c0_i32 = arith.constant 0 : i32
    %c0_i32_0 = arith.constant 0 : i32
    %c0_i32_1 = arith.constant 0 : i32
    %c0_i32_2 = arith.constant 0 : i32
    return %c0_i32, %c0_i32_0, %c0_i32_1 : i32, i32, i32
  }
  func.func @transform_2(%arg0: i32) -> (i32, i32) {
    %c0_i32 = arith.constant 0 : i32
    %c0_i32_0 = arith.constant 0 : i32
    %c0_i32_1 = arith.constant 0 : i32
    return %c0_i32, %c0_i32_0 : i32, i32
  }
  func.func @transform_3(%arg0: i32) -> (i32, i32, i32) {
    %c0_i32 = arith.constant 0 : i32
    %c0_i32_0 = arith.constant 0 : i32
    %c0_i32_1 = arith.constant 0 : i32
    return %arg0, %c0_i32, %c0_i32_0 : i32, i32, i32
  }
  func.func @transform_4(%arg0: i32) -> (i32, i32, i32) {
    %c0_i32 = arith.constant 0 : i32
    %c0_i32_0 = arith.constant 0 : i32
    %c0_i32_1 = arith.constant 0 : i32
    return %arg0, %c0_i32, %c0_i32_0 : i32, i32, i32
  }
}

module attributes {stable_mosaic.version = 11 : i64} {
  func.func @_fused_conv_kernel(%arg0: i32, %arg1: memref<1x32x17xf32, #tpu.memory_space<vmem>>, %arg2: memref<2x16x32xbf16, #tpu.memory_space<vmem>>, %arg3: memref<16x1xf32, #tpu.memory_space<vmem>>, %arg4: memref<1x16x16xf32, #tpu.memory_space<vmem>>) attributes {dimension_semantics = [#tpu.dimension_semantics<parallel>], iteration_bounds = array<i64: 2>, scalar_prefetch = 0 : i64, scratch_operands = 0 : i64, tpu.core_type = #tpu.core_type<tc>, window_params = [{transform_indices = @transform_0, window_bounds = array<i64: 1, 32, 17>}, {pipeline_mode = #tpu.pipeline_mode<synchronous>, transform_indices = @transform_1, window_bounds = array<i64: 2, 16, 32>}, {pipeline_mode = #tpu.pipeline_mode<synchronous>, transform_indices = @transform_2, window_bounds = array<i64: 16, 1>}, {transform_indices = @transform_3, window_bounds = array<i64: 1, 16, 16>}]} {
    %c0 = arith.constant 0 : index
    %c0_0 = arith.constant 0 : index
    %c0_1 = arith.constant 0 : index
    %0 = vector.load %arg1[%c0, %c0_0, %c0_1] : memref<1x32x17xf32, #tpu.memory_space<vmem>>, vector<1x32x17xf32>
    %1 = vector.shape_cast %0 : vector<1x32x17xf32> to vector<32x17xf32>
    %cst = arith.constant 0.000000e+00 : f32
    %2 = vector.broadcast %cst : f32 to vector<32x17xf32>
    %3 = arith.cmpf oge, %1, %2 : vector<32x17xf32>
    %cst_2 = arith.constant 1.000000e-01 : f32
    %4 = vector.broadcast %cst_2 : f32 to vector<32x17xf32>
    %5 = arith.mulf %4, %1 : vector<32x17xf32>
    %6 = arith.select %3, %1, %5 : vector<32x17xi1>, vector<32x17xf32>
    %7 = arith.truncf %6 : vector<32x17xf32> to vector<32x17xbf16>
    %cst_3 = arith.constant 0.000000e+00 : f32
    %8 = vector.broadcast %cst_3 : f32 to vector<16x16xf32>
    %c0_4 = arith.constant 0 : index
    %c0_5 = arith.constant 0 : index
    %c0_6 = arith.constant 0 : index
    %9 = vector.load %arg2[%c0_4, %c0_5, %c0_6] : memref<2x16x32xbf16, #tpu.memory_space<vmem>>, vector<1x16x32xbf16>
    %10 = vector.shape_cast %9 : vector<1x16x32xbf16> to vector<16x32xbf16>
    %11 = vector.extract_strided_slice %7 {offsets = [0, 0], sizes = [32, 16], strides = [1, 1]} : vector<32x17xbf16> to vector<32x16xbf16>
    %cst_7 = arith.constant dense<0.000000e+00> : vector<16x16xf32>
    %12 = tpu.matmul %10, %11, %cst_7 {dimension_numbers = #tpu.dot_dimension_numbers<[1], [0], [0], [1], [0, 0, 1, 1], [], []>} : vector<16x32xbf16>, vector<32x16xbf16>, vector<16x16xf32> -> vector<16x16xf32>
    %13 = arith.addf %8, %12 : vector<16x16xf32>
    %c1 = arith.constant 1 : index
    %c0_8 = arith.constant 0 : index
    %c0_9 = arith.constant 0 : index
    %14 = vector.load %arg2[%c1, %c0_8, %c0_9] : memref<2x16x32xbf16, #tpu.memory_space<vmem>>, vector<1x16x32xbf16>
    %15 = vector.shape_cast %14 : vector<1x16x32xbf16> to vector<16x32xbf16>
    %16 = vector.extract_strided_slice %7 {offsets = [0, 1], sizes = [32, 16], strides = [1, 1]} : vector<32x17xbf16> to vector<32x16xbf16>
    %cst_10 = arith.constant dense<0.000000e+00> : vector<16x16xf32>
    %17 = tpu.matmul %15, %16, %cst_10 {dimension_numbers = #tpu.dot_dimension_numbers<[1], [0], [0], [1], [0, 0, 1, 1], [], []>} : vector<16x32xbf16>, vector<32x16xbf16>, vector<16x16xf32> -> vector<16x16xf32>
    %18 = arith.addf %13, %17 : vector<16x16xf32>
    %c0_11 = arith.constant 0 : index
    %c0_12 = arith.constant 0 : index
    %19 = vector.load %arg3[%c0_11, %c0_12] : memref<16x1xf32, #tpu.memory_space<vmem>>, vector<16x1xf32>
    %20 = vector.broadcast %19 : vector<16x1xf32> to vector<16x16xf32>
    %21 = arith.addf %18, %20 : vector<16x16xf32>
    %c0_13 = arith.constant 0 : index
    %c0_14 = arith.constant 0 : index
    %c0_15 = arith.constant 0 : index
    %22 = vector.load %arg4[%c0_13, %c0_14, %c0_15] : memref<1x16x16xf32, #tpu.memory_space<vmem>>, vector<1x16x16xf32>
    %23 = vector.shape_cast %22 : vector<1x16x16xf32> to vector<16x16xf32>
    %24 = vector.shape_cast %21 : vector<16x16xf32> to vector<1x16x16xf32>
    tpu.vector_store %arg4[%c0_13, %c0_14, %c0_15], %24 {strides = array<i32>} : memref<1x16x16xf32, #tpu.memory_space<vmem>>, vector<1x16x16xf32>,
    return
  }
  func.func @transform_0(%arg0: i32) -> (i32, i32, i32) {
    %c0_i32 = arith.constant 0 : i32
    %c0_i32_0 = arith.constant 0 : i32
    %c0_i32_1 = arith.constant 0 : i32
    return %arg0, %c0_i32, %c0_i32_0 : i32, i32, i32
  }
  func.func @transform_1(%arg0: i32) -> (i32, i32, i32) {
    %c0_i32 = arith.constant 0 : i32
    %c0_i32_0 = arith.constant 0 : i32
    %c0_i32_1 = arith.constant 0 : i32
    %c0_i32_2 = arith.constant 0 : i32
    return %c0_i32, %c0_i32_0, %c0_i32_1 : i32, i32, i32
  }
  func.func @transform_2(%arg0: i32) -> (i32, i32) {
    %c0_i32 = arith.constant 0 : i32
    %c0_i32_0 = arith.constant 0 : i32
    %c0_i32_1 = arith.constant 0 : i32
    return %c0_i32, %c0_i32_0 : i32, i32
  }
  func.func @transform_3(%arg0: i32) -> (i32, i32, i32) {
    %c0_i32 = arith.constant 0 : i32
    %c0_i32_0 = arith.constant 0 : i32
    %c0_i32_1 = arith.constant 0 : i32
    return %arg0, %c0_i32, %c0_i32_0 : i32, i32, i32
  }
}

module attributes {stable_mosaic.version = 11 : i64} {
  func.func @_fused_conv_kernel(%arg0: i32, %arg1: memref<1x16x16xf32, #tpu.memory_space<vmem>>, %arg2: memref<1x16x16xbf16, #tpu.memory_space<vmem>>, %arg3: memref<16x1xf32, #tpu.memory_space<vmem>>, %arg4: memref<1x16x16xf32, #tpu.memory_space<vmem>>, %arg5: memref<1x16x16xf32, #tpu.memory_space<vmem>>) attributes {dimension_semantics = [#tpu.dimension_semantics<parallel>], iteration_bounds = array<i64: 2>, scalar_prefetch = 0 : i64, scratch_operands = 0 : i64, tpu.core_type = #tpu.core_type<tc>, window_params = [{transform_indices = @transform_0, window_bounds = array<i64: 1, 16, 16>}, {pipeline_mode = #tpu.pipeline_mode<synchronous>, transform_indices = @transform_1, window_bounds = array<i64: 1, 16, 16>}, {pipeline_mode = #tpu.pipeline_mode<synchronous>, transform_indices = @transform_2, window_bounds = array<i64: 16, 1>}, {transform_indices = @transform_3, window_bounds = array<i64: 1, 16, 16>}, {transform_indices = @transform_4, window_bounds = array<i64: 1, 16, 16>}]} {
    %c0 = arith.constant 0 : index
    %c0_0 = arith.constant 0 : index
    %c0_1 = arith.constant 0 : index
    %0 = vector.load %arg1[%c0, %c0_0, %c0_1] : memref<1x16x16xf32, #tpu.memory_space<vmem>>, vector<1x16x16xf32>
    %1 = vector.shape_cast %0 : vector<1x16x16xf32> to vector<16x16xf32>
    %2 = arith.truncf %1 : vector<16x16xf32> to vector<16x16xbf16>
    %cst = arith.constant 0.000000e+00 : f32
    %3 = vector.broadcast %cst : f32 to vector<16x16xf32>
    %c0_2 = arith.constant 0 : index
    %c0_3 = arith.constant 0 : index
    %c0_4 = arith.constant 0 : index
    %4 = vector.load %arg2[%c0_2, %c0_3, %c0_4] : memref<1x16x16xbf16, #tpu.memory_space<vmem>>, vector<1x16x16xbf16>
    %5 = vector.shape_cast %4 : vector<1x16x16xbf16> to vector<16x16xbf16>
    %cst_5 = arith.constant dense<0.000000e+00> : vector<16x16xf32>
    %6 = tpu.matmul %5, %2, %cst_5 {dimension_numbers = #tpu.dot_dimension_numbers<[1], [0], [0], [1], [0, 0, 1, 1], [], []>} : vector<16x16xbf16>, vector<16x16xbf16>, vector<16x16xf32> -> vector<16x16xf32>
    %7 = arith.addf %3, %6 : vector<16x16xf32>
    %c0_6 = arith.constant 0 : index
    %c0_7 = arith.constant 0 : index
    %8 = vector.load %arg3[%c0_6, %c0_7] : memref<16x1xf32, #tpu.memory_space<vmem>>, vector<16x1xf32>
    %9 = vector.broadcast %8 : vector<16x1xf32> to vector<16x16xf32>
    %10 = arith.addf %7, %9 : vector<16x16xf32>
    %c0_8 = arith.constant 0 : index
    %c0_9 = arith.constant 0 : index
    %c0_10 = arith.constant 0 : index
    %11 = vector.load %arg4[%c0_8, %c0_9, %c0_10] : memref<1x16x16xf32, #tpu.memory_space<vmem>>, vector<1x16x16xf32>
    %12 = vector.shape_cast %11 : vector<1x16x16xf32> to vector<16x16xf32>
    %13 = arith.addf %10, %12 : vector<16x16xf32>
    %c0_11 = arith.constant 0 : index
    %c0_12 = arith.constant 0 : index
    %c0_13 = arith.constant 0 : index
    %14 = vector.load %arg5[%c0_11, %c0_12, %c0_13] : memref<1x16x16xf32, #tpu.memory_space<vmem>>, vector<1x16x16xf32>
    %15 = vector.shape_cast %14 : vector<1x16x16xf32> to vector<16x16xf32>
    %16 = vector.shape_cast %13 : vector<16x16xf32> to vector<1x16x16xf32>
    tpu.vector_store %arg5[%c0_11, %c0_12, %c0_13], %16 {strides = array<i32>} : memref<1x16x16xf32, #tpu.memory_space<vmem>>, vector<1x16x16xf32>,
    return
  }
  func.func @transform_0(%arg0: i32) -> (i32, i32, i32) {
    %c0_i32 = arith.constant 0 : i32
    %c0_i32_0 = arith.constant 0 : i32
    %c0_i32_1 = arith.constant 0 : i32
    return %arg0, %c0_i32, %c0_i32_0 : i32, i32, i32
  }
  func.func @transform_1(%arg0: i32) -> (i32, i32, i32) {
    %c0_i32 = arith.constant 0 : i32
    %c0_i32_0 = arith.constant 0 : i32
    %c0_i32_1 = arith.constant 0 : i32
    %c0_i32_2 = arith.constant 0 : i32
    return %c0_i32, %c0_i32_0, %c0_i32_1 : i32, i32, i32
  }
  func.func @transform_2(%arg0: i32) -> (i32, i32) {
    %c0_i32 = arith.constant 0 : i32
    %c0_i32_0 = arith.constant 0 : i32
    %c0_i32_1 = arith.constant 0 : i32
    return %c0_i32, %c0_i32_0 : i32, i32
  }
  func.func @transform_3(%arg0: i32) -> (i32, i32, i32) {
    %c0_i32 = arith.constant 0 : i32
    %c0_i32_0 = arith.constant 0 : i32
    %c0_i32_1 = arith.constant 0 : i32
    return %arg0, %c0_i32, %c0_i32_0 : i32, i32, i32
  }
  func.func @transform_4(%arg0: i32) -> (i32, i32, i32) {
    %c0_i32 = arith.constant 0 : i32
    %c0_i32_0 = arith.constant 0 : i32
    %c0_i32_1 = arith.constant 0 : i32
    return %arg0, %c0_i32, %c0_i32_0 : i32, i32, i32
  }
}

module attributes {stable_mosaic.version = 11 : i64} {
  func.func @_fused_conv_kernel(%arg0: i32, %arg1: memref<1x16x22xf32, #tpu.memory_space<vmem>>, %arg2: memref<3x16x16xbf16, #tpu.memory_space<vmem>>, %arg3: memref<16x1xf32, #tpu.memory_space<vmem>>, %arg4: memref<1x16x16xf32, #tpu.memory_space<vmem>>, %arg5: memref<1x16x16xf32, #tpu.memory_space<vmem>>) attributes {dimension_semantics = [#tpu.dimension_semantics<parallel>], iteration_bounds = array<i64: 2>, scalar_prefetch = 0 : i64, scratch_operands = 0 : i64, tpu.core_type = #tpu.core_type<tc>, window_params = [{transform_indices = @transform_0, window_bounds = array<i64: 1, 16, 22>}, {pipeline_mode = #tpu.pipeline_mode<synchronous>, transform_indices = @transform_1, window_bounds = array<i64: 3, 16, 16>}, {pipeline_mode = #tpu.pipeline_mode<synchronous>, transform_indices = @transform_2, window_bounds = array<i64: 16, 1>}, {transform_indices = @transform_3, window_bounds = array<i64: 1, 16, 16>}, {transform_indices = @transform_4, window_bounds = array<i64: 1, 16, 16>}]} {
    %c0 = arith.constant 0 : index
    %c0_0 = arith.constant 0 : index
    %c0_1 = arith.constant 0 : index
    %0 = vector.load %arg1[%c0, %c0_0, %c0_1] : memref<1x16x22xf32, #tpu.memory_space<vmem>>, vector<1x16x22xf32>
    %1 = vector.shape_cast %0 : vector<1x16x22xf32> to vector<16x22xf32>
    %cst = arith.constant 0.000000e+00 : f32
    %2 = vector.broadcast %cst : f32 to vector<16x22xf32>
    %3 = arith.cmpf oge, %1, %2 : vector<16x22xf32>
    %cst_2 = arith.constant 1.000000e-01 : f32
    %4 = vector.broadcast %cst_2 : f32 to vector<16x22xf32>
    %5 = arith.mulf %4, %1 : vector<16x22xf32>
    %6 = arith.select %3, %1, %5 : vector<16x22xi1>, vector<16x22xf32>
    %7 = arith.truncf %6 : vector<16x22xf32> to vector<16x22xbf16>
    %cst_3 = arith.constant 0.000000e+00 : f32
    %8 = vector.broadcast %cst_3 : f32 to vector<16x16xf32>
    %c0_4 = arith.constant 0 : index
    %c0_5 = arith.constant 0 : index
    %c0_6 = arith.constant 0 : index
    %9 = vector.load %arg2[%c0_4, %c0_5, %c0_6] : memref<3x16x16xbf16, #tpu.memory_space<vmem>>, vector<1x16x16xbf16>
    %10 = vector.shape_cast %9 : vector<1x16x16xbf16> to vector<16x16xbf16>
    %11 = vector.extract_strided_slice %7 {offsets = [0, 0], sizes = [16, 16], strides = [1, 1]} : vector<16x22xbf16> to vector<16x16xbf16>
    %cst_7 = arith.constant dense<0.000000e+00> : vector<16x16xf32>
    %12 = tpu.matmul %10, %11, %cst_7 {dimension_numbers = #tpu.dot_dimension_numbers<[1], [0], [0], [1], [0, 0, 1, 1], [], []>} : vector<16x16xbf16>, vector<16x16xbf16>, vector<16x16xf32> -> vector<16x16xf32>
    %13 = arith.addf %8, %12 : vector<16x16xf32>
    %c1 = arith.constant 1 : index
    %c0_8 = arith.constant 0 : index
    %c0_9 = arith.constant 0 : index
    %14 = vector.load %arg2[%c1, %c0_8, %c0_9] : memref<3x16x16xbf16, #tpu.memory_space<vmem>>, vector<1x16x16xbf16>
    %15 = vector.shape_cast %14 : vector<1x16x16xbf16> to vector<16x16xbf16>
    %16 = vector.extract_strided_slice %7 {offsets = [0, 3], sizes = [16, 16], strides = [1, 1]} : vector<16x22xbf16> to vector<16x16xbf16>
    %cst_10 = arith.constant dense<0.000000e+00> : vector<16x16xf32>
    %17 = tpu.matmul %15, %16, %cst_10 {dimension_numbers = #tpu.dot_dimension_numbers<[1], [0], [0], [1], [0, 0, 1, 1], [], []>} : vector<16x16xbf16>, vector<16x16xbf16>, vector<16x16xf32> -> vector<16x16xf32>
    %18 = arith.addf %13, %17 : vector<16x16xf32>
    %c2 = arith.constant 2 : index
    %c0_11 = arith.constant 0 : index
    %c0_12 = arith.constant 0 : index
    %19 = vector.load %arg2[%c2, %c0_11, %c0_12] : memref<3x16x16xbf16, #tpu.memory_space<vmem>>, vector<1x16x16xbf16>
    %20 = vector.shape_cast %19 : vector<1x16x16xbf16> to vector<16x16xbf16>
    %21 = vector.extract_strided_slice %7 {offsets = [0, 6], sizes = [16, 16], strides = [1, 1]} : vector<16x22xbf16> to vector<16x16xbf16>
    %cst_13 = arith.constant dense<0.000000e+00> : vector<16x16xf32>
    %22 = tpu.matmul %20, %21, %cst_13 {dimension_numbers = #tpu.dot_dimension_numbers<[1], [0], [0], [1], [0, 0, 1, 1], [], []>} : vector<16x16xbf16>, vector<16x16xbf16>, vector<16x16xf32> -> vector<16x16xf32>
    %23 = arith.addf %18, %22 : vector<16x16xf32>
    %c0_14 = arith.constant 0 : index
    %c0_15 = arith.constant 0 : index
    %24 = vector.load %arg3[%c0_14, %c0_15] : memref<16x1xf32, #tpu.memory_space<vmem>>, vector<16x1xf32>
    %25 = vector.broadcast %24 : vector<16x1xf32> to vector<16x16xf32>
    %26 = arith.addf %23, %25 : vector<16x16xf32>
    %c0_16 = arith.constant 0 : index
    %c0_17 = arith.constant 0 : index
    %c0_18 = arith.constant 0 : index
    %27 = vector.load %arg4[%c0_16, %c0_17, %c0_18] : memref<1x16x16xf32, #tpu.memory_space<vmem>>, vector<1x16x16xf32>
    %28 = vector.shape_cast %27 : vector<1x16x16xf32> to vector<16x16xf32>
    %29 = arith.addf %26, %28 : vector<16x16xf32>
    %c0_19 = arith.constant 0 : index
    %c0_20 = arith.constant 0 : index
    %c0_21 = arith.constant 0 : index
    %30 = vector.load %arg5[%c0_19, %c0_20, %c0_21] : memref<1x16x16xf32, #tpu.memory_space<vmem>>, vector<1x16x16xf32>
    %31 = vector.shape_cast %30 : vector<1x16x16xf32> to vector<16x16xf32>
    %32 = vector.shape_cast %29 : vector<16x16xf32> to vector<1x16x16xf32>
    tpu.vector_store %arg5[%c0_19, %c0_20, %c0_21], %32 {strides = array<i32>} : memref<1x16x16xf32, #tpu.memory_space<vmem>>, vector<1x16x16xf32>,
    return
  }
  func.func @transform_0(%arg0: i32) -> (i32, i32, i32) {
    %c0_i32 = arith.constant 0 : i32
    %c0_i32_0 = arith.constant 0 : i32
    %c0_i32_1 = arith.constant 0 : i32
    return %arg0, %c0_i32, %c0_i32_0 : i32, i32, i32
  }
  func.func @transform_1(%arg0: i32) -> (i32, i32, i32) {
    %c0_i32 = arith.constant 0 : i32
    %c0_i32_0 = arith.constant 0 : i32
    %c0_i32_1 = arith.constant 0 : i32
    %c0_i32_2 = arith.constant 0 : i32
    return %c0_i32, %c0_i32_0, %c0_i32_1 : i32, i32, i32
  }
  func.func @transform_2(%arg0: i32) -> (i32, i32) {
    %c0_i32 = arith.constant 0 : i32
    %c0_i32_0 = arith.constant 0 : i32
    %c0_i32_1 = arith.constant 0 : i32
    return %c0_i32, %c0_i32_0 : i32, i32
  }
  func.func @transform_3(%arg0: i32) -> (i32, i32, i32) {
    %c0_i32 = arith.constant 0 : i32
    %c0_i32_0 = arith.constant 0 : i32
    %c0_i32_1 = arith.constant 0 : i32
    return %arg0, %c0_i32, %c0_i32_0 : i32, i32, i32
  }
  func.func @transform_4(%arg0: i32) -> (i32, i32, i32) {
    %c0_i32 = arith.constant 0 : i32
    %c0_i32_0 = arith.constant 0 : i32
    %c0_i32_1 = arith.constant 0 : i32
    return %arg0, %c0_i32, %c0_i32_0 : i32, i32, i32
  }
}

module attributes {stable_mosaic.version = 11 : i64} {
  func.func @_fused_conv_kernel(%arg0: i32, %arg1: memref<1x16x4xf32, #tpu.memory_space<vmem>>, %arg2: memref<1x32x16xbf16, #tpu.memory_space<vmem>>, %arg3: memref<32x1xf32, #tpu.memory_space<vmem>>, %arg4: memref<1x32x4xf32, #tpu.memory_space<vmem>>, %arg5: memref<1x32x4xf32, #tpu.memory_space<vmem>>) attributes {dimension_semantics = [#tpu.dimension_semantics<parallel>], iteration_bounds = array<i64: 2>, scalar_prefetch = 0 : i64, scratch_operands = 0 : i64, tpu.core_type = #tpu.core_type<tc>, window_params = [{transform_indices = @transform_0, window_bounds = array<i64: 1, 16, 4>}, {pipeline_mode = #tpu.pipeline_mode<synchronous>, transform_indices = @transform_1, window_bounds = array<i64: 1, 32, 16>}, {pipeline_mode = #tpu.pipeline_mode<synchronous>, transform_indices = @transform_2, window_bounds = array<i64: 32, 1>}, {transform_indices = @transform_3, window_bounds = array<i64: 1, 32, 4>}, {transform_indices = @transform_4, window_bounds = array<i64: 1, 32, 4>}]} {
    %c0 = arith.constant 0 : index
    %c0_0 = arith.constant 0 : index
    %c0_1 = arith.constant 0 : index
    %0 = vector.load %arg1[%c0, %c0_0, %c0_1] : memref<1x16x4xf32, #tpu.memory_space<vmem>>, vector<1x16x4xf32>
    %1 = vector.shape_cast %0 : vector<1x16x4xf32> to vector<16x4xf32>
    %2 = arith.truncf %1 : vector<16x4xf32> to vector<16x4xbf16>
    %cst = arith.constant 0.000000e+00 : f32
    %3 = vector.broadcast %cst : f32 to vector<32x4xf32>
    %c0_2 = arith.constant 0 : index
    %c0_3 = arith.constant 0 : index
    %c0_4 = arith.constant 0 : index
    %4 = vector.load %arg2[%c0_2, %c0_3, %c0_4] : memref<1x32x16xbf16, #tpu.memory_space<vmem>>, vector<1x32x16xbf16>
    %5 = vector.shape_cast %4 : vector<1x32x16xbf16> to vector<32x16xbf16>
    %cst_5 = arith.constant dense<0.000000e+00> : vector<32x4xf32>
    %6 = tpu.matmul %5, %2, %cst_5 {dimension_numbers = #tpu.dot_dimension_numbers<[1], [0], [0], [1], [0, 0, 1, 1], [], []>} : vector<32x16xbf16>, vector<16x4xbf16>, vector<32x4xf32> -> vector<32x4xf32>
    %7 = arith.addf %3, %6 : vector<32x4xf32>
    %c0_6 = arith.constant 0 : index
    %c0_7 = arith.constant 0 : index
    %8 = vector.load %arg3[%c0_6, %c0_7] : memref<32x1xf32, #tpu.memory_space<vmem>>, vector<32x1xf32>
    %9 = vector.broadcast %8 : vector<32x1xf32> to vector<32x4xf32>
    %10 = arith.addf %7, %9 : vector<32x4xf32>
    %c0_8 = arith.constant 0 : index
    %c0_9 = arith.constant 0 : index
    %c0_10 = arith.constant 0 : index
    %11 = vector.load %arg4[%c0_8, %c0_9, %c0_10] : memref<1x32x4xf32, #tpu.memory_space<vmem>>, vector<1x32x4xf32>
    %12 = vector.shape_cast %11 : vector<1x32x4xf32> to vector<32x4xf32>
    %13 = arith.addf %10, %12 : vector<32x4xf32>
    %c0_11 = arith.constant 0 : index
    %c0_12 = arith.constant 0 : index
    %c0_13 = arith.constant 0 : index
    %14 = vector.load %arg5[%c0_11, %c0_12, %c0_13] : memref<1x32x4xf32, #tpu.memory_space<vmem>>, vector<1x32x4xf32>
    %15 = vector.shape_cast %14 : vector<1x32x4xf32> to vector<32x4xf32>
    %16 = vector.shape_cast %13 : vector<32x4xf32> to vector<1x32x4xf32>
    tpu.vector_store %arg5[%c0_11, %c0_12, %c0_13], %16 {strides = array<i32>} : memref<1x32x4xf32, #tpu.memory_space<vmem>>, vector<1x32x4xf32>,
    return
  }
  func.func @transform_0(%arg0: i32) -> (i32, i32, i32) {
    %c0_i32 = arith.constant 0 : i32
    %c0_i32_0 = arith.constant 0 : i32
    %c0_i32_1 = arith.constant 0 : i32
    return %arg0, %c0_i32, %c0_i32_0 : i32, i32, i32
  }
  func.func @transform_1(%arg0: i32) -> (i32, i32, i32) {
    %c0_i32 = arith.constant 0 : i32
    %c0_i32_0 = arith.constant 0 : i32
    %c0_i32_1 = arith.constant 0 : i32
    %c0_i32_2 = arith.constant 0 : i32
    return %c0_i32, %c0_i32_0, %c0_i32_1 : i32, i32, i32
  }
  func.func @transform_2(%arg0: i32) -> (i32, i32) {
    %c0_i32 = arith.constant 0 : i32
    %c0_i32_0 = arith.constant 0 : i32
    %c0_i32_1 = arith.constant 0 : i32
    return %c0_i32, %c0_i32_0 : i32, i32
  }
  func.func @transform_3(%arg0: i32) -> (i32, i32, i32) {
    %c0_i32 = arith.constant 0 : i32
    %c0_i32_0 = arith.constant 0 : i32
    %c0_i32_1 = arith.constant 0 : i32
    return %arg0, %c0_i32, %c0_i32_0 : i32, i32, i32
  }
  func.func @transform_4(%arg0: i32) -> (i32, i32, i32) {
    %c0_i32 = arith.constant 0 : i32
    %c0_i32_0 = arith.constant 0 : i32
    %c0_i32_1 = arith.constant 0 : i32
    return %arg0, %c0_i32, %c0_i32_0 : i32, i32, i32
  }
}

module attributes {stable_mosaic.version = 11 : i64} {
  func.func @_fused_conv_kernel(%arg0: i32, %arg1: memref<1x32x6xf32, #tpu.memory_space<vmem>>, %arg2: memref<3x32x32xbf16, #tpu.memory_space<vmem>>, %arg3: memref<32x1xf32, #tpu.memory_space<vmem>>, %arg4: memref<1x32x4xf32, #tpu.memory_space<vmem>>, %arg5: memref<1x32x4xf32, #tpu.memory_space<vmem>>) attributes {dimension_semantics = [#tpu.dimension_semantics<parallel>], iteration_bounds = array<i64: 2>, scalar_prefetch = 0 : i64, scratch_operands = 0 : i64, tpu.core_type = #tpu.core_type<tc>, window_params = [{transform_indices = @transform_0, window_bounds = array<i64: 1, 32, 6>}, {pipeline_mode = #tpu.pipeline_mode<synchronous>, transform_indices = @transform_1, window_bounds = array<i64: 3, 32, 32>}, {pipeline_mode = #tpu.pipeline_mode<synchronous>, transform_indices = @transform_2, window_bounds = array<i64: 32, 1>}, {transform_indices = @transform_3, window_bounds = array<i64: 1, 32, 4>}, {transform_indices = @transform_4, window_bounds = array<i64: 1, 32, 4>}]} {
    %c0 = arith.constant 0 : index
    %c0_0 = arith.constant 0 : index
    %c0_1 = arith.constant 0 : index
    %0 = vector.load %arg1[%c0, %c0_0, %c0_1] : memref<1x32x6xf32, #tpu.memory_space<vmem>>, vector<1x32x6xf32>
    %1 = vector.shape_cast %0 : vector<1x32x6xf32> to vector<32x6xf32>
    %cst = arith.constant 0.000000e+00 : f32
    %2 = vector.broadcast %cst : f32 to vector<32x6xf32>
    %3 = arith.cmpf oge, %1, %2 : vector<32x6xf32>
    %cst_2 = arith.constant 1.000000e-01 : f32
    %4 = vector.broadcast %cst_2 : f32 to vector<32x6xf32>
    %5 = arith.mulf %4, %1 : vector<32x6xf32>
    %6 = arith.select %3, %1, %5 : vector<32x6xi1>, vector<32x6xf32>
    %7 = arith.truncf %6 : vector<32x6xf32> to vector<32x6xbf16>
    %cst_3 = arith.constant 0.000000e+00 : f32
    %8 = vector.broadcast %cst_3 : f32 to vector<32x4xf32>
    %c0_4 = arith.constant 0 : index
    %c0_5 = arith.constant 0 : index
    %c0_6 = arith.constant 0 : index
    %9 = vector.load %arg2[%c0_4, %c0_5, %c0_6] : memref<3x32x32xbf16, #tpu.memory_space<vmem>>, vector<1x32x32xbf16>
    %10 = vector.shape_cast %9 : vector<1x32x32xbf16> to vector<32x32xbf16>
    %11 = vector.extract_strided_slice %7 {offsets = [0, 0], sizes = [32, 4], strides = [1, 1]} : vector<32x6xbf16> to vector<32x4xbf16>
    %cst_7 = arith.constant dense<0.000000e+00> : vector<32x4xf32>
    %12 = tpu.matmul %10, %11, %cst_7 {dimension_numbers = #tpu.dot_dimension_numbers<[1], [0], [0], [1], [0, 0, 1, 1], [], []>} : vector<32x32xbf16>, vector<32x4xbf16>, vector<32x4xf32> -> vector<32x4xf32>
    %13 = arith.addf %8, %12 : vector<32x4xf32>
    %c1 = arith.constant 1 : index
    %c0_8 = arith.constant 0 : index
    %c0_9 = arith.constant 0 : index
    %14 = vector.load %arg2[%c1, %c0_8, %c0_9] : memref<3x32x32xbf16, #tpu.memory_space<vmem>>, vector<1x32x32xbf16>
    %15 = vector.shape_cast %14 : vector<1x32x32xbf16> to vector<32x32xbf16>
    %16 = vector.extract_strided_slice %7 {offsets = [0, 1], sizes = [32, 4], strides = [1, 1]} : vector<32x6xbf16> to vector<32x4xbf16>
    %cst_10 = arith.constant dense<0.000000e+00> : vector<32x4xf32>
    %17 = tpu.matmul %15, %16, %cst_10 {dimension_numbers = #tpu.dot_dimension_numbers<[1], [0], [0], [1], [0, 0, 1, 1], [], []>} : vector<32x32xbf16>, vector<32x4xbf16>, vector<32x4xf32> -> vector<32x4xf32>
    %18 = arith.addf %13, %17 : vector<32x4xf32>
    %c2 = arith.constant 2 : index
    %c0_11 = arith.constant 0 : index
    %c0_12 = arith.constant 0 : index
    %19 = vector.load %arg2[%c2, %c0_11, %c0_12] : memref<3x32x32xbf16, #tpu.memory_space<vmem>>, vector<1x32x32xbf16>
    %20 = vector.shape_cast %19 : vector<1x32x32xbf16> to vector<32x32xbf16>
    %21 = vector.extract_strided_slice %7 {offsets = [0, 2], sizes = [32, 4], strides = [1, 1]} : vector<32x6xbf16> to vector<32x4xbf16>
    %cst_13 = arith.constant dense<0.000000e+00> : vector<32x4xf32>
    %22 = tpu.matmul %20, %21, %cst_13 {dimension_numbers = #tpu.dot_dimension_numbers<[1], [0], [0], [1], [0, 0, 1, 1], [], []>} : vector<32x32xbf16>, vector<32x4xbf16>, vector<32x4xf32> -> vector<32x4xf32>
    %23 = arith.addf %18, %22 : vector<32x4xf32>
    %c0_14 = arith.constant 0 : index
    %c0_15 = arith.constant 0 : index
    %24 = vector.load %arg3[%c0_14, %c0_15] : memref<32x1xf32, #tpu.memory_space<vmem>>, vector<32x1xf32>
    %25 = vector.broadcast %24 : vector<32x1xf32> to vector<32x4xf32>
    %26 = arith.addf %23, %25 : vector<32x4xf32>
    %c0_16 = arith.constant 0 : index
    %c0_17 = arith.constant 0 : index
    %c0_18 = arith.constant 0 : index
    %27 = vector.load %arg4[%c0_16, %c0_17, %c0_18] : memref<1x32x4xf32, #tpu.memory_space<vmem>>, vector<1x32x4xf32>
    %28 = vector.shape_cast %27 : vector<1x32x4xf32> to vector<32x4xf32>
    %29 = arith.addf %26, %28 : vector<32x4xf32>
    %c0_19 = arith.constant 0 : index
    %c0_20 = arith.constant 0 : index
    %c0_21 = arith.constant 0 : index
    %30 = vector.load %arg5[%c0_19, %c0_20, %c0_21] : memref<1x32x4xf32, #tpu.memory_space<vmem>>, vector<1x32x4xf32>
    %31 = vector.shape_cast %30 : vector<1x32x4xf32> to vector<32x4xf32>
    %32 = vector.shape_cast %29 : vector<32x4xf32> to vector<1x32x4xf32>
    tpu.vector_store %arg5[%c0_19, %c0_20, %c0_21], %32 {strides = array<i32>} : memref<1x32x4xf32, #tpu.memory_space<vmem>>, vector<1x32x4xf32>,
    return
  }
  func.func @transform_0(%arg0: i32) -> (i32, i32, i32) {
    %c0_i32 = arith.constant 0 : i32
    %c0_i32_0 = arith.constant 0 : i32
    %c0_i32_1 = arith.constant 0 : i32
    return %arg0, %c0_i32, %c0_i32_0 : i32, i32, i32
  }
  func.func @transform_1(%arg0: i32) -> (i32, i32, i32) {
    %c0_i32 = arith.constant 0 : i32
    %c0_i32_0 = arith.constant 0 : i32
    %c0_i32_1 = arith.constant 0 : i32
    %c0_i32_2 = arith.constant 0 : i32
    return %c0_i32, %c0_i32_0, %c0_i32_1 : i32, i32, i32
  }
  func.func @transform_2(%arg0: i32) -> (i32, i32) {
    %c0_i32 = arith.constant 0 : i32
    %c0_i32_0 = arith.constant 0 : i32
    %c0_i32_1 = arith.constant 0 : i32
    return %c0_i32, %c0_i32_0 : i32, i32
  }
  func.func @transform_3(%arg0: i32) -> (i32, i32, i32) {
    %c0_i32 = arith.constant 0 : i32
    %c0_i32_0 = arith.constant 0 : i32
    %c0_i32_1 = arith.constant 0 : i32
    return %arg0, %c0_i32, %c0_i32_0 : i32, i32, i32
  }
  func.func @transform_4(%arg0: i32) -> (i32, i32, i32) {
    %c0_i32 = arith.constant 0 : i32
    %c0_i32_0 = arith.constant 0 : i32
    %c0_i32_1 = arith.constant 0 : i32
    return %arg0, %c0_i32, %c0_i32_0 : i32, i32, i32
  }
}

module attributes {stable_mosaic.version = 11 : i64} {
  func.func @_fused_conv_kernel(%arg0: i32, %arg1: memref<1x64x5xf32, #tpu.memory_space<vmem>>, %arg2: memref<2x32x64xbf16, #tpu.memory_space<vmem>>, %arg3: memref<32x1xf32, #tpu.memory_space<vmem>>, %arg4: memref<1x32x4xf32, #tpu.memory_space<vmem>>) attributes {dimension_semantics = [#tpu.dimension_semantics<parallel>], iteration_bounds = array<i64: 2>, scalar_prefetch = 0 : i64, scratch_operands = 0 : i64, tpu.core_type = #tpu.core_type<tc>, window_params = [{transform_indices = @transform_0, window_bounds = array<i64: 1, 64, 5>}, {pipeline_mode = #tpu.pipeline_mode<synchronous>, transform_indices = @transform_1, window_bounds = array<i64: 2, 32, 64>}, {pipeline_mode = #tpu.pipeline_mode<synchronous>, transform_indices = @transform_2, window_bounds = array<i64: 32, 1>}, {transform_indices = @transform_3, window_bounds = array<i64: 1, 32, 4>}]} {
    %c0 = arith.constant 0 : index
    %c0_0 = arith.constant 0 : index
    %c0_1 = arith.constant 0 : index
    %0 = vector.load %arg1[%c0, %c0_0, %c0_1] : memref<1x64x5xf32, #tpu.memory_space<vmem>>, vector<1x64x5xf32>
    %1 = vector.shape_cast %0 : vector<1x64x5xf32> to vector<64x5xf32>
    %cst = arith.constant 0.000000e+00 : f32
    %2 = vector.broadcast %cst : f32 to vector<64x5xf32>
    %3 = arith.cmpf oge, %1, %2 : vector<64x5xf32>
    %cst_2 = arith.constant 1.000000e-01 : f32
    %4 = vector.broadcast %cst_2 : f32 to vector<64x5xf32>
    %5 = arith.mulf %4, %1 : vector<64x5xf32>
    %6 = arith.select %3, %1, %5 : vector<64x5xi1>, vector<64x5xf32>
    %7 = arith.truncf %6 : vector<64x5xf32> to vector<64x5xbf16>
    %cst_3 = arith.constant 0.000000e+00 : f32
    %8 = vector.broadcast %cst_3 : f32 to vector<32x4xf32>
    %c0_4 = arith.constant 0 : index
    %c0_5 = arith.constant 0 : index
    %c0_6 = arith.constant 0 : index
    %9 = vector.load %arg2[%c0_4, %c0_5, %c0_6] : memref<2x32x64xbf16, #tpu.memory_space<vmem>>, vector<1x32x64xbf16>
    %10 = vector.shape_cast %9 : vector<1x32x64xbf16> to vector<32x64xbf16>
    %11 = vector.extract_strided_slice %7 {offsets = [0, 0], sizes = [64, 4], strides = [1, 1]} : vector<64x5xbf16> to vector<64x4xbf16>
    %cst_7 = arith.constant dense<0.000000e+00> : vector<32x4xf32>
    %12 = tpu.matmul %10, %11, %cst_7 {dimension_numbers = #tpu.dot_dimension_numbers<[1], [0], [0], [1], [0, 0, 1, 1], [], []>} : vector<32x64xbf16>, vector<64x4xbf16>, vector<32x4xf32> -> vector<32x4xf32>
    %13 = arith.addf %8, %12 : vector<32x4xf32>
    %c1 = arith.constant 1 : index
    %c0_8 = arith.constant 0 : index
    %c0_9 = arith.constant 0 : index
    %14 = vector.load %arg2[%c1, %c0_8, %c0_9] : memref<2x32x64xbf16, #tpu.memory_space<vmem>>, vector<1x32x64xbf16>
    %15 = vector.shape_cast %14 : vector<1x32x64xbf16> to vector<32x64xbf16>
    %16 = vector.extract_strided_slice %7 {offsets = [0, 1], sizes = [64, 4], strides = [1, 1]} : vector<64x5xbf16> to vector<64x4xbf16>
    %cst_10 = arith.constant dense<0.000000e+00> : vector<32x4xf32>
    %17 = tpu.matmul %15, %16, %cst_10 {dimension_numbers = #tpu.dot_dimension_numbers<[1], [0], [0], [1], [0, 0, 1, 1], [], []>} : vector<32x64xbf16>, vector<64x4xbf16>, vector<32x4xf32> -> vector<32x4xf32>
    %18 = arith.addf %13, %17 : vector<32x4xf32>
    %c0_11 = arith.constant 0 : index
    %c0_12 = arith.constant 0 : index
    %19 = vector.load %arg3[%c0_11, %c0_12] : memref<32x1xf32, #tpu.memory_space<vmem>>, vector<32x1xf32>
    %20 = vector.broadcast %19 : vector<32x1xf32> to vector<32x4xf32>
    %21 = arith.addf %18, %20 : vector<32x4xf32>
    %c0_13 = arith.constant 0 : index
    %c0_14 = arith.constant 0 : index
    %c0_15 = arith.constant 0 : index
    %22 = vector.load %arg4[%c0_13, %c0_14, %c0_15] : memref<1x32x4xf32, #tpu.memory_space<vmem>>, vector<1x32x4xf32>
    %23 = vector.shape_cast %22 : vector<1x32x4xf32> to vector<32x4xf32>
    %24 = vector.shape_cast %21 : vector<32x4xf32> to vector<1x32x4xf32>
    tpu.vector_store %arg4[%c0_13, %c0_14, %c0_15], %24 {strides = array<i32>} : memref<1x32x4xf32, #tpu.memory_space<vmem>>, vector<1x32x4xf32>,
    return
  }
  func.func @transform_0(%arg0: i32) -> (i32, i32, i32) {
    %c0_i32 = arith.constant 0 : i32
    %c0_i32_0 = arith.constant 0 : i32
    %c0_i32_1 = arith.constant 0 : i32
    return %arg0, %c0_i32, %c0_i32_0 : i32, i32, i32
  }
  func.func @transform_1(%arg0: i32) -> (i32, i32, i32) {
    %c0_i32 = arith.constant 0 : i32
    %c0_i32_0 = arith.constant 0 : i32
    %c0_i32_1 = arith.constant 0 : i32
    %c0_i32_2 = arith.constant 0 : i32
    return %c0_i32, %c0_i32_0, %c0_i32_1 : i32, i32, i32
  }
  func.func @transform_2(%arg0: i32) -> (i32, i32) {
    %c0_i32 = arith.constant 0 : i32
    %c0_i32_0 = arith.constant 0 : i32
    %c0_i32_1 = arith.constant 0 : i32
    return %c0_i32, %c0_i32_0 : i32, i32
  }
  func.func @transform_3(%arg0: i32) -> (i32, i32, i32) {
    %c0_i32 = arith.constant 0 : i32
    %c0_i32_0 = arith.constant 0 : i32
    %c0_i32_1 = arith.constant 0 : i32
    return %arg0, %c0_i32, %c0_i32_0 : i32, i32, i32
  }
}

module attributes {stable_mosaic.version = 11 : i64} {
  func.func @_fused_conv_kernel(%arg0: i32, %arg1: memref<1x32x10xf32, #tpu.memory_space<vmem>>, %arg2: memref<3x32x32xbf16, #tpu.memory_space<vmem>>, %arg3: memref<32x1xf32, #tpu.memory_space<vmem>>, %arg4: memref<1x32x4xf32, #tpu.memory_space<vmem>>, %arg5: memref<1x32x4xf32, #tpu.memory_space<vmem>>) attributes {dimension_semantics = [#tpu.dimension_semantics<parallel>], iteration_bounds = array<i64: 2>, scalar_prefetch = 0 : i64, scratch_operands = 0 : i64, tpu.core_type = #tpu.core_type<tc>, window_params = [{transform_indices = @transform_0, window_bounds = array<i64: 1, 32, 10>}, {pipeline_mode = #tpu.pipeline_mode<synchronous>, transform_indices = @transform_1, window_bounds = array<i64: 3, 32, 32>}, {pipeline_mode = #tpu.pipeline_mode<synchronous>, transform_indices = @transform_2, window_bounds = array<i64: 32, 1>}, {transform_indices = @transform_3, window_bounds = array<i64: 1, 32, 4>}, {transform_indices = @transform_4, window_bounds = array<i64: 1, 32, 4>}]} {
    %c0 = arith.constant 0 : index
    %c0_0 = arith.constant 0 : index
    %c0_1 = arith.constant 0 : index
    %0 = vector.load %arg1[%c0, %c0_0, %c0_1] : memref<1x32x10xf32, #tpu.memory_space<vmem>>, vector<1x32x10xf32>
    %1 = vector.shape_cast %0 : vector<1x32x10xf32> to vector<32x10xf32>
    %cst = arith.constant 0.000000e+00 : f32
    %2 = vector.broadcast %cst : f32 to vector<32x10xf32>
    %3 = arith.cmpf oge, %1, %2 : vector<32x10xf32>
    %cst_2 = arith.constant 1.000000e-01 : f32
    %4 = vector.broadcast %cst_2 : f32 to vector<32x10xf32>
    %5 = arith.mulf %4, %1 : vector<32x10xf32>
    %6 = arith.select %3, %1, %5 : vector<32x10xi1>, vector<32x10xf32>
    %7 = arith.truncf %6 : vector<32x10xf32> to vector<32x10xbf16>
    %cst_3 = arith.constant 0.000000e+00 : f32
    %8 = vector.broadcast %cst_3 : f32 to vector<32x4xf32>
    %c0_4 = arith.constant 0 : index
    %c0_5 = arith.constant 0 : index
    %c0_6 = arith.constant 0 : index
    %9 = vector.load %arg2[%c0_4, %c0_5, %c0_6] : memref<3x32x32xbf16, #tpu.memory_space<vmem>>, vector<1x32x32xbf16>
    %10 = vector.shape_cast %9 : vector<1x32x32xbf16> to vector<32x32xbf16>
    %11 = vector.extract_strided_slice %7 {offsets = [0, 0], sizes = [32, 4], strides = [1, 1]} : vector<32x10xbf16> to vector<32x4xbf16>
    %cst_7 = arith.constant dense<0.000000e+00> : vector<32x4xf32>
    %12 = tpu.matmul %10, %11, %cst_7 {dimension_numbers = #tpu.dot_dimension_numbers<[1], [0], [0], [1], [0, 0, 1, 1], [], []>} : vector<32x32xbf16>, vector<32x4xbf16>, vector<32x4xf32> -> vector<32x4xf32>
    %13 = arith.addf %8, %12 : vector<32x4xf32>
    %c1 = arith.constant 1 : index
    %c0_8 = arith.constant 0 : index
    %c0_9 = arith.constant 0 : index
    %14 = vector.load %arg2[%c1, %c0_8, %c0_9] : memref<3x32x32xbf16, #tpu.memory_space<vmem>>, vector<1x32x32xbf16>
    %15 = vector.shape_cast %14 : vector<1x32x32xbf16> to vector<32x32xbf16>
    %16 = vector.extract_strided_slice %7 {offsets = [0, 3], sizes = [32, 4], strides = [1, 1]} : vector<32x10xbf16> to vector<32x4xbf16>
    %cst_10 = arith.constant dense<0.000000e+00> : vector<32x4xf32>
    %17 = tpu.matmul %15, %16, %cst_10 {dimension_numbers = #tpu.dot_dimension_numbers<[1], [0], [0], [1], [0, 0, 1, 1], [], []>} : vector<32x32xbf16>, vector<32x4xbf16>, vector<32x4xf32> -> vector<32x4xf32>
    %18 = arith.addf %13, %17 : vector<32x4xf32>
    %c2 = arith.constant 2 : index
    %c0_11 = arith.constant 0 : index
    %c0_12 = arith.constant 0 : index
    %19 = vector.load %arg2[%c2, %c0_11, %c0_12] : memref<3x32x32xbf16, #tpu.memory_space<vmem>>, vector<1x32x32xbf16>
    %20 = vector.shape_cast %19 : vector<1x32x32xbf16> to vector<32x32xbf16>
    %21 = vector.extract_strided_slice %7 {offsets = [0, 6], sizes = [32, 4], strides = [1, 1]} : vector<32x10xbf16> to vector<32x4xbf16>
    %cst_13 = arith.constant dense<0.000000e+00> : vector<32x4xf32>
    %22 = tpu.matmul %20, %21, %cst_13 {dimension_numbers = #tpu.dot_dimension_numbers<[1], [0], [0], [1], [0, 0, 1, 1], [], []>} : vector<32x32xbf16>, vector<32x4xbf16>, vector<32x4xf32> -> vector<32x4xf32>
    %23 = arith.addf %18, %22 : vector<32x4xf32>
    %c0_14 = arith.constant 0 : index
    %c0_15 = arith.constant 0 : index
    %24 = vector.load %arg3[%c0_14, %c0_15] : memref<32x1xf32, #tpu.memory_space<vmem>>, vector<32x1xf32>
    %25 = vector.broadcast %24 : vector<32x1xf32> to vector<32x4xf32>
    %26 = arith.addf %23, %25 : vector<32x4xf32>
    %c0_16 = arith.constant 0 : index
    %c0_17 = arith.constant 0 : index
    %c0_18 = arith.constant 0 : index
    %27 = vector.load %arg4[%c0_16, %c0_17, %c0_18] : memref<1x32x4xf32, #tpu.memory_space<vmem>>, vector<1x32x4xf32>
    %28 = vector.shape_cast %27 : vector<1x32x4xf32> to vector<32x4xf32>
    %29 = arith.addf %26, %28 : vector<32x4xf32>
    %c0_19 = arith.constant 0 : index
    %c0_20 = arith.constant 0 : index
    %c0_21 = arith.constant 0 : index
    %30 = vector.load %arg5[%c0_19, %c0_20, %c0_21] : memref<1x32x4xf32, #tpu.memory_space<vmem>>, vector<1x32x4xf32>
    %31 = vector.shape_cast %30 : vector<1x32x4xf32> to vector<32x4xf32>
    %32 = vector.shape_cast %29 : vector<32x4xf32> to vector<1x32x4xf32>
    tpu.vector_store %arg5[%c0_19, %c0_20, %c0_21], %32 {strides = array<i32>} : memref<1x32x4xf32, #tpu.memory_space<vmem>>, vector<1x32x4xf32>,
    return
  }
  func.func @transform_0(%arg0: i32) -> (i32, i32, i32) {
    %c0_i32 = arith.constant 0 : i32
    %c0_i32_0 = arith.constant 0 : i32
    %c0_i32_1 = arith.constant 0 : i32
    return %arg0, %c0_i32, %c0_i32_0 : i32, i32, i32
  }
  func.func @transform_1(%arg0: i32) -> (i32, i32, i32) {
    %c0_i32 = arith.constant 0 : i32
    %c0_i32_0 = arith.constant 0 : i32
    %c0_i32_1 = arith.constant 0 : i32
    %c0_i32_2 = arith.constant 0 : i32
    return %c0_i32, %c0_i32_0, %c0_i32_1 : i32, i32, i32
  }
  func.func @transform_2(%arg0: i32) -> (i32, i32) {
    %c0_i32 = arith.constant 0 : i32
    %c0_i32_0 = arith.constant 0 : i32
    %c0_i32_1 = arith.constant 0 : i32
    return %c0_i32, %c0_i32_0 : i32, i32
  }
  func.func @transform_3(%arg0: i32) -> (i32, i32, i32) {
    %c0_i32 = arith.constant 0 : i32
    %c0_i32_0 = arith.constant 0 : i32
    %c0_i32_1 = arith.constant 0 : i32
    return %arg0, %c0_i32, %c0_i32_0 : i32, i32, i32
  }
  func.func @transform_4(%arg0: i32) -> (i32, i32, i32) {
    %c0_i32 = arith.constant 0 : i32
    %c0_i32_0 = arith.constant 0 : i32
    %c0_i32_1 = arith.constant 0 : i32
    return %arg0, %c0_i32, %c0_i32_0 : i32, i32, i32
  }
}

module attributes {stable_mosaic.version = 11 : i64} {
  func.func @_fused_conv_kernel(%arg0: i32, %arg1: memref<1x16x1xf32, #tpu.memory_space<vmem>>, %arg2: memref<1x64x16xbf16, #tpu.memory_space<vmem>>, %arg3: memref<64x1xf32, #tpu.memory_space<vmem>>, %arg4: memref<1x64x1xf32, #tpu.memory_space<vmem>>, %arg5: memref<1x64x1xf32, #tpu.memory_space<vmem>>) attributes {dimension_semantics = [#tpu.dimension_semantics<parallel>], iteration_bounds = array<i64: 2>, scalar_prefetch = 0 : i64, scratch_operands = 0 : i64, tpu.core_type = #tpu.core_type<tc>, window_params = [{transform_indices = @transform_0, window_bounds = array<i64: 1, 16, 1>}, {pipeline_mode = #tpu.pipeline_mode<synchronous>, transform_indices = @transform_1, window_bounds = array<i64: 1, 64, 16>}, {pipeline_mode = #tpu.pipeline_mode<synchronous>, transform_indices = @transform_2, window_bounds = array<i64: 64, 1>}, {transform_indices = @transform_3, window_bounds = array<i64: 1, 64, 1>}, {transform_indices = @transform_4, window_bounds = array<i64: 1, 64, 1>}]} {
    %c0 = arith.constant 0 : index
    %c0_0 = arith.constant 0 : index
    %c0_1 = arith.constant 0 : index
    %0 = vector.load %arg1[%c0, %c0_0, %c0_1] : memref<1x16x1xf32, #tpu.memory_space<vmem>>, vector<1x16x1xf32>
    %1 = vector.shape_cast %0 : vector<1x16x1xf32> to vector<16x1xf32>
    %2 = arith.truncf %1 : vector<16x1xf32> to vector<16x1xbf16>
    %cst = arith.constant 0.000000e+00 : f32
    %3 = vector.broadcast %cst : f32 to vector<64x1xf32>
    %c0_2 = arith.constant 0 : index
    %c0_3 = arith.constant 0 : index
    %c0_4 = arith.constant 0 : index
    %4 = vector.load %arg2[%c0_2, %c0_3, %c0_4] : memref<1x64x16xbf16, #tpu.memory_space<vmem>>, vector<1x64x16xbf16>
    %5 = vector.shape_cast %4 : vector<1x64x16xbf16> to vector<64x16xbf16>
    %cst_5 = arith.constant dense<0.000000e+00> : vector<64x1xf32>
    %6 = tpu.matmul %5, %2, %cst_5 {dimension_numbers = #tpu.dot_dimension_numbers<[1], [0], [0], [1], [0, 0, 1, 1], [], []>} : vector<64x16xbf16>, vector<16x1xbf16>, vector<64x1xf32> -> vector<64x1xf32>
    %7 = arith.addf %3, %6 : vector<64x1xf32>
    %c0_6 = arith.constant 0 : index
    %c0_7 = arith.constant 0 : index
    %8 = vector.load %arg3[%c0_6, %c0_7] : memref<64x1xf32, #tpu.memory_space<vmem>>, vector<64x1xf32>
    %9 = arith.addf %7, %8 : vector<64x1xf32>
    %c0_8 = arith.constant 0 : index
    %c0_9 = arith.constant 0 : index
    %c0_10 = arith.constant 0 : index
    %10 = vector.load %arg4[%c0_8, %c0_9, %c0_10] : memref<1x64x1xf32, #tpu.memory_space<vmem>>, vector<1x64x1xf32>
    %11 = vector.shape_cast %10 : vector<1x64x1xf32> to vector<64x1xf32>
    %12 = arith.addf %9, %11 : vector<64x1xf32>
    %c0_11 = arith.constant 0 : index
    %c0_12 = arith.constant 0 : index
    %c0_13 = arith.constant 0 : index
    %13 = vector.load %arg5[%c0_11, %c0_12, %c0_13] : memref<1x64x1xf32, #tpu.memory_space<vmem>>, vector<1x64x1xf32>
    %14 = vector.shape_cast %13 : vector<1x64x1xf32> to vector<64x1xf32>
    %15 = vector.shape_cast %12 : vector<64x1xf32> to vector<1x64x1xf32>
    tpu.vector_store %arg5[%c0_11, %c0_12, %c0_13], %15 {strides = array<i32>} : memref<1x64x1xf32, #tpu.memory_space<vmem>>, vector<1x64x1xf32>,
    return
  }
  func.func @transform_0(%arg0: i32) -> (i32, i32, i32) {
    %c0_i32 = arith.constant 0 : i32
    %c0_i32_0 = arith.constant 0 : i32
    %c0_i32_1 = arith.constant 0 : i32
    return %arg0, %c0_i32, %c0_i32_0 : i32, i32, i32
  }
  func.func @transform_1(%arg0: i32) -> (i32, i32, i32) {
    %c0_i32 = arith.constant 0 : i32
    %c0_i32_0 = arith.constant 0 : i32
    %c0_i32_1 = arith.constant 0 : i32
    %c0_i32_2 = arith.constant 0 : i32
    return %c0_i32, %c0_i32_0, %c0_i32_1 : i32, i32, i32
  }
  func.func @transform_2(%arg0: i32) -> (i32, i32) {
    %c0_i32 = arith.constant 0 : i32
    %c0_i32_0 = arith.constant 0 : i32
    %c0_i32_1 = arith.constant 0 : i32
    return %c0_i32, %c0_i32_0 : i32, i32
  }
  func.func @transform_3(%arg0: i32) -> (i32, i32, i32) {
    %c0_i32 = arith.constant 0 : i32
    %c0_i32_0 = arith.constant 0 : i32
    %c0_i32_1 = arith.constant 0 : i32
    return %arg0, %c0_i32, %c0_i32_0 : i32, i32, i32
  }
  func.func @transform_4(%arg0: i32) -> (i32, i32, i32) {
    %c0_i32 = arith.constant 0 : i32
    %c0_i32_0 = arith.constant 0 : i32
    %c0_i32_1 = arith.constant 0 : i32
    return %arg0, %c0_i32, %c0_i32_0 : i32, i32, i32
  }
}

module attributes {stable_mosaic.version = 11 : i64} {
  func.func @_fused_conv_kernel(%arg0: i32, %arg1: memref<1x128x2xf32, #tpu.memory_space<vmem>>, %arg2: memref<2x64x128xbf16, #tpu.memory_space<vmem>>, %arg3: memref<64x1xf32, #tpu.memory_space<vmem>>, %arg4: memref<1x64x1xf32, #tpu.memory_space<vmem>>) attributes {dimension_semantics = [#tpu.dimension_semantics<parallel>], iteration_bounds = array<i64: 2>, scalar_prefetch = 0 : i64, scratch_operands = 0 : i64, tpu.core_type = #tpu.core_type<tc>, window_params = [{transform_indices = @transform_0, window_bounds = array<i64: 1, 128, 2>}, {pipeline_mode = #tpu.pipeline_mode<synchronous>, transform_indices = @transform_1, window_bounds = array<i64: 2, 64, 128>}, {pipeline_mode = #tpu.pipeline_mode<synchronous>, transform_indices = @transform_2, window_bounds = array<i64: 64, 1>}, {transform_indices = @transform_3, window_bounds = array<i64: 1, 64, 1>}]} {
    %c0 = arith.constant 0 : index
    %c0_0 = arith.constant 0 : index
    %c0_1 = arith.constant 0 : index
    %0 = vector.load %arg1[%c0, %c0_0, %c0_1] : memref<1x128x2xf32, #tpu.memory_space<vmem>>, vector<1x128x2xf32>
    %1 = vector.shape_cast %0 : vector<1x128x2xf32> to vector<128x2xf32>
    %cst = arith.constant 0.000000e+00 : f32
    %2 = vector.broadcast %cst : f32 to vector<128x2xf32>
    %3 = arith.cmpf oge, %1, %2 : vector<128x2xf32>
    %cst_2 = arith.constant 1.000000e-01 : f32
    %4 = vector.broadcast %cst_2 : f32 to vector<128x2xf32>
    %5 = arith.mulf %4, %1 : vector<128x2xf32>
    %6 = arith.select %3, %1, %5 : vector<128x2xi1>, vector<128x2xf32>
    %7 = arith.truncf %6 : vector<128x2xf32> to vector<128x2xbf16>
    %cst_3 = arith.constant 0.000000e+00 : f32
    %8 = vector.broadcast %cst_3 : f32 to vector<64x1xf32>
    %c0_4 = arith.constant 0 : index
    %c0_5 = arith.constant 0 : index
    %c0_6 = arith.constant 0 : index
    %9 = vector.load %arg2[%c0_4, %c0_5, %c0_6] : memref<2x64x128xbf16, #tpu.memory_space<vmem>>, vector<1x64x128xbf16>
    %10 = vector.shape_cast %9 : vector<1x64x128xbf16> to vector<64x128xbf16>
    %11 = vector.extract_strided_slice %7 {offsets = [0, 0], sizes = [128, 1], strides = [1, 1]} : vector<128x2xbf16> to vector<128x1xbf16>
    %cst_7 = arith.constant dense<0.000000e+00> : vector<64x1xf32>
    %12 = tpu.matmul %10, %11, %cst_7 {dimension_numbers = #tpu.dot_dimension_numbers<[1], [0], [0], [1], [0, 0, 1, 1], [], []>} : vector<64x128xbf16>, vector<128x1xbf16>, vector<64x1xf32> -> vector<64x1xf32>
    %13 = arith.addf %8, %12 : vector<64x1xf32>
    %c1 = arith.constant 1 : index
    %c0_8 = arith.constant 0 : index
    %c0_9 = arith.constant 0 : index
    %14 = vector.load %arg2[%c1, %c0_8, %c0_9] : memref<2x64x128xbf16, #tpu.memory_space<vmem>>, vector<1x64x128xbf16>
    %15 = vector.shape_cast %14 : vector<1x64x128xbf16> to vector<64x128xbf16>
    %16 = vector.extract_strided_slice %7 {offsets = [0, 1], sizes = [128, 1], strides = [1, 1]} : vector<128x2xbf16> to vector<128x1xbf16>
    %cst_10 = arith.constant dense<0.000000e+00> : vector<64x1xf32>
    %17 = tpu.matmul %15, %16, %cst_10 {dimension_numbers = #tpu.dot_dimension_numbers<[1], [0], [0], [1], [0, 0, 1, 1], [], []>} : vector<64x128xbf16>, vector<128x1xbf16>, vector<64x1xf32> -> vector<64x1xf32>
    %18 = arith.addf %13, %17 : vector<64x1xf32>
    %c0_11 = arith.constant 0 : index
    %c0_12 = arith.constant 0 : index
    %19 = vector.load %arg3[%c0_11, %c0_12] : memref<64x1xf32, #tpu.memory_space<vmem>>, vector<64x1xf32>
    %20 = arith.addf %18, %19 : vector<64x1xf32>
    %c0_13 = arith.constant 0 : index
    %c0_14 = arith.constant 0 : index
    %c0_15 = arith.constant 0 : index
    %21 = vector.load %arg4[%c0_13, %c0_14, %c0_15] : memref<1x64x1xf32, #tpu.memory_space<vmem>>, vector<1x64x1xf32>
    %22 = vector.shape_cast %21 : vector<1x64x1xf32> to vector<64x1xf32>
    %23 = vector.shape_cast %20 : vector<64x1xf32> to vector<1x64x1xf32>
    tpu.vector_store %arg4[%c0_13, %c0_14, %c0_15], %23 {strides = array<i32>} : memref<1x64x1xf32, #tpu.memory_space<vmem>>, vector<1x64x1xf32>,
    return
  }
  func.func @transform_0(%arg0: i32) -> (i32, i32, i32) {
    %c0_i32 = arith.constant 0 : i32
    %c0_i32_0 = arith.constant 0 : i32
    %c0_i32_1 = arith.constant 0 : i32
    return %arg0, %c0_i32, %c0_i32_0 : i32, i32, i32
  }
  func.func @transform_1(%arg0: i32) -> (i32, i32, i32) {
    %c0_i32 = arith.constant 0 : i32
    %c0_i32_0 = arith.constant 0 : i32
    %c0_i32_1 = arith.constant 0 : i32
    %c0_i32_2 = arith.constant 0 : i32
    return %c0_i32, %c0_i32_0, %c0_i32_1 : i32, i32, i32
  }
  func.func @transform_2(%arg0: i32) -> (i32, i32) {
    %c0_i32 = arith.constant 0 : i32
    %c0_i32_0 = arith.constant 0 : i32
    %c0_i32_1 = arith.constant 0 : i32
    return %c0_i32, %c0_i32_0 : i32, i32
  }
  func.func @transform_3(%arg0: i32) -> (i32, i32, i32) {
    %c0_i32 = arith.constant 0 : i32
    %c0_i32_0 = arith.constant 0 : i32
    %c0_i32_1 = arith.constant 0 : i32
    return %arg0, %c0_i32, %c0_i32_0 : i32, i32, i32
  }
}

module attributes {stable_mosaic.version = 11 : i64} {
  func.func @_fused_conv_kernel(%arg0: i32, %arg1: memref<1x64x3xf32, #tpu.memory_space<vmem>>, %arg2: memref<3x64x64xbf16, #tpu.memory_space<vmem>>, %arg3: memref<64x1xf32, #tpu.memory_space<vmem>>, %arg4: memref<1x64x1xf32, #tpu.memory_space<vmem>>, %arg5: memref<1x64x1xf32, #tpu.memory_space<vmem>>) attributes {dimension_semantics = [#tpu.dimension_semantics<parallel>], iteration_bounds = array<i64: 2>, scalar_prefetch = 0 : i64, scratch_operands = 0 : i64, tpu.core_type = #tpu.core_type<tc>, window_params = [{transform_indices = @transform_0, window_bounds = array<i64: 1, 64, 3>}, {pipeline_mode = #tpu.pipeline_mode<synchronous>, transform_indices = @transform_1, window_bounds = array<i64: 3, 64, 64>}, {pipeline_mode = #tpu.pipeline_mode<synchronous>, transform_indices = @transform_2, window_bounds = array<i64: 64, 1>}, {transform_indices = @transform_3, window_bounds = array<i64: 1, 64, 1>}, {transform_indices = @transform_4, window_bounds = array<i64: 1, 64, 1>}]} {
    %c0 = arith.constant 0 : index
    %c0_0 = arith.constant 0 : index
    %c0_1 = arith.constant 0 : index
    %0 = vector.load %arg1[%c0, %c0_0, %c0_1] : memref<1x64x3xf32, #tpu.memory_space<vmem>>, vector<1x64x3xf32>
    %1 = vector.shape_cast %0 : vector<1x64x3xf32> to vector<64x3xf32>
    %cst = arith.constant 0.000000e+00 : f32
    %2 = vector.broadcast %cst : f32 to vector<64x3xf32>
    %3 = arith.cmpf oge, %1, %2 : vector<64x3xf32>
    %cst_2 = arith.constant 1.000000e-01 : f32
    %4 = vector.broadcast %cst_2 : f32 to vector<64x3xf32>
    %5 = arith.mulf %4, %1 : vector<64x3xf32>
    %6 = arith.select %3, %1, %5 : vector<64x3xi1>, vector<64x3xf32>
    %7 = arith.truncf %6 : vector<64x3xf32> to vector<64x3xbf16>
    %cst_3 = arith.constant 0.000000e+00 : f32
    %8 = vector.broadcast %cst_3 : f32 to vector<64x1xf32>
    %c0_4 = arith.constant 0 : index
    %c0_5 = arith.constant 0 : index
    %c0_6 = arith.constant 0 : index
    %9 = vector.load %arg2[%c0_4, %c0_5, %c0_6] : memref<3x64x64xbf16, #tpu.memory_space<vmem>>, vector<1x64x64xbf16>
    %10 = vector.shape_cast %9 : vector<1x64x64xbf16> to vector<64x64xbf16>
    %11 = vector.extract_strided_slice %7 {offsets = [0, 0], sizes = [64, 1], strides = [1, 1]} : vector<64x3xbf16> to vector<64x1xbf16>
    %cst_7 = arith.constant dense<0.000000e+00> : vector<64x1xf32>
    %12 = tpu.matmul %10, %11, %cst_7 {dimension_numbers = #tpu.dot_dimension_numbers<[1], [0], [0], [1], [0, 0, 1, 1], [], []>} : vector<64x64xbf16>, vector<64x1xbf16>, vector<64x1xf32> -> vector<64x1xf32>
    %13 = arith.addf %8, %12 : vector<64x1xf32>
    %c1 = arith.constant 1 : index
    %c0_8 = arith.constant 0 : index
    %c0_9 = arith.constant 0 : index
    %14 = vector.load %arg2[%c1, %c0_8, %c0_9] : memref<3x64x64xbf16, #tpu.memory_space<vmem>>, vector<1x64x64xbf16>
    %15 = vector.shape_cast %14 : vector<1x64x64xbf16> to vector<64x64xbf16>
    %16 = vector.extract_strided_slice %7 {offsets = [0, 1], sizes = [64, 1], strides = [1, 1]} : vector<64x3xbf16> to vector<64x1xbf16>
    %cst_10 = arith.constant dense<0.000000e+00> : vector<64x1xf32>
    %17 = tpu.matmul %15, %16, %cst_10 {dimension_numbers = #tpu.dot_dimension_numbers<[1], [0], [0], [1], [0, 0, 1, 1], [], []>} : vector<64x64xbf16>, vector<64x1xbf16>, vector<64x1xf32> -> vector<64x1xf32>
    %18 = arith.addf %13, %17 : vector<64x1xf32>
    %c2 = arith.constant 2 : index
    %c0_11 = arith.constant 0 : index
    %c0_12 = arith.constant 0 : index
    %19 = vector.load %arg2[%c2, %c0_11, %c0_12] : memref<3x64x64xbf16, #tpu.memory_space<vmem>>, vector<1x64x64xbf16>
    %20 = vector.shape_cast %19 : vector<1x64x64xbf16> to vector<64x64xbf16>
    %21 = vector.extract_strided_slice %7 {offsets = [0, 2], sizes = [64, 1], strides = [1, 1]} : vector<64x3xbf16> to vector<64x1xbf16>
    %cst_13 = arith.constant dense<0.000000e+00> : vector<64x1xf32>
    %22 = tpu.matmul %20, %21, %cst_13 {dimension_numbers = #tpu.dot_dimension_numbers<[1], [0], [0], [1], [0, 0, 1, 1], [], []>} : vector<64x64xbf16>, vector<64x1xbf16>, vector<64x1xf32> -> vector<64x1xf32>
    %23 = arith.addf %18, %22 : vector<64x1xf32>
    %c0_14 = arith.constant 0 : index
    %c0_15 = arith.constant 0 : index
    %24 = vector.load %arg3[%c0_14, %c0_15] : memref<64x1xf32, #tpu.memory_space<vmem>>, vector<64x1xf32>
    %25 = arith.addf %23, %24 : vector<64x1xf32>
    %c0_16 = arith.constant 0 : index
    %c0_17 = arith.constant 0 : index
    %c0_18 = arith.constant 0 : index
    %26 = vector.load %arg4[%c0_16, %c0_17, %c0_18] : memref<1x64x1xf32, #tpu.memory_space<vmem>>, vector<1x64x1xf32>
    %27 = vector.shape_cast %26 : vector<1x64x1xf32> to vector<64x1xf32>
    %28 = arith.addf %25, %27 : vector<64x1xf32>
    %c0_19 = arith.constant 0 : index
    %c0_20 = arith.constant 0 : index
    %c0_21 = arith.constant 0 : index
    %29 = vector.load %arg5[%c0_19, %c0_20, %c0_21] : memref<1x64x1xf32, #tpu.memory_space<vmem>>, vector<1x64x1xf32>
    %30 = vector.shape_cast %29 : vector<1x64x1xf32> to vector<64x1xf32>
    %31 = vector.shape_cast %28 : vector<64x1xf32> to vector<1x64x1xf32>
    tpu.vector_store %arg5[%c0_19, %c0_20, %c0_21], %31 {strides = array<i32>} : memref<1x64x1xf32, #tpu.memory_space<vmem>>, vector<1x64x1xf32>,
    return
  }
  func.func @transform_0(%arg0: i32) -> (i32, i32, i32) {
    %c0_i32 = arith.constant 0 : i32
    %c0_i32_0 = arith.constant 0 : i32
    %c0_i32_1 = arith.constant 0 : i32
    return %arg0, %c0_i32, %c0_i32_0 : i32, i32, i32
  }
  func.func @transform_1(%arg0: i32) -> (i32, i32, i32) {
    %c0_i32 = arith.constant 0 : i32
    %c0_i32_0 = arith.constant 0 : i32
    %c0_i32_1 = arith.constant 0 : i32
    %c0_i32_2 = arith.constant 0 : i32
    return %c0_i32, %c0_i32_0, %c0_i32_1 : i32, i32, i32
  }
  func.func @transform_2(%arg0: i32) -> (i32, i32) {
    %c0_i32 = arith.constant 0 : i32
    %c0_i32_0 = arith.constant 0 : i32
    %c0_i32_1 = arith.constant 0 : i32
    return %c0_i32, %c0_i32_0 : i32, i32
  }
  func.func @transform_3(%arg0: i32) -> (i32, i32, i32) {
    %c0_i32 = arith.constant 0 : i32
    %c0_i32_0 = arith.constant 0 : i32
    %c0_i32_1 = arith.constant 0 : i32
    return %arg0, %c0_i32, %c0_i32_0 : i32, i32, i32
  }
  func.func @transform_4(%arg0: i32) -> (i32, i32, i32) {
    %c0_i32 = arith.constant 0 : i32
    %c0_i32_0 = arith.constant 0 : i32
    %c0_i32_1 = arith.constant 0 : i32
    return %arg0, %c0_i32, %c0_i32_0 : i32, i32, i32
  }
}

module attributes {stable_mosaic.version = 11 : i64} {
  func.func @_fused_conv_kernel(%arg0: i32, %arg1: memref<1x64x7xf32, #tpu.memory_space<vmem>>, %arg2: memref<3x64x64xbf16, #tpu.memory_space<vmem>>, %arg3: memref<64x1xf32, #tpu.memory_space<vmem>>, %arg4: memref<1x64x1xf32, #tpu.memory_space<vmem>>, %arg5: memref<1x64x1xf32, #tpu.memory_space<vmem>>) attributes {dimension_semantics = [#tpu.dimension_semantics<parallel>], iteration_bounds = array<i64: 2>, scalar_prefetch = 0 : i64, scratch_operands = 0 : i64, tpu.core_type = #tpu.core_type<tc>, window_params = [{transform_indices = @transform_0, window_bounds = array<i64: 1, 64, 7>}, {pipeline_mode = #tpu.pipeline_mode<synchronous>, transform_indices = @transform_1, window_bounds = array<i64: 3, 64, 64>}, {pipeline_mode = #tpu.pipeline_mode<synchronous>, transform_indices = @transform_2, window_bounds = array<i64: 64, 1>}, {transform_indices = @transform_3, window_bounds = array<i64: 1, 64, 1>}, {transform_indices = @transform_4, window_bounds = array<i64: 1, 64, 1>}]} {
    %c0 = arith.constant 0 : index
    %c0_0 = arith.constant 0 : index
    %c0_1 = arith.constant 0 : index
    %0 = vector.load %arg1[%c0, %c0_0, %c0_1] : memref<1x64x7xf32, #tpu.memory_space<vmem>>, vector<1x64x7xf32>
    %1 = vector.shape_cast %0 : vector<1x64x7xf32> to vector<64x7xf32>
    %cst = arith.constant 0.000000e+00 : f32
    %2 = vector.broadcast %cst : f32 to vector<64x7xf32>
    %3 = arith.cmpf oge, %1, %2 : vector<64x7xf32>
    %cst_2 = arith.constant 1.000000e-01 : f32
    %4 = vector.broadcast %cst_2 : f32 to vector<64x7xf32>
    %5 = arith.mulf %4, %1 : vector<64x7xf32>
    %6 = arith.select %3, %1, %5 : vector<64x7xi1>, vector<64x7xf32>
    %7 = arith.truncf %6 : vector<64x7xf32> to vector<64x7xbf16>
    %cst_3 = arith.constant 0.000000e+00 : f32
    %8 = vector.broadcast %cst_3 : f32 to vector<64x1xf32>
    %c0_4 = arith.constant 0 : index
    %c0_5 = arith.constant 0 : index
    %c0_6 = arith.constant 0 : index
    %9 = vector.load %arg2[%c0_4, %c0_5, %c0_6] : memref<3x64x64xbf16, #tpu.memory_space<vmem>>, vector<1x64x64xbf16>
    %10 = vector.shape_cast %9 : vector<1x64x64xbf16> to vector<64x64xbf16>
    %11 = vector.extract_strided_slice %7 {offsets = [0, 0], sizes = [64, 1], strides = [1, 1]} : vector<64x7xbf16> to vector<64x1xbf16>
    %cst_7 = arith.constant dense<0.000000e+00> : vector<64x1xf32>
    %12 = tpu.matmul %10, %11, %cst_7 {dimension_numbers = #tpu.dot_dimension_numbers<[1], [0], [0], [1], [0, 0, 1, 1], [], []>} : vector<64x64xbf16>, vector<64x1xbf16>, vector<64x1xf32> -> vector<64x1xf32>
    %13 = arith.addf %8, %12 : vector<64x1xf32>
    %c1 = arith.constant 1 : index
    %c0_8 = arith.constant 0 : index
    %c0_9 = arith.constant 0 : index
    %14 = vector.load %arg2[%c1, %c0_8, %c0_9] : memref<3x64x64xbf16, #tpu.memory_space<vmem>>, vector<1x64x64xbf16>
    %15 = vector.shape_cast %14 : vector<1x64x64xbf16> to vector<64x64xbf16>
    %16 = vector.extract_strided_slice %7 {offsets = [0, 3], sizes = [64, 1], strides = [1, 1]} : vector<64x7xbf16> to vector<64x1xbf16>
    %cst_10 = arith.constant dense<0.000000e+00> : vector<64x1xf32>
    %17 = tpu.matmul %15, %16, %cst_10 {dimension_numbers = #tpu.dot_dimension_numbers<[1], [0], [0], [1], [0, 0, 1, 1], [], []>} : vector<64x64xbf16>, vector<64x1xbf16>, vector<64x1xf32> -> vector<64x1xf32>
    %18 = arith.addf %13, %17 : vector<64x1xf32>
    %c2 = arith.constant 2 : index
    %c0_11 = arith.constant 0 : index
    %c0_12 = arith.constant 0 : index
    %19 = vector.load %arg2[%c2, %c0_11, %c0_12] : memref<3x64x64xbf16, #tpu.memory_space<vmem>>, vector<1x64x64xbf16>
    %20 = vector.shape_cast %19 : vector<1x64x64xbf16> to vector<64x64xbf16>
    %21 = vector.extract_strided_slice %7 {offsets = [0, 6], sizes = [64, 1], strides = [1, 1]} : vector<64x7xbf16> to vector<64x1xbf16>
    %cst_13 = arith.constant dense<0.000000e+00> : vector<64x1xf32>
    %22 = tpu.matmul %20, %21, %cst_13 {dimension_numbers = #tpu.dot_dimension_numbers<[1], [0], [0], [1], [0, 0, 1, 1], [], []>} : vector<64x64xbf16>, vector<64x1xbf16>, vector<64x1xf32> -> vector<64x1xf32>
    %23 = arith.addf %18, %22 : vector<64x1xf32>
    %c0_14 = arith.constant 0 : index
    %c0_15 = arith.constant 0 : index
    %24 = vector.load %arg3[%c0_14, %c0_15] : memref<64x1xf32, #tpu.memory_space<vmem>>, vector<64x1xf32>
    %25 = arith.addf %23, %24 : vector<64x1xf32>
    %c0_16 = arith.constant 0 : index
    %c0_17 = arith.constant 0 : index
    %c0_18 = arith.constant 0 : index
    %26 = vector.load %arg4[%c0_16, %c0_17, %c0_18] : memref<1x64x1xf32, #tpu.memory_space<vmem>>, vector<1x64x1xf32>
    %27 = vector.shape_cast %26 : vector<1x64x1xf32> to vector<64x1xf32>
    %28 = arith.addf %25, %27 : vector<64x1xf32>
    %c0_19 = arith.constant 0 : index
    %c0_20 = arith.constant 0 : index
    %c0_21 = arith.constant 0 : index
    %29 = vector.load %arg5[%c0_19, %c0_20, %c0_21] : memref<1x64x1xf32, #tpu.memory_space<vmem>>, vector<1x64x1xf32>
    %30 = vector.shape_cast %29 : vector<1x64x1xf32> to vector<64x1xf32>
    %31 = vector.shape_cast %28 : vector<64x1xf32> to vector<1x64x1xf32>
    tpu.vector_store %arg5[%c0_19, %c0_20, %c0_21], %31 {strides = array<i32>} : memref<1x64x1xf32, #tpu.memory_space<vmem>>, vector<1x64x1xf32>,
    return
  }
  func.func @transform_0(%arg0: i32) -> (i32, i32, i32) {
    %c0_i32 = arith.constant 0 : i32
    %c0_i32_0 = arith.constant 0 : i32
    %c0_i32_1 = arith.constant 0 : i32
    return %arg0, %c0_i32, %c0_i32_0 : i32, i32, i32
  }
  func.func @transform_1(%arg0: i32) -> (i32, i32, i32) {
    %c0_i32 = arith.constant 0 : i32
    %c0_i32_0 = arith.constant 0 : i32
    %c0_i32_1 = arith.constant 0 : i32
    %c0_i32_2 = arith.constant 0 : i32
    return %c0_i32, %c0_i32_0, %c0_i32_1 : i32, i32, i32
  }
  func.func @transform_2(%arg0: i32) -> (i32, i32) {
    %c0_i32 = arith.constant 0 : i32
    %c0_i32_0 = arith.constant 0 : i32
    %c0_i32_1 = arith.constant 0 : i32
    return %c0_i32, %c0_i32_0 : i32, i32
  }
  func.func @transform_3(%arg0: i32) -> (i32, i32, i32) {
    %c0_i32 = arith.constant 0 : i32
    %c0_i32_0 = arith.constant 0 : i32
    %c0_i32_1 = arith.constant 0 : i32
    return %arg0, %c0_i32, %c0_i32_0 : i32, i32, i32
  }
  func.func @transform_4(%arg0: i32) -> (i32, i32, i32) {
    %c0_i32 = arith.constant 0 : i32
    %c0_i32_0 = arith.constant 0 : i32
    %c0_i32_1 = arith.constant 0 : i32
    return %arg0, %c0_i32, %c0_i32_0 : i32, i32, i32
  }
}

module attributes {stable_mosaic.version = 11 : i64} {
  func.func @_fused_conv_kernel(%arg0: i32, %arg1: memref<1x64x3xf32, #tpu.memory_space<vmem>>, %arg2: memref<3x128x64xbf16, #tpu.memory_space<vmem>>, %arg3: memref<128x1xf32, #tpu.memory_space<vmem>>, %arg4: memref<1x128x1xf32, #tpu.memory_space<vmem>>) attributes {dimension_semantics = [#tpu.dimension_semantics<parallel>], iteration_bounds = array<i64: 2>, scalar_prefetch = 0 : i64, scratch_operands = 0 : i64, tpu.core_type = #tpu.core_type<tc>, window_params = [{transform_indices = @transform_0, window_bounds = array<i64: 1, 64, 3>}, {pipeline_mode = #tpu.pipeline_mode<synchronous>, transform_indices = @transform_1, window_bounds = array<i64: 3, 128, 64>}, {pipeline_mode = #tpu.pipeline_mode<synchronous>, transform_indices = @transform_2, window_bounds = array<i64: 128, 1>}, {transform_indices = @transform_3, window_bounds = array<i64: 1, 128, 1>}]} {
    %c0 = arith.constant 0 : index
    %c0_0 = arith.constant 0 : index
    %c0_1 = arith.constant 0 : index
    %0 = vector.load %arg1[%c0, %c0_0, %c0_1] : memref<1x64x3xf32, #tpu.memory_space<vmem>>, vector<1x64x3xf32>
    %1 = vector.shape_cast %0 : vector<1x64x3xf32> to vector<64x3xf32>
    %cst = arith.constant 0.000000e+00 : f32
    %2 = vector.broadcast %cst : f32 to vector<64x3xf32>
    %3 = arith.cmpf oge, %1, %2 : vector<64x3xf32>
    %cst_2 = arith.constant 1.000000e-01 : f32
    %4 = vector.broadcast %cst_2 : f32 to vector<64x3xf32>
    %5 = arith.mulf %4, %1 : vector<64x3xf32>
    %6 = arith.select %3, %1, %5 : vector<64x3xi1>, vector<64x3xf32>
    %7 = arith.truncf %6 : vector<64x3xf32> to vector<64x3xbf16>
    %cst_3 = arith.constant 0.000000e+00 : f32
    %8 = vector.broadcast %cst_3 : f32 to vector<128x1xf32>
    %c0_4 = arith.constant 0 : index
    %c0_5 = arith.constant 0 : index
    %c0_6 = arith.constant 0 : index
    %9 = vector.load %arg2[%c0_4, %c0_5, %c0_6] : memref<3x128x64xbf16, #tpu.memory_space<vmem>>, vector<1x128x64xbf16>
    %10 = vector.shape_cast %9 : vector<1x128x64xbf16> to vector<128x64xbf16>
    %11 = vector.extract_strided_slice %7 {offsets = [0, 0], sizes = [64, 1], strides = [1, 1]} : vector<64x3xbf16> to vector<64x1xbf16>
    %cst_7 = arith.constant dense<0.000000e+00> : vector<128x1xf32>
    %12 = tpu.matmul %10, %11, %cst_7 {dimension_numbers = #tpu.dot_dimension_numbers<[1], [0], [0], [1], [0, 0, 1, 1], [], []>} : vector<128x64xbf16>, vector<64x1xbf16>, vector<128x1xf32> -> vector<128x1xf32>
    %13 = arith.addf %8, %12 : vector<128x1xf32>
    %c1 = arith.constant 1 : index
    %c0_8 = arith.constant 0 : index
    %c0_9 = arith.constant 0 : index
    %14 = vector.load %arg2[%c1, %c0_8, %c0_9] : memref<3x128x64xbf16, #tpu.memory_space<vmem>>, vector<1x128x64xbf16>
    %15 = vector.shape_cast %14 : vector<1x128x64xbf16> to vector<128x64xbf16>
    %16 = vector.extract_strided_slice %7 {offsets = [0, 1], sizes = [64, 1], strides = [1, 1]} : vector<64x3xbf16> to vector<64x1xbf16>
    %cst_10 = arith.constant dense<0.000000e+00> : vector<128x1xf32>
    %17 = tpu.matmul %15, %16, %cst_10 {dimension_numbers = #tpu.dot_dimension_numbers<[1], [0], [0], [1], [0, 0, 1, 1], [], []>} : vector<128x64xbf16>, vector<64x1xbf16>, vector<128x1xf32> -> vector<128x1xf32>
    %18 = arith.addf %13, %17 : vector<128x1xf32>
    %c2 = arith.constant 2 : index
    %c0_11 = arith.constant 0 : index
    %c0_12 = arith.constant 0 : index
    %19 = vector.load %arg2[%c2, %c0_11, %c0_12] : memref<3x128x64xbf16, #tpu.memory_space<vmem>>, vector<1x128x64xbf16>
    %20 = vector.shape_cast %19 : vector<1x128x64xbf16> to vector<128x64xbf16>
    %21 = vector.extract_strided_slice %7 {offsets = [0, 2], sizes = [64, 1], strides = [1, 1]} : vector<64x3xbf16> to vector<64x1xbf16>
    %cst_13 = arith.constant dense<0.000000e+00> : vector<128x1xf32>
    %22 = tpu.matmul %20, %21, %cst_13 {dimension_numbers = #tpu.dot_dimension_numbers<[1], [0], [0], [1], [0, 0, 1, 1], [], []>} : vector<128x64xbf16>, vector<64x1xbf16>, vector<128x1xf32> -> vector<128x1xf32>
    %23 = arith.addf %18, %22 : vector<128x1xf32>
    %c0_14 = arith.constant 0 : index
    %c0_15 = arith.constant 0 : index
    %24 = vector.load %arg3[%c0_14, %c0_15] : memref<128x1xf32, #tpu.memory_space<vmem>>, vector<128x1xf32>
    %25 = arith.addf %23, %24 : vector<128x1xf32>
    %c0_16 = arith.constant 0 : index
    %c0_17 = arith.constant 0 : index
    %c0_18 = arith.constant 0 : index
    %26 = vector.load %arg4[%c0_16, %c0_17, %c0_18] : memref<1x128x1xf32, #tpu.memory_space<vmem>>, vector<1x128x1xf32>
    %27 = vector.shape_cast %26 : vector<1x128x1xf32> to vector<128x1xf32>
    %28 = vector.shape_cast %25 : vector<128x1xf32> to vector<1x128x1xf32>
    tpu.vector_store %arg4[%c0_16, %c0_17, %c0_18], %28 {strides = array<i32>} : memref<1x128x1xf32, #tpu.memory_space<vmem>>, vector<1x128x1xf32>,
    return
  }
  func.func @transform_0(%arg0: i32) -> (i32, i32, i32) {
    %c0_i32 = arith.constant 0 : i32
    %c0_i32_0 = arith.constant 0 : i32
    %c0_i32_1 = arith.constant 0 : i32
    return %arg0, %c0_i32, %c0_i32_0 : i32, i32, i32
  }
  func.func @transform_1(%arg0: i32) -> (i32, i32, i32) {
    %c0_i32 = arith.constant 0 : i32
    %c0_i32_0 = arith.constant 0 : i32
    %c0_i32_1 = arith.constant 0 : i32
    %c0_i32_2 = arith.constant 0 : i32
    return %c0_i32, %c0_i32_0, %c0_i32_1 : i32, i32, i32
  }
  func.func @transform_2(%arg0: i32) -> (i32, i32) {
    %c0_i32 = arith.constant 0 : i32
    %c0_i32_0 = arith.constant 0 : i32
    %c0_i32_1 = arith.constant 0 : i32
    return %c0_i32, %c0_i32_0 : i32, i32
  }
  func.func @transform_3(%arg0: i32) -> (i32, i32, i32) {
    %c0_i32 = arith.constant 0 : i32
    %c0_i32_0 = arith.constant 0 : i32
    %c0_i32_1 = arith.constant 0 : i32
    return %arg0, %c0_i32, %c0_i32_0 : i32, i32, i32
  }
}

module attributes {stable_mosaic.version = 11 : i64} {
  func.func @_fused_conv_kernel(%arg0: i32, %arg1: memref<1x32x6xf32, #tpu.memory_space<vmem>>, %arg2: memref<3x64x32xbf16, #tpu.memory_space<vmem>>, %arg3: memref<64x1xf32, #tpu.memory_space<vmem>>, %arg4: memref<1x64x4xf32, #tpu.memory_space<vmem>>) attributes {dimension_semantics = [#tpu.dimension_semantics<parallel>], iteration_bounds = array<i64: 2>, scalar_prefetch = 0 : i64, scratch_operands = 0 : i64, tpu.core_type = #tpu.core_type<tc>, window_params = [{transform_indices = @transform_0, window_bounds = array<i64: 1, 32, 6>}, {pipeline_mode = #tpu.pipeline_mode<synchronous>, transform_indices = @transform_1, window_bounds = array<i64: 3, 64, 32>}, {pipeline_mode = #tpu.pipeline_mode<synchronous>, transform_indices = @transform_2, window_bounds = array<i64: 64, 1>}, {transform_indices = @transform_3, window_bounds = array<i64: 1, 64, 4>}]} {
    %c0 = arith.constant 0 : index
    %c0_0 = arith.constant 0 : index
    %c0_1 = arith.constant 0 : index
    %0 = vector.load %arg1[%c0, %c0_0, %c0_1] : memref<1x32x6xf32, #tpu.memory_space<vmem>>, vector<1x32x6xf32>
    %1 = vector.shape_cast %0 : vector<1x32x6xf32> to vector<32x6xf32>
    %cst = arith.constant 0.000000e+00 : f32
    %2 = vector.broadcast %cst : f32 to vector<32x6xf32>
    %3 = arith.cmpf oge, %1, %2 : vector<32x6xf32>
    %cst_2 = arith.constant 1.000000e-01 : f32
    %4 = vector.broadcast %cst_2 : f32 to vector<32x6xf32>
    %5 = arith.mulf %4, %1 : vector<32x6xf32>
    %6 = arith.select %3, %1, %5 : vector<32x6xi1>, vector<32x6xf32>
    %7 = arith.truncf %6 : vector<32x6xf32> to vector<32x6xbf16>
    %cst_3 = arith.constant 0.000000e+00 : f32
    %8 = vector.broadcast %cst_3 : f32 to vector<64x4xf32>
    %c0_4 = arith.constant 0 : index
    %c0_5 = arith.constant 0 : index
    %c0_6 = arith.constant 0 : index
    %9 = vector.load %arg2[%c0_4, %c0_5, %c0_6] : memref<3x64x32xbf16, #tpu.memory_space<vmem>>, vector<1x64x32xbf16>
    %10 = vector.shape_cast %9 : vector<1x64x32xbf16> to vector<64x32xbf16>
    %11 = vector.extract_strided_slice %7 {offsets = [0, 0], sizes = [32, 4], strides = [1, 1]} : vector<32x6xbf16> to vector<32x4xbf16>
    %cst_7 = arith.constant dense<0.000000e+00> : vector<64x4xf32>
    %12 = tpu.matmul %10, %11, %cst_7 {dimension_numbers = #tpu.dot_dimension_numbers<[1], [0], [0], [1], [0, 0, 1, 1], [], []>} : vector<64x32xbf16>, vector<32x4xbf16>, vector<64x4xf32> -> vector<64x4xf32>
    %13 = arith.addf %8, %12 : vector<64x4xf32>
    %c1 = arith.constant 1 : index
    %c0_8 = arith.constant 0 : index
    %c0_9 = arith.constant 0 : index
    %14 = vector.load %arg2[%c1, %c0_8, %c0_9] : memref<3x64x32xbf16, #tpu.memory_space<vmem>>, vector<1x64x32xbf16>
    %15 = vector.shape_cast %14 : vector<1x64x32xbf16> to vector<64x32xbf16>
    %16 = vector.extract_strided_slice %7 {offsets = [0, 1], sizes = [32, 4], strides = [1, 1]} : vector<32x6xbf16> to vector<32x4xbf16>
    %cst_10 = arith.constant dense<0.000000e+00> : vector<64x4xf32>
    %17 = tpu.matmul %15, %16, %cst_10 {dimension_numbers = #tpu.dot_dimension_numbers<[1], [0], [0], [1], [0, 0, 1, 1], [], []>} : vector<64x32xbf16>, vector<32x4xbf16>, vector<64x4xf32> -> vector<64x4xf32>
    %18 = arith.addf %13, %17 : vector<64x4xf32>
    %c2 = arith.constant 2 : index
    %c0_11 = arith.constant 0 : index
    %c0_12 = arith.constant 0 : index
    %19 = vector.load %arg2[%c2, %c0_11, %c0_12] : memref<3x64x32xbf16, #tpu.memory_space<vmem>>, vector<1x64x32xbf16>
    %20 = vector.shape_cast %19 : vector<1x64x32xbf16> to vector<64x32xbf16>
    %21 = vector.extract_strided_slice %7 {offsets = [0, 2], sizes = [32, 4], strides = [1, 1]} : vector<32x6xbf16> to vector<32x4xbf16>
    %cst_13 = arith.constant dense<0.000000e+00> : vector<64x4xf32>
    %22 = tpu.matmul %20, %21, %cst_13 {dimension_numbers = #tpu.dot_dimension_numbers<[1], [0], [0], [1], [0, 0, 1, 1], [], []>} : vector<64x32xbf16>, vector<32x4xbf16>, vector<64x4xf32> -> vector<64x4xf32>
    %23 = arith.addf %18, %22 : vector<64x4xf32>
    %c0_14 = arith.constant 0 : index
    %c0_15 = arith.constant 0 : index
    %24 = vector.load %arg3[%c0_14, %c0_15] : memref<64x1xf32, #tpu.memory_space<vmem>>, vector<64x1xf32>
    %25 = vector.broadcast %24 : vector<64x1xf32> to vector<64x4xf32>
    %26 = arith.addf %23, %25 : vector<64x4xf32>
    %c0_16 = arith.constant 0 : index
    %c0_17 = arith.constant 0 : index
    %c0_18 = arith.constant 0 : index
    %27 = vector.load %arg4[%c0_16, %c0_17, %c0_18] : memref<1x64x4xf32, #tpu.memory_space<vmem>>, vector<1x64x4xf32>
    %28 = vector.shape_cast %27 : vector<1x64x4xf32> to vector<64x4xf32>
    %29 = vector.shape_cast %26 : vector<64x4xf32> to vector<1x64x4xf32>
    tpu.vector_store %arg4[%c0_16, %c0_17, %c0_18], %29 {strides = array<i32>} : memref<1x64x4xf32, #tpu.memory_space<vmem>>, vector<1x64x4xf32>,
    return
  }
  func.func @transform_0(%arg0: i32) -> (i32, i32, i32) {
    %c0_i32 = arith.constant 0 : i32
    %c0_i32_0 = arith.constant 0 : i32
    %c0_i32_1 = arith.constant 0 : i32
    return %arg0, %c0_i32, %c0_i32_0 : i32, i32, i32
  }
  func.func @transform_1(%arg0: i32) -> (i32, i32, i32) {
    %c0_i32 = arith.constant 0 : i32
    %c0_i32_0 = arith.constant 0 : i32
    %c0_i32_1 = arith.constant 0 : i32
    %c0_i32_2 = arith.constant 0 : i32
    return %c0_i32, %c0_i32_0, %c0_i32_1 : i32, i32, i32
  }
  func.func @transform_2(%arg0: i32) -> (i32, i32) {
    %c0_i32 = arith.constant 0 : i32
    %c0_i32_0 = arith.constant 0 : i32
    %c0_i32_1 = arith.constant 0 : i32
    return %c0_i32, %c0_i32_0 : i32, i32
  }
  func.func @transform_3(%arg0: i32) -> (i32, i32, i32) {
    %c0_i32 = arith.constant 0 : i32
    %c0_i32_0 = arith.constant 0 : i32
    %c0_i32_1 = arith.constant 0 : i32
    return %arg0, %c0_i32, %c0_i32_0 : i32, i32, i32
  }
}

module attributes {stable_mosaic.version = 11 : i64} {
  func.func @_fused_conv_kernel(%arg0: i32, %arg1: memref<1x16x18xf32, #tpu.memory_space<vmem>>, %arg2: memref<3x32x16xbf16, #tpu.memory_space<vmem>>, %arg3: memref<32x1xf32, #tpu.memory_space<vmem>>, %arg4: memref<1x32x16xf32, #tpu.memory_space<vmem>>) attributes {dimension_semantics = [#tpu.dimension_semantics<parallel>], iteration_bounds = array<i64: 2>, scalar_prefetch = 0 : i64, scratch_operands = 0 : i64, tpu.core_type = #tpu.core_type<tc>, window_params = [{transform_indices = @transform_0, window_bounds = array<i64: 1, 16, 18>}, {pipeline_mode = #tpu.pipeline_mode<synchronous>, transform_indices = @transform_1, window_bounds = array<i64: 3, 32, 16>}, {pipeline_mode = #tpu.pipeline_mode<synchronous>, transform_indices = @transform_2, window_bounds = array<i64: 32, 1>}, {transform_indices = @transform_3, window_bounds = array<i64: 1, 32, 16>}]} {
    %c0 = arith.constant 0 : index
    %c0_0 = arith.constant 0 : index
    %c0_1 = arith.constant 0 : index
    %0 = vector.load %arg1[%c0, %c0_0, %c0_1] : memref<1x16x18xf32, #tpu.memory_space<vmem>>, vector<1x16x18xf32>
    %1 = vector.shape_cast %0 : vector<1x16x18xf32> to vector<16x18xf32>
    %cst = arith.constant 0.000000e+00 : f32
    %2 = vector.broadcast %cst : f32 to vector<16x18xf32>
    %3 = arith.cmpf oge, %1, %2 : vector<16x18xf32>
    %cst_2 = arith.constant 1.000000e-01 : f32
    %4 = vector.broadcast %cst_2 : f32 to vector<16x18xf32>
    %5 = arith.mulf %4, %1 : vector<16x18xf32>
    %6 = arith.select %3, %1, %5 : vector<16x18xi1>, vector<16x18xf32>
    %7 = arith.truncf %6 : vector<16x18xf32> to vector<16x18xbf16>
    %cst_3 = arith.constant 0.000000e+00 : f32
    %8 = vector.broadcast %cst_3 : f32 to vector<32x16xf32>
    %c0_4 = arith.constant 0 : index
    %c0_5 = arith.constant 0 : index
    %c0_6 = arith.constant 0 : index
    %9 = vector.load %arg2[%c0_4, %c0_5, %c0_6] : memref<3x32x16xbf16, #tpu.memory_space<vmem>>, vector<1x32x16xbf16>
    %10 = vector.shape_cast %9 : vector<1x32x16xbf16> to vector<32x16xbf16>
    %11 = vector.extract_strided_slice %7 {offsets = [0, 0], sizes = [16, 16], strides = [1, 1]} : vector<16x18xbf16> to vector<16x16xbf16>
    %cst_7 = arith.constant dense<0.000000e+00> : vector<32x16xf32>
    %12 = tpu.matmul %10, %11, %cst_7 {dimension_numbers = #tpu.dot_dimension_numbers<[1], [0], [0], [1], [0, 0, 1, 1], [], []>} : vector<32x16xbf16>, vector<16x16xbf16>, vector<32x16xf32> -> vector<32x16xf32>
    %13 = arith.addf %8, %12 : vector<32x16xf32>
    %c1 = arith.constant 1 : index
    %c0_8 = arith.constant 0 : index
    %c0_9 = arith.constant 0 : index
    %14 = vector.load %arg2[%c1, %c0_8, %c0_9] : memref<3x32x16xbf16, #tpu.memory_space<vmem>>, vector<1x32x16xbf16>
    %15 = vector.shape_cast %14 : vector<1x32x16xbf16> to vector<32x16xbf16>
    %16 = vector.extract_strided_slice %7 {offsets = [0, 1], sizes = [16, 16], strides = [1, 1]} : vector<16x18xbf16> to vector<16x16xbf16>
    %cst_10 = arith.constant dense<0.000000e+00> : vector<32x16xf32>
    %17 = tpu.matmul %15, %16, %cst_10 {dimension_numbers = #tpu.dot_dimension_numbers<[1], [0], [0], [1], [0, 0, 1, 1], [], []>} : vector<32x16xbf16>, vector<16x16xbf16>, vector<32x16xf32> -> vector<32x16xf32>
    %18 = arith.addf %13, %17 : vector<32x16xf32>
    %c2 = arith.constant 2 : index
    %c0_11 = arith.constant 0 : index
    %c0_12 = arith.constant 0 : index
    %19 = vector.load %arg2[%c2, %c0_11, %c0_12] : memref<3x32x16xbf16, #tpu.memory_space<vmem>>, vector<1x32x16xbf16>
    %20 = vector.shape_cast %19 : vector<1x32x16xbf16> to vector<32x16xbf16>
    %21 = vector.extract_strided_slice %7 {offsets = [0, 2], sizes = [16, 16], strides = [1, 1]} : vector<16x18xbf16> to vector<16x16xbf16>
    %cst_13 = arith.constant dense<0.000000e+00> : vector<32x16xf32>
    %22 = tpu.matmul %20, %21, %cst_13 {dimension_numbers = #tpu.dot_dimension_numbers<[1], [0], [0], [1], [0, 0, 1, 1], [], []>} : vector<32x16xbf16>, vector<16x16xbf16>, vector<32x16xf32> -> vector<32x16xf32>
    %23 = arith.addf %18, %22 : vector<32x16xf32>
    %c0_14 = arith.constant 0 : index
    %c0_15 = arith.constant 0 : index
    %24 = vector.load %arg3[%c0_14, %c0_15] : memref<32x1xf32, #tpu.memory_space<vmem>>, vector<32x1xf32>
    %25 = vector.broadcast %24 : vector<32x1xf32> to vector<32x16xf32>
    %26 = arith.addf %23, %25 : vector<32x16xf32>
    %c0_16 = arith.constant 0 : index
    %c0_17 = arith.constant 0 : index
    %c0_18 = arith.constant 0 : index
    %27 = vector.load %arg4[%c0_16, %c0_17, %c0_18] : memref<1x32x16xf32, #tpu.memory_space<vmem>>, vector<1x32x16xf32>
    %28 = vector.shape_cast %27 : vector<1x32x16xf32> to vector<32x16xf32>
    %29 = vector.shape_cast %26 : vector<32x16xf32> to vector<1x32x16xf32>
    tpu.vector_store %arg4[%c0_16, %c0_17, %c0_18], %29 {strides = array<i32>} : memref<1x32x16xf32, #tpu.memory_space<vmem>>, vector<1x32x16xf32>,
    return
  }
  func.func @transform_0(%arg0: i32) -> (i32, i32, i32) {
    %c0_i32 = arith.constant 0 : i32
    %c0_i32_0 = arith.constant 0 : i32
    %c0_i32_1 = arith.constant 0 : i32
    return %arg0, %c0_i32, %c0_i32_0 : i32, i32, i32
  }
  func.func @transform_1(%arg0: i32) -> (i32, i32, i32) {
    %c0_i32 = arith.constant 0 : i32
    %c0_i32_0 = arith.constant 0 : i32
    %c0_i32_1 = arith.constant 0 : i32
    %c0_i32_2 = arith.constant 0 : i32
    return %c0_i32, %c0_i32_0, %c0_i32_1 : i32, i32, i32
  }
  func.func @transform_2(%arg0: i32) -> (i32, i32) {
    %c0_i32 = arith.constant 0 : i32
    %c0_i32_0 = arith.constant 0 : i32
    %c0_i32_1 = arith.constant 0 : i32
    return %c0_i32, %c0_i32_0 : i32, i32
  }
  func.func @transform_3(%arg0: i32) -> (i32, i32, i32) {
    %c0_i32 = arith.constant 0 : i32
    %c0_i32_0 = arith.constant 0 : i32
    %c0_i32_1 = arith.constant 0 : i32
    return %arg0, %c0_i32, %c0_i32_0 : i32, i32, i32
  }
}

module attributes {stable_mosaic.version = 11 : i64} {
  func.func @_fused_conv_kernel(%arg0: i32, %arg1: memref<1x8x70xf32, #tpu.memory_space<vmem>>, %arg2: memref<3x8x8xbf16, #tpu.memory_space<vmem>>, %arg3: memref<8x1xf32, #tpu.memory_space<vmem>>, %arg4: memref<1x8x64xf32, #tpu.memory_space<vmem>>, %arg5: memref<1x8x64xf32, #tpu.memory_space<vmem>>) attributes {dimension_semantics = [#tpu.dimension_semantics<parallel>], iteration_bounds = array<i64: 2>, scalar_prefetch = 0 : i64, scratch_operands = 0 : i64, tpu.core_type = #tpu.core_type<tc>, window_params = [{transform_indices = @transform_0, window_bounds = array<i64: 1, 8, 70>}, {pipeline_mode = #tpu.pipeline_mode<synchronous>, transform_indices = @transform_1, window_bounds = array<i64: 3, 8, 8>}, {pipeline_mode = #tpu.pipeline_mode<synchronous>, transform_indices = @transform_2, window_bounds = array<i64: 8, 1>}, {transform_indices = @transform_3, window_bounds = array<i64: 1, 8, 64>}, {transform_indices = @transform_4, window_bounds = array<i64: 1, 8, 64>}]} {
    %c0 = arith.constant 0 : index
    %c0_0 = arith.constant 0 : index
    %c0_1 = arith.constant 0 : index
    %0 = vector.load %arg1[%c0, %c0_0, %c0_1] : memref<1x8x70xf32, #tpu.memory_space<vmem>>, vector<1x8x70xf32>
    %1 = vector.shape_cast %0 : vector<1x8x70xf32> to vector<8x70xf32>
    %cst = arith.constant 0.000000e+00 : f32
    %2 = vector.broadcast %cst : f32 to vector<8x70xf32>
    %3 = arith.cmpf oge, %1, %2 : vector<8x70xf32>
    %cst_2 = arith.constant 1.000000e-01 : f32
    %4 = vector.broadcast %cst_2 : f32 to vector<8x70xf32>
    %5 = arith.mulf %4, %1 : vector<8x70xf32>
    %6 = arith.select %3, %1, %5 : vector<8x70xi1>, vector<8x70xf32>
    %7 = arith.truncf %6 : vector<8x70xf32> to vector<8x70xbf16>
    %cst_3 = arith.constant 0.000000e+00 : f32
    %8 = vector.broadcast %cst_3 : f32 to vector<8x64xf32>
    %c0_4 = arith.constant 0 : index
    %c0_5 = arith.constant 0 : index
    %c0_6 = arith.constant 0 : index
    %9 = vector.load %arg2[%c0_4, %c0_5, %c0_6] : memref<3x8x8xbf16, #tpu.memory_space<vmem>>, vector<1x8x8xbf16>
    %10 = vector.shape_cast %9 : vector<1x8x8xbf16> to vector<8x8xbf16>
    %11 = vector.extract_strided_slice %7 {offsets = [0, 0], sizes = [8, 64], strides = [1, 1]} : vector<8x70xbf16> to vector<8x64xbf16>
    %cst_7 = arith.constant dense<0.000000e+00> : vector<8x64xf32>
    %12 = tpu.matmul %10, %11, %cst_7 {dimension_numbers = #tpu.dot_dimension_numbers<[1], [0], [0], [1], [0, 0, 1, 1], [], []>} : vector<8x8xbf16>, vector<8x64xbf16>, vector<8x64xf32> -> vector<8x64xf32>
    %13 = arith.addf %8, %12 : vector<8x64xf32>
    %c1 = arith.constant 1 : index
    %c0_8 = arith.constant 0 : index
    %c0_9 = arith.constant 0 : index
    %14 = vector.load %arg2[%c1, %c0_8, %c0_9] : memref<3x8x8xbf16, #tpu.memory_space<vmem>>, vector<1x8x8xbf16>
    %15 = vector.shape_cast %14 : vector<1x8x8xbf16> to vector<8x8xbf16>
    %16 = vector.extract_strided_slice %7 {offsets = [0, 3], sizes = [8, 64], strides = [1, 1]} : vector<8x70xbf16> to vector<8x64xbf16>
    %cst_10 = arith.constant dense<0.000000e+00> : vector<8x64xf32>
    %17 = tpu.matmul %15, %16, %cst_10 {dimension_numbers = #tpu.dot_dimension_numbers<[1], [0], [0], [1], [0, 0, 1, 1], [], []>} : vector<8x8xbf16>, vector<8x64xbf16>, vector<8x64xf32> -> vector<8x64xf32>
    %18 = arith.addf %13, %17 : vector<8x64xf32>
    %c2 = arith.constant 2 : index
    %c0_11 = arith.constant 0 : index
    %c0_12 = arith.constant 0 : index
    %19 = vector.load %arg2[%c2, %c0_11, %c0_12] : memref<3x8x8xbf16, #tpu.memory_space<vmem>>, vector<1x8x8xbf16>
    %20 = vector.shape_cast %19 : vector<1x8x8xbf16> to vector<8x8xbf16>
    %21 = vector.extract_strided_slice %7 {offsets = [0, 6], sizes = [8, 64], strides = [1, 1]} : vector<8x70xbf16> to vector<8x64xbf16>
    %cst_13 = arith.constant dense<0.000000e+00> : vector<8x64xf32>
    %22 = tpu.matmul %20, %21, %cst_13 {dimension_numbers = #tpu.dot_dimension_numbers<[1], [0], [0], [1], [0, 0, 1, 1], [], []>} : vector<8x8xbf16>, vector<8x64xbf16>, vector<8x64xf32> -> vector<8x64xf32>
    %23 = arith.addf %18, %22 : vector<8x64xf32>
    %c0_14 = arith.constant 0 : index
    %c0_15 = arith.constant 0 : index
    %24 = vector.load %arg3[%c0_14, %c0_15] : memref<8x1xf32, #tpu.memory_space<vmem>>, vector<8x1xf32>
    %25 = vector.broadcast %24 : vector<8x1xf32> to vector<8x64xf32>
    %26 = arith.addf %23, %25 : vector<8x64xf32>
    %c0_16 = arith.constant 0 : index
    %c0_17 = arith.constant 0 : index
    %c0_18 = arith.constant 0 : index
    %27 = vector.load %arg4[%c0_16, %c0_17, %c0_18] : memref<1x8x64xf32, #tpu.memory_space<vmem>>, vector<1x8x64xf32>
    %28 = vector.shape_cast %27 : vector<1x8x64xf32> to vector<8x64xf32>
    %29 = arith.addf %26, %28 : vector<8x64xf32>
    %c0_19 = arith.constant 0 : index
    %c0_20 = arith.constant 0 : index
    %c0_21 = arith.constant 0 : index
    %30 = vector.load %arg5[%c0_19, %c0_20, %c0_21] : memref<1x8x64xf32, #tpu.memory_space<vmem>>, vector<1x8x64xf32>
    %31 = vector.shape_cast %30 : vector<1x8x64xf32> to vector<8x64xf32>
    %32 = vector.shape_cast %29 : vector<8x64xf32> to vector<1x8x64xf32>
    tpu.vector_store %arg5[%c0_19, %c0_20, %c0_21], %32 {strides = array<i32>} : memref<1x8x64xf32, #tpu.memory_space<vmem>>, vector<1x8x64xf32>,
    return
  }
  func.func @transform_0(%arg0: i32) -> (i32, i32, i32) {
    %c0_i32 = arith.constant 0 : i32
    %c0_i32_0 = arith.constant 0 : i32
    %c0_i32_1 = arith.constant 0 : i32
    return %arg0, %c0_i32, %c0_i32_0 : i32, i32, i32
  }
  func.func @transform_1(%arg0: i32) -> (i32, i32, i32) {
    %c0_i32 = arith.constant 0 : i32
    %c0_i32_0 = arith.constant 0 : i32
    %c0_i32_1 = arith.constant 0 : i32
    %c0_i32_2 = arith.constant 0 : i32
    return %c0_i32, %c0_i32_0, %c0_i32_1 : i32, i32, i32
  }
  func.func @transform_2(%arg0: i32) -> (i32, i32) {
    %c0_i32 = arith.constant 0 : i32
    %c0_i32_0 = arith.constant 0 : i32
    %c0_i32_1 = arith.constant 0 : i32
    return %c0_i32, %c0_i32_0 : i32, i32
  }
  func.func @transform_3(%arg0: i32) -> (i32, i32, i32) {
    %c0_i32 = arith.constant 0 : i32
    %c0_i32_0 = arith.constant 0 : i32
    %c0_i32_1 = arith.constant 0 : i32
    return %arg0, %c0_i32, %c0_i32_0 : i32, i32, i32
  }
  func.func @transform_4(%arg0: i32) -> (i32, i32, i32) {
    %c0_i32 = arith.constant 0 : i32
    %c0_i32_0 = arith.constant 0 : i32
    %c0_i32_1 = arith.constant 0 : i32
    return %arg0, %c0_i32, %c0_i32_0 : i32, i32, i32
  }
}

module attributes {stable_mosaic.version = 11 : i64} {
  func.func @_fused_conv_kernel(%arg0: i32, %arg1: memref<1x8x66xf32, #tpu.memory_space<vmem>>, %arg2: memref<3x8x8xbf16, #tpu.memory_space<vmem>>, %arg3: memref<8x1xf32, #tpu.memory_space<vmem>>, %arg4: memref<1x8x64xf32, #tpu.memory_space<vmem>>, %arg5: memref<1x8x64xf32, #tpu.memory_space<vmem>>) attributes {dimension_semantics = [#tpu.dimension_semantics<parallel>], iteration_bounds = array<i64: 2>, scalar_prefetch = 0 : i64, scratch_operands = 0 : i64, tpu.core_type = #tpu.core_type<tc>, window_params = [{transform_indices = @transform_0, window_bounds = array<i64: 1, 8, 66>}, {pipeline_mode = #tpu.pipeline_mode<synchronous>, transform_indices = @transform_1, window_bounds = array<i64: 3, 8, 8>}, {pipeline_mode = #tpu.pipeline_mode<synchronous>, transform_indices = @transform_2, window_bounds = array<i64: 8, 1>}, {transform_indices = @transform_3, window_bounds = array<i64: 1, 8, 64>}, {transform_indices = @transform_4, window_bounds = array<i64: 1, 8, 64>}]} {
    %c0 = arith.constant 0 : index
    %c0_0 = arith.constant 0 : index
    %c0_1 = arith.constant 0 : index
    %0 = vector.load %arg1[%c0, %c0_0, %c0_1] : memref<1x8x66xf32, #tpu.memory_space<vmem>>, vector<1x8x66xf32>
    %1 = vector.shape_cast %0 : vector<1x8x66xf32> to vector<8x66xf32>
    %cst = arith.constant 0.000000e+00 : f32
    %2 = vector.broadcast %cst : f32 to vector<8x66xf32>
    %3 = arith.cmpf oge, %1, %2 : vector<8x66xf32>
    %cst_2 = arith.constant 1.000000e-01 : f32
    %4 = vector.broadcast %cst_2 : f32 to vector<8x66xf32>
    %5 = arith.mulf %4, %1 : vector<8x66xf32>
    %6 = arith.select %3, %1, %5 : vector<8x66xi1>, vector<8x66xf32>
    %7 = arith.truncf %6 : vector<8x66xf32> to vector<8x66xbf16>
    %cst_3 = arith.constant 0.000000e+00 : f32
    %8 = vector.broadcast %cst_3 : f32 to vector<8x64xf32>
    %c0_4 = arith.constant 0 : index
    %c0_5 = arith.constant 0 : index
    %c0_6 = arith.constant 0 : index
    %9 = vector.load %arg2[%c0_4, %c0_5, %c0_6] : memref<3x8x8xbf16, #tpu.memory_space<vmem>>, vector<1x8x8xbf16>
    %10 = vector.shape_cast %9 : vector<1x8x8xbf16> to vector<8x8xbf16>
    %11 = vector.extract_strided_slice %7 {offsets = [0, 0], sizes = [8, 64], strides = [1, 1]} : vector<8x66xbf16> to vector<8x64xbf16>
    %cst_7 = arith.constant dense<0.000000e+00> : vector<8x64xf32>
    %12 = tpu.matmul %10, %11, %cst_7 {dimension_numbers = #tpu.dot_dimension_numbers<[1], [0], [0], [1], [0, 0, 1, 1], [], []>} : vector<8x8xbf16>, vector<8x64xbf16>, vector<8x64xf32> -> vector<8x64xf32>
    %13 = arith.addf %8, %12 : vector<8x64xf32>
    %c1 = arith.constant 1 : index
    %c0_8 = arith.constant 0 : index
    %c0_9 = arith.constant 0 : index
    %14 = vector.load %arg2[%c1, %c0_8, %c0_9] : memref<3x8x8xbf16, #tpu.memory_space<vmem>>, vector<1x8x8xbf16>
    %15 = vector.shape_cast %14 : vector<1x8x8xbf16> to vector<8x8xbf16>
    %16 = vector.extract_strided_slice %7 {offsets = [0, 1], sizes = [8, 64], strides = [1, 1]} : vector<8x66xbf16> to vector<8x64xbf16>
    %cst_10 = arith.constant dense<0.000000e+00> : vector<8x64xf32>
    %17 = tpu.matmul %15, %16, %cst_10 {dimension_numbers = #tpu.dot_dimension_numbers<[1], [0], [0], [1], [0, 0, 1, 1], [], []>} : vector<8x8xbf16>, vector<8x64xbf16>, vector<8x64xf32> -> vector<8x64xf32>
    %18 = arith.addf %13, %17 : vector<8x64xf32>
    %c2 = arith.constant 2 : index
    %c0_11 = arith.constant 0 : index
    %c0_12 = arith.constant 0 : index
    %19 = vector.load %arg2[%c2, %c0_11, %c0_12] : memref<3x8x8xbf16, #tpu.memory_space<vmem>>, vector<1x8x8xbf16>
    %20 = vector.shape_cast %19 : vector<1x8x8xbf16> to vector<8x8xbf16>
    %21 = vector.extract_strided_slice %7 {offsets = [0, 2], sizes = [8, 64], strides = [1, 1]} : vector<8x66xbf16> to vector<8x64xbf16>
    %cst_13 = arith.constant dense<0.000000e+00> : vector<8x64xf32>
    %22 = tpu.matmul %20, %21, %cst_13 {dimension_numbers = #tpu.dot_dimension_numbers<[1], [0], [0], [1], [0, 0, 1, 1], [], []>} : vector<8x8xbf16>, vector<8x64xbf16>, vector<8x64xf32> -> vector<8x64xf32>
    %23 = arith.addf %18, %22 : vector<8x64xf32>
    %c0_14 = arith.constant 0 : index
    %c0_15 = arith.constant 0 : index
    %24 = vector.load %arg3[%c0_14, %c0_15] : memref<8x1xf32, #tpu.memory_space<vmem>>, vector<8x1xf32>
    %25 = vector.broadcast %24 : vector<8x1xf32> to vector<8x64xf32>
    %26 = arith.addf %23, %25 : vector<8x64xf32>
    %c0_16 = arith.constant 0 : index
    %c0_17 = arith.constant 0 : index
    %c0_18 = arith.constant 0 : index
    %27 = vector.load %arg4[%c0_16, %c0_17, %c0_18] : memref<1x8x64xf32, #tpu.memory_space<vmem>>, vector<1x8x64xf32>
    %28 = vector.shape_cast %27 : vector<1x8x64xf32> to vector<8x64xf32>
    %29 = arith.addf %26, %28 : vector<8x64xf32>
    %c0_19 = arith.constant 0 : index
    %c0_20 = arith.constant 0 : index
    %c0_21 = arith.constant 0 : index
    %30 = vector.load %arg5[%c0_19, %c0_20, %c0_21] : memref<1x8x64xf32, #tpu.memory_space<vmem>>, vector<1x8x64xf32>
    %31 = vector.shape_cast %30 : vector<1x8x64xf32> to vector<8x64xf32>
    %32 = vector.shape_cast %29 : vector<8x64xf32> to vector<1x8x64xf32>
    tpu.vector_store %arg5[%c0_19, %c0_20, %c0_21], %32 {strides = array<i32>} : memref<1x8x64xf32, #tpu.memory_space<vmem>>, vector<1x8x64xf32>,
    return
  }
  func.func @transform_0(%arg0: i32) -> (i32, i32, i32) {
    %c0_i32 = arith.constant 0 : i32
    %c0_i32_0 = arith.constant 0 : i32
    %c0_i32_1 = arith.constant 0 : i32
    return %arg0, %c0_i32, %c0_i32_0 : i32, i32, i32
  }
  func.func @transform_1(%arg0: i32) -> (i32, i32, i32) {
    %c0_i32 = arith.constant 0 : i32
    %c0_i32_0 = arith.constant 0 : i32
    %c0_i32_1 = arith.constant 0 : i32
    %c0_i32_2 = arith.constant 0 : i32
    return %c0_i32, %c0_i32_0, %c0_i32_1 : i32, i32, i32
  }
  func.func @transform_2(%arg0: i32) -> (i32, i32) {
    %c0_i32 = arith.constant 0 : i32
    %c0_i32_0 = arith.constant 0 : i32
    %c0_i32_1 = arith.constant 0 : i32
    return %c0_i32, %c0_i32_0 : i32, i32
  }
  func.func @transform_3(%arg0: i32) -> (i32, i32, i32) {
    %c0_i32 = arith.constant 0 : i32
    %c0_i32_0 = arith.constant 0 : i32
    %c0_i32_1 = arith.constant 0 : i32
    return %arg0, %c0_i32, %c0_i32_0 : i32, i32, i32
  }
  func.func @transform_4(%arg0: i32) -> (i32, i32, i32) {
    %c0_i32 = arith.constant 0 : i32
    %c0_i32_0 = arith.constant 0 : i32
    %c0_i32_1 = arith.constant 0 : i32
    return %arg0, %c0_i32, %c0_i32_0 : i32, i32, i32
  }
}

module attributes {stable_mosaic.version = 11 : i64} {
  func.func @_fused_conv_kernel(%arg0: i32, %arg1: memref<1x8x64xf32, #tpu.memory_space<vmem>>, %arg2: memref<1x8x8xbf16, #tpu.memory_space<vmem>>, %arg3: memref<8x1xf32, #tpu.memory_space<vmem>>, %arg4: memref<1x8x64xf32, #tpu.memory_space<vmem>>) attributes {dimension_semantics = [#tpu.dimension_semantics<parallel>], iteration_bounds = array<i64: 2>, scalar_prefetch = 0 : i64, scratch_operands = 0 : i64, tpu.core_type = #tpu.core_type<tc>, window_params = [{transform_indices = @transform_0, window_bounds = array<i64: 1, 8, 64>}, {pipeline_mode = #tpu.pipeline_mode<synchronous>, transform_indices = @transform_1, window_bounds = array<i64: 1, 8, 8>}, {pipeline_mode = #tpu.pipeline_mode<synchronous>, transform_indices = @transform_2, window_bounds = array<i64: 8, 1>}, {transform_indices = @transform_3, window_bounds = array<i64: 1, 8, 64>}]} {
    %c0 = arith.constant 0 : index
    %c0_0 = arith.constant 0 : index
    %c0_1 = arith.constant 0 : index
    %0 = vector.load %arg1[%c0, %c0_0, %c0_1] : memref<1x8x64xf32, #tpu.memory_space<vmem>>, vector<1x8x64xf32>
    %1 = vector.shape_cast %0 : vector<1x8x64xf32> to vector<8x64xf32>
    %cst = arith.constant 0.000000e+00 : f32
    %2 = vector.broadcast %cst : f32 to vector<8x64xf32>
    %3 = arith.cmpf oge, %1, %2 : vector<8x64xf32>
    %cst_2 = arith.constant 1.000000e-01 : f32
    %4 = vector.broadcast %cst_2 : f32 to vector<8x64xf32>
    %5 = arith.mulf %4, %1 : vector<8x64xf32>
    %6 = arith.select %3, %1, %5 : vector<8x64xi1>, vector<8x64xf32>
    %7 = arith.truncf %6 : vector<8x64xf32> to vector<8x64xbf16>
    %cst_3 = arith.constant 0.000000e+00 : f32
    %8 = vector.broadcast %cst_3 : f32 to vector<8x64xf32>
    %c0_4 = arith.constant 0 : index
    %c0_5 = arith.constant 0 : index
    %c0_6 = arith.constant 0 : index
    %9 = vector.load %arg2[%c0_4, %c0_5, %c0_6] : memref<1x8x8xbf16, #tpu.memory_space<vmem>>, vector<1x8x8xbf16>
    %10 = vector.shape_cast %9 : vector<1x8x8xbf16> to vector<8x8xbf16>
    %cst_7 = arith.constant dense<0.000000e+00> : vector<8x64xf32>
    %11 = tpu.matmul %10, %7, %cst_7 {dimension_numbers = #tpu.dot_dimension_numbers<[1], [0], [0], [1], [0, 0, 1, 1], [], []>} : vector<8x8xbf16>, vector<8x64xbf16>, vector<8x64xf32> -> vector<8x64xf32>
    %12 = arith.addf %8, %11 : vector<8x64xf32>
    %c0_8 = arith.constant 0 : index
    %c0_9 = arith.constant 0 : index
    %13 = vector.load %arg3[%c0_8, %c0_9] : memref<8x1xf32, #tpu.memory_space<vmem>>, vector<8x1xf32>
    %14 = vector.broadcast %13 : vector<8x1xf32> to vector<8x64xf32>
    %15 = arith.addf %12, %14 : vector<8x64xf32>
    %c0_10 = arith.constant 0 : index
    %c0_11 = arith.constant 0 : index
    %c0_12 = arith.constant 0 : index
    %16 = vector.load %arg4[%c0_10, %c0_11, %c0_12] : memref<1x8x64xf32, #tpu.memory_space<vmem>>, vector<1x8x64xf32>
    %17 = vector.shape_cast %16 : vector<1x8x64xf32> to vector<8x64xf32>
    %18 = vector.shape_cast %15 : vector<8x64xf32> to vector<1x8x64xf32>
    tpu.vector_store %arg4[%c0_10, %c0_11, %c0_12], %18 {strides = array<i32>} : memref<1x8x64xf32, #tpu.memory_space<vmem>>, vector<1x8x64xf32>,
    return
  }
  func.func @transform_0(%arg0: i32) -> (i32, i32, i32) {
    %c0_i32 = arith.constant 0 : i32
    %c0_i32_0 = arith.constant 0 : i32
    %c0_i32_1 = arith.constant 0 : i32
    return %arg0, %c0_i32, %c0_i32_0 : i32, i32, i32
  }
  func.func @transform_1(%arg0: i32) -> (i32, i32, i32) {
    %c0_i32 = arith.constant 0 : i32
    %c0_i32_0 = arith.constant 0 : i32
    %c0_i32_1 = arith.constant 0 : i32
    %c0_i32_2 = arith.constant 0 : i32
    return %c0_i32, %c0_i32_0, %c0_i32_1 : i32, i32, i32
  }
  func.func @transform_2(%arg0: i32) -> (i32, i32) {
    %c0_i32 = arith.constant 0 : i32
    %c0_i32_0 = arith.constant 0 : i32
    %c0_i32_1 = arith.constant 0 : i32
    return %c0_i32, %c0_i32_0 : i32, i32
  }
  func.func @transform_3(%arg0: i32) -> (i32, i32, i32) {
    %c0_i32 = arith.constant 0 : i32
    %c0_i32_0 = arith.constant 0 : i32
    %c0_i32_1 = arith.constant 0 : i32
    return %arg0, %c0_i32, %c0_i32_0 : i32, i32, i32
  }
}

</mosaic_0001>

<bundles_post_ra>
// kernel: affine_layer_fwd.30
= control target key start
LH: loop header
LB: loop body
LE: loop exit
PB: predicated region body
PF: predicated region fallthrough
CT: control target
= control target key end

     0   :  { %s301_s12 = smov 0   ;;  %s324_s0 = inlined_call_operand.vmem [shape: f32[2,4,64], index: 0, kind: input, shape index: {}]   ;;  %s325_s1 = inlined_call_operand.vmem [shape: bf16[1,8,4], index: 1, kind: input, shape index: {}]   ;;  %s326_s2 = inlined_call_operand.vmem [shape: f32[8,1], index: 2, kind: input, shape index: {}]   ;;  %s327_s3 = inlined_call_operand.vmem [shape: f32[2,8,64], index: 3, kind: output, shape index: {}]  }
   0x1 LB: > { %s252_s13 = sadd.s32 4294967295, %s278_s12   ;;  %p256_p0 = scmp.ge.s32.totalorder %s278_s12, 1  ;;  %s278_s12 = sphi %s301_s12, %s13_s12  }
   0x2   : > { %p136_p1 = scmp.lt.s32.totalorder %s278_s12, 3 }
   0x4   : > { %p137_p2 = pnand %p256_p0, %p136_p1 }
   0x5   : > { %p158_p3 = scmp.lt.s32.totalorder (!%p137_p2), %s252_s13, 1 }
   0x6   : > { %140 = sbr.rel (%p137_p2) target bundleno = 155 (0x9b), region = 32 }
   0xb   : > { %v280_v0 = vmov 0   ;;  %v170_v1 = vld [vmem:[%s326_s2] sm:$0xff]  ;;  %s329_s13 = smov (!%p158_p3, %s252_s13), 1  ;;  %vm180_vm0 = vcmask 1041408   ;;  %vm176_vm1 = vcmask 31744   ;;  %vm197_vm2 = vcmask 523264  }
   0xc   : > { %271 = vset.pattern.permute.xlu0 %v280_v0  ;;  %s257_s16 = sshll.u32 %s329_s13, 2  ;;  %v169_v5 = vld [vmem:[%s325_s1] sm:$0xf]  ;;  %s258_s22 = sshll.u32 %s329_s13, 3 }
   0xd   : > { %173 = vperm.xlu0 %271, %v170_v1   ;;  %s161_s19 = scalar_lea.vmem %s324_s0, %s257_s16  ;;  %s165_s25 = scalar_lea.vmem %s327_s3, %s258_s22 }
   0xe   : > { %v167_v2 = vld [vmem:[%s161_s19] sm:$0xf] }
   0xf   : > { %v168_v3 = vpack.c.bf16 %v167_v2, %v167_v2 }
  0x11   : > { %v182_v4 = vsel %vm180_vm0, %v168_v3, 0 }
  0x12   : > { %191 = vmatpush.bf16.msra.mxu0 %v182_v4 }
  0x15   : > { %259 = vmatmul.msk.bf16.vlgmr.msra.gmra.mxu0 %vm176_vm1, %v169_v5 }
  0x7f   : > { %v174_v6 = vpop.permute.xlu0 %173 }
  0x92   : > { %v193_v7 = vpop.f32.mrf.mxu0 }
  0x93   : > { %v194_v8 = vadd.f32 %v193_v7, %v174_v6 }
  0x95   : > { %198 = vst.msk [vmem:[%s165_s25] sm:$0xff] %vm197_vm2, %v194_v8 }
  0x9a   : > { %v195_v9 = vpop.f32.mrf.mxu0 }
  0x9b PF: > { %s13_s12 = sadd.s32 1, %s278_s12  }
  0x9c   : > { %p10_p4 = scmp.ge.s32.totalorder %s13_s12, 4  }
  0x9e   :  { %12 = sbr.rel (!%p10_p4) target bundleno = 1 (0x1), region = 62 }

// kernel: affine_layer_fwd.31
= control target key start
LH: loop header
LB: loop body
LE: loop exit
PB: predicated region body
PF: predicated region fallthrough
CT: control target
= control target key end

     0   :  { %s367_s15 = smov 0   ;;  %s393_s0 = inlined_call_operand.vmem [shape: f32[2,16,64], index: 0, kind: input, shape index: {}]   ;;  %s394_s1 = inlined_call_operand.vmem [shape: bf16[1,8,16], index: 1, kind: input, shape index: {}]   ;;  %s395_s2 = inlined_call_operand.vmem [shape: f32[8,1], index: 2, kind: input, shape index: {}]   ;;  %s396_s3 = inlined_call_operand.vmem [shape: f32[2,8,64], index: 3, kind: input, shape index: {}]   ;;  %s397_s4 = inlined_call_operand.vmem [shape: f32[2,8,64], index: 4, kind: output, shape index: {}]  }
   0x1 LB: > { %s310_s16 = sadd.s32 4294967295, %s339_s15   ;;  %p314_p0 = scmp.ge.s32.totalorder %s339_s15, 1  ;;  %s339_s15 = sphi %s367_s15, %s14_s15  }
   0x2   : > { %p171_p1 = scmp.lt.s32.totalorder %s339_s15, 3 }
   0x4   : > { %p172_p2 = pnand %p314_p0, %p171_p1 }
   0x5   : > { %p200_p3 = scmp.lt.s32.totalorder (!%p172_p2), %s310_s16, 1 }
   0x6   : > { %175 = sbr.rel (%p172_p2) target bundleno = 154 (0x9a), region = 36 }
   0xb   : > { %v218_v0 = vld [vmem:[%s395_s2] sm:$0xff]  ;;  %v341_v1 = vmov 0   ;;  %s399_s16 = smov (!%p200_p3, %s310_s16), 1  ;;  %vm224_vm0 = vcmask 130048   ;;  %vm243_vm1 = vcmask 523264  }
   0xc   : > { %332 = vset.pattern.permute.xlu0 %v341_v1  ;;  %s322_s19 = sshll.u32 %s399_s16, 4  ;;  %v217_v5 = vld [vmem:[%s394_s1] sm:$0xf]  ;;  %s317_s25 = sshll.u32 %s399_s16, 3 }
   0xd   : > { %221 = vperm.xlu0 %332, %v218_v0   ;;  %s204_s22 = scalar_lea.vmem %s393_s0, %s322_s19  ;;  %s208_s28 = scalar_lea.vmem %s396_s3, %s317_s25 }
   0xe   : > { %v214_v2 = vld [vmem:[%s204_s22] sm:$0xff]  ;;  %v215_v3 = vld [vmem:[%s204_s22 + $0x8] sm:$0xff]  ;;  %s212_s5 = scalar_lea.vmem %s397_s4, %s317_s25 }
   0xf   : > { %v216_v4 = vpack.c.bf16 %v215_v3, %v214_v2  ;;  %v241_v8 = vld [vmem:[%s208_s28] sm:$0xff] }
  0x11   : > { %235 = vmatpush.bf16.msra.mxu0 %v216_v4 }
  0x14   : > { %319 = vmatmul.msk.bf16.vlgmr.msra.gmra.mxu0 %vm224_vm0, %v217_v5 }
  0x7f   : > { %v222_v6 = vpop.permute.xlu0 %221 }
  0x91   : > { %v237_v7 = vpop.f32.mrf.mxu0 }
  0x92   : > { %v238_v9 = vadd.f32 %v237_v7, %v222_v6 }
  0x94   : > { %v242_v10 = vadd.f32 %v241_v8, %v238_v9 }
  0x96   : > { %244 = vst.msk [vmem:[%s212_s5] sm:$0xff] %vm243_vm1, %v242_v10 }
  0x99   : > { %v239_v11 = vpop.f32.mrf.mxu0 }
  0x9a PF: > { %s14_s15 = sadd.s32 1, %s339_s15  }
  0x9b   : > { %p11_p4 = scmp.ge.s32.totalorder %s14_s15, 4  }
  0x9d   :  { %13 = sbr.rel (!%p11_p4) target bundleno = 1 (0x1), region = 69 }

// kernel: affine_layer_fwd.34
= control target key start
LH: loop header
LB: loop body
LE: loop exit
PB: predicated region body
PF: predicated region fallthrough
CT: control target
= control target key end

     0   :  { %s492_s15 = smov 0   ;;  %s537_s0 = inlined_call_operand.vmem [shape: f32[2,16,18], index: 0, kind: input, shape index: {}]   ;;  %s538_s1 = inlined_call_operand.vmem [shape: bf16[3,16,16], index: 1, kind: input, shape index: {}]   ;;  %s539_s2 = inlined_call_operand.vmem [shape: f32[16,1], index: 2, kind: input, shape index: {}]   ;;  %s540_s3 = inlined_call_operand.vmem [shape: f32[2,16,16], index: 3, kind: input, shape index: {}]   ;;  %s541_s4 = inlined_call_operand.vmem [shape: f32[2,16,16], index: 4, kind: output, shape index: {}]  }
   0x1 LB: > { %s405_s16 = sadd.s32 4294967295, %s462_s15   ;;  %p409_p0 = scmp.ge.s32.totalorder %s462_s15, 1  ;;  %s462_s15 = sphi %s492_s15, %s14_s15  }
   0x2   : > { %p172_p1 = scmp.lt.s32.totalorder %s462_s15, 3 }
   0x4   : > { %p173_p2 = pnand %p409_p0, %p172_p1 }
   0x5   : > { %p203_p3 = scmp.lt.s32.totalorder (!%p173_p2), %s405_s16, 1  ;;  %s464_s21 = smov (!%p173_p2), 126  }
   0x6   : > { %176 = sbr.rel (%p173_p2) target bundleno = 293 (0x125), region = 36  ;;  %s465_s22 = smov (!%p173_p2), 127  }
   0xb   : > { %s543_s16 = smov (!%p203_p3, %s405_s16), 1  ;;  %v440_v11 = vld [vmem:[%s538_s1] sm:$0xff]  ;;  %vm247_vm2 = vcmask 130048   ;;  %v466_v13 = vmov 0   ;;  %v319_v14 = vld [vmem:[%s539_s2 + $0x8] sm:$0xff]  ;;  %v442_v16 = vld [vmem:[%s538_s1 + $0x10] sm:$0xff] }
   0xc   : > { %s500_s17 = sshll.u32 %s543_s16, 4  ;;  %v318_v12 = vld [vmem:[%s539_s2] sm:$0xff]  ;;  %454 = vset.pattern.permute.xlu1 %v466_v13  ;;  %455 = vset.pattern.permute.xlu0 %v466_v13  ;;  %v441_v18 = vld [vmem:[%s538_s1 + $0x8] sm:$0xff] }
   0xd   : > { %s207_s20 = scalar_lea.vmem %s537_s0, %s500_s17  ;;  %322 = vperm.xlu1 %454, %v318_v12   ;;  %s212_s9 = scalar_lea.vmem %s540_s3, %s500_s17 }
   0xe   : > { %v219_v0 = vld [vmem:[%s207_s20] sm:$0xff]  ;;  %v220_v1 = vld [vmem:[%s207_s20 + $0x8] sm:$0xff]  ;;  %s217_s12 = scalar_lea.vmem %s541_s4, %s500_s17 }
   0xf   : > { %vm221_vm0 = vcmp.ge.f32.partialorder %v219_v0, 0.0  ;;  %vm222_vm1 = vcmp.ge.f32.partialorder %v220_v1, 0.0  ;;  %v223_v2 = vmul.f32 0.1, %v219_v0  ;;  %v224_v3 = vmul.f32 0.1, %v220_v1 }
  0x10   : > { %v332_v25 = vld [vmem:[%s212_s9] sm:$0xff]  ;;  %v333_v34 = vld [vmem:[%s212_s9 + $0x8] sm:$0xff] }
  0x11   : > { %v225_v4 = vsel %vm221_vm0, %v219_v0, %v223_v2  ;;  %v226_v5 = vsel %vm222_vm1, %v220_v1, %v224_v3 }
  0x12   : > { %v227_v6 = vpack.c.bf16 %v225_v4, %v225_v4  ;;  %v228_v7 = vpack.c.bf16 %v226_v5, %v226_v5 }
  0x14   : > { %v241_v8 = vunpack.c.l.b16 %v227_v6  ;;  %v242_v9 = vunpack.c.l.b16 %v228_v7 }
  0x15   : > { %327 = vperm.xlu1 %454, %v319_v14  }
  0x16   : > { %v243_v10 = vpack.c.b16 %v242_v9, %v241_v8 }
  0x18   : > { %296 = vrot.lane.b32.xlu0 %v243_v10, %s464_s21  ;;  %281 = vmatpush.bf16.msra.mxu1 %v243_v10 }
  0x1b   : > { %427 = vmatmul.msk.bf16.vlgmr.msra.gmra.mxu1 %vm247_vm2, %v440_v11 }
  0x20   : > { %244 = vrot.lane.b32.xlu0 %v243_v10, %s465_s22 }
  0x7f   : > { %v323_v23 = vpop.permute.xlu1 %322 }
  0x87   : > { %v328_v33 = vpop.permute.xlu1 %327 }
  0x8a   : > { %v297_v15 = vpop.permute.xlu0 %296 }
  0x8b   : > { %309 = vmatpush.bf16.msra.mxu2 %v297_v15 }
  0x8e   : > { %434 = vmatmul.msk.bf16.vlgmr.msra.gmra.mxu2 %vm247_vm2, %v442_v16 }
  0x92   : > { %v245_v17 = vpop.permute.xlu0 %244 }
  0x93   : > { %258 = vmatpush.bf16.msra.mxu0 %v245_v17 }
  0x96   : > { %422 = vmatmul.msk.bf16.vlgmr.msra.gmra.mxu0 %vm247_vm2, %v441_v18 }
  0x98   : > { %v283_v19 = vpop.f32.mrf.mxu1 }
  0xa0   : > { %v285_v28 = vpop.f32.mrf.mxu1 }
 0x111   : > { %v311_v20 = vpop.f32.mrf.mxu2 }
 0x113   : > { %v260_v21 = vpop.f32.mrf.mxu0 }
 0x114   : > { %v284_v22 = vadd.f32 %v283_v19, %v260_v21 }
 0x116   : > { %v316_v24 = vadd.f32 %v311_v20, %v284_v22 }
 0x118   : > { %v330_v26 = vadd.f32 %v323_v23, %v316_v24 }
 0x119   : > { %v313_v31 = vpop.f32.mrf.mxu2 }
 0x11a   : > { %v334_v27 = vadd.f32 %v332_v25, %v330_v26 }
 0x11b   : > { %v262_v29 = vpop.f32.mrf.mxu0 }
 0x11c   : > { %336 = vst.msk [vmem:[%s217_s12] sm:$0xff] %vm247_vm2, %v334_v27  ;;  %v286_v30 = vadd.f32 %v285_v28, %v262_v29 }
 0x11e   : > { %v317_v32 = vadd.f32 %v313_v31, %v286_v30 }
 0x120   : > { %v331_v35 = vadd.f32 %v328_v33, %v317_v32 }
 0x122   : > { %v335_v36 = vadd.f32 %v333_v34, %v331_v35 }
 0x124   : > { %337 = vst.msk [vmem:[%s217_s12 + $0x8] sm:$0xff] %vm247_vm2, %v335_v36 }
 0x125 PF: > { %s14_s15 = sadd.s32 1, %s462_s15  }
 0x126   : > { %p11_p4 = scmp.ge.s32.totalorder %s14_s15, 4  }
 0x128   :  { %13 = sbr.rel (!%p11_p4) target bundleno = 1 (0x1), region = 71 }

// kernel: affine_layer_fwd.33
= control target key start
LH: loop header
LB: loop body
LE: loop exit
PB: predicated region body
PF: predicated region fallthrough
CT: control target
= control target key end

     0   :  { %s398_s15 = smov 0   ;;  %s430_s0 = inlined_call_operand.vmem [shape: f32[2,16,16], index: 0, kind: input, shape index: {}]   ;;  %s431_s1 = inlined_call_operand.vmem [shape: bf16[1,16,16], index: 1, kind: input, shape index: {}]   ;;  %s432_s2 = inlined_call_operand.vmem [shape: f32[16,1], index: 2, kind: input, shape index: {}]   ;;  %s433_s3 = inlined_call_operand.vmem [shape: f32[2,16,16], index: 3, kind: input, shape index: {}]   ;;  %s434_s4 = inlined_call_operand.vmem [shape: f32[2,16,16], index: 4, kind: output, shape index: {}]  }
   0x1 LB: > { %s332_s16 = sadd.s32 4294967295, %s370_s15   ;;  %p336_p0 = scmp.ge.s32.totalorder %s370_s15, 1  ;;  %s370_s15 = sphi %s398_s15, %s14_s15  }
   0x2   : > { %p172_p1 = scmp.lt.s32.totalorder %s370_s15, 3 }
   0x4   : > { %p173_p2 = pnand %p336_p0, %p172_p1 }
   0x5   : > { %p203_p3 = scmp.lt.s32.totalorder (!%p173_p2), %s332_s16, 1 }
   0x6   : > { %176 = sbr.rel (%p173_p2) target bundleno = 159 (0x9f), region = 36 }
   0xb   : > { %v224_v0 = vld [vmem:[%s432_s2] sm:$0xff]  ;;  %v372_v1 = vmov 0   ;;  %s436_s16 = smov (!%p203_p3, %s332_s16), 1  ;;  %v225_v5 = vld [vmem:[%s432_s2 + $0x8] sm:$0xff]  ;;  %vm241_vm0 = vcmask 130048  }
   0xc   : > { %363 = vset.pattern.permute.xlu0 %v372_v1  ;;  %s350_s19 = sshll.u32 %s436_s16, 4  ;;  %v353_v6 = vld [vmem:[%s431_s1] sm:$0xff] }
   0xd   : > { %228 = vperm.xlu0 %363, %v224_v0   ;;  %s207_s22 = scalar_lea.vmem %s430_s0, %s350_s19  ;;  %s212_s29 = scalar_lea.vmem %s433_s3, %s350_s19 }
   0xe   : > { %v219_v2 = vld [vmem:[%s207_s22] sm:$0xff]  ;;  %v220_v3 = vld [vmem:[%s207_s22 + $0x8] sm:$0xff]  ;;  %s217_s6 = scalar_lea.vmem %s434_s4, %s350_s19 }
   0xf   : > { %v221_v4 = vpack.c.bf16 %v220_v3, %v219_v2  ;;  %v259_v9 = vld [vmem:[%s212_s29] sm:$0xff]  ;;  %v260_v14 = vld [vmem:[%s212_s29 + $0x8] sm:$0xff] }
  0x11   : > { %252 = vmatpush.bf16.msra.mxu0 %v221_v4 }
  0x14   : > { %347 = vmatmul.msk.bf16.vlgmr.msra.gmra.mxu0 %vm241_vm0, %v353_v6 }
  0x15   : > { %233 = vperm.xlu0 %363, %v225_v5  }
  0x7f   : > { %v229_v7 = vpop.permute.xlu0 %228 }
  0x87   : > { %v234_v12 = vpop.permute.xlu0 %233 }
  0x91   : > { %v254_v8 = vpop.f32.mrf.mxu0 }
  0x92   : > { %v255_v10 = vadd.f32 %v254_v8, %v229_v7 }
  0x94   : > { %v261_v11 = vadd.f32 %v259_v9, %v255_v10 }
  0x96   : > { %263 = vst.msk [vmem:[%s217_s6] sm:$0xff] %vm241_vm0, %v261_v11 }
  0x99   : > { %v256_v13 = vpop.f32.mrf.mxu0 }
  0x9a   : > { %v257_v15 = vadd.f32 %v256_v13, %v234_v12 }
  0x9c   : > { %v262_v16 = vadd.f32 %v260_v14, %v257_v15 }
  0x9e   : > { %264 = vst.msk [vmem:[%s217_s6 + $0x8] sm:$0xff] %vm241_vm0, %v262_v16 }
  0x9f PF: > { %s14_s15 = sadd.s32 1, %s370_s15  }
  0xa0   : > { %p11_p4 = scmp.ge.s32.totalorder %s14_s15, 4  }
  0xa2   :  { %13 = sbr.rel (!%p11_p4) target bundleno = 1 (0x1), region = 69 }

// kernel: affine_layer_fwd.32
= control target key start
LH: loop header
LB: loop body
LE: loop exit
PB: predicated region body
PF: predicated region fallthrough
CT: control target
= control target key end

     0   :  { %s401_s12 = smov 0   ;;  %s434_s0 = inlined_call_operand.vmem [shape: f32[2,32,17], index: 0, kind: input, shape index: {}]   ;;  %s435_s1 = inlined_call_operand.vmem [shape: bf16[2,16,32], index: 1, kind: input, shape index: {}]   ;;  %s436_s2 = inlined_call_operand.vmem [shape: f32[16,1], index: 2, kind: input, shape index: {}]   ;;  %s437_s3 = inlined_call_operand.vmem [shape: f32[2,16,16], index: 3, kind: output, shape index: {}]  }
   0x1 LB: > { %s332_s13 = sadd.s32 4294967295, %s377_s12   ;;  %p336_p0 = scmp.ge.s32.totalorder %s377_s12, 1  ;;  %s377_s12 = sphi %s401_s12, %s13_s12  }
   0x2   : > { %p137_p1 = scmp.lt.s32.totalorder %s377_s12, 3 }
   0x4   : > { %p138_p2 = pnand %p336_p0, %p137_p1 }
   0x5   : > { %p161_p3 = scmp.lt.s32.totalorder (!%p138_p2), %s332_s13, 1  ;;  %s379_s18 = smov (!%p138_p2), 127  }
   0x6   : > { %141 = sbr.rel (%p138_p2) target bundleno = 289 (0x121), region = 32 }
   0xb   : > { %s439_s13 = smov (!%p161_p3, %s332_s13), 1  ;;  %v357_v22 = vld [vmem:[%s435_s1] sm:$0xff]  ;;  %vm218_vm4 = vcmask 261120   ;;  %v380_v24 = vmov 0   ;;  %v261_v25 = vld [vmem:[%s436_s2 + $0x8] sm:$0xff]  ;;  %vm274_vm5 = vcmask 130048  }
   0xc   : > { %s355_s14 = sshll.u32 %s439_s13, 5  ;;  %v260_v23 = vld [vmem:[%s436_s2] sm:$0xff]  ;;  %369 = vset.pattern.permute.xlu1 %v380_v24  ;;  %370 = vset.pattern.permute.xlu0 %v380_v24  ;;  %v358_v28 = vld [vmem:[%s435_s1 + $0x8] sm:$0xff]  ;;  %s356_s27 = sshll.u32 %s439_s13, 4 }
   0xd   : > { %s165_s17 = scalar_lea.vmem %s434_s0, %s355_s14  ;;  %264 = vperm.xlu1 %369, %v260_v23   ;;  %s170_s30 = scalar_lea.vmem %s437_s3, %s356_s27 }
   0xe   : > { %v174_v0 = vld [vmem:[%s165_s17 + $0x10] sm:$0xff]  ;;  %v175_v1 = vld [vmem:[%s165_s17 + $0x18] sm:$0xff]  ;;  %v172_v2 = vld [vmem:[%s165_s17] sm:$0xff] }
   0xf   : > { %vm178_vm0 = vcmp.ge.f32.partialorder %v174_v0, 0.0  ;;  %vm179_vm1 = vcmp.ge.f32.partialorder %v175_v1, 0.0  ;;  %v182_v3 = vmul.f32 0.1, %v174_v0  ;;  %v183_v4 = vmul.f32 0.1, %v175_v1 }
  0x10   : > { %v173_v5 = vld [vmem:[%s165_s17 + $0x8] sm:$0xff]  ;;  %vm176_vm2 = vcmp.ge.f32.partialorder %v172_v2, 0.0  ;;  %v180_v6 = vmul.f32 0.1, %v172_v2 }
  0x11   : > { %v186_v7 = vsel %vm178_vm0, %v174_v0, %v182_v3  ;;  %v187_v8 = vsel %vm179_vm1, %v175_v1, %v183_v4  ;;  %vm177_vm3 = vcmp.ge.f32.partialorder %v173_v5, 0.0  ;;  %v181_v9 = vmul.f32 0.1, %v173_v5 }
  0x12   : > { %v190_v10 = vpack.c.bf16 %v186_v7, %v186_v7  ;;  %v191_v11 = vpack.c.bf16 %v187_v8, %v187_v8  ;;  %v184_v12 = vsel %vm176_vm2, %v172_v2, %v180_v6 }
  0x13   : > { %v185_v13 = vsel %vm177_vm3, %v173_v5, %v181_v9  ;;  %v188_v14 = vpack.c.bf16 %v184_v12, %v184_v12 }
  0x14   : > { %v208_v15 = vunpack.c.l.b16 %v190_v10  ;;  %v209_v16 = vunpack.c.l.b16 %v191_v11  ;;  %v189_v17 = vpack.c.bf16 %v185_v13, %v185_v13 }
  0x15   : > { %v206_v19 = vunpack.c.l.b16 %v188_v14  ;;  %269 = vperm.xlu1 %369, %v261_v25  }
  0x16   : > { %v211_v18 = vpack.c.b16 %v209_v16, %v208_v15  ;;  %v207_v20 = vunpack.c.l.b16 %v189_v17 }
  0x18   : > { %214 = vrot.lane.b32.xlu0 %v211_v18, %s379_s18  ;;  %252 = vmatpush.bf16.msra.mxu1 %v211_v18  ;;  %v210_v21 = vpack.c.b16 %v207_v20, %v206_v19 }
  0x1c   : > { %253 = vmatpush.bf16.msra.mxu1 %v210_v21 }
  0x1f   : > { %352 = vmatmul.msk.bf16.vlgmr.msra.gmra.mxu1 %vm218_vm4, %v357_v22 }
  0x20   : > { %212 = vrot.lane.b32.xlu0 %v210_v21, %s379_s18 }
  0x7f   : > { %v265_v30 = vpop.permute.xlu1 %264 }
  0x87   : > { %v270_v37 = vpop.permute.xlu1 %269 }
  0x8a   : > { %v215_v26 = vpop.permute.xlu0 %214 }
  0x8b   : > { %228 = vmatpush.bf16.msra.mxu0 %v215_v26 }
  0x92   : > { %v213_v27 = vpop.permute.xlu0 %212 }
  0x93   : > { %229 = vmatpush.bf16.msra.mxu0 %v213_v27 }
  0x96   : > { %347 = vmatmul.msk.bf16.vlgmr.msra.gmra.mxu0 %vm218_vm4, %v358_v28 }
  0x9c   : > { %v255_v29 = vpop.f32.mrf.mxu1 }
  0xa4   : > { %v257_v34 = vpop.f32.mrf.mxu1 }
 0x113   : > { %v231_v31 = vpop.f32.mrf.mxu0 }
 0x114   : > { %v256_v32 = vadd.f32 %v255_v29, %v231_v31 }
 0x116   : > { %v272_v33 = vadd.f32 %v265_v30, %v256_v32 }
 0x118   : > { %275 = vst.msk [vmem:[%s170_s30] sm:$0xff] %vm274_vm5, %v272_v33 }
 0x11b   : > { %v233_v35 = vpop.f32.mrf.mxu0 }
 0x11c   : > { %v258_v36 = vadd.f32 %v257_v34, %v233_v35 }
 0x11e   : > { %v273_v38 = vadd.f32 %v270_v37, %v258_v36 }
 0x120   : > { %276 = vst.msk [vmem:[%s170_s30 + $0x8] sm:$0xff] %vm274_vm5, %v273_v38 }
 0x121 PF: > { %s13_s12 = sadd.s32 1, %s377_s12  }
 0x122   : > { %p10_p4 = scmp.ge.s32.totalorder %s13_s12, 4  }
 0x124   :  { %12 = sbr.rel (!%p10_p4) target bundleno = 1 (0x1), region = 63 }

// kernel: affine_layer_fwd.35
= control target key start
LH: loop header
LB: loop body
LE: loop exit
PB: predicated region body
PF: predicated region fallthrough
CT: control target
= control target key end

     0   :  { %s492_s15 = smov 0   ;;  %s537_s0 = inlined_call_operand.vmem [shape: f32[2,16,22], index: 0, kind: input, shape index: {}]   ;;  %s538_s1 = inlined_call_operand.vmem [shape: bf16[3,16,16], index: 1, kind: input, shape index: {}]   ;;  %s539_s2 = inlined_call_operand.vmem [shape: f32[16,1], index: 2, kind: input, shape index: {}]   ;;  %s540_s3 = inlined_call_operand.vmem [shape: f32[2,16,16], index: 3, kind: input, shape index: {}]   ;;  %s541_s4 = inlined_call_operand.vmem [shape: f32[2,16,16], index: 4, kind: output, shape index: {}]  }
   0x1 LB: > { %s405_s16 = sadd.s32 4294967295, %s462_s15   ;;  %p409_p0 = scmp.ge.s32.totalorder %s462_s15, 1  ;;  %s462_s15 = sphi %s492_s15, %s14_s15  }
   0x2   : > { %p172_p1 = scmp.lt.s32.totalorder %s462_s15, 3 }
   0x4   : > { %p173_p2 = pnand %p409_p0, %p172_p1 }
   0x5   : > { %p203_p3 = scmp.lt.s32.totalorder (!%p173_p2), %s405_s16, 1  ;;  %s464_s21 = smov (!%p173_p2), 122  }
   0x6   : > { %176 = sbr.rel (%p173_p2) target bundleno = 293 (0x125), region = 36  ;;  %s465_s22 = smov (!%p173_p2), 125  }
   0xb   : > { %s543_s16 = smov (!%p203_p3, %s405_s16), 1  ;;  %v440_v11 = vld [vmem:[%s538_s1] sm:$0xff]  ;;  %vm247_vm2 = vcmask 130048   ;;  %v466_v13 = vmov 0   ;;  %v319_v14 = vld [vmem:[%s539_s2 + $0x8] sm:$0xff]  ;;  %v442_v16 = vld [vmem:[%s538_s1 + $0x10] sm:$0xff] }
   0xc   : > { %s500_s17 = sshll.u32 %s543_s16, 4  ;;  %v318_v12 = vld [vmem:[%s539_s2] sm:$0xff]  ;;  %454 = vset.pattern.permute.xlu1 %v466_v13  ;;  %455 = vset.pattern.permute.xlu0 %v466_v13  ;;  %v441_v18 = vld [vmem:[%s538_s1 + $0x8] sm:$0xff] }
   0xd   : > { %s207_s20 = scalar_lea.vmem %s537_s0, %s500_s17  ;;  %322 = vperm.xlu1 %454, %v318_v12   ;;  %s212_s9 = scalar_lea.vmem %s540_s3, %s500_s17 }
   0xe   : > { %v219_v0 = vld [vmem:[%s207_s20] sm:$0xff]  ;;  %v220_v1 = vld [vmem:[%s207_s20 + $0x8] sm:$0xff]  ;;  %s217_s12 = scalar_lea.vmem %s541_s4, %s500_s17 }
   0xf   : > { %vm221_vm0 = vcmp.ge.f32.partialorder %v219_v0, 0.0  ;;  %vm222_vm1 = vcmp.ge.f32.partialorder %v220_v1, 0.0  ;;  %v223_v2 = vmul.f32 0.1, %v219_v0  ;;  %v224_v3 = vmul.f32 0.1, %v220_v1 }
  0x10   : > { %v332_v25 = vld [vmem:[%s212_s9] sm:$0xff]  ;;  %v333_v34 = vld [vmem:[%s212_s9 + $0x8] sm:$0xff] }
  0x11   : > { %v225_v4 = vsel %vm221_vm0, %v219_v0, %v223_v2  ;;  %v226_v5 = vsel %vm222_vm1, %v220_v1, %v224_v3 }
  0x12   : > { %v227_v6 = vpack.c.bf16 %v225_v4, %v225_v4  ;;  %v228_v7 = vpack.c.bf16 %v226_v5, %v226_v5 }
  0x14   : > { %v241_v8 = vunpack.c.l.b16 %v227_v6  ;;  %v242_v9 = vunpack.c.l.b16 %v228_v7 }
  0x15   : > { %327 = vperm.xlu1 %454, %v319_v14  }
  0x16   : > { %v243_v10 = vpack.c.b16 %v242_v9, %v241_v8 }
  0x18   : > { %296 = vrot.lane.b32.xlu0 %v243_v10, %s464_s21  ;;  %281 = vmatpush.bf16.msra.mxu1 %v243_v10 }
  0x1b   : > { %427 = vmatmul.msk.bf16.vlgmr.msra.gmra.mxu1 %vm247_vm2, %v440_v11 }
  0x20   : > { %244 = vrot.lane.b32.xlu0 %v243_v10, %s465_s22 }
  0x7f   : > { %v323_v23 = vpop.permute.xlu1 %322 }
  0x87   : > { %v328_v33 = vpop.permute.xlu1 %327 }
  0x8a   : > { %v297_v15 = vpop.permute.xlu0 %296 }
  0x8b   : > { %309 = vmatpush.bf16.msra.mxu2 %v297_v15 }
  0x8e   : > { %434 = vmatmul.msk.bf16.vlgmr.msra.gmra.mxu2 %vm247_vm2, %v442_v16 }
  0x92   : > { %v245_v17 = vpop.permute.xlu0 %244 }
  0x93   : > { %258 = vmatpush.bf16.msra.mxu0 %v245_v17 }
  0x96   : > { %422 = vmatmul.msk.bf16.vlgmr.msra.gmra.mxu0 %vm247_vm2, %v441_v18 }
  0x98   : > { %v283_v19 = vpop.f32.mrf.mxu1 }
  0xa0   : > { %v285_v28 = vpop.f32.mrf.mxu1 }
 0x111   : > { %v311_v20 = vpop.f32.mrf.mxu2 }
 0x113   : > { %v260_v21 = vpop.f32.mrf.mxu0 }
 0x114   : > { %v284_v22 = vadd.f32 %v283_v19, %v260_v21 }
 0x116   : > { %v316_v24 = vadd.f32 %v311_v20, %v284_v22 }
 0x118   : > { %v330_v26 = vadd.f32 %v323_v23, %v316_v24 }
 0x119   : > { %v313_v31 = vpop.f32.mrf.mxu2 }
 0x11a   : > { %v334_v27 = vadd.f32 %v332_v25, %v330_v26 }
 0x11b   : > { %v262_v29 = vpop.f32.mrf.mxu0 }
 0x11c   : > { %336 = vst.msk [vmem:[%s217_s12] sm:$0xff] %vm247_vm2, %v334_v27  ;;  %v286_v30 = vadd.f32 %v285_v28, %v262_v29 }
 0x11e   : > { %v317_v32 = vadd.f32 %v313_v31, %v286_v30 }
 0x120   : > { %v331_v35 = vadd.f32 %v328_v33, %v317_v32 }
 0x122   : > { %v335_v36 = vadd.f32 %v333_v34, %v331_v35 }
 0x124   : > { %337 = vst.msk [vmem:[%s217_s12 + $0x8] sm:$0xff] %vm247_vm2, %v335_v36 }
 0x125 PF: > { %s14_s15 = sadd.s32 1, %s462_s15  }
 0x126   : > { %p11_p4 = scmp.ge.s32.totalorder %s14_s15, 4  }
 0x128   :  { %13 = sbr.rel (!%p11_p4) target bundleno = 1 (0x1), region = 71 }

// kernel: affine_layer_fwd.37
= control target key start
LH: loop header
LB: loop body
LE: loop exit
PB: predicated region body
PF: predicated region fallthrough
CT: control target
= control target key end

     0   :  { %s440_s15 = smov 0   ;;  %s486_s0 = inlined_call_operand.vmem [shape: f32[2,16,4], index: 0, kind: input, shape index: {}]   ;;  %s487_s1 = inlined_call_operand.vmem [shape: bf16[1,32,16], index: 1, kind: input, shape index: {}]   ;;  %s488_s2 = inlined_call_operand.vmem [shape: f32[32,1], index: 2, kind: input, shape index: {}]   ;;  %s489_s3 = inlined_call_operand.vmem [shape: f32[2,32,4], index: 3, kind: input, shape index: {}]   ;;  %s490_s4 = inlined_call_operand.vmem [shape: f32[2,32,4], index: 4, kind: output, shape index: {}]  }
   0x1 LB: > { %s366_s16 = sadd.s32 4294967295, %s412_s15   ;;  %p370_p0 = scmp.ge.s32.totalorder %s412_s15, 1  ;;  %s412_s15 = sphi %s440_s15, %s14_s15  }
   0x2   : > { %p172_p1 = scmp.lt.s32.totalorder %s412_s15, 3 }
   0x4   : > { %p173_p2 = pnand %p370_p0, %p172_p1 }
   0x5   : > { %p203_p3 = scmp.lt.s32.totalorder (!%p173_p2), %s366_s16, 1 }
   0x6   : > { %176 = sbr.rel (%p173_p2) target bundleno = 160 (0xa0), region = 36 }
   0xb   : > { %v228_v0 = vld [vmem:[%s488_s2 + $0x10] sm:$0xff]  ;;  %v414_v1 = vmov 0   ;;  %v226_v2 = vld [vmem:[%s488_s2] sm:$0xff]  ;;  %s492_s16 = smov (!%p203_p3, %s366_s16), 1  ;;  %v229_v6 = vld [vmem:[%s488_s2 + $0x18] sm:$0xff]  ;;  %vm260_vm0 = vcmask 130048  }
   0xc   : > { %405 = vset.pattern.permute.xlu1 %v414_v1  ;;  %404 = vset.pattern.permute.xlu0 %v414_v1  ;;  %s389_s21 = sshll.u32 %s492_s16, 4  ;;  %v227_v7 = vld [vmem:[%s488_s2 + $0x8] sm:$0xff]  ;;  %v392_v8 = vld [vmem:[%s487_s1] sm:$0xff]  ;;  %s390_s7 = sshll.u32 %s492_s16, 5  ;;  %vm294_vm1 = vcmask 31744  }
   0xd   : > { %242 = vperm.xlu1 %405, %v228_v0   ;;  %232 = vperm.xlu0 %404, %v226_v2   ;;  %s207_s24 = scalar_lea.vmem %s486_s0, %s389_s21  ;;  %v393_v9 = vld [vmem:[%s487_s1 + $0x8] sm:$0xff]  ;;  %s212_s10 = scalar_lea.vmem %s489_s3, %s390_s7 }
   0xe   : > { %v219_v3 = vld [vmem:[%s207_s24] sm:$0xff]  ;;  %v220_v4 = vld [vmem:[%s207_s24 + $0x8] sm:$0xff]  ;;  %v288_v15 = vld [vmem:[%s212_s10 + $0x10] sm:$0xff]  ;;  %s217_s13 = scalar_lea.vmem %s490_s4, %s390_s7 }
   0xf   : > { %v221_v5 = vpack.c.bf16 %v220_v4, %v219_v3  ;;  %v286_v13 = vld [vmem:[%s212_s10] sm:$0xff]  ;;  %v287_v23 = vld [vmem:[%s212_s10 + $0x8] sm:$0xff]  ;;  %v289_v25 = vld [vmem:[%s212_s10 + $0x18] sm:$0xff] }
  0x11   : > { %274 = vmatpush.bf16.msra.mxu0 %v221_v5  ;;  %394 = vmatpush.bf16.msra.mxu1 %v221_v5 }
  0x14   : > { %385 = vmatmul.msk.bf16.vlgmr.msra.gmra.mxu0 %vm260_vm0, %v392_v8  ;;  %386 = vmatmul.msk.bf16.vlgmr.msra.gmra.mxu1 %vm260_vm0, %v393_v9 }
  0x15   : > { %247 = vperm.xlu1 %405, %v229_v6   ;;  %237 = vperm.xlu0 %404, %v227_v7  }
  0x7f   : > { %v243_v10 = vpop.permute.xlu1 %242  ;;  %v233_v11 = vpop.permute.xlu0 %232 }
  0x87   : > { %v248_v20 = vpop.permute.xlu1 %247  ;;  %v238_v21 = vpop.permute.xlu0 %237 }
  0x91   : > { %v276_v12 = vpop.f32.mrf.mxu0  ;;  %v281_v14 = vpop.f32.mrf.mxu1 }
  0x92   : > { %v277_v16 = vadd.f32 %v276_v12, %v233_v11  ;;  %v282_v17 = vadd.f32 %v281_v14, %v243_v10 }
  0x94   : > { %v290_v18 = vadd.f32 %v286_v13, %v277_v16  ;;  %v292_v19 = vadd.f32 %v288_v15, %v282_v17 }
  0x96   : > { %295 = vst.msk [vmem:[%s217_s13] sm:$0xff] %vm294_vm1, %v290_v18 }
  0x97   : > { %297 = vst.msk [vmem:[%s217_s13 + $0x10] sm:$0xff] %vm294_vm1, %v292_v19 }
  0x99   : > { %v278_v22 = vpop.f32.mrf.mxu0  ;;  %v283_v24 = vpop.f32.mrf.mxu1 }
  0x9a   : > { %v279_v26 = vadd.f32 %v278_v22, %v238_v21  ;;  %v284_v27 = vadd.f32 %v283_v24, %v248_v20 }
  0x9c   : > { %v291_v28 = vadd.f32 %v287_v23, %v279_v26  ;;  %v293_v29 = vadd.f32 %v289_v25, %v284_v27 }
  0x9e   : > { %296 = vst.msk [vmem:[%s217_s13 + $0x8] sm:$0xff] %vm294_vm1, %v291_v28 }
  0x9f   : > { %298 = vst.msk [vmem:[%s217_s13 + $0x18] sm:$0xff] %vm294_vm1, %v293_v29 }
  0xa0 PF: > { %s14_s15 = sadd.s32 1, %s412_s15  }
  0xa1   : > { %p11_p4 = scmp.ge.s32.totalorder %s14_s15, 4  }
  0xa3   :  { %13 = sbr.rel (!%p11_p4) target bundleno = 1 (0x1), region = 69 }

// kernel: affine_layer_fwd.38
= control target key start
LH: loop header
LB: loop body
LE: loop exit
PB: predicated region body
PF: predicated region fallthrough
CT: control target
= control target key end

     0   :  { %s607_s15 = smov 0   ;;  %s684_s0 = inlined_call_operand.vmem [shape: f32[2,32,6], index: 0, kind: input, shape index: {}]   ;;  %s685_s1 = inlined_call_operand.vmem [shape: bf16[3,32,32], index: 1, kind: input, shape index: {}]   ;;  %s686_s2 = inlined_call_operand.vmem [shape: f32[32,1], index: 2, kind: input, shape index: {}]   ;;  %s687_s3 = inlined_call_operand.vmem [shape: f32[2,32,4], index: 3, kind: input, shape index: {}]   ;;  %s688_s4 = inlined_call_operand.vmem [shape: f32[2,32,4], index: 4, kind: output, shape index: {}]  }
   0x1 LB: > { %s495_s16 = sadd.s32 4294967295, %s577_s15   ;;  %p499_p0 = scmp.ge.s32.totalorder %s577_s15, 1  ;;  %s577_s15 = sphi %s607_s15, %s14_s15  }
   0x2   : > { %p172_p1 = scmp.lt.s32.totalorder %s577_s15, 3 }
   0x4   : > { %p173_p2 = pnand %p499_p0, %p172_p1 }
   0x5   : > { %p203_p3 = scmp.lt.s32.totalorder (!%p173_p2), %s495_s16, 1  ;;  %s579_s21 = smov (!%p173_p2), 127  }
   0x6   : > { %176 = sbr.rel (%p173_p2) target bundleno = 313 (0x139), region = 36  ;;  %s580_s22 = smov (!%p173_p2), 126  }
   0xb   : > { %s690_s16 = smov (!%p203_p3, %s495_s16), 1  ;;  %v549_v22 = vld [vmem:[%s685_s1] sm:$0xff]  ;;  %vm274_vm4 = vcmask 261120   ;;  %v550_v23 = vld [vmem:[%s685_s1 + $0x8] sm:$0xff]  ;;  %v389_v24 = vld [vmem:[%s686_s2 + $0x10] sm:$0xff]  ;;  %v581_v27 = vmov 0  }
   0xc   : > { %s615_s17 = sshll.u32 %s690_s16, 5  ;;  %v387_v25 = vld [vmem:[%s686_s2] sm:$0xff]  ;;  %v390_v26 = vld [vmem:[%s686_s2 + $0x18] sm:$0xff]  ;;  %569 = vset.pattern.permute.xlu0 %v581_v27  ;;  %570 = vset.pattern.permute.xlu1 %v581_v27  ;;  %v388_v30 = vld [vmem:[%s686_s2 + $0x8] sm:$0xff]  ;;  %vm423_vm5 = vcmask 31744  }
   0xd   : > { %s207_s20 = scalar_lea.vmem %s684_s0, %s615_s17  ;;  %568 = vset.pattern.permute.xlu2 %v581_v27  ;;  %v551_v33 = vld [vmem:[%s685_s1 + $0x10] sm:$0xff]  ;;  %v553_v34 = vld [vmem:[%s685_s1 + $0x20] sm:$0xff]  ;;  %v552_v35 = vld [vmem:[%s685_s1 + $0x18] sm:$0xff]  ;;  %s668_s24 = scalar_lea.vmem %s688_s4, %s615_s17 }
   0xe   : > { %v221_v0 = vld [vmem:[%s207_s20 + $0x10] sm:$0xff]  ;;  %v222_v1 = vld [vmem:[%s207_s20 + $0x18] sm:$0xff]  ;;  %v219_v2 = vld [vmem:[%s207_s20] sm:$0xff]  ;;  %393 = vperm.xlu2 %568, %v387_v25  }
   0xf   : > { %vm225_vm0 = vcmp.ge.f32.partialorder %v221_v0, 0.0  ;;  %vm226_vm1 = vcmp.ge.f32.partialorder %v222_v1, 0.0  ;;  %v229_v3 = vmul.f32 0.1, %v221_v0  ;;  %v230_v4 = vmul.f32 0.1, %v222_v1 }
  0x10   : > { %v220_v5 = vld [vmem:[%s207_s20 + $0x8] sm:$0xff]  ;;  %vm223_vm2 = vcmp.ge.f32.partialorder %v219_v2, 0.0  ;;  %v227_v6 = vmul.f32 0.1, %v219_v2 }
  0x11   : > { %v233_v7 = vsel %vm225_vm0, %v221_v0, %v229_v3  ;;  %v234_v8 = vsel %vm226_vm1, %v222_v1, %v230_v4  ;;  %vm224_vm3 = vcmp.ge.f32.partialorder %v220_v5, 0.0  ;;  %v228_v9 = vmul.f32 0.1, %v220_v5  ;;  %v554_v36 = vld [vmem:[%s685_s1 + $0x28] sm:$0xff] }
  0x12   : > { %v237_v10 = vpack.c.bf16 %v233_v7, %v233_v7  ;;  %v238_v11 = vpack.c.bf16 %v234_v8, %v234_v8  ;;  %v231_v12 = vsel %vm223_vm2, %v219_v2, %v227_v6 }
  0x13   : > { %v232_v13 = vsel %vm224_vm3, %v220_v5, %v228_v9  ;;  %v235_v14 = vpack.c.bf16 %v231_v12, %v231_v12 }
  0x14   : > { %v264_v15 = vunpack.c.l.b16 %v237_v10  ;;  %v265_v16 = vunpack.c.l.b16 %v238_v11  ;;  %v236_v17 = vpack.c.bf16 %v232_v13, %v232_v13 }
  0x15   : > { %v262_v19 = vunpack.c.l.b16 %v235_v14 }
  0x16   : > { %v267_v18 = vpack.c.b16 %v265_v16, %v264_v15  ;;  %v263_v20 = vunpack.c.l.b16 %v236_v17  ;;  %398 = vperm.xlu2 %568, %v388_v30  }
  0x18   : > { %270 = vrot.lane.b32.xlu1 %v267_v18, %s579_s21  ;;  %354 = vrot.lane.b32.xlu0 %v267_v18, %s580_s22  ;;  %v266_v21 = vpack.c.b16 %v263_v20, %v262_v19 }
  0x19   : > { %324 = vmatpush.bf16.msra.mxu1 %v267_v18 }
  0x1d   : > { %325 = vmatpush.bf16.msra.mxu1 %v266_v21 }
  0x20   : > { %268 = vrot.lane.b32.xlu1 %v266_v21, %s579_s21  ;;  %352 = vrot.lane.b32.xlu0 %v266_v21, %s580_s22  ;;  %s661_s21 = scalar_lea.vmem %s687_s3, %s615_s17 }
  0x21   : > { %528 = vmatmul.msk.bf16.vlgmr.msra.gmra.mxu1 %vm274_vm4, %v549_v22  ;;  %v415_v44 = vld [vmem:[%s661_s21] sm:$0xff]  ;;  %v416_v54 = vld [vmem:[%s661_s21 + $0x8] sm:$0xff]  ;;  %v417_v61 = vld [vmem:[%s661_s21 + $0x10] sm:$0xff] }
  0x22   : > { %v418_v6 = vld [vmem:[%s661_s21 + $0x18] sm:$0xff] }
  0x28   : > { %403 = vperm.xlu0 %569, %v389_v24   ;;  %408 = vperm.xlu1 %570, %v390_v26  }
  0x31   : > { %529 = vmatmul.msk.bf16.gmra.mxu1 %vm274_vm4, %v550_v23 }
  0x68   : > { %v394_v40 = vpop.permute.xlu2 %393 }
  0x70   : > { %v399_v50 = vpop.permute.xlu2 %398 }
  0x8a   : > { %v271_v28 = vpop.permute.xlu1 %270  ;;  %v355_v29 = vpop.permute.xlu0 %354 }
  0x8b   : > { %370 = vmatpush.bf16.msra.mxu2 %v355_v29  ;;  %287 = vmatpush.bf16.msra.mxu0 %v271_v28 }
  0x8c   : > { %555 = vmatpush.bf16.msra.mxu3 %v271_v28 }
  0x92   : > { %v269_v31 = vpop.permute.xlu1 %268  ;;  %v353_v32 = vpop.permute.xlu0 %352 }
  0x93   : > { %288 = vmatpush.bf16.msra.mxu0 %v269_v31  ;;  %371 = vmatpush.bf16.msra.mxu2 %v353_v32 }
  0x94   : > { %556 = vmatpush.bf16.msra.mxu3 %v269_v31 }
  0x96   : > { %518 = vmatmul.msk.bf16.vlgmr.msra.gmra.mxu0 %vm274_vm4, %v551_v33  ;;  %542 = vmatmul.msk.bf16.vlgmr.msra.gmra.mxu2 %vm274_vm4, %v553_v34 }
  0x97   : > { %519 = vmatmul.msk.bf16.vlgmr.msra.gmra.mxu3 %vm274_vm4, %v552_v35 }
  0x9a   : > { %v404_v59 = vpop.permute.xlu0 %403  ;;  %v409_v4 = vpop.permute.xlu1 %408 }
  0x9e   : > { %v327_v37 = vpop.f32.mrf.mxu1 }
  0xa6   : > { %543 = vmatmul.msk.bf16.gmra.mxu2 %vm274_vm4, %v554_v36  ;;  %v329_v41 = vpop.f32.mrf.mxu1 }
  0xae   : > { %v332_v53 = vpop.f32.mrf.mxu1 }
  0xb6   : > { %v334_v0 = vpop.f32.mrf.mxu1 }
 0x113   : > { %v290_v38 = vpop.f32.mrf.mxu0 }
 0x114   : > { %v328_v39 = vadd.f32 %v327_v37, %v290_v38 }
 0x119   : > { %v373_v42 = vpop.f32.mrf.mxu2 }
 0x11a   : > { %v383_v43 = vadd.f32 %v373_v42, %v328_v39  ;;  %v295_v52 = vpop.f32.mrf.mxu3 }
 0x11b   : > { %v292_v46 = vpop.f32.mrf.mxu0  ;;  %v333_v56 = vadd.f32 %v332_v53, %v295_v52 }
 0x11c   : > { %v411_v45 = vadd.f32 %v394_v40, %v383_v43  ;;  %v330_v48 = vadd.f32 %v329_v41, %v292_v46 }
 0x11e   : > { %v419_v47 = vadd.f32 %v415_v44, %v411_v45 }
 0x120   : > { %424 = vst.msk [vmem:[%s668_s24] sm:$0xff] %vm423_vm5, %v419_v47 }
 0x121   : > { %v375_v49 = vpop.f32.mrf.mxu2 }
 0x122   : > { %v384_v51 = vadd.f32 %v375_v49, %v330_v48  ;;  %v297_v63 = vpop.f32.mrf.mxu3 }
 0x123   : > { %v335_v2 = vadd.f32 %v334_v0, %v297_v63 }
 0x124   : > { %v412_v55 = vadd.f32 %v399_v50, %v384_v51 }
 0x126   : > { %v420_v57 = vadd.f32 %v416_v54, %v412_v55 }
 0x128   : > { %425 = vst.msk [vmem:[%s668_s24 + $0x8] sm:$0xff] %vm423_vm5, %v420_v57 }
 0x129   : > { %v378_v58 = vpop.f32.mrf.mxu2 }
 0x12a   : > { %v385_v60 = vadd.f32 %v378_v58, %v333_v56 }
 0x12c   : > { %v413_v62 = vadd.f32 %v404_v59, %v385_v60 }
 0x12e   : > { %v421_v1 = vadd.f32 %v417_v61, %v413_v62 }
 0x130   : > { %426 = vst.msk [vmem:[%s668_s24 + $0x10] sm:$0xff] %vm423_vm5, %v421_v1 }
 0x131   : > { %v380_v3 = vpop.f32.mrf.mxu2 }
 0x132   : > { %v386_v5 = vadd.f32 %v380_v3, %v335_v2 }
 0x134   : > { %v414_v7 = vadd.f32 %v409_v4, %v386_v5 }
 0x136   : > { %v422_v8 = vadd.f32 %v418_v6, %v414_v7 }
 0x138   : > { %427 = vst.msk [vmem:[%s668_s24 + $0x18] sm:$0xff] %vm423_vm5, %v422_v8 }
 0x139 PF: > { %s14_s15 = sadd.s32 1, %s577_s15  }
 0x13a   : > { %p11_p4 = scmp.ge.s32.totalorder %s14_s15, 4  }
 0x13c   :  { %13 = sbr.rel (!%p11_p4) target bundleno = 1 (0x1), region = 71 }

// kernel: affine_layer_fwd.36
= control target key start
LH: loop header
LB: loop body
LE: loop exit
PB: predicated region body
PF: predicated region fallthrough
CT: control target
= control target key end

     0   :  { %s508_s12 = smov 0   ;;  %s561_s0 = inlined_call_operand.vmem [shape: f32[2,64,5], index: 0, kind: input, shape index: {}]   ;;  %s562_s1 = inlined_call_operand.vmem [shape: bf16[2,32,64], index: 1, kind: input, shape index: {}]   ;;  %s563_s2 = inlined_call_operand.vmem [shape: f32[32,1], index: 2, kind: input, shape index: {}]   ;;  %s564_s3 = inlined_call_operand.vmem [shape: f32[2,32,4], index: 3, kind: output, shape index: {}]  }
   0x1 LB: > { %s416_s13 = sadd.s32 4294967295, %s484_s12   ;;  %p420_p0 = scmp.ge.s32.totalorder %s484_s12, 1  ;;  %s484_s12 = sphi %s508_s12, %s13_s12  }
   0x2   : > { %p137_p1 = scmp.lt.s32.totalorder %s484_s12, 3 }
   0x4   : > { %p138_p2 = pnand %p420_p0, %p137_p1 }
   0x5   : > { %p161_p3 = scmp.lt.s32.totalorder (!%p138_p2), %s416_s13, 1  ;;  %s486_s18 = smov (!%p138_p2), 127  }
   0x6   : > { %141 = sbr.rel (%p138_p2) target bundleno = 303 (0x12f), region = 32 }
   0xb   : > { %s566_s13 = smov (!%p161_p3, %s416_s13), 1  ;;  %v454_v44 = vld [vmem:[%s562_s1 + $0x8] sm:$0xff]  ;;  %vm263_vm8 = vcmask 523264   ;;  %v453_v45 = vld [vmem:[%s562_s1] sm:$0xff]  ;;  %v330_v46 = vld [vmem:[%s563_s2 + $0x10] sm:$0xff]  ;;  %v487_v48 = vmov 0  }
   0xc   : > { %s451_s14 = sshll.u32 %s566_s13, 6  ;;  %v331_v47 = vld [vmem:[%s563_s2 + $0x18] sm:$0xff]  ;;  %476 = vset.pattern.permute.xlu0 %v487_v48  ;;  %477 = vset.pattern.permute.xlu1 %v487_v48  ;;  %v328_v49 = vld [vmem:[%s563_s2] sm:$0xff]  ;;  %v329_v50 = vld [vmem:[%s563_s2 + $0x8] sm:$0xff]  ;;  %s452_s8 = sshll.u32 %s566_s13, 5  ;;  %vm356_vm9 = vcmask 31744  }
   0xd   : > { %s165_s17 = scalar_lea.vmem %s561_s0, %s451_s14  ;;  %475 = vset.pattern.permute.xlu2 %v487_v48  ;;  %v455_v55 = vld [vmem:[%s562_s1 + $0x10] sm:$0xff]  ;;  %v456_v56 = vld [vmem:[%s562_s1 + $0x18] sm:$0xff]  ;;  %s170_s11 = scalar_lea.vmem %s564_s3, %s452_s8 }
   0xe   : > { %v178_v0 = vld [vmem:[%s165_s17 + $0x30] sm:$0xff]  ;;  %v179_v1 = vld [vmem:[%s165_s17 + $0x38] sm:$0xff]  ;;  %v176_v2 = vld [vmem:[%s165_s17 + $0x20] sm:$0xff]  ;;  %334 = vperm.xlu2 %475, %v328_v49  }
   0xf   : > { %vm186_vm0 = vcmp.ge.f32.partialorder %v178_v0, 0.0  ;;  %vm187_vm1 = vcmp.ge.f32.partialorder %v179_v1, 0.0  ;;  %v194_v3 = vmul.f32 0.1, %v178_v0  ;;  %v195_v4 = vmul.f32 0.1, %v179_v1 }
  0x10   : > { %v177_v5 = vld [vmem:[%s165_s17 + $0x28] sm:$0xff]  ;;  %vm184_vm2 = vcmp.ge.f32.partialorder %v176_v2, 0.0  ;;  %v192_v6 = vmul.f32 0.1, %v176_v2  ;;  %v174_v7 = vld [vmem:[%s165_s17 + $0x10] sm:$0xff]  ;;  %v175_v8 = vld [vmem:[%s165_s17 + $0x18] sm:$0xff] }
  0x11   : > { %v202_v9 = vsel %vm186_vm0, %v178_v0, %v194_v3  ;;  %v203_v10 = vsel %vm187_vm1, %v179_v1, %v195_v4  ;;  %vm185_vm3 = vcmp.ge.f32.partialorder %v177_v5, 0.0  ;;  %v193_v11 = vmul.f32 0.1, %v177_v5  ;;  %v172_v15 = vld [vmem:[%s165_s17] sm:$0xff]  ;;  %v173_v16 = vld [vmem:[%s165_s17 + $0x8] sm:$0xff] }
  0x12   : > { %v210_v12 = vpack.c.bf16 %v202_v9, %v202_v9  ;;  %v211_v13 = vpack.c.bf16 %v203_v10, %v203_v10  ;;  %v200_v14 = vsel %vm184_vm2, %v176_v2, %v192_v6  ;;  %vm182_vm4 = vcmp.ge.f32.partialorder %v174_v7, 0.0 }
  0x13   : > { %v201_v17 = vsel %vm185_vm3, %v177_v5, %v193_v11  ;;  %v208_v18 = vpack.c.bf16 %v200_v14, %v200_v14  ;;  %vm183_vm5 = vcmp.ge.f32.partialorder %v175_v8, 0.0  ;;  %v190_v19 = vmul.f32 0.1, %v174_v7 }
  0x14   : > { %v245_v20 = vunpack.c.l.b16 %v210_v12  ;;  %v246_v21 = vunpack.c.l.b16 %v211_v13  ;;  %v209_v22 = vpack.c.bf16 %v201_v17, %v201_v17  ;;  %v191_v23 = vmul.f32 0.1, %v175_v8 }
  0x15   : > { %v243_v24 = vunpack.c.l.b16 %v208_v18  ;;  %v198_v25 = vsel %vm182_vm4, %v174_v7, %v190_v19  ;;  %vm180_vm6 = vcmp.ge.f32.partialorder %v172_v15, 0.0  ;;  %vm181_vm7 = vcmp.ge.f32.partialorder %v173_v16, 0.0 }
  0x16   : > { %v250_v26 = vpack.c.b16 %v246_v21, %v245_v20  ;;  %v244_v27 = vunpack.c.l.b16 %v209_v22  ;;  %v199_v28 = vsel %vm183_vm5, %v175_v8, %v191_v23  ;;  %v206_v29 = vpack.c.bf16 %v198_v25, %v198_v25  ;;  %339 = vperm.xlu2 %475, %v329_v50  }
  0x17   : > { %v207_v30 = vpack.c.bf16 %v199_v28, %v199_v28  ;;  %v188_v31 = vmul.f32 0.1, %v172_v15  ;;  %v189_v32 = vmul.f32 0.1, %v173_v16 }
  0x18   : > { %257 = vrot.lane.b32.xlu0 %v250_v26, %s486_s18  ;;  %v241_v33 = vunpack.c.l.b16 %v206_v29  ;;  %461 = vmatpush.bf16.msra.mxu3 %v250_v26  ;;  %v249_v37 = vpack.c.b16 %v244_v27, %v243_v24 }
  0x19   : > { %v242_v34 = vunpack.c.l.b16 %v207_v30  ;;  %v196_v35 = vsel %vm180_vm6, %v172_v15, %v188_v31  ;;  %v197_v36 = vsel %vm181_vm7, %v173_v16, %v189_v32  ;;  %313 = vmatpush.bf16.msra.mxu1 %v250_v26 }
  0x1a   : > { %v204_v38 = vpack.c.bf16 %v196_v35, %v196_v35  ;;  %v205_v39 = vpack.c.bf16 %v197_v36, %v197_v36 }
  0x1b   : > { %v248_v40 = vpack.c.b16 %v242_v34, %v241_v33 }
  0x1c   : > { %462 = vmatpush.bf16.msra.mxu3 %v249_v37  ;;  %v239_v41 = vunpack.c.l.b16 %v204_v38  ;;  %v240_v42 = vunpack.c.l.b16 %v205_v39 }
  0x1d   : > { %253 = vrot.lane.b32.xlu1 %v248_v40, %s486_s18  ;;  %314 = vmatpush.bf16.msra.mxu1 %v249_v37 }
  0x1e   : > { %v247_v43 = vpack.c.b16 %v240_v42, %v239_v41 }
  0x20   : > { %255 = vrot.lane.b32.xlu0 %v249_v37, %s486_s18  ;;  %463 = vmatpush.bf16.msra.mxu3 %v248_v40 }
  0x21   : > { %315 = vmatpush.bf16.msra.mxu1 %v248_v40 }
  0x24   : > { %464 = vmatpush.bf16.msra.mxu3 %v247_v43 }
  0x25   : > { %251 = vrot.lane.b32.xlu1 %v247_v43, %s486_s18  ;;  %316 = vmatpush.bf16.msra.mxu1 %v247_v43 }
  0x27   : > { %448 = vmatmul.msk.bf16.vlgmr.msra.gmra.mxu3 %vm263_vm8, %v454_v44 }
  0x28   : > { %447 = vmatmul.msk.bf16.vlgmr.msra.gmra.mxu1 %vm263_vm8, %v453_v45  ;;  %344 = vperm.xlu0 %476, %v330_v46  }
  0x2d   : > { %349 = vperm.xlu1 %477, %v331_v47  }
  0x68   : > { %v335_v58 = vpop.permute.xlu2 %334 }
  0x70   : > { %v340_v6 = vpop.permute.xlu2 %339 }
  0x8a   : > { %v258_v51 = vpop.permute.xlu0 %257 }
  0x8b   : > { %274 = vmatpush.bf16.msra.mxu0 %v258_v51  ;;  %457 = vmatpush.bf16.msra.mxu2 %v258_v51 }
  0x8f   : > { %v254_v52 = vpop.permute.xlu1 %253 }
  0x92   : > { %v256_v53 = vpop.permute.xlu0 %255 }
  0x93   : > { %275 = vmatpush.bf16.msra.mxu0 %v256_v53  ;;  %458 = vmatpush.bf16.msra.mxu2 %v256_v53 }
  0x97   : > { %276 = vmatpush.bf16.msra.mxu0 %v254_v52  ;;  %459 = vmatpush.bf16.msra.mxu2 %v254_v52  ;;  %v252_v54 = vpop.permute.xlu1 %251 }
  0x9a   : > { %v345_v0 = vpop.permute.xlu0 %344 }
  0x9b   : > { %277 = vmatpush.bf16.msra.mxu0 %v252_v54  ;;  %460 = vmatpush.bf16.msra.mxu2 %v252_v54 }
  0x9e   : > { %437 = vmatmul.msk.bf16.vlgmr.msra.gmra.mxu0 %vm263_vm8, %v455_v55  ;;  %438 = vmatmul.msk.bf16.vlgmr.msra.gmra.mxu2 %vm263_vm8, %v456_v56 }
  0x9f   : > { %v350_v10 = vpop.permute.xlu1 %349 }
  0xa5   : > { %v318_v57 = vpop.f32.mrf.mxu1 }
  0xaa   : > { %v323_v61 = vpop.f32.mrf.mxu3 }
  0xad   : > { %v320_v2 = vpop.f32.mrf.mxu1 }
  0xb2   : > { %v325_v8 = vpop.f32.mrf.mxu3 }
 0x11b   : > { %v279_v59 = vpop.f32.mrf.mxu0 }
 0x11c   : > { %v319_v60 = vadd.f32 %v318_v57, %v279_v59 }
 0x11e   : > { %v352_v62 = vadd.f32 %v335_v58, %v319_v60 }
 0x120   : > { %357 = vst.msk [vmem:[%s170_s11] sm:$0xff] %vm356_vm9, %v352_v62 }
 0x121   : > { %v284_v63 = vpop.f32.mrf.mxu2 }
 0x122   : > { %v324_v1 = vadd.f32 %v323_v61, %v284_v63 }
 0x123   : > { %v281_v3 = vpop.f32.mrf.mxu0 }
 0x124   : > { %v354_v4 = vadd.f32 %v345_v0, %v324_v1  ;;  %v321_v5 = vadd.f32 %v320_v2, %v281_v3 }
 0x126   : > { %359 = vst.msk [vmem:[%s170_s11 + $0x10] sm:$0xff] %vm356_vm9, %v354_v4  ;;  %v353_v7 = vadd.f32 %v340_v6, %v321_v5 }
 0x128   : > { %358 = vst.msk [vmem:[%s170_s11 + $0x8] sm:$0xff] %vm356_vm9, %v353_v7 }
 0x129   : > { %v286_v9 = vpop.f32.mrf.mxu2 }
 0x12a   : > { %v326_v11 = vadd.f32 %v325_v8, %v286_v9 }
 0x12c   : > { %v355_v12 = vadd.f32 %v350_v10, %v326_v11 }
 0x12e   : > { %360 = vst.msk [vmem:[%s170_s11 + $0x18] sm:$0xff] %vm356_vm9, %v355_v12 }
 0x12f PF: > { %s13_s12 = sadd.s32 1, %s484_s12  }
 0x130   : > { %p10_p4 = scmp.ge.s32.totalorder %s13_s12, 4  }
 0x132   :  { %12 = sbr.rel (!%p10_p4) target bundleno = 1 (0x1), region = 63 }

// kernel: affine_layer_fwd.39
= control target key start
LH: loop header
LB: loop body
LE: loop exit
PB: predicated region body
PF: predicated region fallthrough
CT: control target
= control target key end

     0   :  { %s607_s15 = smov 0   ;;  %s684_s0 = inlined_call_operand.vmem [shape: f32[2,32,10], index: 0, kind: input, shape index: {}]   ;;  %s685_s1 = inlined_call_operand.vmem [shape: bf16[3,32,32], index: 1, kind: input, shape index: {}]   ;;  %s686_s2 = inlined_call_operand.vmem [shape: f32[32,1], index: 2, kind: input, shape index: {}]   ;;  %s687_s3 = inlined_call_operand.vmem [shape: f32[2,32,4], index: 3, kind: input, shape index: {}]   ;;  %s688_s4 = inlined_call_operand.vmem [shape: f32[2,32,4], index: 4, kind: output, shape index: {}]  }
   0x1 LB: > { %s495_s16 = sadd.s32 4294967295, %s577_s15   ;;  %p499_p0 = scmp.ge.s32.totalorder %s577_s15, 1  ;;  %s577_s15 = sphi %s607_s15, %s14_s15  }
   0x2   : > { %p172_p1 = scmp.lt.s32.totalorder %s577_s15, 3 }
   0x4   : > { %p173_p2 = pnand %p499_p0, %p172_p1 }
   0x5   : > { %p203_p3 = scmp.lt.s32.totalorder (!%p173_p2), %s495_s16, 1  ;;  %s579_s21 = smov (!%p173_p2), 125  }
   0x6   : > { %176 = sbr.rel (%p173_p2) target bundleno = 313 (0x139), region = 36  ;;  %s580_s22 = smov (!%p173_p2), 122  }
   0xb   : > { %s690_s16 = smov (!%p203_p3, %s495_s16), 1  ;;  %v549_v22 = vld [vmem:[%s685_s1] sm:$0xff]  ;;  %vm274_vm4 = vcmask 261120   ;;  %v550_v23 = vld [vmem:[%s685_s1 + $0x8] sm:$0xff]  ;;  %v389_v24 = vld [vmem:[%s686_s2 + $0x10] sm:$0xff]  ;;  %v581_v27 = vmov 0  }
   0xc   : > { %s615_s17 = sshll.u32 %s690_s16, 5  ;;  %v387_v25 = vld [vmem:[%s686_s2] sm:$0xff]  ;;  %v390_v26 = vld [vmem:[%s686_s2 + $0x18] sm:$0xff]  ;;  %569 = vset.pattern.permute.xlu0 %v581_v27  ;;  %570 = vset.pattern.permute.xlu1 %v581_v27  ;;  %v388_v30 = vld [vmem:[%s686_s2 + $0x8] sm:$0xff]  ;;  %vm423_vm5 = vcmask 31744  }
   0xd   : > { %s207_s20 = scalar_lea.vmem %s684_s0, %s615_s17  ;;  %568 = vset.pattern.permute.xlu2 %v581_v27  ;;  %v551_v33 = vld [vmem:[%s685_s1 + $0x10] sm:$0xff]  ;;  %v553_v34 = vld [vmem:[%s685_s1 + $0x20] sm:$0xff]  ;;  %v552_v35 = vld [vmem:[%s685_s1 + $0x18] sm:$0xff]  ;;  %s668_s24 = scalar_lea.vmem %s688_s4, %s615_s17 }
   0xe   : > { %v221_v0 = vld [vmem:[%s207_s20 + $0x10] sm:$0xff]  ;;  %v222_v1 = vld [vmem:[%s207_s20 + $0x18] sm:$0xff]  ;;  %v219_v2 = vld [vmem:[%s207_s20] sm:$0xff]  ;;  %393 = vperm.xlu2 %568, %v387_v25  }
   0xf   : > { %vm225_vm0 = vcmp.ge.f32.partialorder %v221_v0, 0.0  ;;  %vm226_vm1 = vcmp.ge.f32.partialorder %v222_v1, 0.0  ;;  %v229_v3 = vmul.f32 0.1, %v221_v0  ;;  %v230_v4 = vmul.f32 0.1, %v222_v1 }
  0x10   : > { %v220_v5 = vld [vmem:[%s207_s20 + $0x8] sm:$0xff]  ;;  %vm223_vm2 = vcmp.ge.f32.partialorder %v219_v2, 0.0  ;;  %v227_v6 = vmul.f32 0.1, %v219_v2 }
  0x11   : > { %v233_v7 = vsel %vm225_vm0, %v221_v0, %v229_v3  ;;  %v234_v8 = vsel %vm226_vm1, %v222_v1, %v230_v4  ;;  %vm224_vm3 = vcmp.ge.f32.partialorder %v220_v5, 0.0  ;;  %v228_v9 = vmul.f32 0.1, %v220_v5  ;;  %v554_v36 = vld [vmem:[%s685_s1 + $0x28] sm:$0xff] }
  0x12   : > { %v237_v10 = vpack.c.bf16 %v233_v7, %v233_v7  ;;  %v238_v11 = vpack.c.bf16 %v234_v8, %v234_v8  ;;  %v231_v12 = vsel %vm223_vm2, %v219_v2, %v227_v6 }
  0x13   : > { %v232_v13 = vsel %vm224_vm3, %v220_v5, %v228_v9  ;;  %v235_v14 = vpack.c.bf16 %v231_v12, %v231_v12 }
  0x14   : > { %v264_v15 = vunpack.c.l.b16 %v237_v10  ;;  %v265_v16 = vunpack.c.l.b16 %v238_v11  ;;  %v236_v17 = vpack.c.bf16 %v232_v13, %v232_v13 }
  0x15   : > { %v262_v19 = vunpack.c.l.b16 %v235_v14 }
  0x16   : > { %v267_v18 = vpack.c.b16 %v265_v16, %v264_v15  ;;  %v263_v20 = vunpack.c.l.b16 %v236_v17  ;;  %398 = vperm.xlu2 %568, %v388_v30  }
  0x18   : > { %270 = vrot.lane.b32.xlu1 %v267_v18, %s579_s21  ;;  %354 = vrot.lane.b32.xlu0 %v267_v18, %s580_s22  ;;  %v266_v21 = vpack.c.b16 %v263_v20, %v262_v19 }
  0x19   : > { %324 = vmatpush.bf16.msra.mxu1 %v267_v18 }
  0x1d   : > { %325 = vmatpush.bf16.msra.mxu1 %v266_v21 }
  0x20   : > { %268 = vrot.lane.b32.xlu1 %v266_v21, %s579_s21  ;;  %352 = vrot.lane.b32.xlu0 %v266_v21, %s580_s22  ;;  %s661_s21 = scalar_lea.vmem %s687_s3, %s615_s17 }
  0x21   : > { %528 = vmatmul.msk.bf16.vlgmr.msra.gmra.mxu1 %vm274_vm4, %v549_v22  ;;  %v415_v44 = vld [vmem:[%s661_s21] sm:$0xff]  ;;  %v416_v54 = vld [vmem:[%s661_s21 + $0x8] sm:$0xff]  ;;  %v417_v61 = vld [vmem:[%s661_s21 + $0x10] sm:$0xff] }
  0x22   : > { %v418_v6 = vld [vmem:[%s661_s21 + $0x18] sm:$0xff] }
  0x28   : > { %403 = vperm.xlu0 %569, %v389_v24   ;;  %408 = vperm.xlu1 %570, %v390_v26  }
  0x31   : > { %529 = vmatmul.msk.bf16.gmra.mxu1 %vm274_vm4, %v550_v23 }
  0x68   : > { %v394_v40 = vpop.permute.xlu2 %393 }
  0x70   : > { %v399_v50 = vpop.permute.xlu2 %398 }
  0x8a   : > { %v271_v28 = vpop.permute.xlu1 %270  ;;  %v355_v29 = vpop.permute.xlu0 %354 }
  0x8b   : > { %370 = vmatpush.bf16.msra.mxu2 %v355_v29  ;;  %287 = vmatpush.bf16.msra.mxu0 %v271_v28 }
  0x8c   : > { %555 = vmatpush.bf16.msra.mxu3 %v271_v28 }
  0x92   : > { %v269_v31 = vpop.permute.xlu1 %268  ;;  %v353_v32 = vpop.permute.xlu0 %352 }
  0x93   : > { %288 = vmatpush.bf16.msra.mxu0 %v269_v31  ;;  %371 = vmatpush.bf16.msra.mxu2 %v353_v32 }
  0x94   : > { %556 = vmatpush.bf16.msra.mxu3 %v269_v31 }
  0x96   : > { %518 = vmatmul.msk.bf16.vlgmr.msra.gmra.mxu0 %vm274_vm4, %v551_v33  ;;  %542 = vmatmul.msk.bf16.vlgmr.msra.gmra.mxu2 %vm274_vm4, %v553_v34 }
  0x97   : > { %519 = vmatmul.msk.bf16.vlgmr.msra.gmra.mxu3 %vm274_vm4, %v552_v35 }
  0x9a   : > { %v404_v59 = vpop.permute.xlu0 %403  ;;  %v409_v4 = vpop.permute.xlu1 %408 }
  0x9e   : > { %v327_v37 = vpop.f32.mrf.mxu1 }
  0xa6   : > { %543 = vmatmul.msk.bf16.gmra.mxu2 %vm274_vm4, %v554_v36  ;;  %v329_v41 = vpop.f32.mrf.mxu1 }
  0xae   : > { %v332_v53 = vpop.f32.mrf.mxu1 }
  0xb6   : > { %v334_v0 = vpop.f32.mrf.mxu1 }
 0x113   : > { %v290_v38 = vpop.f32.mrf.mxu0 }
 0x114   : > { %v328_v39 = vadd.f32 %v327_v37, %v290_v38 }
 0x119   : > { %v373_v42 = vpop.f32.mrf.mxu2 }
 0x11a   : > { %v383_v43 = vadd.f32 %v373_v42, %v328_v39  ;;  %v295_v52 = vpop.f32.mrf.mxu3 }
 0x11b   : > { %v292_v46 = vpop.f32.mrf.mxu0  ;;  %v333_v56 = vadd.f32 %v332_v53, %v295_v52 }
 0x11c   : > { %v411_v45 = vadd.f32 %v394_v40, %v383_v43  ;;  %v330_v48 = vadd.f32 %v329_v41, %v292_v46 }
 0x11e   : > { %v419_v47 = vadd.f32 %v415_v44, %v411_v45 }
 0x120   : > { %424 = vst.msk [vmem:[%s668_s24] sm:$0xff] %vm423_vm5, %v419_v47 }
 0x121   : > { %v375_v49 = vpop.f32.mrf.mxu2 }
 0x122   : > { %v384_v51 = vadd.f32 %v375_v49, %v330_v48  ;;  %v297_v63 = vpop.f32.mrf.mxu3 }
 0x123   : > { %v335_v2 = vadd.f32 %v334_v0, %v297_v63 }
 0x124   : > { %v412_v55 = vadd.f32 %v399_v50, %v384_v51 }
 0x126   : > { %v420_v57 = vadd.f32 %v416_v54, %v412_v55 }
 0x128   : > { %425 = vst.msk [vmem:[%s668_s24 + $0x8] sm:$0xff] %vm423_vm5, %v420_v57 }
 0x129   : > { %v378_v58 = vpop.f32.mrf.mxu2 }
 0x12a   : > { %v385_v60 = vadd.f32 %v378_v58, %v333_v56 }
 0x12c   : > { %v413_v62 = vadd.f32 %v404_v59, %v385_v60 }
 0x12e   : > { %v421_v1 = vadd.f32 %v417_v61, %v413_v62 }
 0x130   : > { %426 = vst.msk [vmem:[%s668_s24 + $0x10] sm:$0xff] %vm423_vm5, %v421_v1 }
 0x131   : > { %v380_v3 = vpop.f32.mrf.mxu2 }
 0x132   : > { %v386_v5 = vadd.f32 %v380_v3, %v335_v2 }
 0x134   : > { %v414_v7 = vadd.f32 %v409_v4, %v386_v5 }
 0x136   : > { %v422_v8 = vadd.f32 %v418_v6, %v414_v7 }
 0x138   : > { %427 = vst.msk [vmem:[%s668_s24 + $0x18] sm:$0xff] %vm423_vm5, %v422_v8 }
 0x139 PF: > { %s14_s15 = sadd.s32 1, %s577_s15  }
 0x13a   : > { %p11_p4 = scmp.ge.s32.totalorder %s14_s15, 4  }
 0x13c   :  { %13 = sbr.rel (!%p11_p4) target bundleno = 1 (0x1), region = 71 }

// kernel: affine_layer_fwd.41
= control target key start
LH: loop header
LB: loop body
LE: loop exit
PB: predicated region body
PF: predicated region fallthrough
CT: control target
= control target key end

     0   :  { %s476_s15 = smov 0   ;;  %s564_s0 = inlined_call_operand.vmem [shape: f32[2,16,1], index: 0, kind: input, shape index: {}]   ;;  %s565_s1 = inlined_call_operand.vmem [shape: bf16[1,64,16], index: 1, kind: input, shape index: {}]   ;;  %s566_s2 = inlined_call_operand.vmem [shape: f32[64,1], index: 2, kind: input, shape index: {}]   ;;  %s567_s3 = inlined_call_operand.vmem [shape: f32[2,64,1], index: 3, kind: input, shape index: {}]   ;;  %s568_s4 = inlined_call_operand.vmem [shape: f32[2,64,1], index: 4, kind: output, shape index: {}]  }
   0x1 LB: > { %s392_s16 = sadd.s32 4294967295, %s449_s15   ;;  %p396_p0 = scmp.ge.s32.totalorder %s449_s15, 1  ;;  %s449_s15 = sphi %s476_s15, %s14_s15  }
   0x2   : > { %p172_p1 = scmp.lt.s32.totalorder %s449_s15, 3 }
   0x4   : > { %p173_p2 = pnand %p396_p0, %p172_p1 }
   0x5   : > { %p203_p3 = scmp.lt.s32.totalorder (!%p173_p2), %s392_s16, 1 }
   0x6   : > { %176 = sbr.rel (%p173_p2) target bundleno = 167 (0xa7), region = 36 }
   0xb   : > { %s570_s16 = smov (!%p203_p3, %s392_s16), 1  ;;  %v428_v3 = vld [vmem:[%s565_s1] sm:$0xff]  ;;  %v429_v4 = vld [vmem:[%s565_s1 + $0x8] sm:$0xff]  ;;  %vm258_vm0 = vcmask 130048   ;;  %v430_v5 = vld [vmem:[%s565_s1 + $0x10] sm:$0xff]  ;;  %vm316_vm1 = vcmask 7168  }
   0xc   : > { %s425_s17 = sshll.u32 %s570_s16, 4  ;;  %v431_v6 = vld [vmem:[%s565_s1 + $0x18] sm:$0xff]  ;;  %s426_s29 = sshll.u32 %s570_s16, 6  ;;  %v230_v7 = vld [vmem:[%s566_s2] sm:$0xff]  ;;  %v232_v8 = vld [vmem:[%s566_s2 + $0x10] sm:$0xff] }
   0xd   : > { %s207_s20 = scalar_lea.vmem %s564_s0, %s425_s17  ;;  %s506_s6 = scalar_lea.vmem %s567_s3, %s426_s29  ;;  %v234_v17 = vld [vmem:[%s566_s2 + $0x20] sm:$0xff]  ;;  %v236_v18 = vld [vmem:[%s566_s2 + $0x30] sm:$0xff]  ;;  %v231_v19 = vld [vmem:[%s566_s2 + $0x8] sm:$0xff] }
   0xe   : > { %v219_v0 = vld [vmem:[%s207_s20] sm:$0xff]  ;;  %v220_v1 = vld [vmem:[%s207_s20 + $0x8] sm:$0xff]  ;;  %v302_v12 = vld [vmem:[%s506_s6 + $0x10] sm:$0xff]  ;;  %s519_s13 = scalar_lea.vmem %s568_s4, %s426_s29 }
   0xf   : > { %v221_v2 = vpack.c.bf16 %v220_v1, %v219_v0  ;;  %v300_v10 = vld [vmem:[%s506_s6] sm:$0xff]  ;;  %v233_v20 = vld [vmem:[%s566_s2 + $0x18] sm:$0xff]  ;;  %v306_v24 = vld [vmem:[%s506_s6 + $0x30] sm:$0xff] }
  0x10   : > { %v304_v22 = vld [vmem:[%s506_s6 + $0x20] sm:$0xff]  ;;  %v301_v28 = vld [vmem:[%s506_s6 + $0x8] sm:$0xff]  ;;  %v303_v30 = vld [vmem:[%s506_s6 + $0x18] sm:$0xff] }
  0x11   : > { %278 = vmatpush.bf16.msra.mxu0 %v221_v2  ;;  %432 = vmatpush.bf16.msra.mxu1 %v221_v2  ;;  %v235_v37 = vld [vmem:[%s566_s2 + $0x28] sm:$0xff]  ;;  %v237_v38 = vld [vmem:[%s566_s2 + $0x38] sm:$0xff] }
  0x12   : > { %433 = vmatpush.bf16.msra.mxu2 %v221_v2  ;;  %434 = vmatpush.bf16.msra.mxu3 %v221_v2  ;;  %v305_v40 = vld [vmem:[%s506_s6 + $0x28] sm:$0xff]  ;;  %v307_v42 = vld [vmem:[%s506_s6 + $0x38] sm:$0xff] }
  0x14   : > { %419 = vmatmul.msk.bf16.vlgmr.msra.gmra.mxu0 %vm258_vm0, %v428_v3  ;;  %420 = vmatmul.msk.bf16.vlgmr.msra.gmra.mxu1 %vm258_vm0, %v429_v4 }
  0x15   : > { %421 = vmatmul.msk.bf16.vlgmr.msra.gmra.mxu2 %vm258_vm0, %v430_v5  ;;  %422 = vmatmul.msk.bf16.vlgmr.msra.gmra.mxu3 %vm258_vm0, %v431_v6 }
  0x91   : > { %v280_v9 = vpop.f32.mrf.mxu0  ;;  %v285_v11 = vpop.f32.mrf.mxu1 }
  0x92   : > { %v281_v13 = vadd.f32 %v280_v9, %v230_v7  ;;  %v286_v14 = vadd.f32 %v285_v11, %v232_v8 }
  0x94   : > { %v308_v15 = vadd.f32 %v300_v10, %v281_v13  ;;  %v310_v16 = vadd.f32 %v302_v12, %v286_v14 }
  0x96   : > { %317 = vst.msk [vmem:[%s519_s13] sm:$0xff] %vm316_vm1, %v308_v15 }
  0x97   : > { %319 = vst.msk [vmem:[%s519_s13 + $0x10] sm:$0xff] %vm316_vm1, %v310_v16 }
  0x98   : > { %v290_v21 = vpop.f32.mrf.mxu2  ;;  %v295_v23 = vpop.f32.mrf.mxu3 }
  0x99   : > { %v291_v25 = vadd.f32 %v290_v21, %v234_v17  ;;  %v296_v26 = vadd.f32 %v295_v23, %v236_v18  ;;  %v282_v27 = vpop.f32.mrf.mxu0  ;;  %v287_v29 = vpop.f32.mrf.mxu1 }
  0x9a   : > { %v283_v31 = vadd.f32 %v282_v27, %v231_v19  ;;  %v288_v32 = vadd.f32 %v287_v29, %v233_v20 }
  0x9b   : > { %v312_v33 = vadd.f32 %v304_v22, %v291_v25  ;;  %v314_v34 = vadd.f32 %v306_v24, %v296_v26 }
  0x9c   : > { %v309_v35 = vadd.f32 %v301_v28, %v283_v31  ;;  %v311_v36 = vadd.f32 %v303_v30, %v288_v32 }
  0x9d   : > { %321 = vst.msk [vmem:[%s519_s13 + $0x20] sm:$0xff] %vm316_vm1, %v312_v33 }
  0x9e   : > { %323 = vst.msk [vmem:[%s519_s13 + $0x30] sm:$0xff] %vm316_vm1, %v314_v34 }
  0x9f   : > { %318 = vst.msk [vmem:[%s519_s13 + $0x8] sm:$0xff] %vm316_vm1, %v309_v35 }
  0xa0   : > { %320 = vst.msk [vmem:[%s519_s13 + $0x18] sm:$0xff] %vm316_vm1, %v311_v36  ;;  %v292_v39 = vpop.f32.mrf.mxu2  ;;  %v297_v41 = vpop.f32.mrf.mxu3 }
  0xa1   : > { %v293_v43 = vadd.f32 %v292_v39, %v235_v37  ;;  %v298_v44 = vadd.f32 %v297_v41, %v237_v38 }
  0xa3   : > { %v313_v45 = vadd.f32 %v305_v40, %v293_v43  ;;  %v315_v46 = vadd.f32 %v307_v42, %v298_v44 }
  0xa5   : > { %322 = vst.msk [vmem:[%s519_s13 + $0x28] sm:$0xff] %vm316_vm1, %v313_v45 }
  0xa6   : > { %324 = vst.msk [vmem:[%s519_s13 + $0x38] sm:$0xff] %vm316_vm1, %v315_v46 }
  0xa7 PF: > { %s14_s15 = sadd.s32 1, %s449_s15  }
  0xa8   : > { %p11_p4 = scmp.ge.s32.totalorder %s14_s15, 4  }
  0xaa   :  { %13 = sbr.rel (!%p11_p4) target bundleno = 1 (0x1), region = 69 }

// kernel: affine_layer_fwd.40
= control target key start
LH: loop header
LB: loop body
LE: loop exit
PB: predicated region body
PF: predicated region fallthrough
CT: control target
= control target key end

     0   :  { %s641_s12 = smov 0   ;;  %s759_s0 = inlined_call_operand.vmem [shape: f32[2,128,2], index: 0, kind: input, shape index: {}]   ;;  %s760_s1 = inlined_call_operand.vmem [shape: bf16[2,64,128], index: 1, kind: input, shape index: {}]   ;;  %s761_s2 = inlined_call_operand.vmem [shape: f32[64,1], index: 2, kind: input, shape index: {}]   ;;  %s762_s3 = inlined_call_operand.vmem [shape: f32[2,64,1], index: 3, kind: output, shape index: {}]  }
   0x1 LB: > { %s526_s13 = sadd.s32 4294967295, %s618_s12   ;;  %p530_p0 = scmp.ge.s32.totalorder %s618_s12, 1  ;;  %s618_s12 = sphi %s641_s12, %s13_s12  }
   0x2   : > { %p137_p1 = scmp.lt.s32.totalorder %s618_s12, 3 }
   0x4   : > { %p138_p2 = pnand %p530_p0, %p137_p1 }
   0x5   : > { %p161_p3 = scmp.lt.s32.totalorder (!%p138_p2), %s526_s13, 1  ;;  %s620_s18 = smov (!%p138_p2), 127  }
   0x6   : > { %141 = sbr.rel (%p138_p2) target bundleno = 335 (0x14f), region = 32 }
   0xb   : > { %s764_s13 = smov (!%p161_p3, %s526_s13), 1 }
   0xc   : > { %s577_s14 = sshll.u32 %s764_s13, 7  ;;  %s578_s8 = sshll.u32 %s764_s13, 6 }
   0xd   : > { %s655_s17 = scalar_lea.vmem %s759_s0, %s577_s14  ;;  %s717_s15 = scalar_lea.vmem %s762_s3, %s578_s8 }
   0xe   : > { %v185_v0 = vld [vmem:[%s655_s17 + $0x70] sm:$0xff]  ;;  %v186_v1 = vld [vmem:[%s655_s17 + $0x78] sm:$0xff]  ;;  %v183_v2 = vld [vmem:[%s655_s17 + $0x60] sm:$0xff] }
   0xf   : > { %vm201_vm0 = vcmp.ge.f32.partialorder %v185_v0, 0.0  ;;  %vm202_vm1 = vcmp.ge.f32.partialorder %v186_v1, 0.0  ;;  %v217_v3 = vmul.f32 0.1, %v185_v0  ;;  %v218_v4 = vmul.f32 0.1, %v186_v1 }
  0x10   : > { %v184_v5 = vld [vmem:[%s655_s17 + $0x68] sm:$0xff]  ;;  %vm199_vm2 = vcmp.ge.f32.partialorder %v183_v2, 0.0  ;;  %v215_v6 = vmul.f32 0.1, %v183_v2  ;;  %v181_v7 = vld [vmem:[%s655_s17 + $0x50] sm:$0xff]  ;;  %v182_v8 = vld [vmem:[%s655_s17 + $0x58] sm:$0xff] }
  0x11   : > { %v233_v9 = vsel %vm201_vm0, %v185_v0, %v217_v3  ;;  %v234_v10 = vsel %vm202_vm1, %v186_v1, %v218_v4  ;;  %vm200_vm3 = vcmp.ge.f32.partialorder %v184_v5, 0.0  ;;  %v216_v11 = vmul.f32 0.1, %v184_v5  ;;  %v179_v15 = vld [vmem:[%s655_s17 + $0x40] sm:$0xff]  ;;  %v180_v16 = vld [vmem:[%s655_s17 + $0x48] sm:$0xff]  ;;  %v173_v24 = vld [vmem:[%s655_s17 + $0x10] sm:$0xff] }
  0x12   : > { %v249_v12 = vpack.c.bf16 %v233_v9, %v233_v9  ;;  %v250_v13 = vpack.c.bf16 %v234_v10, %v234_v10  ;;  %v231_v14 = vsel %vm199_vm2, %v183_v2, %v215_v6  ;;  %vm197_vm4 = vcmp.ge.f32.partialorder %v181_v7, 0.0  ;;  %v174_v27 = vld [vmem:[%s655_s17 + $0x18] sm:$0xff]  ;;  %v171_v35 = vld [vmem:[%s655_s17] sm:$0xff]  ;;  %v172_v39 = vld [vmem:[%s655_s17 + $0x8] sm:$0xff] }
  0x13   : > { %v232_v17 = vsel %vm200_vm3, %v184_v5, %v216_v11  ;;  %v247_v18 = vpack.c.bf16 %v231_v14, %v231_v14  ;;  %vm198_vm5 = vcmp.ge.f32.partialorder %v182_v8, 0.0  ;;  %v213_v19 = vmul.f32 0.1, %v181_v7  ;;  %v177_v47 = vld [vmem:[%s655_s17 + $0x30] sm:$0xff]  ;;  %v178_v51 = vld [vmem:[%s655_s17 + $0x38] sm:$0xff]  ;;  %v175_v57 = vld [vmem:[%s655_s17 + $0x20] sm:$0xff] }
  0x14   : > { %v322_v20 = vunpack.c.l.b16 %v249_v12  ;;  %v323_v21 = vunpack.c.l.b16 %v250_v13  ;;  %v248_v22 = vpack.c.bf16 %v232_v17, %v232_v17  ;;  %v214_v23 = vmul.f32 0.1, %v182_v8  ;;  %v176_v61 = vld [vmem:[%s655_s17 + $0x28] sm:$0xff] }
  0x15   : > { %v320_v25 = vunpack.c.l.b16 %v247_v18  ;;  %v229_v26 = vsel %vm197_vm4, %v181_v7, %v213_v19  ;;  %vm195_vm6 = vcmp.ge.f32.partialorder %v179_v15, 0.0  ;;  %vm196_vm7 = vcmp.ge.f32.partialorder %v180_v16, 0.0 }
  0x16   : > { %v331_v28 = vpack.c.b16 %v323_v21, %v322_v20  ;;  %v321_v29 = vunpack.c.l.b16 %v248_v22  ;;  %v230_v30 = vsel %vm198_vm5, %v182_v8, %v214_v23  ;;  %v245_v31 = vpack.c.bf16 %v229_v26, %v229_v26  ;;  %v579_v26 = vld [vmem:[%s760_s1] sm:$0xff] }
  0x17   : > { %v246_v32 = vpack.c.bf16 %v230_v30, %v230_v30  ;;  %v211_v33 = vmul.f32 0.1, %v179_v15  ;;  %v212_v34 = vmul.f32 0.1, %v180_v16  ;;  %vm189_vm8 = vcmp.ge.f32.partialorder %v173_v24, 0.0 }
  0x18   : > { %346 = vrot.lane.b32.xlu0 %v331_v28, %s620_s18  ;;  %v330_v36 = vpack.c.b16 %v321_v29, %v320_v25  ;;  %v318_v37 = vunpack.c.l.b16 %v245_v31  ;;  %vm190_vm9 = vcmp.ge.f32.partialorder %v174_v27, 0.0  ;;  %v205_v38 = vmul.f32 0.1, %v173_v24  ;;  %595 = vmatpush.bf16.msra.mxu3 %v331_v28 }
  0x19   : > { %v319_v40 = vunpack.c.l.b16 %v246_v32  ;;  %v227_v41 = vsel %vm195_vm6, %v179_v15, %v211_v33  ;;  %v228_v42 = vsel %vm196_vm7, %v180_v16, %v212_v34  ;;  %v206_v43 = vmul.f32 0.1, %v174_v27  ;;  %417 = vmatpush.bf16.msra.mxu1 %v331_v28  ;;  %v582_v28 = vld [vmem:[%s760_s1 + $0x18] sm:$0xff]  ;;  %v580_v32 = vld [vmem:[%s760_s1 + $0x8] sm:$0xff] }
  0x1a   : > { %v243_v44 = vpack.c.bf16 %v227_v41, %v227_v41  ;;  %v244_v45 = vpack.c.bf16 %v228_v42, %v228_v42  ;;  %v221_v46 = vsel %vm189_vm8, %v173_v24, %v205_v38  ;;  %vm187_vm10 = vcmp.ge.f32.partialorder %v171_v35, 0.0  ;;  %v581_v24 = vld [vmem:[%s760_s1 + $0x10] sm:$0xff]  ;;  %v584_v38 = vld [vmem:[%s760_s1 + $0x28] sm:$0xff] }
  0x1b   : > { %v329_v48 = vpack.c.b16 %v319_v40, %v318_v37  ;;  %v222_v49 = vsel %vm190_vm9, %v174_v27, %v206_v43  ;;  %v237_v50 = vpack.c.bf16 %v221_v46, %v221_v46  ;;  %vm188_vm11 = vcmp.ge.f32.partialorder %v172_v39, 0.0  ;;  %v585_v37 = vld [vmem:[%s760_s1 + $0x30] sm:$0xff]  ;;  %v446_v43 = vld [vmem:[%s761_s2] sm:$0xff] }
  0x1c   : > { %v316_v52 = vunpack.c.l.b16 %v243_v44  ;;  %v317_v53 = vunpack.c.l.b16 %v244_v45  ;;  %v238_v54 = vpack.c.bf16 %v222_v49, %v222_v49  ;;  %v203_v55 = vmul.f32 0.1, %v171_v35  ;;  %596 = vmatpush.bf16.msra.mxu3 %v330_v36 }
  0x1d   : > { %342 = vrot.lane.b32.xlu1 %v329_v48, %s620_s18  ;;  %v204_v56 = vmul.f32 0.1, %v172_v39  ;;  %vm193_vm12 = vcmp.ge.f32.partialorder %v177_v47, 0.0  ;;  %418 = vmatpush.bf16.msra.mxu1 %v330_v36  ;;  %v310_v58 = vunpack.c.l.b16 %v237_v50  ;;  %vm194_vm13 = vcmp.ge.f32.partialorder %v178_v51, 0.0 }
  0x1e   : > { %v219_v59 = vsel %vm187_vm10, %v171_v35, %v203_v55  ;;  %v209_v60 = vmul.f32 0.1, %v177_v47  ;;  %v328_v62 = vpack.c.b16 %v317_v53, %v316_v52  ;;  %v311_v63 = vunpack.c.l.b16 %v238_v54 }
  0x1f   : > { %v220_v0 = vsel %vm188_vm11, %v172_v39, %v204_v56  ;;  %v210_v1 = vmul.f32 0.1, %v178_v51  ;;  %v235_v2 = vpack.c.bf16 %v219_v59, %v219_v59  ;;  %vm191_vm14 = vcmp.ge.f32.partialorder %v175_v57, 0.0  ;;  %v586_v39 = vld [vmem:[%s760_s1 + $0x38] sm:$0xff] }
  0x20   : > { %344 = vrot.lane.b32.xlu0 %v330_v36, %s620_s18  ;;  %v236_v3 = vpack.c.bf16 %v220_v0, %v220_v0  ;;  %v225_v4 = vsel %vm193_vm12, %v177_v47, %v209_v60  ;;  %597 = vmatpush.bf16.msra.mxu3 %v329_v48  ;;  %vm192_vm15 = vcmp.ge.f32.partialorder %v176_v61, 0.0  ;;  %v207_v7 = vmul.f32 0.1, %v175_v57  ;;  %v583_v36 = vld [vmem:[%s760_s1 + $0x20] sm:$0xff] }
  0x21   : > { %v226_v5 = vsel %vm194_vm13, %v178_v51, %v210_v1  ;;  %v241_v6 = vpack.c.bf16 %v225_v4, %v225_v4  ;;  %419 = vmatpush.bf16.msra.mxu1 %v329_v48  ;;  %v208_v9 = vmul.f32 0.1, %v176_v61  ;;  %v325_v12 = vpack.c.b16 %v311_v63, %v310_v58  ;;  %v450_v48 = vld [vmem:[%s761_s2 + $0x20] sm:$0xff]  ;;  %v447_v51 = vld [vmem:[%s761_s2 + $0x8] sm:$0xff] }
  0x22   : > { %v242_v8 = vpack.c.bf16 %v226_v5, %v226_v5  ;;  %v223_v11 = vsel %vm191_vm14, %v175_v57, %v207_v7  ;;  %v308_v16 = vunpack.c.l.b16 %v235_v2  ;;  %v309_v17 = vunpack.c.l.b16 %v236_v3  ;;  %v451_v57 = vld [vmem:[%s761_s2 + $0x28] sm:$0xff]  ;;  %v452_v3 = vld [vmem:[%s761_s2 + $0x30] sm:$0xff]  ;;  %v449_v7 = vld [vmem:[%s761_s2 + $0x18] sm:$0xff] }
  0x23   : > { %v314_v10 = vunpack.c.l.b16 %v241_v6  ;;  %v224_v14 = vsel %vm192_vm15, %v176_v61, %v208_v9  ;;  %v239_v15 = vpack.c.bf16 %v223_v11, %v223_v11  ;;  %vm462_vm0 = vcmask 7168   ;;  %v448_v61 = vld [vmem:[%s761_s2 + $0x10] sm:$0xff] }
  0x24   : > { %v315_v13 = vunpack.c.l.b16 %v242_v8  ;;  %598 = vmatpush.bf16.msra.mxu3 %v328_v62  ;;  %v240_v18 = vpack.c.bf16 %v224_v14, %v224_v14  ;;  %v324_v22 = vpack.c.b16 %v309_v17, %v308_v16 }
  0x25   : > { %340 = vrot.lane.b32.xlu1 %v328_v62, %s620_s18  ;;  %420 = vmatpush.bf16.msra.mxu1 %v328_v62  ;;  %v312_v20 = vunpack.c.l.b16 %v239_v15 }
  0x26   : > { %v327_v19 = vpack.c.b16 %v315_v13, %v314_v10  ;;  %v313_v21 = vunpack.c.l.b16 %v240_v18  ;;  %v453_v13 = vld [vmem:[%s761_s2 + $0x38] sm:$0xff] }
  0x28   : > { %334 = vrot.lane.b32.xlu0 %v325_v12, %s620_s18  ;;  %338 = vrot.lane.b32.xlu2 %v327_v19, %s620_s18  ;;  %v326_v23 = vpack.c.b16 %v313_v21, %v312_v20 }
  0x29   : > { %599 = vmatpush.bf16.msra.mxu3 %v327_v19  ;;  %421 = vmatpush.bf16.msra.mxu1 %v327_v19 }
  0x2d   : > { %332 = vrot.lane.b32.xlu1 %v324_v22, %s620_s18  ;;  %600 = vmatpush.bf16.msra.mxu3 %v326_v23 }
  0x2e   : > { %422 = vmatpush.bf16.msra.mxu1 %v326_v23 }
  0x30   : > { %336 = vrot.lane.b32.xlu2 %v326_v23, %s620_s18 }
  0x31   : > { %601 = vmatpush.bf16.msra.mxu3 %v325_v12 }
  0x32   : > { %423 = vmatpush.bf16.msra.mxu1 %v325_v12 }
  0x35   : > { %602 = vmatpush.bf16.msra.mxu3 %v324_v22 }
  0x36   : > { %424 = vmatpush.bf16.msra.mxu1 %v324_v22 }
  0x38   : > { %435 = vmatmul.bf16.vlgmr.msra.gmra.mxu3 %v581_v24 }
  0x39   : > { %425 = vmatmul.bf16.vlgmr.msra.gmra.mxu1 %v579_v26 }
  0x48   : > { %440 = vmatmul.bf16.gmra.mxu3 %v582_v28 }
  0x49   : > { %430 = vmatmul.bf16.gmra.mxu1 %v580_v32 }
  0x82   : > { %v339_v30 = vpop.permute.xlu2 %338 }
  0x8a   : > { %v347_v25 = vpop.permute.xlu0 %346  ;;  %v337_v33 = vpop.permute.xlu2 %336 }
  0x8b   : > { %356 = vmatpush.bf16.msra.mxu0 %v347_v25  ;;  %587 = vmatpush.bf16.msra.mxu2 %v347_v25 }
  0x8f   : > { %v343_v27 = vpop.permute.xlu1 %342 }
  0x92   : > { %v345_v29 = vpop.permute.xlu0 %344 }
  0x93   : > { %357 = vmatpush.bf16.msra.mxu0 %v345_v29  ;;  %588 = vmatpush.bf16.msra.mxu2 %v345_v29 }
  0x97   : > { %358 = vmatpush.bf16.msra.mxu0 %v343_v27  ;;  %589 = vmatpush.bf16.msra.mxu2 %v343_v27  ;;  %v341_v31 = vpop.permute.xlu1 %340 }
  0x9a   : > { %v335_v34 = vpop.permute.xlu0 %334 }
  0x9b   : > { %359 = vmatpush.bf16.msra.mxu0 %v341_v31  ;;  %590 = vmatpush.bf16.msra.mxu2 %v341_v31 }
  0x9f   : > { %360 = vmatpush.bf16.msra.mxu0 %v339_v30  ;;  %591 = vmatpush.bf16.msra.mxu2 %v339_v30  ;;  %v333_v35 = vpop.permute.xlu1 %332 }
  0xa3   : > { %361 = vmatpush.bf16.msra.mxu0 %v337_v33  ;;  %592 = vmatpush.bf16.msra.mxu2 %v337_v33 }
  0xa7   : > { %362 = vmatpush.bf16.msra.mxu0 %v335_v34  ;;  %593 = vmatpush.bf16.msra.mxu2 %v335_v34 }
  0xab   : > { %363 = vmatpush.bf16.msra.mxu0 %v333_v35  ;;  %594 = vmatpush.bf16.msra.mxu2 %v333_v35 }
  0xae   : > { %364 = vmatmul.bf16.vlgmr.msra.gmra.mxu0 %v583_v36  ;;  %374 = vmatmul.bf16.vlgmr.msra.gmra.mxu2 %v585_v37 }
  0xb6   : > { %v426_v40 = vpop.f32.mrf.mxu1 }
  0xbb   : > { %v436_v41 = vpop.f32.mrf.mxu3 }
  0xbe   : > { %369 = vmatmul.bf16.gmra.mxu0 %v584_v38  ;;  %379 = vmatmul.bf16.gmra.mxu2 %v586_v39  ;;  %v428_v46 = vpop.f32.mrf.mxu1 }
  0xc3   : > { %v438_v54 = vpop.f32.mrf.mxu3 }
  0xc6   : > { %v431_v58 = vpop.f32.mrf.mxu1 }
  0xcb   : > { %v441_v1 = vpop.f32.mrf.mxu3 }
  0xce   : > { %v433_v5 = vpop.f32.mrf.mxu1 }
  0xd3   : > { %v443_v11 = vpop.f32.mrf.mxu3 }
 0x12b   : > { %v365_v42 = vpop.f32.mrf.mxu0 }
 0x12c   : > { %v427_v44 = vadd.f32 %v426_v40, %v365_v42 }
 0x12e   : > { %v454_v45 = vadd.f32 %v446_v43, %v427_v44 }
 0x130   : > { %463 = vst.msk [vmem:[%s717_s15] sm:$0xff] %vm462_vm0, %v454_v45 }
 0x131   : > { %v375_v47 = vpop.f32.mrf.mxu2 }
 0x132   : > { %v437_v49 = vadd.f32 %v436_v41, %v375_v47 }
 0x133   : > { %v367_v50 = vpop.f32.mrf.mxu0 }
 0x134   : > { %v458_v52 = vadd.f32 %v450_v48, %v437_v49  ;;  %v429_v53 = vadd.f32 %v428_v46, %v367_v50 }
 0x136   : > { %467 = vst.msk [vmem:[%s717_s15 + $0x20] sm:$0xff] %vm462_vm0, %v458_v52  ;;  %v455_v55 = vadd.f32 %v447_v51, %v429_v53 }
 0x138   : > { %464 = vst.msk [vmem:[%s717_s15 + $0x8] sm:$0xff] %vm462_vm0, %v455_v55 }
 0x139   : > { %v377_v56 = vpop.f32.mrf.mxu2 }
 0x13a   : > { %v439_v59 = vadd.f32 %v438_v54, %v377_v56 }
 0x13b   : > { %v370_v60 = vpop.f32.mrf.mxu0 }
 0x13c   : > { %v459_v62 = vadd.f32 %v451_v57, %v439_v59  ;;  %v432_v63 = vadd.f32 %v431_v58, %v370_v60 }
 0x13e   : > { %468 = vst.msk [vmem:[%s717_s15 + $0x28] sm:$0xff] %vm462_vm0, %v459_v62  ;;  %v456_v0 = vadd.f32 %v448_v61, %v432_v63 }
 0x140   : > { %465 = vst.msk [vmem:[%s717_s15 + $0x10] sm:$0xff] %vm462_vm0, %v456_v0 }
 0x141   : > { %v380_v2 = vpop.f32.mrf.mxu2 }
 0x142   : > { %v442_v4 = vadd.f32 %v441_v1, %v380_v2 }
 0x143   : > { %v372_v6 = vpop.f32.mrf.mxu0 }
 0x144   : > { %v460_v8 = vadd.f32 %v452_v3, %v442_v4  ;;  %v434_v9 = vadd.f32 %v433_v5, %v372_v6 }
 0x146   : > { %469 = vst.msk [vmem:[%s717_s15 + $0x30] sm:$0xff] %vm462_vm0, %v460_v8  ;;  %v457_v10 = vadd.f32 %v449_v7, %v434_v9 }
 0x148   : > { %466 = vst.msk [vmem:[%s717_s15 + $0x18] sm:$0xff] %vm462_vm0, %v457_v10 }
 0x149   : > { %v382_v12 = vpop.f32.mrf.mxu2 }
 0x14a   : > { %v444_v14 = vadd.f32 %v443_v11, %v382_v12 }
 0x14c   : > { %v461_v15 = vadd.f32 %v453_v13, %v444_v14 }
 0x14e   : > { %470 = vst.msk [vmem:[%s717_s15 + $0x38] sm:$0xff] %vm462_vm0, %v461_v15 }
 0x14f PF: > { %s13_s12 = sadd.s32 1, %s618_s12  }
 0x150   : > { %p10_p4 = scmp.ge.s32.totalorder %s13_s12, 4  }
 0x152   :  { %12 = sbr.rel (!%p10_p4) target bundleno = 1 (0x1), region = 63 }

// kernel: affine_layer_fwd.42
= control target key start
LH: loop header
LB: loop body
LE: loop exit
PB: predicated region body
PF: predicated region fallthrough
CT: control target
= control target key end

     0   :  { %s794_s15 = smov 0   ;;  %s919_s0 = inlined_call_operand.vmem [shape: f32[2,64,3], index: 0, kind: input, shape index: {}]   ;;  %s920_s1 = inlined_call_operand.vmem [shape: bf16[3,64,64], index: 1, kind: input, shape index: {}]   ;;  %s921_s2 = inlined_call_operand.vmem [shape: f32[64,1], index: 2, kind: input, shape index: {}]   ;;  %s922_s3 = inlined_call_operand.vmem [shape: f32[2,64,1], index: 3, kind: input, shape index: {}]   ;;  %s923_s4 = inlined_call_operand.vmem [shape: f32[2,64,1], index: 4, kind: output, shape index: {}]  }
   0x1 LB: > { %s633_s16 = sadd.s32 4294967295, %s765_s15   ;;  %p637_p0 = scmp.ge.s32.totalorder %s765_s15, 1  ;;  %s765_s15 = sphi %s794_s15, %s14_s15  }
   0x2   : > { %p172_p1 = scmp.lt.s32.totalorder %s765_s15, 3 }
   0x4   : > { %p173_p2 = pnand %p637_p0, %p172_p1 }
   0x5   : > { %p203_p3 = scmp.lt.s32.totalorder (!%p173_p2), %s633_s16, 1  ;;  %s767_s21 = smov (!%p173_p2), 127  }
   0x6   : > { %176 = sbr.rel (%p173_p2) target bundleno = 342 (0x156), region = 36  ;;  %s768_s22 = smov (!%p173_p2), 126  }
   0xb   : > { %s925_s16 = smov (!%p203_p3, %s633_s16), 1  ;;  %vm328_vm8 = vcmask 523264   ;;  %v726_v44 = vld [vmem:[%s920_s1 + $0x8] sm:$0xff]  ;;  %v727_v47 = vld [vmem:[%s920_s1 + $0x10] sm:$0xff]  ;;  %v729_v53 = vld [vmem:[%s920_s1 + $0x20] sm:$0xff]  ;;  %vm557_vm9 = vcmask 7168  }
   0xc   : > { %s802_s17 = sshll.u32 %s925_s16, 6  ;;  %v730_v54 = vld [vmem:[%s920_s1 + $0x28] sm:$0xff]  ;;  %v728_v56 = vld [vmem:[%s920_s1 + $0x18] sm:$0xff]  ;;  %v731_v58 = vld [vmem:[%s920_s1 + $0x30] sm:$0xff] }
   0xd   : > { %s207_s20 = scalar_lea.vmem %s919_s0, %s802_s17  ;;  %v734_v57 = vld [vmem:[%s920_s1 + $0x48] sm:$0xff]  ;;  %v725_v59 = vld [vmem:[%s920_s1] sm:$0xff]  ;;  %v735_v60 = vld [vmem:[%s920_s1 + $0x50] sm:$0xff]  ;;  %s860_s25 = scalar_lea.vmem %s922_s3, %s802_s17 }
   0xe   : > { %v225_v0 = vld [vmem:[%s207_s20 + $0x30] sm:$0xff]  ;;  %v226_v1 = vld [vmem:[%s207_s20 + $0x38] sm:$0xff]  ;;  %v223_v2 = vld [vmem:[%s207_s20 + $0x20] sm:$0xff]  ;;  %s870_s30 = scalar_lea.vmem %s923_s4, %s802_s17 }
   0xf   : > { %vm233_vm0 = vcmp.ge.f32.partialorder %v225_v0, 0.0  ;;  %vm234_vm1 = vcmp.ge.f32.partialorder %v226_v1, 0.0  ;;  %v241_v3 = vmul.f32 0.1, %v225_v0  ;;  %v242_v4 = vmul.f32 0.1, %v226_v1 }
  0x10   : > { %v224_v5 = vld [vmem:[%s207_s20 + $0x28] sm:$0xff]  ;;  %vm231_vm2 = vcmp.ge.f32.partialorder %v223_v2, 0.0  ;;  %v239_v6 = vmul.f32 0.1, %v223_v2  ;;  %v219_v7 = vld [vmem:[%s207_s20] sm:$0xff]  ;;  %v221_v18 = vld [vmem:[%s207_s20 + $0x10] sm:$0xff] }
  0x11   : > { %v249_v8 = vsel %vm233_vm0, %v225_v0, %v241_v3  ;;  %v250_v9 = vsel %vm234_vm1, %v226_v1, %v242_v4  ;;  %vm232_vm3 = vcmp.ge.f32.partialorder %v224_v5, 0.0  ;;  %v240_v10 = vmul.f32 0.1, %v224_v5  ;;  %v220_v11 = vld [vmem:[%s207_s20 + $0x8] sm:$0xff]  ;;  %v222_v19 = vld [vmem:[%s207_s20 + $0x18] sm:$0xff]  ;;  %v733_v62 = vld [vmem:[%s920_s1 + $0x40] sm:$0xff] }
  0x12   : > { %v257_v12 = vpack.c.bf16 %v249_v8, %v249_v8  ;;  %v258_v13 = vpack.c.bf16 %v250_v9, %v250_v9  ;;  %v247_v14 = vsel %vm231_vm2, %v223_v2, %v239_v6  ;;  %v235_v17 = vmul.f32 0.1, %v219_v7  ;;  %v732_v61 = vld [vmem:[%s920_s1 + $0x38] sm:$0xff]  ;;  %v543_v9 = vld [vmem:[%s860_s25 + $0x10] sm:$0xff] }
  0x13   : > { %v248_v15 = vsel %vm232_vm3, %v224_v5, %v240_v10  ;;  %v255_v16 = vpack.c.bf16 %v247_v14, %v247_v14  ;;  %v236_v23 = vmul.f32 0.1, %v220_v11  ;;  %vm227_vm4 = vcmp.ge.f32.partialorder %v219_v7, 0.0  ;;  %v736_v63 = vld [vmem:[%s920_s1 + $0x58] sm:$0xff] }
  0x14   : > { %v310_v20 = vunpack.c.l.b16 %v257_v12  ;;  %v311_v21 = vunpack.c.l.b16 %v258_v13  ;;  %v256_v22 = vpack.c.bf16 %v248_v15, %v248_v15  ;;  %vm228_vm5 = vcmp.ge.f32.partialorder %v220_v11, 0.0 }
  0x15   : > { %v308_v24 = vunpack.c.l.b16 %v255_v16  ;;  %vm229_vm6 = vcmp.ge.f32.partialorder %v221_v18, 0.0  ;;  %vm230_vm7 = vcmp.ge.f32.partialorder %v222_v19, 0.0  ;;  %v237_v27 = vmul.f32 0.1, %v221_v18 }
  0x16   : > { %v315_v25 = vpack.c.b16 %v311_v21, %v310_v20  ;;  %v309_v26 = vunpack.c.l.b16 %v256_v22  ;;  %v238_v28 = vmul.f32 0.1, %v222_v19  ;;  %v243_v30 = vsel %vm227_vm4, %v219_v7, %v235_v17  ;;  %v527_v7 = vld [vmem:[%s921_s2 + $0x10] sm:$0xff]  ;;  %v528_v17 = vld [vmem:[%s921_s2 + $0x18] sm:$0xff] }
  0x17   : > { %v244_v31 = vsel %vm228_vm5, %v220_v11, %v236_v23  ;;  %v245_v32 = vsel %vm229_vm6, %v221_v18, %v237_v27  ;;  %v251_v36 = vpack.c.bf16 %v243_v30, %v243_v30 }
  0x18   : > { %322 = vrot.lane.b32.xlu0 %v315_v25, %s767_s21  ;;  %v314_v29 = vpack.c.b16 %v309_v26, %v308_v24  ;;  %741 = vmatpush.bf16.msra.mxu1 %v315_v25  ;;  %v246_v33 = vsel %vm230_vm7, %v222_v19, %v238_v28  ;;  %v253_v34 = vpack.c.bf16 %v245_v32, %v245_v32  ;;  %v544_v19 = vld [vmem:[%s860_s25 + $0x18] sm:$0xff]  ;;  %v529_v26 = vld [vmem:[%s921_s2 + $0x20] sm:$0xff] }
  0x19   : > { %v254_v35 = vpack.c.bf16 %v246_v33, %v246_v33  ;;  %v252_v37 = vpack.c.bf16 %v244_v31, %v244_v31  ;;  %v304_v41 = vunpack.c.l.b16 %v251_v36 }
  0x1a   : > { %320 = vrot.lane.b32.xlu1 %v314_v29, %s767_s21  ;;  %v306_v38 = vunpack.c.l.b16 %v253_v34 }
  0x1b   : > { %v307_v39 = vunpack.c.l.b16 %v254_v35  ;;  %v305_v42 = vunpack.c.l.b16 %v252_v37  ;;  %v525_v35 = vld [vmem:[%s921_s2] sm:$0xff] }
  0x1c   : > { %742 = vmatpush.bf16.msra.mxu1 %v314_v29 }
  0x1d   : > { %v313_v40 = vpack.c.b16 %v307_v39, %v306_v38  ;;  %v312_v43 = vpack.c.b16 %v305_v42, %v304_v41  ;;  %v541_v38 = vld [vmem:[%s860_s25] sm:$0xff]  ;;  %v530_v41 = vld [vmem:[%s921_s2 + $0x28] sm:$0xff] }
  0x1f   : > { %318 = vrot.lane.b32.xlu2 %v313_v40, %s767_s21 }
  0x20   : > { %470 = vrot.lane.b32.xlu0 %v315_v25, %s768_s22  ;;  %743 = vmatpush.bf16.msra.mxu1 %v313_v40 }
  0x22   : > { %468 = vrot.lane.b32.xlu1 %v314_v29, %s768_s22 }
  0x24   : > { %744 = vmatpush.bf16.msra.mxu1 %v312_v43 }
  0x27   : > { %466 = vrot.lane.b32.xlu2 %v313_v40, %s768_s22  ;;  %689 = vmatmul.msk.bf16.vlgmr.msra.gmra.mxu1 %vm328_vm8, %v726_v44  ;;  %v546_v44 = vld [vmem:[%s860_s25 + $0x28] sm:$0xff] }
  0x28   : > { %316 = vrot.lane.b32.xlu0 %v312_v43, %s767_s21 }
  0x2a   : > { %464 = vrot.lane.b32.xlu1 %v312_v43, %s768_s22 }
  0x37   : > { %690 = vmatmul.msk.bf16.gmra.mxu1 %vm328_vm8, %v727_v47 }
  0x47   : > { %691 = vmatmul.msk.bf16.gmra.mxu1 %vm328_vm8, %v728_v56 }
  0x79   : > { %v319_v48 = vpop.permute.xlu2 %318 }
  0x81   : > { %v467_v51 = vpop.permute.xlu2 %466 }
  0x8a   : > { %v323_v45 = vpop.permute.xlu0 %322 }
  0x8b   : > { %345 = vmatpush.bf16.msra.mxu0 %v323_v45  ;;  %737 = vmatpush.bf16.msra.mxu3 %v323_v45 }
  0x8c   : > { %v321_v46 = vpop.permute.xlu1 %320 }
  0x8f   : > { %346 = vmatpush.bf16.msra.mxu0 %v321_v46  ;;  %738 = vmatpush.bf16.msra.mxu3 %v321_v46 }
  0x92   : > { %v471_v49 = vpop.permute.xlu0 %470 }
  0x93   : > { %347 = vmatpush.bf16.msra.mxu0 %v319_v48  ;;  %739 = vmatpush.bf16.msra.mxu3 %v319_v48 }
  0x94   : > { %745 = vmatpush.bf16.msra.mxu2 %v471_v49  ;;  %v469_v50 = vpop.permute.xlu1 %468 }
  0x98   : > { %746 = vmatpush.bf16.msra.mxu2 %v469_v50 }
  0x9a   : > { %v317_v52 = vpop.permute.xlu0 %316 }
  0x9b   : > { %348 = vmatpush.bf16.msra.mxu0 %v317_v52  ;;  %740 = vmatpush.bf16.msra.mxu3 %v317_v52  ;;  %v526_v52 = vld [vmem:[%s921_s2 + $0x8] sm:$0xff] }
  0x9c   : > { %747 = vmatpush.bf16.msra.mxu2 %v467_v51  ;;  %v465_v55 = vpop.permute.xlu1 %464 }
  0x9e   : > { %668 = vmatmul.msk.bf16.vlgmr.msra.gmra.mxu0 %vm328_vm8, %v729_v53  ;;  %669 = vmatmul.msk.bf16.vlgmr.msra.gmra.mxu3 %vm328_vm8, %v730_v54  ;;  %v542_v54 = vld [vmem:[%s860_s25 + $0x8] sm:$0xff] }
  0x9f   : > { %410 = vmatpush.bf16.msrb.mxu0 %v315_v25 }
  0xa0   : > { %748 = vmatpush.bf16.msra.mxu2 %v465_v55 }
  0xa3   : > { %411 = vmatpush.bf16.msrb.mxu0 %v314_v29  ;;  %717 = vmatmul.msk.bf16.vlgmr.msra.gmra.mxu2 %vm328_vm8, %v734_v57  ;;  %v545_v29 = vld [vmem:[%s860_s25 + $0x20] sm:$0xff]  ;;  %v531_v57 = vld [vmem:[%s921_s2 + $0x30] sm:$0xff] }
  0xa4   : > { %v420_v0 = vpop.f32.mrf.mxu1 }
  0xa7   : > { %412 = vmatpush.bf16.msrb.mxu0 %v313_v40 }
  0xab   : > { %413 = vmatpush.bf16.msrb.mxu0 %v312_v43 }
  0xac   : > { %v422_v5 = vpop.f32.mrf.mxu1 }
  0xae   : > { %670 = vmatmul.msk.bf16.gmra.mxu3 %vm328_vm8, %v731_v58  ;;  %688 = vmatmul.msk.bf16.vlgmr.msrb.gmra.mxu0 %vm328_vm8, %v725_v59 }
  0xaf   : > { %492 = vmatpush.bf16.msra.mxu0 %v471_v49 }
  0xb3   : > { %493 = vmatpush.bf16.msra.mxu0 %v469_v50  ;;  %718 = vmatmul.msk.bf16.gmra.mxu2 %vm328_vm8, %v735_v60  ;;  %v547_v60 = vld [vmem:[%s860_s25 + $0x30] sm:$0xff] }
  0xb4   : > { %v425_v15 = vpop.f32.mrf.mxu1 }
  0xb7   : > { %494 = vmatpush.bf16.msra.mxu0 %v467_v51 }
  0xbb   : > { %495 = vmatpush.bf16.msra.mxu0 %v465_v55 }
  0xbc   : > { %v427_v28 = vpop.f32.mrf.mxu1 }
  0xbe   : > { %671 = vmatmul.msk.bf16.gmra.mxu3 %vm328_vm8, %v732_v61  ;;  %716 = vmatmul.msk.bf16.vlgmr.msra.gmra.mxu0 %vm328_vm8, %v733_v62 }
  0xc3   : > { %719 = vmatmul.msk.bf16.gmra.mxu2 %vm328_vm8, %v736_v63 }
  0xc4   : > { %v430_v48 = vpop.f32.mrf.mxu1 }
 0x11b   : > { %v350_v1 = vpop.f32.mrf.mxu0 }
 0x121   : > { %v355_v2 = vpop.f32.mrf.mxu3 }
 0x122   : > { %v421_v3 = vadd.f32 %v420_v0, %v355_v2  ;;  %v432_v0 = vpop.f32.mrf.mxu1 }
 0x123   : > { %v352_v4 = vpop.f32.mrf.mxu0 }
 0x126   : > { %v502_v6 = vpop.f32.mrf.mxu2 }
 0x127   : > { %v519_v8 = vadd.f32 %v502_v6, %v421_v3  ;;  %v532_v3 = vld [vmem:[%s921_s2 + $0x38] sm:$0xff] }
 0x129   : > { %v535_v10 = vadd.f32 %v527_v7, %v519_v8  ;;  %v357_v11 = vpop.f32.mrf.mxu3 }
 0x12a   : > { %v423_v14 = vadd.f32 %v422_v5, %v357_v11  ;;  %v548_v5 = vld [vmem:[%s860_s25 + $0x38] sm:$0xff] }
 0x12b   : > { %v551_v12 = vadd.f32 %v543_v9, %v535_v10  ;;  %v415_v13 = vpop.f32.mrf.mxu0 }
 0x12c   : > { %v416_v32 = vadd.f32 %v415_v13, %v350_v1 }
 0x12d   : > { %560 = vst.msk [vmem:[%s870_s30 + $0x10] sm:$0xff] %vm557_vm9, %v551_v12 }
 0x12e   : > { %v504_v16 = vpop.f32.mrf.mxu2 }
 0x12f   : > { %v520_v18 = vadd.f32 %v504_v16, %v423_v14 }
 0x131   : > { %v536_v20 = vadd.f32 %v528_v17, %v520_v18  ;;  %v360_v21 = vpop.f32.mrf.mxu3 }
 0x132   : > { %v426_v23 = vadd.f32 %v425_v15, %v360_v21 }
 0x133   : > { %v552_v22 = vadd.f32 %v544_v19, %v536_v20  ;;  %v417_v24 = vpop.f32.mrf.mxu0 }
 0x134   : > { %v418_v47 = vadd.f32 %v417_v24, %v352_v4 }
 0x135   : > { %561 = vst.msk [vmem:[%s870_s30 + $0x18] sm:$0xff] %vm557_vm9, %v552_v22 }
 0x136   : > { %v507_v25 = vpop.f32.mrf.mxu2 }
 0x137   : > { %v521_v27 = vadd.f32 %v507_v25, %v426_v23 }
 0x139   : > { %v537_v30 = vadd.f32 %v529_v26, %v521_v27  ;;  %v362_v31 = vpop.f32.mrf.mxu3 }
 0x13a   : > { %v428_v37 = vadd.f32 %v427_v28, %v362_v31 }
 0x13b   : > { %v553_v33 = vadd.f32 %v545_v29, %v537_v30  ;;  %v497_v34 = vpop.f32.mrf.mxu0 }
 0x13c   : > { %v517_v36 = vadd.f32 %v497_v34, %v416_v32 }
 0x13d   : > { %562 = vst.msk [vmem:[%s870_s30 + $0x20] sm:$0xff] %vm557_vm9, %v553_v33 }
 0x13e   : > { %v533_v39 = vadd.f32 %v525_v35, %v517_v36  ;;  %v509_v40 = vpop.f32.mrf.mxu2 }
 0x13f   : > { %v522_v42 = vadd.f32 %v509_v40, %v428_v37 }
 0x140   : > { %v549_v43 = vadd.f32 %v541_v38, %v533_v39 }
 0x141   : > { %v538_v45 = vadd.f32 %v530_v41, %v522_v42  ;;  %v365_v46 = vpop.f32.mrf.mxu3 }
 0x142   : > { %558 = vst.msk [vmem:[%s870_s30] sm:$0xff] %vm557_vm9, %v549_v43  ;;  %v431_v50 = vadd.f32 %v430_v48, %v365_v46 }
 0x143   : > { %v554_v49 = vadd.f32 %v546_v44, %v538_v45  ;;  %v499_v51 = vpop.f32.mrf.mxu0 }
 0x144   : > { %v518_v53 = vadd.f32 %v499_v51, %v418_v47 }
 0x145   : > { %563 = vst.msk [vmem:[%s870_s30 + $0x28] sm:$0xff] %vm557_vm9, %v554_v49 }
 0x146   : > { %v534_v55 = vadd.f32 %v526_v52, %v518_v53  ;;  %v512_v56 = vpop.f32.mrf.mxu2 }
 0x147   : > { %v523_v58 = vadd.f32 %v512_v56, %v431_v50 }
 0x148   : > { %v550_v59 = vadd.f32 %v542_v54, %v534_v55 }
 0x149   : > { %v539_v61 = vadd.f32 %v531_v57, %v523_v58  ;;  %v367_v62 = vpop.f32.mrf.mxu3 }
 0x14a   : > { %559 = vst.msk [vmem:[%s870_s30 + $0x8] sm:$0xff] %vm557_vm9, %v550_v59  ;;  %v433_v1 = vadd.f32 %v432_v0, %v367_v62 }
 0x14b   : > { %v555_v63 = vadd.f32 %v547_v60, %v539_v61 }
 0x14d   : > { %564 = vst.msk [vmem:[%s870_s30 + $0x30] sm:$0xff] %vm557_vm9, %v555_v63 }
 0x14e   : > { %v514_v2 = vpop.f32.mrf.mxu2 }
 0x14f   : > { %v524_v4 = vadd.f32 %v514_v2, %v433_v1 }
 0x151   : > { %v540_v6 = vadd.f32 %v532_v3, %v524_v4 }
 0x153   : > { %v556_v7 = vadd.f32 %v548_v5, %v540_v6 }
 0x155   : > { %565 = vst.msk [vmem:[%s870_s30 + $0x38] sm:$0xff] %vm557_vm9, %v556_v7 }
 0x156 PF: > { %s14_s15 = sadd.s32 1, %s765_s15  }
 0x157   : > { %p11_p4 = scmp.ge.s32.totalorder %s14_s15, 4  }
 0x159   :  { %13 = sbr.rel (!%p11_p4) target bundleno = 1 (0x1), region = 71 }

// kernel: tile.18
= control target key start
LH: loop header
LB: loop body
LE: loop exit
PB: predicated region body
PF: predicated region fallthrough
CT: control target
= control target key end

     0   :  { %s22_s0 = inlined_call_operand.vmem [shape: f32[32], index: 0, kind: input, shape index: {}]   ;;  %s23_s1 = inlined_call_operand.vmem [shape: f32[4,32], index: 1, kind: output, shape index: {}]  }
   0x1   :  { %v4_v0 = vld [vmem:[%s22_s0] ss:$0 sm:$0xff] }
   0x2   :  { %5 = vst [vmem:[%s23_s1] sm:$0xf] %v4_v0 }

// kernel: tile.0
= control target key start
LH: loop header
LB: loop body
LE: loop exit
PB: predicated region body
PF: predicated region fallthrough
CT: control target
= control target key end

     0   :  { %s546_s8 = smov 125   ;;  %s547_s9 = smov 123   ;;  %vm7_vm0 = vcmask 7168   ;;  %s1101_s0 = inlined_call_operand.vmem [shape: f32[4,32], index: 0, kind: input, shape index: {}]   ;;  %s1102_s1 = inlined_call_operand.vmem [shape: f32[128,1], index: 1, kind: output, shape index: {}]  }
   0x1   :  { %v4_v0 = vld [vmem:[%s1101_s0] sm:$0xf]  ;;  %s545_s0 = smov 127   ;;  %s548_s10 = smov 126  }
   0x2   :  { %5 = vst [vmem:[#allocation0] sm:$0xf] %v4_v0  ;;  %s549_s11 = smov 124   ;;  %s550_s12 = smov 122  }
   0x3   :  { %s551_s13 = smov 121   ;;  %s552_s14 = smov 120  }
   0x4   :  { %s553_s15 = smov 119   ;;  %s554_s16 = smov 118  }
   0x5   :  { %s555_s17 = smov 117   ;;  %s556_s18 = smov 116  }
   0x6   :  { %s557_s19 = smov 115   ;;  %s558_s20 = smov 114  }
   0x7   :  { %s559_s21 = smov 113   ;;  %s560_s22 = smov 112  }
   0x8   :  { %s561_s23 = smov 111   ;;  %s562_s24 = smov 110  }
   0x9   :  { %v15_v1 = vld [vmem:[#allocation0] sm:$0xf]   ;;  %s563_s25 = smov 109   ;;  %s564_s26 = smov 108  }
   0xa   :  { %v39_v2 = vld [vmem:[#allocation0] sm:$0xf]   ;;  %16 = vrot.lane.b32.xlu0 %v15_v1, %s545_s0  ;;  %s565_s27 = smov 107   ;;  %s566_s28 = smov 106  }
   0xb   :  { %40 = vrot.lane.b32.xlu1 %v39_v2, %s546_s8  ;;  %v63_v3 = vld [vmem:[#allocation0] sm:$0xf]   ;;  %s567_s29 = smov 105   ;;  %s568_s30 = smov 104  }
   0xc   :  { %64 = vrot.lane.b32.xlu2 %v63_v3, %s547_s9  ;;  %v27_v4 = vld [vmem:[#allocation0] sm:$0xf]   ;;  %s569_s2 = smov 103   ;;  %s570_s3 = smov 102  }
   0xd   :  { %v51_v5 = vld [vmem:[#allocation0] sm:$0xf]   ;;  %s571_s4 = smov 101   ;;  %s572_s5 = smov 100  }
   0xe   :  { %v75_v6 = vld [vmem:[#allocation0] sm:$0xf]   ;;  %s573_s6 = smov 99   ;;  %s574_s7 = smov 98  }
   0xf   :  { %v87_v7 = vld [vmem:[#allocation0] sm:$0xf]   ;;  %s575_s0 = smov 97  }
  0x10   :  { %v99_v8 = vld [vmem:[#allocation0] sm:$0xf]  }
  0x11   :  { %v111_v9 = vld [vmem:[#allocation0] sm:$0xf]  }
  0x12   :  { %28 = vrot.lane.b32.xlu0 %v27_v4, %s548_s10  ;;  %v123_v10 = vld [vmem:[#allocation0] sm:$0xf]  }
  0x13   :  { %52 = vrot.lane.b32.xlu1 %v51_v5, %s549_s11  ;;  %v135_v11 = vld [vmem:[#allocation0] sm:$0xf]  }
  0x14   :  { %76 = vrot.lane.b32.xlu2 %v75_v6, %s550_s12  ;;  %v147_v12 = vld [vmem:[#allocation0] sm:$0xf]  }
  0x15   :  { %v159_v13 = vld [vmem:[#allocation0] sm:$0xf]  }
  0x16   :  { %v171_v14 = vld [vmem:[#allocation0] sm:$0xf]  }
  0x17   :  { %v183_v15 = vld [vmem:[#allocation0] sm:$0xf]  }
  0x18   :  { %v195_v16 = vld [vmem:[#allocation0] sm:$0xf]  }
  0x19   :  { %v207_v17 = vld [vmem:[#allocation0] sm:$0xf]  }
  0x1a   :  { %88 = vrot.lane.b32.xlu0 %v87_v7, %s551_s13  ;;  %v219_v18 = vld [vmem:[#allocation0] sm:$0xf]  }
  0x1b   :  { %100 = vrot.lane.b32.xlu1 %v99_v8, %s552_s14  ;;  %v231_v19 = vld [vmem:[#allocation0] sm:$0xf]  }
  0x1c   :  { %112 = vrot.lane.b32.xlu2 %v111_v9, %s553_s15  ;;  %v243_v20 = vld [vmem:[#allocation0] sm:$0xf]  }
  0x1d   :  { %v255_v21 = vld [vmem:[#allocation0] sm:$0xf]  }
  0x1e   :  { %v267_v22 = vld [vmem:[#allocation0] sm:$0xf]  }
  0x1f   :  { %v279_v23 = vld [vmem:[#allocation0] sm:$0xf]  }
  0x20   :  { %v291_v24 = vld [vmem:[#allocation0] sm:$0xf]  }
  0x21   :  { %v303_v25 = vld [vmem:[#allocation0] sm:$0xf]  }
  0x22   :  { %124 = vrot.lane.b32.xlu0 %v123_v10, %s554_s16  ;;  %v315_v26 = vld [vmem:[#allocation0] sm:$0xf]  }
  0x23   :  { %136 = vrot.lane.b32.xlu1 %v135_v11, %s555_s17  ;;  %v327_v27 = vld [vmem:[#allocation0] sm:$0xf]  }
  0x24   :  { %148 = vrot.lane.b32.xlu2 %v147_v12, %s556_s18  ;;  %v339_v28 = vld [vmem:[#allocation0] sm:$0xf]  }
  0x25   :  { %v351_v29 = vld [vmem:[#allocation0] sm:$0xf]  }
  0x26   :  { %v363_v30 = vld [vmem:[#allocation0] sm:$0xf]  }
  0x27   :  { %v375_v31 = vld [vmem:[#allocation0] sm:$0xf]  }
  0x28   :  { %v6_v63 = vld [vmem:[#allocation0] sm:$0xf]  }
  0x29   :  { %8 = vst.msk [vmem:[%s1102_s1] sm:$0x1] %vm7_vm0, %v6_v63  }
  0x2a   :  { %160 = vrot.lane.b32.xlu0 %v159_v13, %s557_s19  ;;  %387 = vst.msk [vmem:[%s1102_s1 + $0x1f] sm:$0x2] %vm7_vm0, %v6_v63  }
  0x2b   :  { %172 = vrot.lane.b32.xlu1 %v171_v14, %s558_s20  ;;  %388 = vst.msk [vmem:[%s1102_s1 + $0x3e] sm:$0x4] %vm7_vm0, %v6_v63  }
  0x2c   :  { %184 = vrot.lane.b32.xlu2 %v183_v15, %s559_s21  ;;  %389 = vst.msk [vmem:[%s1102_s1 + $0x5d] sm:$0x8] %vm7_vm0, %v6_v63  }
  0x32   :  { %196 = vrot.lane.b32.xlu0 %v195_v16, %s560_s22 }
  0x33   :  { %208 = vrot.lane.b32.xlu1 %v207_v17, %s561_s23 }
  0x34   :  { %220 = vrot.lane.b32.xlu2 %v219_v18, %s562_s24 }
  0x3a   :  { %232 = vrot.lane.b32.xlu0 %v231_v19, %s563_s25 }
  0x3b   :  { %244 = vrot.lane.b32.xlu1 %v243_v20, %s564_s26 }
  0x3c   :  { %256 = vrot.lane.b32.xlu2 %v255_v21, %s565_s27 }
  0x42   :  { %268 = vrot.lane.b32.xlu0 %v267_v22, %s566_s28 }
  0x43   :  { %280 = vrot.lane.b32.xlu1 %v279_v23, %s567_s29 }
  0x44   :  { %292 = vrot.lane.b32.xlu2 %v291_v24, %s568_s30 }
  0x4a   :  { %304 = vrot.lane.b32.xlu0 %v303_v25, %s569_s2 }
  0x4b   :  { %316 = vrot.lane.b32.xlu1 %v315_v26, %s570_s3 }
  0x4c   :  { %328 = vrot.lane.b32.xlu2 %v327_v27, %s571_s4 }
  0x52   :  { %340 = vrot.lane.b32.xlu0 %v339_v28, %s572_s5 }
  0x53   :  { %352 = vrot.lane.b32.xlu1 %v351_v29, %s573_s6 }
  0x54   :  { %364 = vrot.lane.b32.xlu2 %v363_v30, %s574_s7 }
  0x5a   :  { %376 = vrot.lane.b32.xlu0 %v375_v31, %s575_s0 }
  0x66   :  { %v65_v32 = vpop.permute.xlu2 %64  }
  0x67   :  { %406 = vst.msk [vmem:[%s1102_s1 + $0x5] sm:$0x1] %vm7_vm0, %v65_v32  }
  0x68   :  { %407 = vst.msk [vmem:[%s1102_s1 + $0x24] sm:$0x2] %vm7_vm0, %v65_v32  }
  0x69   :  { %408 = vst.msk [vmem:[%s1102_s1 + $0x43] sm:$0x4] %vm7_vm0, %v65_v32  }
  0x6a   :  { %409 = vst.msk [vmem:[%s1102_s1 + $0x62] sm:$0x8] %vm7_vm0, %v65_v32  }
  0x6e   :  { %v77_v33 = vpop.permute.xlu2 %76  }
  0x6f   :  { %410 = vst.msk [vmem:[%s1102_s1 + $0x6] sm:$0x1] %vm7_vm0, %v77_v33  }
  0x70   :  { %411 = vst.msk [vmem:[%s1102_s1 + $0x25] sm:$0x2] %vm7_vm0, %v77_v33  }
  0x71   :  { %412 = vst.msk [vmem:[%s1102_s1 + $0x44] sm:$0x4] %vm7_vm0, %v77_v33  }
  0x72   :  { %413 = vst.msk [vmem:[%s1102_s1 + $0x63] sm:$0x8] %vm7_vm0, %v77_v33  }
  0x76   :  { %v113_v34 = vpop.permute.xlu2 %112  }
  0x77   :  { %422 = vst.msk [vmem:[%s1102_s1 + $0x9] sm:$0x1] %vm7_vm0, %v113_v34  }
  0x78   :  { %423 = vst.msk [vmem:[%s1102_s1 + $0x28] sm:$0x2] %vm7_vm0, %v113_v34  }
  0x79   :  { %424 = vst.msk [vmem:[%s1102_s1 + $0x47] sm:$0x4] %vm7_vm0, %v113_v34  }
  0x7a   :  { %425 = vst.msk [vmem:[%s1102_s1 + $0x66] sm:$0x8] %vm7_vm0, %v113_v34  }
  0x7c   :  { %v17_v35 = vpop.permute.xlu0 %16  }
  0x7d   :  { %v41_v36 = vpop.permute.xlu1 %40   ;;  %390 = vst.msk [vmem:[%s1102_s1 + $0x1] sm:$0x1] %vm7_vm0, %v17_v35  }
  0x7e   :  { %391 = vst.msk [vmem:[%s1102_s1 + $0x20] sm:$0x2] %vm7_vm0, %v17_v35   ;;  %v149_v37 = vpop.permute.xlu2 %148  }
  0x7f   :  { %392 = vst.msk [vmem:[%s1102_s1 + $0x3f] sm:$0x4] %vm7_vm0, %v17_v35  }
  0x80   :  { %393 = vst.msk [vmem:[%s1102_s1 + $0x5e] sm:$0x8] %vm7_vm0, %v17_v35  }
  0x81   :  { %398 = vst.msk [vmem:[%s1102_s1 + $0x3] sm:$0x1] %vm7_vm0, %v41_v36  }
  0x82   :  { %399 = vst.msk [vmem:[%s1102_s1 + $0x22] sm:$0x2] %vm7_vm0, %v41_v36  }
  0x83   :  { %400 = vst.msk [vmem:[%s1102_s1 + $0x41] sm:$0x4] %vm7_vm0, %v41_v36  }
  0x84   :  { %401 = vst.msk [vmem:[%s1102_s1 + $0x60] sm:$0x8] %vm7_vm0, %v41_v36   ;;  %v29_v38 = vpop.permute.xlu0 %28  }
  0x85   :  { %v53_v39 = vpop.permute.xlu1 %52   ;;  %394 = vst.msk [vmem:[%s1102_s1 + $0x2] sm:$0x1] %vm7_vm0, %v29_v38  }
  0x86   :  { %395 = vst.msk [vmem:[%s1102_s1 + $0x21] sm:$0x2] %vm7_vm0, %v29_v38   ;;  %v185_v40 = vpop.permute.xlu2 %184  }
  0x87   :  { %396 = vst.msk [vmem:[%s1102_s1 + $0x40] sm:$0x4] %vm7_vm0, %v29_v38  }
  0x88   :  { %397 = vst.msk [vmem:[%s1102_s1 + $0x5f] sm:$0x8] %vm7_vm0, %v29_v38  }
  0x89   :  { %402 = vst.msk [vmem:[%s1102_s1 + $0x4] sm:$0x1] %vm7_vm0, %v53_v39  }
  0x8a   :  { %403 = vst.msk [vmem:[%s1102_s1 + $0x23] sm:$0x2] %vm7_vm0, %v53_v39  }
  0x8b   :  { %404 = vst.msk [vmem:[%s1102_s1 + $0x42] sm:$0x4] %vm7_vm0, %v53_v39  }
  0x8c   :  { %405 = vst.msk [vmem:[%s1102_s1 + $0x61] sm:$0x8] %vm7_vm0, %v53_v39   ;;  %v89_v41 = vpop.permute.xlu0 %88  }
  0x8d   :  { %v101_v42 = vpop.permute.xlu1 %100   ;;  %414 = vst.msk [vmem:[%s1102_s1 + $0x7] sm:$0x1] %vm7_vm0, %v89_v41  }
  0x8e   :  { %415 = vst.msk [vmem:[%s1102_s1 + $0x26] sm:$0x2] %vm7_vm0, %v89_v41   ;;  %v221_v43 = vpop.permute.xlu2 %220  }
  0x8f   :  { %416 = vst.msk [vmem:[%s1102_s1 + $0x45] sm:$0x4] %vm7_vm0, %v89_v41  }
  0x90   :  { %417 = vst.msk [vmem:[%s1102_s1 + $0x64] sm:$0x8] %vm7_vm0, %v89_v41  }
  0x91   :  { %418 = vst.msk [vmem:[%s1102_s1 + $0x8] sm:$0x1] %vm7_vm0, %v101_v42  }
  0x92   :  { %419 = vst.msk [vmem:[%s1102_s1 + $0x27] sm:$0x2] %vm7_vm0, %v101_v42  }
  0x93   :  { %420 = vst.msk [vmem:[%s1102_s1 + $0x46] sm:$0x4] %vm7_vm0, %v101_v42  }
  0x94   :  { %421 = vst.msk [vmem:[%s1102_s1 + $0x65] sm:$0x8] %vm7_vm0, %v101_v42   ;;  %v125_v44 = vpop.permute.xlu0 %124  }
  0x95   :  { %v137_v45 = vpop.permute.xlu1 %136   ;;  %426 = vst.msk [vmem:[%s1102_s1 + $0xa] sm:$0x1] %vm7_vm0, %v125_v44  }
  0x96   :  { %427 = vst.msk [vmem:[%s1102_s1 + $0x29] sm:$0x2] %vm7_vm0, %v125_v44   ;;  %v257_v48 = vpop.permute.xlu2 %256  }
  0x97   :  { %428 = vst.msk [vmem:[%s1102_s1 + $0x48] sm:$0x4] %vm7_vm0, %v125_v44  }
  0x98   :  { %429 = vst.msk [vmem:[%s1102_s1 + $0x67] sm:$0x8] %vm7_vm0, %v125_v44  }
  0x99   :  { %434 = vst.msk [vmem:[%s1102_s1 + $0xc] sm:$0x1] %vm7_vm0, %v149_v37  }
  0x9a   :  { %435 = vst.msk [vmem:[%s1102_s1 + $0x2b] sm:$0x2] %vm7_vm0, %v149_v37  }
  0x9b   :  { %436 = vst.msk [vmem:[%s1102_s1 + $0x4a] sm:$0x4] %vm7_vm0, %v149_v37  }
  0x9c   :  { %437 = vst.msk [vmem:[%s1102_s1 + $0x69] sm:$0x8] %vm7_vm0, %v149_v37   ;;  %v161_v46 = vpop.permute.xlu0 %160  }
  0x9d   :  { %v173_v47 = vpop.permute.xlu1 %172   ;;  %430 = vst.msk [vmem:[%s1102_s1 + $0xb] sm:$0x1] %vm7_vm0, %v137_v45  }
  0x9e   :  { %431 = vst.msk [vmem:[%s1102_s1 + $0x2a] sm:$0x2] %vm7_vm0, %v137_v45   ;;  %v293_v51 = vpop.permute.xlu2 %292  }
  0x9f   :  { %432 = vst.msk [vmem:[%s1102_s1 + $0x49] sm:$0x4] %vm7_vm0, %v137_v45  }
  0xa0   :  { %433 = vst.msk [vmem:[%s1102_s1 + $0x68] sm:$0x8] %vm7_vm0, %v137_v45  }
  0xa1   :  { %438 = vst.msk [vmem:[%s1102_s1 + $0xd] sm:$0x1] %vm7_vm0, %v161_v46  }
  0xa2   :  { %439 = vst.msk [vmem:[%s1102_s1 + $0x2c] sm:$0x2] %vm7_vm0, %v161_v46  }
  0xa3   :  { %440 = vst.msk [vmem:[%s1102_s1 + $0x4b] sm:$0x4] %vm7_vm0, %v161_v46  }
  0xa4   :  { %441 = vst.msk [vmem:[%s1102_s1 + $0x6a] sm:$0x8] %vm7_vm0, %v161_v46   ;;  %v197_v49 = vpop.permute.xlu0 %196  }
  0xa5   :  { %v209_v50 = vpop.permute.xlu1 %208   ;;  %446 = vst.msk [vmem:[%s1102_s1 + $0xf] sm:$0x1] %vm7_vm0, %v185_v40  }
  0xa6   :  { %447 = vst.msk [vmem:[%s1102_s1 + $0x2e] sm:$0x2] %vm7_vm0, %v185_v40   ;;  %v329_v56 = vpop.permute.xlu2 %328  }
  0xa7   :  { %448 = vst.msk [vmem:[%s1102_s1 + $0x4d] sm:$0x4] %vm7_vm0, %v185_v40  }
  0xa8   :  { %449 = vst.msk [vmem:[%s1102_s1 + $0x6c] sm:$0x8] %vm7_vm0, %v185_v40  }
  0xa9   :  { %442 = vst.msk [vmem:[%s1102_s1 + $0xe] sm:$0x1] %vm7_vm0, %v173_v47  }
  0xaa   :  { %443 = vst.msk [vmem:[%s1102_s1 + $0x2d] sm:$0x2] %vm7_vm0, %v173_v47  }
  0xab   :  { %444 = vst.msk [vmem:[%s1102_s1 + $0x4c] sm:$0x4] %vm7_vm0, %v173_v47  }
  0xac   :  { %445 = vst.msk [vmem:[%s1102_s1 + $0x6b] sm:$0x8] %vm7_vm0, %v173_v47   ;;  %v233_v52 = vpop.permute.xlu0 %232  }
  0xad   :  { %v245_v53 = vpop.permute.xlu1 %244   ;;  %450 = vst.msk [vmem:[%s1102_s1 + $0x10] sm:$0x1] %vm7_vm0, %v197_v49  }
  0xae   :  { %451 = vst.msk [vmem:[%s1102_s1 + $0x2f] sm:$0x2] %vm7_vm0, %v197_v49   ;;  %v365_v59 = vpop.permute.xlu2 %364  }
  0xaf   :  { %452 = vst.msk [vmem:[%s1102_s1 + $0x4e] sm:$0x4] %vm7_vm0, %v197_v49  }
  0xb0   :  { %453 = vst.msk [vmem:[%s1102_s1 + $0x6d] sm:$0x8] %vm7_vm0, %v197_v49  }
  0xb1   :  { %458 = vst.msk [vmem:[%s1102_s1 + $0x12] sm:$0x1] %vm7_vm0, %v221_v43  }
  0xb2   :  { %459 = vst.msk [vmem:[%s1102_s1 + $0x31] sm:$0x2] %vm7_vm0, %v221_v43  }
  0xb3   :  { %460 = vst.msk [vmem:[%s1102_s1 + $0x50] sm:$0x4] %vm7_vm0, %v221_v43  }
  0xb4   :  { %461 = vst.msk [vmem:[%s1102_s1 + $0x6f] sm:$0x8] %vm7_vm0, %v221_v43   ;;  %v269_v54 = vpop.permute.xlu0 %268  }
  0xb5   :  { %v281_v55 = vpop.permute.xlu1 %280   ;;  %454 = vst.msk [vmem:[%s1102_s1 + $0x11] sm:$0x1] %vm7_vm0, %v209_v50  }
  0xb6   :  { %455 = vst.msk [vmem:[%s1102_s1 + $0x30] sm:$0x2] %vm7_vm0, %v209_v50  }
  0xb7   :  { %456 = vst.msk [vmem:[%s1102_s1 + $0x4f] sm:$0x4] %vm7_vm0, %v209_v50  }
  0xb8   :  { %457 = vst.msk [vmem:[%s1102_s1 + $0x6e] sm:$0x8] %vm7_vm0, %v209_v50  }
  0xb9   :  { %462 = vst.msk [vmem:[%s1102_s1 + $0x13] sm:$0x1] %vm7_vm0, %v233_v52  }
  0xba   :  { %463 = vst.msk [vmem:[%s1102_s1 + $0x32] sm:$0x2] %vm7_vm0, %v233_v52  }
  0xbb   :  { %464 = vst.msk [vmem:[%s1102_s1 + $0x51] sm:$0x4] %vm7_vm0, %v233_v52  }
  0xbc   :  { %465 = vst.msk [vmem:[%s1102_s1 + $0x70] sm:$0x8] %vm7_vm0, %v233_v52   ;;  %v305_v57 = vpop.permute.xlu0 %304  }
  0xbd   :  { %v317_v58 = vpop.permute.xlu1 %316   ;;  %470 = vst.msk [vmem:[%s1102_s1 + $0x15] sm:$0x1] %vm7_vm0, %v257_v48  }
  0xbe   :  { %471 = vst.msk [vmem:[%s1102_s1 + $0x34] sm:$0x2] %vm7_vm0, %v257_v48  }
  0xbf   :  { %472 = vst.msk [vmem:[%s1102_s1 + $0x53] sm:$0x4] %vm7_vm0, %v257_v48  }
  0xc0   :  { %473 = vst.msk [vmem:[%s1102_s1 + $0x72] sm:$0x8] %vm7_vm0, %v257_v48  }
  0xc1   :  { %466 = vst.msk [vmem:[%s1102_s1 + $0x14] sm:$0x1] %vm7_vm0, %v245_v53  }
  0xc2   :  { %467 = vst.msk [vmem:[%s1102_s1 + $0x33] sm:$0x2] %vm7_vm0, %v245_v53  }
  0xc3   :  { %468 = vst.msk [vmem:[%s1102_s1 + $0x52] sm:$0x4] %vm7_vm0, %v245_v53  }
  0xc4   :  { %469 = vst.msk [vmem:[%s1102_s1 + $0x71] sm:$0x8] %vm7_vm0, %v245_v53   ;;  %v341_v60 = vpop.permute.xlu0 %340  }
  0xc5   :  { %v353_v61 = vpop.permute.xlu1 %352   ;;  %474 = vst.msk [vmem:[%s1102_s1 + $0x16] sm:$0x1] %vm7_vm0, %v269_v54  }
  0xc6   :  { %475 = vst.msk [vmem:[%s1102_s1 + $0x35] sm:$0x2] %vm7_vm0, %v269_v54  }
  0xc7   :  { %476 = vst.msk [vmem:[%s1102_s1 + $0x54] sm:$0x4] %vm7_vm0, %v269_v54  }
  0xc8   :  { %477 = vst.msk [vmem:[%s1102_s1 + $0x73] sm:$0x8] %vm7_vm0, %v269_v54  }
  0xc9   :  { %482 = vst.msk [vmem:[%s1102_s1 + $0x18] sm:$0x1] %vm7_vm0, %v293_v51  }
  0xca   :  { %483 = vst.msk [vmem:[%s1102_s1 + $0x37] sm:$0x2] %vm7_vm0, %v293_v51  }
  0xcb   :  { %484 = vst.msk [vmem:[%s1102_s1 + $0x56] sm:$0x4] %vm7_vm0, %v293_v51  }
  0xcc   :  { %485 = vst.msk [vmem:[%s1102_s1 + $0x75] sm:$0x8] %vm7_vm0, %v293_v51   ;;  %v377_v62 = vpop.permute.xlu0 %376  }
  0xcd   :  { %478 = vst.msk [vmem:[%s1102_s1 + $0x17] sm:$0x1] %vm7_vm0, %v281_v55  }
  0xce   :  { %479 = vst.msk [vmem:[%s1102_s1 + $0x36] sm:$0x2] %vm7_vm0, %v281_v55  }
  0xcf   :  { %480 = vst.msk [vmem:[%s1102_s1 + $0x55] sm:$0x4] %vm7_vm0, %v281_v55  }
  0xd0   :  { %481 = vst.msk [vmem:[%s1102_s1 + $0x74] sm:$0x8] %vm7_vm0, %v281_v55  }
  0xd1   :  { %486 = vst.msk [vmem:[%s1102_s1 + $0x19] sm:$0x1] %vm7_vm0, %v305_v57  }
  0xd2   :  { %487 = vst.msk [vmem:[%s1102_s1 + $0x38] sm:$0x2] %vm7_vm0, %v305_v57  }
  0xd3   :  { %488 = vst.msk [vmem:[%s1102_s1 + $0x57] sm:$0x4] %vm7_vm0, %v305_v57  }
  0xd4   :  { %489 = vst.msk [vmem:[%s1102_s1 + $0x76] sm:$0x8] %vm7_vm0, %v305_v57  }
  0xd5   :  { %494 = vst.msk [vmem:[%s1102_s1 + $0x1b] sm:$0x1] %vm7_vm0, %v329_v56  }
  0xd6   :  { %495 = vst.msk [vmem:[%s1102_s1 + $0x3a] sm:$0x2] %vm7_vm0, %v329_v56  }
  0xd7   :  { %496 = vst.msk [vmem:[%s1102_s1 + $0x59] sm:$0x4] %vm7_vm0, %v329_v56  }
  0xd8   :  { %497 = vst.msk [vmem:[%s1102_s1 + $0x78] sm:$0x8] %vm7_vm0, %v329_v56  }
  0xd9   :  { %490 = vst.msk [vmem:[%s1102_s1 + $0x1a] sm:$0x1] %vm7_vm0, %v317_v58  }
  0xda   :  { %491 = vst.msk [vmem:[%s1102_s1 + $0x39] sm:$0x2] %vm7_vm0, %v317_v58  }
  0xdb   :  { %492 = vst.msk [vmem:[%s1102_s1 + $0x58] sm:$0x4] %vm7_vm0, %v317_v58  }
  0xdc   :  { %493 = vst.msk [vmem:[%s1102_s1 + $0x77] sm:$0x8] %vm7_vm0, %v317_v58  }
  0xdd   :  { %498 = vst.msk [vmem:[%s1102_s1 + $0x1c] sm:$0x1] %vm7_vm0, %v341_v60  }
  0xde   :  { %499 = vst.msk [vmem:[%s1102_s1 + $0x3b] sm:$0x2] %vm7_vm0, %v341_v60  }
  0xdf   :  { %500 = vst.msk [vmem:[%s1102_s1 + $0x5a] sm:$0x4] %vm7_vm0, %v341_v60  }
  0xe0   :  { %501 = vst.msk [vmem:[%s1102_s1 + $0x79] sm:$0x8] %vm7_vm0, %v341_v60  }
  0xe1   :  { %506 = vst.msk [vmem:[%s1102_s1 + $0x1e] sm:$0x1] %vm7_vm0, %v365_v59  }
  0xe2   :  { %507 = vst.msk [vmem:[%s1102_s1 + $0x3d] sm:$0x2] %vm7_vm0, %v365_v59  }
  0xe3   :  { %508 = vst.msk [vmem:[%s1102_s1 + $0x5c] sm:$0x4] %vm7_vm0, %v365_v59  }
  0xe4   :  { %509 = vst.msk [vmem:[%s1102_s1 + $0x7b] sm:$0x8] %vm7_vm0, %v365_v59  }
  0xe5   :  { %502 = vst.msk [vmem:[%s1102_s1 + $0x1d] sm:$0x1] %vm7_vm0, %v353_v61  }
  0xe6   :  { %503 = vst.msk [vmem:[%s1102_s1 + $0x3c] sm:$0x2] %vm7_vm0, %v353_v61  }
  0xe7   :  { %504 = vst.msk [vmem:[%s1102_s1 + $0x5b] sm:$0x4] %vm7_vm0, %v353_v61  }
  0xe8   :  { %505 = vst.msk [vmem:[%s1102_s1 + $0x7a] sm:$0x8] %vm7_vm0, %v353_v61  }
  0xe9   :  { %510 = vst.msk [vmem:[%s1102_s1 + $0x1f] sm:$0x1] %vm7_vm0, %v377_v62  }
  0xea   :  { %511 = vst.msk [vmem:[%s1102_s1 + $0x3e] sm:$0x2] %vm7_vm0, %v377_v62  }
  0xeb   :  { %512 = vst.msk [vmem:[%s1102_s1 + $0x5d] sm:$0x4] %vm7_vm0, %v377_v62  }
  0xec   :  { %513 = vst.msk [vmem:[%s1102_s1 + $0x7c] sm:$0x8] %vm7_vm0, %v377_v62  }

// kernel: affine_layer_fwd.43
= control target key start
LH: loop header
LB: loop body
LE: loop exit
PB: predicated region body
PF: predicated region fallthrough
CT: control target
= control target key end

     0   :  { %s794_s15 = smov 0   ;;  %s919_s0 = inlined_call_operand.vmem [shape: f32[2,64,7], index: 0, kind: input, shape index: {}]   ;;  %s920_s1 = inlined_call_operand.vmem [shape: bf16[3,64,64], index: 1, kind: input, shape index: {}]   ;;  %s921_s2 = inlined_call_operand.vmem [shape: f32[64,1], index: 2, kind: input, shape index: {}]   ;;  %s922_s3 = inlined_call_operand.vmem [shape: f32[2,64,1], index: 3, kind: input, shape index: {}]   ;;  %s923_s4 = inlined_call_operand.vmem [shape: f32[2,64,1], index: 4, kind: output, shape index: {}]  }
   0x1 LB: > { %s633_s16 = sadd.s32 4294967295, %s765_s15   ;;  %p637_p0 = scmp.ge.s32.totalorder %s765_s15, 1  ;;  %s765_s15 = sphi %s794_s15, %s14_s15  }
   0x2   : > { %p172_p1 = scmp.lt.s32.totalorder %s765_s15, 3 }
   0x4   : > { %p173_p2 = pnand %p637_p0, %p172_p1 }
   0x5   : > { %p203_p3 = scmp.lt.s32.totalorder (!%p173_p2), %s633_s16, 1  ;;  %s767_s21 = smov (!%p173_p2), 125  }
   0x6   : > { %176 = sbr.rel (%p173_p2) target bundleno = 342 (0x156), region = 36  ;;  %s768_s22 = smov (!%p173_p2), 122  }
   0xb   : > { %s925_s16 = smov (!%p203_p3, %s633_s16), 1  ;;  %vm328_vm8 = vcmask 523264   ;;  %v726_v44 = vld [vmem:[%s920_s1 + $0x8] sm:$0xff]  ;;  %v727_v47 = vld [vmem:[%s920_s1 + $0x10] sm:$0xff]  ;;  %v729_v53 = vld [vmem:[%s920_s1 + $0x20] sm:$0xff]  ;;  %vm557_vm9 = vcmask 7168  }
   0xc   : > { %s802_s17 = sshll.u32 %s925_s16, 6  ;;  %v730_v54 = vld [vmem:[%s920_s1 + $0x28] sm:$0xff]  ;;  %v728_v56 = vld [vmem:[%s920_s1 + $0x18] sm:$0xff]  ;;  %v731_v58 = vld [vmem:[%s920_s1 + $0x30] sm:$0xff] }
   0xd   : > { %s207_s20 = scalar_lea.vmem %s919_s0, %s802_s17  ;;  %v734_v57 = vld [vmem:[%s920_s1 + $0x48] sm:$0xff]  ;;  %v725_v59 = vld [vmem:[%s920_s1] sm:$0xff]  ;;  %v735_v60 = vld [vmem:[%s920_s1 + $0x50] sm:$0xff]  ;;  %s860_s25 = scalar_lea.vmem %s922_s3, %s802_s17 }
   0xe   : > { %v225_v0 = vld [vmem:[%s207_s20 + $0x30] sm:$0xff]  ;;  %v226_v1 = vld [vmem:[%s207_s20 + $0x38] sm:$0xff]  ;;  %v223_v2 = vld [vmem:[%s207_s20 + $0x20] sm:$0xff]  ;;  %s870_s30 = scalar_lea.vmem %s923_s4, %s802_s17 }
   0xf   : > { %vm233_vm0 = vcmp.ge.f32.partialorder %v225_v0, 0.0  ;;  %vm234_vm1 = vcmp.ge.f32.partialorder %v226_v1, 0.0  ;;  %v241_v3 = vmul.f32 0.1, %v225_v0  ;;  %v242_v4 = vmul.f32 0.1, %v226_v1 }
  0x10   : > { %v224_v5 = vld [vmem:[%s207_s20 + $0x28] sm:$0xff]  ;;  %vm231_vm2 = vcmp.ge.f32.partialorder %v223_v2, 0.0  ;;  %v239_v6 = vmul.f32 0.1, %v223_v2  ;;  %v219_v7 = vld [vmem:[%s207_s20] sm:$0xff]  ;;  %v221_v18 = vld [vmem:[%s207_s20 + $0x10] sm:$0xff] }
  0x11   : > { %v249_v8 = vsel %vm233_vm0, %v225_v0, %v241_v3  ;;  %v250_v9 = vsel %vm234_vm1, %v226_v1, %v242_v4  ;;  %vm232_vm3 = vcmp.ge.f32.partialorder %v224_v5, 0.0  ;;  %v240_v10 = vmul.f32 0.1, %v224_v5  ;;  %v220_v11 = vld [vmem:[%s207_s20 + $0x8] sm:$0xff]  ;;  %v222_v19 = vld [vmem:[%s207_s20 + $0x18] sm:$0xff]  ;;  %v733_v62 = vld [vmem:[%s920_s1 + $0x40] sm:$0xff] }
  0x12   : > { %v257_v12 = vpack.c.bf16 %v249_v8, %v249_v8  ;;  %v258_v13 = vpack.c.bf16 %v250_v9, %v250_v9  ;;  %v247_v14 = vsel %vm231_vm2, %v223_v2, %v239_v6  ;;  %v235_v17 = vmul.f32 0.1, %v219_v7  ;;  %v732_v61 = vld [vmem:[%s920_s1 + $0x38] sm:$0xff]  ;;  %v543_v9 = vld [vmem:[%s860_s25 + $0x10] sm:$0xff] }
  0x13   : > { %v248_v15 = vsel %vm232_vm3, %v224_v5, %v240_v10  ;;  %v255_v16 = vpack.c.bf16 %v247_v14, %v247_v14  ;;  %v236_v23 = vmul.f32 0.1, %v220_v11  ;;  %vm227_vm4 = vcmp.ge.f32.partialorder %v219_v7, 0.0  ;;  %v736_v63 = vld [vmem:[%s920_s1 + $0x58] sm:$0xff] }
  0x14   : > { %v310_v20 = vunpack.c.l.b16 %v257_v12  ;;  %v311_v21 = vunpack.c.l.b16 %v258_v13  ;;  %v256_v22 = vpack.c.bf16 %v248_v15, %v248_v15  ;;  %vm228_vm5 = vcmp.ge.f32.partialorder %v220_v11, 0.0 }
  0x15   : > { %v308_v24 = vunpack.c.l.b16 %v255_v16  ;;  %vm229_vm6 = vcmp.ge.f32.partialorder %v221_v18, 0.0  ;;  %vm230_vm7 = vcmp.ge.f32.partialorder %v222_v19, 0.0  ;;  %v237_v27 = vmul.f32 0.1, %v221_v18 }
  0x16   : > { %v315_v25 = vpack.c.b16 %v311_v21, %v310_v20  ;;  %v309_v26 = vunpack.c.l.b16 %v256_v22  ;;  %v238_v28 = vmul.f32 0.1, %v222_v19  ;;  %v243_v30 = vsel %vm227_vm4, %v219_v7, %v235_v17  ;;  %v527_v7 = vld [vmem:[%s921_s2 + $0x10] sm:$0xff]  ;;  %v528_v17 = vld [vmem:[%s921_s2 + $0x18] sm:$0xff] }
  0x17   : > { %v244_v31 = vsel %vm228_vm5, %v220_v11, %v236_v23  ;;  %v245_v32 = vsel %vm229_vm6, %v221_v18, %v237_v27  ;;  %v251_v36 = vpack.c.bf16 %v243_v30, %v243_v30 }
  0x18   : > { %322 = vrot.lane.b32.xlu0 %v315_v25, %s767_s21  ;;  %v314_v29 = vpack.c.b16 %v309_v26, %v308_v24  ;;  %741 = vmatpush.bf16.msra.mxu1 %v315_v25  ;;  %v246_v33 = vsel %vm230_vm7, %v222_v19, %v238_v28  ;;  %v253_v34 = vpack.c.bf16 %v245_v32, %v245_v32  ;;  %v544_v19 = vld [vmem:[%s860_s25 + $0x18] sm:$0xff]  ;;  %v529_v26 = vld [vmem:[%s921_s2 + $0x20] sm:$0xff] }
  0x19   : > { %v254_v35 = vpack.c.bf16 %v246_v33, %v246_v33  ;;  %v252_v37 = vpack.c.bf16 %v244_v31, %v244_v31  ;;  %v304_v41 = vunpack.c.l.b16 %v251_v36 }
  0x1a   : > { %320 = vrot.lane.b32.xlu1 %v314_v29, %s767_s21  ;;  %v306_v38 = vunpack.c.l.b16 %v253_v34 }
  0x1b   : > { %v307_v39 = vunpack.c.l.b16 %v254_v35  ;;  %v305_v42 = vunpack.c.l.b16 %v252_v37  ;;  %v525_v35 = vld [vmem:[%s921_s2] sm:$0xff] }
  0x1c   : > { %742 = vmatpush.bf16.msra.mxu1 %v314_v29 }
  0x1d   : > { %v313_v40 = vpack.c.b16 %v307_v39, %v306_v38  ;;  %v312_v43 = vpack.c.b16 %v305_v42, %v304_v41  ;;  %v541_v38 = vld [vmem:[%s860_s25] sm:$0xff]  ;;  %v530_v41 = vld [vmem:[%s921_s2 + $0x28] sm:$0xff] }
  0x1f   : > { %318 = vrot.lane.b32.xlu2 %v313_v40, %s767_s21 }
  0x20   : > { %470 = vrot.lane.b32.xlu0 %v315_v25, %s768_s22  ;;  %743 = vmatpush.bf16.msra.mxu1 %v313_v40 }
  0x22   : > { %468 = vrot.lane.b32.xlu1 %v314_v29, %s768_s22 }
  0x24   : > { %744 = vmatpush.bf16.msra.mxu1 %v312_v43 }
  0x27   : > { %466 = vrot.lane.b32.xlu2 %v313_v40, %s768_s22  ;;  %689 = vmatmul.msk.bf16.vlgmr.msra.gmra.mxu1 %vm328_vm8, %v726_v44  ;;  %v546_v44 = vld [vmem:[%s860_s25 + $0x28] sm:$0xff] }
  0x28   : > { %316 = vrot.lane.b32.xlu0 %v312_v43, %s767_s21 }
  0x2a   : > { %464 = vrot.lane.b32.xlu1 %v312_v43, %s768_s22 }
  0x37   : > { %690 = vmatmul.msk.bf16.gmra.mxu1 %vm328_vm8, %v727_v47 }
  0x47   : > { %691 = vmatmul.msk.bf16.gmra.mxu1 %vm328_vm8, %v728_v56 }
  0x79   : > { %v319_v48 = vpop.permute.xlu2 %318 }
  0x81   : > { %v467_v51 = vpop.permute.xlu2 %466 }
  0x8a   : > { %v323_v45 = vpop.permute.xlu0 %322 }
  0x8b   : > { %345 = vmatpush.bf16.msra.mxu0 %v323_v45  ;;  %737 = vmatpush.bf16.msra.mxu3 %v323_v45 }
  0x8c   : > { %v321_v46 = vpop.permute.xlu1 %320 }
  0x8f   : > { %346 = vmatpush.bf16.msra.mxu0 %v321_v46  ;;  %738 = vmatpush.bf16.msra.mxu3 %v321_v46 }
  0x92   : > { %v471_v49 = vpop.permute.xlu0 %470 }
  0x93   : > { %347 = vmatpush.bf16.msra.mxu0 %v319_v48  ;;  %739 = vmatpush.bf16.msra.mxu3 %v319_v48 }
  0x94   : > { %745 = vmatpush.bf16.msra.mxu2 %v471_v49  ;;  %v469_v50 = vpop.permute.xlu1 %468 }
  0x98   : > { %746 = vmatpush.bf16.msra.mxu2 %v469_v50 }
  0x9a   : > { %v317_v52 = vpop.permute.xlu0 %316 }
  0x9b   : > { %348 = vmatpush.bf16.msra.mxu0 %v317_v52  ;;  %740 = vmatpush.bf16.msra.mxu3 %v317_v52  ;;  %v526_v52 = vld [vmem:[%s921_s2 + $0x8] sm:$0xff] }
  0x9c   : > { %747 = vmatpush.bf16.msra.mxu2 %v467_v51  ;;  %v465_v55 = vpop.permute.xlu1 %464 }
  0x9e   : > { %668 = vmatmul.msk.bf16.vlgmr.msra.gmra.mxu0 %vm328_vm8, %v729_v53  ;;  %669 = vmatmul.msk.bf16.vlgmr.msra.gmra.mxu3 %vm328_vm8, %v730_v54  ;;  %v542_v54 = vld [vmem:[%s860_s25 + $0x8] sm:$0xff] }
  0x9f   : > { %410 = vmatpush.bf16.msrb.mxu0 %v315_v25 }
  0xa0   : > { %748 = vmatpush.bf16.msra.mxu2 %v465_v55 }
  0xa3   : > { %411 = vmatpush.bf16.msrb.mxu0 %v314_v29  ;;  %717 = vmatmul.msk.bf16.vlgmr.msra.gmra.mxu2 %vm328_vm8, %v734_v57  ;;  %v545_v29 = vld [vmem:[%s860_s25 + $0x20] sm:$0xff]  ;;  %v531_v57 = vld [vmem:[%s921_s2 + $0x30] sm:$0xff] }
  0xa4   : > { %v420_v0 = vpop.f32.mrf.mxu1 }
  0xa7   : > { %412 = vmatpush.bf16.msrb.mxu0 %v313_v40 }
  0xab   : > { %413 = vmatpush.bf16.msrb.mxu0 %v312_v43 }
  0xac   : > { %v422_v5 = vpop.f32.mrf.mxu1 }
  0xae   : > { %670 = vmatmul.msk.bf16.gmra.mxu3 %vm328_vm8, %v731_v58  ;;  %688 = vmatmul.msk.bf16.vlgmr.msrb.gmra.mxu0 %vm328_vm8, %v725_v59 }
  0xaf   : > { %492 = vmatpush.bf16.msra.mxu0 %v471_v49 }
  0xb3   : > { %493 = vmatpush.bf16.msra.mxu0 %v469_v50  ;;  %718 = vmatmul.msk.bf16.gmra.mxu2 %vm328_vm8, %v735_v60  ;;  %v547_v60 = vld [vmem:[%s860_s25 + $0x30] sm:$0xff] }
  0xb4   : > { %v425_v15 = vpop.f32.mrf.mxu1 }
  0xb7   : > { %494 = vmatpush.bf16.msra.mxu0 %v467_v51 }
  0xbb   : > { %495 = vmatpush.bf16.msra.mxu0 %v465_v55 }
  0xbc   : > { %v427_v28 = vpop.f32.mrf.mxu1 }
  0xbe   : > { %671 = vmatmul.msk.bf16.gmra.mxu3 %vm328_vm8, %v732_v61  ;;  %716 = vmatmul.msk.bf16.vlgmr.msra.gmra.mxu0 %vm328_vm8, %v733_v62 }
  0xc3   : > { %719 = vmatmul.msk.bf16.gmra.mxu2 %vm328_vm8, %v736_v63 }
  0xc4   : > { %v430_v48 = vpop.f32.mrf.mxu1 }
 0x11b   : > { %v350_v1 = vpop.f32.mrf.mxu0 }
 0x121   : > { %v355_v2 = vpop.f32.mrf.mxu3 }
 0x122   : > { %v421_v3 = vadd.f32 %v420_v0, %v355_v2  ;;  %v432_v0 = vpop.f32.mrf.mxu1 }
 0x123   : > { %v352_v4 = vpop.f32.mrf.mxu0 }
 0x126   : > { %v502_v6 = vpop.f32.mrf.mxu2 }
 0x127   : > { %v519_v8 = vadd.f32 %v502_v6, %v421_v3  ;;  %v532_v3 = vld [vmem:[%s921_s2 + $0x38] sm:$0xff] }
 0x129   : > { %v535_v10 = vadd.f32 %v527_v7, %v519_v8  ;;  %v357_v11 = vpop.f32.mrf.mxu3 }
 0x12a   : > { %v423_v14 = vadd.f32 %v422_v5, %v357_v11  ;;  %v548_v5 = vld [vmem:[%s860_s25 + $0x38] sm:$0xff] }
 0x12b   : > { %v551_v12 = vadd.f32 %v543_v9, %v535_v10  ;;  %v415_v13 = vpop.f32.mrf.mxu0 }
 0x12c   : > { %v416_v32 = vadd.f32 %v415_v13, %v350_v1 }
 0x12d   : > { %560 = vst.msk [vmem:[%s870_s30 + $0x10] sm:$0xff] %vm557_vm9, %v551_v12 }
 0x12e   : > { %v504_v16 = vpop.f32.mrf.mxu2 }
 0x12f   : > { %v520_v18 = vadd.f32 %v504_v16, %v423_v14 }
 0x131   : > { %v536_v20 = vadd.f32 %v528_v17, %v520_v18  ;;  %v360_v21 = vpop.f32.mrf.mxu3 }
 0x132   : > { %v426_v23 = vadd.f32 %v425_v15, %v360_v21 }
 0x133   : > { %v552_v22 = vadd.f32 %v544_v19, %v536_v20  ;;  %v417_v24 = vpop.f32.mrf.mxu0 }
 0x134   : > { %v418_v47 = vadd.f32 %v417_v24, %v352_v4 }
 0x135   : > { %561 = vst.msk [vmem:[%s870_s30 + $0x18] sm:$0xff] %vm557_vm9, %v552_v22 }
 0x136   : > { %v507_v25 = vpop.f32.mrf.mxu2 }
 0x137   : > { %v521_v27 = vadd.f32 %v507_v25, %v426_v23 }
 0x139   : > { %v537_v30 = vadd.f32 %v529_v26, %v521_v27  ;;  %v362_v31 = vpop.f32.mrf.mxu3 }
 0x13a   : > { %v428_v37 = vadd.f32 %v427_v28, %v362_v31 }
 0x13b   : > { %v553_v33 = vadd.f32 %v545_v29, %v537_v30  ;;  %v497_v34 = vpop.f32.mrf.mxu0 }
 0x13c   : > { %v517_v36 = vadd.f32 %v497_v34, %v416_v32 }
 0x13d   : > { %562 = vst.msk [vmem:[%s870_s30 + $0x20] sm:$0xff] %vm557_vm9, %v553_v33 }
 0x13e   : > { %v533_v39 = vadd.f32 %v525_v35, %v517_v36  ;;  %v509_v40 = vpop.f32.mrf.mxu2 }
 0x13f   : > { %v522_v42 = vadd.f32 %v509_v40, %v428_v37 }
 0x140   : > { %v549_v43 = vadd.f32 %v541_v38, %v533_v39 }
 0x141   : > { %v538_v45 = vadd.f32 %v530_v41, %v522_v42  ;;  %v365_v46 = vpop.f32.mrf.mxu3 }
 0x142   : > { %558 = vst.msk [vmem:[%s870_s30] sm:$0xff] %vm557_vm9, %v549_v43  ;;  %v431_v50 = vadd.f32 %v430_v48, %v365_v46 }
 0x143   : > { %v554_v49 = vadd.f32 %v546_v44, %v538_v45  ;;  %v499_v51 = vpop.f32.mrf.mxu0 }
 0x144   : > { %v518_v53 = vadd.f32 %v499_v51, %v418_v47 }
 0x145   : > { %563 = vst.msk [vmem:[%s870_s30 + $0x28] sm:$0xff] %vm557_vm9, %v554_v49 }
 0x146   : > { %v534_v55 = vadd.f32 %v526_v52, %v518_v53  ;;  %v512_v56 = vpop.f32.mrf.mxu2 }
 0x147   : > { %v523_v58 = vadd.f32 %v512_v56, %v431_v50 }
 0x148   : > { %v550_v59 = vadd.f32 %v542_v54, %v534_v55 }
 0x149   : > { %v539_v61 = vadd.f32 %v531_v57, %v523_v58  ;;  %v367_v62 = vpop.f32.mrf.mxu3 }
 0x14a   : > { %559 = vst.msk [vmem:[%s870_s30 + $0x8] sm:$0xff] %vm557_vm9, %v550_v59  ;;  %v433_v1 = vadd.f32 %v432_v0, %v367_v62 }
 0x14b   : > { %v555_v63 = vadd.f32 %v547_v60, %v539_v61 }
 0x14d   : > { %564 = vst.msk [vmem:[%s870_s30 + $0x30] sm:$0xff] %vm557_vm9, %v555_v63 }
 0x14e   : > { %v514_v2 = vpop.f32.mrf.mxu2 }
 0x14f   : > { %v524_v4 = vadd.f32 %v514_v2, %v433_v1 }
 0x151   : > { %v540_v6 = vadd.f32 %v532_v3, %v524_v4 }
 0x153   : > { %v556_v7 = vadd.f32 %v548_v5, %v540_v6 }
 0x155   : > { %565 = vst.msk [vmem:[%s870_s30 + $0x38] sm:$0xff] %vm557_vm9, %v556_v7 }
 0x156 PF: > { %s14_s15 = sadd.s32 1, %s765_s15  }
 0x157   : > { %p11_p4 = scmp.ge.s32.totalorder %s14_s15, 4  }
 0x159   :  { %13 = sbr.rel (!%p11_p4) target bundleno = 1 (0x1), region = 71 }

// kernel: tile.23
= control target key start
LH: loop header
LB: loop body
LE: loop exit
PB: predicated region body
PF: predicated region fallthrough
CT: control target
= control target key end

     0   :  { %s22_s0 = inlined_call_operand.vmem [shape: f32[16], index: 0, kind: input, shape index: {}]   ;;  %s23_s1 = inlined_call_operand.vmem [shape: f32[4,16], index: 1, kind: output, shape index: {}]  }
   0x1   :  { %v4_v0 = vld [vmem:[%s22_s0] ss:$0 sm:$0xff] }
   0x2   :  { %5 = vst [vmem:[%s23_s1] sm:$0xf] %v4_v0 }

// kernel: tile.1
= control target key start
LH: loop header
LB: loop body
LE: loop exit
PB: predicated region body
PF: predicated region fallthrough
CT: control target
= control target key end

     0   :  { %s176_s8 = smov 127   ;;  %s177_s9 = smov 123   ;;  %vm7_vm0 = vcmask 7168   ;;  %s331_s0 = inlined_call_operand.vmem [shape: f32[4,16], index: 0, kind: input, shape index: {}]   ;;  %s332_s1 = inlined_call_operand.vmem [shape: f32[64,1], index: 1, kind: output, shape index: {}]  }
   0x1   :  { %v4_v0 = vld [vmem:[%s331_s0] sm:$0xf]  ;;  %s175_s0 = smov 125   ;;  %s178_s10 = smov 124  }
   0x2   :  { %5 = vst [vmem:[#allocation0] sm:$0xf] %v4_v0  ;;  %s179_s11 = smov 126   ;;  %s180_s12 = smov 122  }
   0x3   :  { %s181_s13 = smov 120   ;;  %s182_s14 = smov 121  }
   0x4   :  { %s183_s15 = smov 119   ;;  %s184_s16 = smov 117  }
   0x5   :  { %s185_s17 = smov 118   ;;  %s186_s18 = smov 116  }
   0x6   :  { %s187_s19 = smov 114   ;;  %s188_s20 = smov 115  }
   0x7   :  { %s189_s21 = smov 113  }
   0x9   :  { %v26_v1 = vld [vmem:[#allocation0] sm:$0xf]  }
   0xa   :  { %v10_v2 = vld [vmem:[#allocation0] sm:$0xf]   ;;  %27 = vrot.lane.b32.xlu1 %v26_v1, %s175_s0 }
   0xb   :  { %11 = vrot.lane.b32.xlu0 %v10_v2, %s176_s8  ;;  %v42_v3 = vld [vmem:[#allocation0] sm:$0xf]  }
   0xc   :  { %43 = vrot.lane.b32.xlu2 %v42_v3, %s177_s9  ;;  %v34_v4 = vld [vmem:[#allocation0] sm:$0xf]  }
   0xd   :  { %v18_v5 = vld [vmem:[#allocation0] sm:$0xf]  }
   0xe   :  { %v50_v6 = vld [vmem:[#allocation0] sm:$0xf]  }
   0xf   :  { %v66_v7 = vld [vmem:[#allocation0] sm:$0xf]  }
  0x10   :  { %v58_v8 = vld [vmem:[#allocation0] sm:$0xf]  }
  0x11   :  { %v74_v9 = vld [vmem:[#allocation0] sm:$0xf]  }
  0x12   :  { %35 = vrot.lane.b32.xlu1 %v34_v4, %s178_s10  ;;  %v90_v10 = vld [vmem:[#allocation0] sm:$0xf]  }
  0x13   :  { %19 = vrot.lane.b32.xlu0 %v18_v5, %s179_s11  ;;  %v82_v11 = vld [vmem:[#allocation0] sm:$0xf]  }
  0x14   :  { %51 = vrot.lane.b32.xlu2 %v50_v6, %s180_s12  ;;  %v98_v12 = vld [vmem:[#allocation0] sm:$0xf]  }
  0x15   :  { %v114_v13 = vld [vmem:[#allocation0] sm:$0xf]  }
  0x16   :  { %v106_v14 = vld [vmem:[#allocation0] sm:$0xf]  }
  0x17   :  { %v122_v15 = vld [vmem:[#allocation0] sm:$0xf]  }
  0x18   :  { %v6_v22 = vld [vmem:[#allocation0] sm:$0xf]  }
  0x19   :  { %8 = vst.msk [vmem:[%s332_s1] ss:$16 sm:$0x3] %vm7_vm0, %v6_v22  }
  0x1a   :  { %67 = vrot.lane.b32.xlu1 %v66_v7, %s181_s13  ;;  %9 = vst.msk [vmem:[%s332_s1] ss:$16 sm:$0xc] %vm7_vm0, %v6_v22  }
  0x1b   :  { %59 = vrot.lane.b32.xlu0 %v58_v8, %s182_s14 }
  0x1c   :  { %75 = vrot.lane.b32.xlu2 %v74_v9, %s183_s15 }
  0x22   :  { %91 = vrot.lane.b32.xlu1 %v90_v10, %s184_s16 }
  0x23   :  { %83 = vrot.lane.b32.xlu0 %v82_v11, %s185_s17 }
  0x24   :  { %99 = vrot.lane.b32.xlu2 %v98_v12, %s186_s18 }
  0x2a   :  { %115 = vrot.lane.b32.xlu1 %v114_v13, %s187_s19 }
  0x2b   :  { %107 = vrot.lane.b32.xlu0 %v106_v14, %s188_s20 }
  0x2c   :  { %123 = vrot.lane.b32.xlu2 %v122_v15, %s189_s21 }
  0x66   :  { %v44_v16 = vpop.permute.xlu2 %43  }
  0x67   :  { %138 = vst.msk [vmem:[%s332_s1 + $0x5] ss:$16 sm:$0x3] %vm7_vm0, %v44_v16  }
  0x68   :  { %139 = vst.msk [vmem:[%s332_s1 + $0x5] ss:$16 sm:$0xc] %vm7_vm0, %v44_v16  }
  0x6e   :  { %v52_v17 = vpop.permute.xlu2 %51  }
  0x6f   :  { %140 = vst.msk [vmem:[%s332_s1 + $0x6] ss:$16 sm:$0x3] %vm7_vm0, %v52_v17  }
  0x70   :  { %141 = vst.msk [vmem:[%s332_s1 + $0x6] ss:$16 sm:$0xc] %vm7_vm0, %v52_v17  }
  0x76   :  { %v76_v18 = vpop.permute.xlu2 %75  }
  0x77   :  { %146 = vst.msk [vmem:[%s332_s1 + $0x9] ss:$16 sm:$0x3] %vm7_vm0, %v76_v18  }
  0x78   :  { %147 = vst.msk [vmem:[%s332_s1 + $0x9] ss:$16 sm:$0xc] %vm7_vm0, %v76_v18  }
  0x7c   :  { %v28_v19 = vpop.permute.xlu1 %27  }
  0x7d   :  { %v12_v20 = vpop.permute.xlu0 %11   ;;  %134 = vst.msk [vmem:[%s332_s1 + $0x3] ss:$16 sm:$0x3] %vm7_vm0, %v28_v19  }
  0x7e   :  { %135 = vst.msk [vmem:[%s332_s1 + $0x3] ss:$16 sm:$0xc] %vm7_vm0, %v28_v19   ;;  %v100_v21 = vpop.permute.xlu2 %99  }
  0x7f   :  { %130 = vst.msk [vmem:[%s332_s1 + $0x1] ss:$16 sm:$0x3] %vm7_vm0, %v12_v20  }
  0x80   :  { %131 = vst.msk [vmem:[%s332_s1 + $0x1] ss:$16 sm:$0xc] %vm7_vm0, %v12_v20  }
  0x81   :  { %152 = vst.msk [vmem:[%s332_s1 + $0xc] ss:$16 sm:$0x3] %vm7_vm0, %v100_v21  }
  0x82   :  { %153 = vst.msk [vmem:[%s332_s1 + $0xc] ss:$16 sm:$0xc] %vm7_vm0, %v100_v21  }
  0x84   :  { %v36_v23 = vpop.permute.xlu1 %35  }
  0x85   :  { %v20_v24 = vpop.permute.xlu0 %19   ;;  %136 = vst.msk [vmem:[%s332_s1 + $0x4] ss:$16 sm:$0x3] %vm7_vm0, %v36_v23  }
  0x86   :  { %137 = vst.msk [vmem:[%s332_s1 + $0x4] ss:$16 sm:$0xc] %vm7_vm0, %v36_v23   ;;  %v124_v25 = vpop.permute.xlu2 %123  }
  0x87   :  { %132 = vst.msk [vmem:[%s332_s1 + $0x2] ss:$16 sm:$0x3] %vm7_vm0, %v20_v24  }
  0x88   :  { %133 = vst.msk [vmem:[%s332_s1 + $0x2] ss:$16 sm:$0xc] %vm7_vm0, %v20_v24  }
  0x89   :  { %158 = vst.msk [vmem:[%s332_s1 + $0xf] ss:$16 sm:$0x3] %vm7_vm0, %v124_v25  }
  0x8a   :  { %159 = vst.msk [vmem:[%s332_s1 + $0xf] ss:$16 sm:$0xc] %vm7_vm0, %v124_v25  }
  0x8c   :  { %v68_v26 = vpop.permute.xlu1 %67  }
  0x8d   :  { %v60_v27 = vpop.permute.xlu0 %59   ;;  %144 = vst.msk [vmem:[%s332_s1 + $0x8] ss:$16 sm:$0x3] %vm7_vm0, %v68_v26  }
  0x8e   :  { %145 = vst.msk [vmem:[%s332_s1 + $0x8] ss:$16 sm:$0xc] %vm7_vm0, %v68_v26  }
  0x8f   :  { %142 = vst.msk [vmem:[%s332_s1 + $0x7] ss:$16 sm:$0x3] %vm7_vm0, %v60_v27  }
  0x90   :  { %143 = vst.msk [vmem:[%s332_s1 + $0x7] ss:$16 sm:$0xc] %vm7_vm0, %v60_v27  }
  0x94   :  { %v92_v28 = vpop.permute.xlu1 %91  }
  0x95   :  { %v84_v29 = vpop.permute.xlu0 %83   ;;  %150 = vst.msk [vmem:[%s332_s1 + $0xb] ss:$16 sm:$0x3] %vm7_vm0, %v92_v28  }
  0x96   :  { %151 = vst.msk [vmem:[%s332_s1 + $0xb] ss:$16 sm:$0xc] %vm7_vm0, %v92_v28  }
  0x97   :  { %148 = vst.msk [vmem:[%s332_s1 + $0xa] ss:$16 sm:$0x3] %vm7_vm0, %v84_v29  }
  0x98   :  { %149 = vst.msk [vmem:[%s332_s1 + $0xa] ss:$16 sm:$0xc] %vm7_vm0, %v84_v29  }
  0x9c   :  { %v116_v30 = vpop.permute.xlu1 %115  }
  0x9d   :  { %v108_v31 = vpop.permute.xlu0 %107   ;;  %156 = vst.msk [vmem:[%s332_s1 + $0xe] ss:$16 sm:$0x3] %vm7_vm0, %v116_v30  }
  0x9e   :  { %157 = vst.msk [vmem:[%s332_s1 + $0xe] ss:$16 sm:$0xc] %vm7_vm0, %v116_v30  }
  0x9f   :  { %154 = vst.msk [vmem:[%s332_s1 + $0xd] ss:$16 sm:$0x3] %vm7_vm0, %v108_v31  }
  0xa0   :  { %155 = vst.msk [vmem:[%s332_s1 + $0xd] ss:$16 sm:$0xc] %vm7_vm0, %v108_v31  }

// kernel: tile.28
= control target key start
LH: loop header
LB: loop body
LE: loop exit
PB: predicated region body
PF: predicated region fallthrough
CT: control target
= control target key end

     0   :  { %s22_s0 = inlined_call_operand.vmem [shape: f32[8], index: 0, kind: input, shape index: {}]   ;;  %s23_s1 = inlined_call_operand.vmem [shape: f32[4,8], index: 1, kind: output, shape index: {}]  }
   0x1   :  { %v4_v0 = vld [vmem:[%s22_s0] ss:$0 sm:$0xff] }
   0x2   :  { %5 = vst [vmem:[%s23_s1] sm:$0xf] %v4_v0 }

// kernel: tile.2
= control target key start
LH: loop header
LB: loop body
LE: loop exit
PB: predicated region body
PF: predicated region fallthrough
CT: control target
= control target key end

     0   :  { %s66_s8 = smov 125   ;;  %s67_s9 = smov 123   ;;  %vm7_vm0 = vcmask 7168   ;;  %s117_s0 = inlined_call_operand.vmem [shape: f32[4,8], index: 0, kind: input, shape index: {}]   ;;  %s118_s1 = inlined_call_operand.vmem [shape: f32[32,1], index: 1, kind: output, shape index: {}]  }
   0x1   :  { %v4_v0 = vld [vmem:[%s117_s0] sm:$0xf]  ;;  %s65_s0 = smov 127   ;;  %s68_s10 = smov 126  }
   0x2   :  { %5 = vst [vmem:[#allocation0] sm:$0xf] %v4_v0  ;;  %s69_s11 = smov 124   ;;  %s70_s12 = smov 122  }
   0x3   :  { %s71_s13 = smov 121  }
   0x9   :  { %v9_v1 = vld [vmem:[#allocation0] sm:$0xf]  }
   0xa   :  { %v21_v2 = vld [vmem:[#allocation0] sm:$0xf]   ;;  %10 = vrot.lane.b32.xlu0 %v9_v1, %s65_s0 }
   0xb   :  { %22 = vrot.lane.b32.xlu1 %v21_v2, %s66_s8  ;;  %v33_v3 = vld [vmem:[#allocation0] sm:$0xf]  }
   0xc   :  { %34 = vrot.lane.b32.xlu2 %v33_v3, %s67_s9  ;;  %v15_v4 = vld [vmem:[#allocation0] sm:$0xf]  }
   0xd   :  { %v27_v5 = vld [vmem:[#allocation0] sm:$0xf]  }
   0xe   :  { %v39_v6 = vld [vmem:[#allocation0] sm:$0xf]  }
   0xf   :  { %v45_v7 = vld [vmem:[#allocation0] sm:$0xf]  }
  0x10   :  { %v6_v8 = vld [vmem:[#allocation0] sm:$0xf]  }
  0x11   :  { %8 = vst.msk [vmem:[%s118_s1] ss:$8 sm:$0xf] %vm7_vm0, %v6_v8  }
  0x12   :  { %16 = vrot.lane.b32.xlu0 %v15_v4, %s68_s10 }
  0x13   :  { %28 = vrot.lane.b32.xlu1 %v27_v5, %s69_s11 }
  0x14   :  { %40 = vrot.lane.b32.xlu2 %v39_v6, %s70_s12 }
  0x1a   :  { %46 = vrot.lane.b32.xlu0 %v45_v7, %s71_s13 }
  0x66   :  { %v35_v9 = vpop.permute.xlu2 %34  }
  0x67   :  { %55 = vst.msk [vmem:[%s118_s1 + $0x5] ss:$8 sm:$0xf] %vm7_vm0, %v35_v9  }
  0x6e   :  { %v41_v10 = vpop.permute.xlu2 %40  }
  0x6f   :  { %56 = vst.msk [vmem:[%s118_s1 + $0x6] ss:$8 sm:$0xf] %vm7_vm0, %v41_v10  }
  0x7c   :  { %v11_v11 = vpop.permute.xlu0 %10  }
  0x7d   :  { %v23_v12 = vpop.permute.xlu1 %22   ;;  %51 = vst.msk [vmem:[%s118_s1 + $0x1] ss:$8 sm:$0xf] %vm7_vm0, %v11_v11  }
  0x7e   :  { %53 = vst.msk [vmem:[%s118_s1 + $0x3] ss:$8 sm:$0xf] %vm7_vm0, %v23_v12  }
  0x84   :  { %v17_v13 = vpop.permute.xlu0 %16  }
  0x85   :  { %v29_v14 = vpop.permute.xlu1 %28   ;;  %52 = vst.msk [vmem:[%s118_s1 + $0x2] ss:$8 sm:$0xf] %vm7_vm0, %v17_v13  }
  0x86   :  { %54 = vst.msk [vmem:[%s118_s1 + $0x4] ss:$8 sm:$0xf] %vm7_vm0, %v29_v14  }
  0x8c   :  { %v47_v15 = vpop.permute.xlu0 %46  }
  0x8d   :  { %57 = vst.msk [vmem:[%s118_s1 + $0x7] ss:$8 sm:$0xf] %vm7_vm0, %v47_v15  }

// kernel: affine_layer_fwd.47
= control target key start
LH: loop header
LB: loop body
LE: loop exit
PB: predicated region body
PF: predicated region fallthrough
CT: control target
= control target key end

     0   :  { %s1011_s12 = smov 0   ;;  %s1222_s0 = inlined_call_operand.vmem [shape: f32[2,64,3], index: 0, kind: input, shape index: {}]   ;;  %s1223_s1 = inlined_call_operand.vmem [shape: bf16[3,128,64], index: 1, kind: input, shape index: {}]   ;;  %s1224_s2 = inlined_call_operand.vmem [shape: f32[128,1], index: 2, kind: input, shape index: {}]   ;;  %s1225_s3 = inlined_call_operand.vmem [shape: f32[2,128,1], index: 3, kind: output, shape index: {}]  }
   0x1 LB: > { %s770_s13 = sadd.s32 4294967295, %s987_s12   ;;  %p774_p0 = scmp.ge.s32.totalorder %s987_s12, 1  ;;  %s987_s12 = sphi %s1011_s12, %s13_s12  }
   0x2   : > { %p137_p1 = scmp.lt.s32.totalorder %s987_s12, 3 }
   0x4   : > { %p138_p2 = pnand %p774_p0, %p137_p1 }
   0x5   : > { %p161_p3 = scmp.lt.s32.totalorder (!%p138_p2), %s770_s13, 1  ;;  %s989_s18 = smov (!%p138_p2), 127  }
   0x6   : > { %141 = sbr.rel (%p138_p2) target bundleno = 388 (0x184), region = 32  ;;  %s990_s19 = smov (!%p138_p2), 126  }
   0xb   : > { %s1227_s13 = smov (!%p161_p3, %s770_s13), 1  ;;  %vm317_vm8 = vcmask 523264   ;;  %v935_v44 = vld [vmem:[%s1223_s1] sm:$0xff]  ;;  %v936_v47 = vld [vmem:[%s1223_s1 + $0x8] sm:$0xff]  ;;  %v949_v54 = vld [vmem:[%s1223_s1 + $0x70] sm:$0xff]  ;;  %vm698_vm9 = vcmask 7168  }
   0xc   : > { %s933_s14 = sshll.u32 %s1227_s13, 6  ;;  %v943_v53 = vld [vmem:[%s1223_s1 + $0x40] sm:$0xff]  ;;  %v937_v56 = vld [vmem:[%s1223_s1 + $0x10] sm:$0xff]  ;;  %v944_v58 = vld [vmem:[%s1223_s1 + $0x48] sm:$0xff] }
   0xd   : > { %s165_s17 = scalar_lea.vmem %s1222_s0, %s933_s14  ;;  %v951_v57 = vld [vmem:[%s1223_s1 + $0x80] sm:$0xff]  ;;  %v950_v59 = vld [vmem:[%s1223_s1 + $0x78] sm:$0xff]  ;;  %v952_v61 = vld [vmem:[%s1223_s1 + $0x88] sm:$0xff] }
   0xe   : > { %v178_v0 = vld [vmem:[%s165_s17 + $0x30] sm:$0xff]  ;;  %v179_v1 = vld [vmem:[%s165_s17 + $0x38] sm:$0xff]  ;;  %v176_v2 = vld [vmem:[%s165_s17 + $0x20] sm:$0xff] }
   0xf   : > { %vm186_vm0 = vcmp.ge.f32.partialorder %v178_v0, 0.0  ;;  %vm187_vm1 = vcmp.ge.f32.partialorder %v179_v1, 0.0  ;;  %v194_v3 = vmul.f32 0.1, %v178_v0  ;;  %v195_v4 = vmul.f32 0.1, %v179_v1 }
  0x10   : > { %v177_v5 = vld [vmem:[%s165_s17 + $0x28] sm:$0xff]  ;;  %vm184_vm2 = vcmp.ge.f32.partialorder %v176_v2, 0.0  ;;  %v192_v6 = vmul.f32 0.1, %v176_v2  ;;  %v172_v7 = vld [vmem:[%s165_s17] sm:$0xff]  ;;  %v174_v18 = vld [vmem:[%s165_s17 + $0x10] sm:$0xff] }
  0x11   : > { %v202_v8 = vsel %vm186_vm0, %v178_v0, %v194_v3  ;;  %v203_v9 = vsel %vm187_vm1, %v179_v1, %v195_v4  ;;  %vm185_vm3 = vcmp.ge.f32.partialorder %v177_v5, 0.0  ;;  %v193_v10 = vmul.f32 0.1, %v177_v5  ;;  %v173_v11 = vld [vmem:[%s165_s17 + $0x8] sm:$0xff]  ;;  %v175_v19 = vld [vmem:[%s165_s17 + $0x18] sm:$0xff]  ;;  %v945_v62 = vld [vmem:[%s1223_s1 + $0x50] sm:$0xff] }
  0x12   : > { %v210_v12 = vpack.c.bf16 %v202_v8, %v202_v8  ;;  %v211_v13 = vpack.c.bf16 %v203_v9, %v203_v9  ;;  %v200_v14 = vsel %vm184_vm2, %v176_v2, %v192_v6  ;;  %v188_v17 = vmul.f32 0.1, %v172_v7  ;;  %v938_v60 = vld [vmem:[%s1223_s1 + $0x18] sm:$0xff]  ;;  %v941_v63 = vld [vmem:[%s1223_s1 + $0x30] sm:$0xff]  ;;  %v939_v0 = vld [vmem:[%s1223_s1 + $0x20] sm:$0xff] }
  0x13   : > { %v201_v15 = vsel %vm185_vm3, %v177_v5, %v193_v10  ;;  %v208_v16 = vpack.c.bf16 %v200_v14, %v200_v14  ;;  %v189_v23 = vmul.f32 0.1, %v173_v11  ;;  %vm180_vm4 = vcmp.ge.f32.partialorder %v172_v7, 0.0  ;;  %v953_v1 = vld [vmem:[%s1223_s1 + $0x90] sm:$0xff]  ;;  %v946_v2 = vld [vmem:[%s1223_s1 + $0x58] sm:$0xff]  ;;  %v940_v4 = vld [vmem:[%s1223_s1 + $0x28] sm:$0xff] }
  0x14   : > { %v299_v20 = vunpack.c.l.b16 %v210_v12  ;;  %v300_v21 = vunpack.c.l.b16 %v211_v13  ;;  %v209_v22 = vpack.c.bf16 %v201_v15, %v201_v15  ;;  %vm181_vm5 = vcmp.ge.f32.partialorder %v173_v11, 0.0  ;;  %v942_v3 = vld [vmem:[%s1223_s1 + $0x38] sm:$0xff]  ;;  %v947_v6 = vld [vmem:[%s1223_s1 + $0x60] sm:$0xff]  ;;  %v948_v9 = vld [vmem:[%s1223_s1 + $0x68] sm:$0xff] }
  0x15   : > { %v297_v24 = vunpack.c.l.b16 %v208_v16  ;;  %vm182_vm6 = vcmp.ge.f32.partialorder %v174_v18, 0.0  ;;  %vm183_vm7 = vcmp.ge.f32.partialorder %v175_v19, 0.0  ;;  %v190_v27 = vmul.f32 0.1, %v174_v18  ;;  %v954_v5 = vld [vmem:[%s1223_s1 + $0x98] sm:$0xff]  ;;  %v955_v8 = vld [vmem:[%s1223_s1 + $0xa0] sm:$0xff] }
  0x16   : > { %v304_v25 = vpack.c.b16 %v300_v21, %v299_v20  ;;  %v298_v26 = vunpack.c.l.b16 %v209_v22  ;;  %v191_v28 = vmul.f32 0.1, %v175_v19  ;;  %v196_v30 = vsel %vm180_vm4, %v172_v7, %v188_v17  ;;  %v957_v7 = vld [vmem:[%s1223_s1 + $0xb0] sm:$0xff]  ;;  %v958_v10 = vld [vmem:[%s1223_s1 + $0xb8] sm:$0xff]  ;;  %v666_v20 = vld [vmem:[%s1224_s2] sm:$0xff] }
  0x17   : > { %v197_v31 = vsel %vm181_vm5, %v173_v11, %v189_v23  ;;  %v198_v32 = vsel %vm182_vm6, %v174_v18, %v190_v27  ;;  %v204_v36 = vpack.c.bf16 %v196_v30, %v196_v30  ;;  %v956_v11 = vld [vmem:[%s1223_s1 + $0xa8] sm:$0xff] }
  0x18   : > { %311 = vrot.lane.b32.xlu0 %v304_v25, %s989_s18  ;;  %v303_v29 = vpack.c.b16 %v298_v26, %v297_v24  ;;  %463 = vmatpush.bf16.msra.mxu1 %v304_v25  ;;  %v199_v33 = vsel %vm183_vm7, %v175_v19, %v191_v28  ;;  %v206_v34 = vpack.c.bf16 %v198_v32, %v198_v32  ;;  %v667_v28 = vld [vmem:[%s1224_s2 + $0x8] sm:$0xff] }
  0x19   : > { %v207_v35 = vpack.c.bf16 %v199_v33, %v199_v33  ;;  %v205_v37 = vpack.c.bf16 %v197_v31, %v197_v31  ;;  %v293_v41 = vunpack.c.l.b16 %v204_v36  ;;  %v668_v36 = vld [vmem:[%s1224_s2 + $0x10] sm:$0xff] }
  0x1a   : > { %309 = vrot.lane.b32.xlu1 %v303_v29, %s989_s18  ;;  %v295_v38 = vunpack.c.l.b16 %v206_v34 }
  0x1b   : > { %v296_v39 = vunpack.c.l.b16 %v207_v35  ;;  %v294_v42 = vunpack.c.l.b16 %v205_v37 }
  0x1c   : > { %464 = vmatpush.bf16.msra.mxu1 %v303_v29 }
  0x1d   : > { %v302_v40 = vpack.c.b16 %v296_v39, %v295_v38  ;;  %v301_v43 = vpack.c.b16 %v294_v42, %v293_v41 }
  0x1f   : > { %307 = vrot.lane.b32.xlu2 %v302_v40, %s989_s18 }
  0x20   : > { %571 = vrot.lane.b32.xlu0 %v304_v25, %s990_s19  ;;  %465 = vmatpush.bf16.msra.mxu1 %v302_v40 }
  0x22   : > { %569 = vrot.lane.b32.xlu1 %v303_v29, %s990_s19 }
  0x24   : > { %466 = vmatpush.bf16.msra.mxu1 %v301_v43 }
  0x27   : > { %567 = vrot.lane.b32.xlu2 %v302_v40, %s990_s19  ;;  %867 = vmatmul.msk.bf16.vlgmr.msra.gmra.mxu1 %vm317_vm8, %v935_v44  ;;  %v669_v44 = vld [vmem:[%s1224_s2 + $0x18] sm:$0xff] }
  0x28   : > { %305 = vrot.lane.b32.xlu0 %v301_v43, %s989_s18  ;;  %s934_s18 = sshll.u32 %s1227_s13, 7 }
  0x29   : > { %s1130_s23 = scalar_lea.vmem %s1225_s3, %s934_s18 }
  0x2a   : > { %565 = vrot.lane.b32.xlu1 %v301_v43, %s990_s19 }
  0x37   : > { %868 = vmatmul.msk.bf16.gmra.mxu1 %vm317_vm8, %v936_v47 }
  0x47   : > { %869 = vmatmul.msk.bf16.gmra.mxu1 %vm317_vm8, %v937_v56 }
  0x57   : > { %870 = vmatmul.msk.bf16.gmra.mxu1 %vm317_vm8, %v938_v60 }
  0x67   : > { %871 = vmatmul.msk.bf16.gmra.mxu1 %vm317_vm8, %v939_v0 }
  0x77   : > { %872 = vmatmul.msk.bf16.gmra.mxu1 %vm317_vm8, %v940_v4 }
  0x79   : > { %v308_v48 = vpop.permute.xlu2 %307 }
  0x81   : > { %v568_v51 = vpop.permute.xlu2 %567 }
  0x8a   : > { %v312_v45 = vpop.permute.xlu0 %311 }
  0x8b   : > { %346 = vmatpush.bf16.msra.mxu0 %v312_v45  ;;  %959 = vmatpush.bf16.msra.mxu3 %v312_v45 }
  0x8c   : > { %v310_v46 = vpop.permute.xlu1 %309 }
  0x8f   : > { %347 = vmatpush.bf16.msra.mxu0 %v310_v46  ;;  %960 = vmatpush.bf16.msra.mxu3 %v310_v46 }
  0x92   : > { %v572_v49 = vpop.permute.xlu0 %571 }
  0x93   : > { %348 = vmatpush.bf16.msra.mxu0 %v308_v48  ;;  %961 = vmatpush.bf16.msra.mxu3 %v308_v48 }
  0x94   : > { %605 = vmatpush.bf16.msra.mxu2 %v572_v49  ;;  %v570_v50 = vpop.permute.xlu1 %569 }
  0x98   : > { %606 = vmatpush.bf16.msra.mxu2 %v570_v50 }
  0x9a   : > { %v306_v52 = vpop.permute.xlu0 %305 }
  0x9b   : > { %349 = vmatpush.bf16.msra.mxu0 %v306_v52  ;;  %962 = vmatpush.bf16.msra.mxu3 %v306_v52 }
  0x9c   : > { %607 = vmatpush.bf16.msra.mxu2 %v568_v51  ;;  %v566_v55 = vpop.permute.xlu1 %565 }
  0x9e   : > { %827 = vmatmul.msk.bf16.vlgmr.msra.gmra.mxu0 %vm317_vm8, %v943_v53  ;;  %833 = vmatmul.msk.bf16.vlgmr.msra.gmra.mxu3 %vm317_vm8, %v949_v54 }
  0x9f   : > { %963 = vmatpush.bf16.msrb.mxu3 %v304_v25 }
  0xa0   : > { %608 = vmatpush.bf16.msra.mxu2 %v566_v55 }
  0xa3   : > { %964 = vmatpush.bf16.msrb.mxu3 %v303_v29  ;;  %923 = vmatmul.msk.bf16.vlgmr.msra.gmra.mxu2 %vm317_vm8, %v951_v57 }
  0xa4   : > { %v468_v12 = vpop.f32.mrf.mxu1 }
  0xa7   : > { %965 = vmatpush.bf16.msrb.mxu3 %v302_v40 }
  0xab   : > { %966 = vmatpush.bf16.msrb.mxu3 %v301_v43 }
  0xac   : > { %v470_v13 = vpop.f32.mrf.mxu1 }
  0xae   : > { %828 = vmatmul.msk.bf16.gmra.mxu0 %vm317_vm8, %v944_v58  ;;  %834 = vmatmul.msk.bf16.gmra.mxu3 %vm317_vm8, %v950_v59  ;;  %v671_v59 = vld [vmem:[%s1224_s2 + $0x28] sm:$0xff] }
  0xaf   : > { %967 = vmatpush.bf16.msra.mxu3 %v572_v49 }
  0xb3   : > { %968 = vmatpush.bf16.msra.mxu3 %v570_v50  ;;  %924 = vmatmul.msk.bf16.gmra.mxu2 %vm317_vm8, %v952_v61 }
  0xb4   : > { %v473_v15 = vpop.f32.mrf.mxu1 }
  0xb7   : > { %969 = vmatpush.bf16.msra.mxu3 %v568_v51  ;;  %v670_v51 = vld [vmem:[%s1224_s2 + $0x20] sm:$0xff] }
  0xbb   : > { %970 = vmatpush.bf16.msra.mxu3 %v566_v55 }
  0xbc   : > { %v475_v24 = vpop.f32.mrf.mxu1 }
  0xbe   : > { %829 = vmatmul.msk.bf16.gmra.mxu0 %vm317_vm8, %v945_v62  ;;  %873 = vmatmul.msk.bf16.vlgmr.msrb.gmra.mxu3 %vm317_vm8, %v941_v63 }
  0xc3   : > { %925 = vmatmul.msk.bf16.gmra.mxu2 %vm317_vm8, %v953_v1 }
  0xc4   : > { %v478_v34 = vpop.f32.mrf.mxu1 }
  0xcc   : > { %v480_v42 = vpop.f32.mrf.mxu1 }
  0xce   : > { %830 = vmatmul.msk.bf16.gmra.mxu0 %vm317_vm8, %v946_v2  ;;  %874 = vmatmul.msk.bf16.gmra.mxu3 %vm317_vm8, %v942_v3  ;;  %v672_v3 = vld [vmem:[%s1224_s2 + $0x30] sm:$0xff] }
  0xd3   : > { %926 = vmatmul.msk.bf16.gmra.mxu2 %vm317_vm8, %v954_v5 }
  0xd4   : > { %v483_v53 = vpop.f32.mrf.mxu1 }
  0xdc   : > { %v485_v63 = vpop.f32.mrf.mxu1 }
  0xde   : > { %831 = vmatmul.msk.bf16.gmra.mxu0 %vm317_vm8, %v947_v6  ;;  %929 = vmatmul.msk.bf16.vlgmr.msra.gmra.mxu3 %vm317_vm8, %v957_v7 }
  0xe3   : > { %927 = vmatmul.msk.bf16.gmra.mxu2 %vm317_vm8, %v955_v8 }
  0xe4   : > { %v488_v7 = vpop.f32.mrf.mxu1 }
  0xee   : > { %832 = vmatmul.msk.bf16.gmra.mxu0 %vm317_vm8, %v948_v9  ;;  %930 = vmatmul.msk.bf16.gmra.mxu3 %vm317_vm8, %v958_v10 }
  0xf3   : > { %928 = vmatmul.msk.bf16.gmra.mxu2 %vm317_vm8, %v956_v11  ;;  %v673_v11 = vld [vmem:[%s1224_s2 + $0x38] sm:$0xff] }
 0x11b   : > { %v351_v14 = vpop.f32.mrf.mxu0 }
 0x11c   : > { %v469_v17 = vadd.f32 %v468_v12, %v351_v14 }
 0x121   : > { %v1121_v16 = vpop.f32.mrf.mxu3 }
 0x123   : > { %v353_v18 = vpop.f32.mrf.mxu0 }
 0x124   : > { %v471_v26 = vadd.f32 %v470_v13, %v353_v18 }
 0x126   : > { %v610_v19 = vpop.f32.mrf.mxu2 }
 0x127   : > { %v650_v21 = vadd.f32 %v610_v19, %v469_v17  ;;  %v678_v17 = vld [vmem:[%s1224_s2 + $0x60] sm:$0xff] }
 0x129   : > { %v682_v22 = vadd.f32 %v666_v20, %v650_v21  ;;  %v1132_v23 = vpop.f32.mrf.mxu3  ;;  %v490_v21 = vpop.f32.mrf.mxu1 }
 0x12b   : > { %699 = vst.msk [vmem:[%s1130_s23] sm:$0xff] %vm698_vm9, %v682_v22  ;;  %v356_v25 = vpop.f32.mrf.mxu0 }
 0x12c   : > { %v474_v32 = vadd.f32 %v473_v15, %v356_v25 }
 0x12e   : > { %v612_v27 = vpop.f32.mrf.mxu2 }
 0x12f   : > { %v651_v29 = vadd.f32 %v612_v27, %v471_v26 }
 0x131   : > { %v683_v30 = vadd.f32 %v667_v28, %v651_v29  ;;  %v1139_v31 = vpop.f32.mrf.mxu3  ;;  %v679_v29 = vld [vmem:[%s1224_s2 + $0x68] sm:$0xff] }
 0x133   : > { %700 = vst.msk [vmem:[%s1130_s23 + $0x8] sm:$0xff] %vm698_vm9, %v683_v30  ;;  %v358_v33 = vpop.f32.mrf.mxu0 }
 0x134   : > { %v476_v41 = vadd.f32 %v475_v24, %v358_v33 }
 0x136   : > { %v615_v35 = vpop.f32.mrf.mxu2 }
 0x137   : > { %v652_v37 = vadd.f32 %v615_v35, %v474_v32 }
 0x139   : > { %v684_v38 = vadd.f32 %v668_v36, %v652_v37  ;;  %v1146_v39 = vpop.f32.mrf.mxu3 }
 0x13b   : > { %701 = vst.msk [vmem:[%s1130_s23 + $0x10] sm:$0xff] %vm698_vm9, %v684_v38  ;;  %v361_v40 = vpop.f32.mrf.mxu0  ;;  %v493_v38 = vpop.f32.mrf.mxu1 }
 0x13c   : > { %v479_v48 = vadd.f32 %v478_v34, %v361_v40 }
 0x13e   : > { %v617_v43 = vpop.f32.mrf.mxu2 }
 0x13f   : > { %v653_v45 = vadd.f32 %v617_v43, %v476_v41 }
 0x141   : > { %v685_v46 = vadd.f32 %v669_v44, %v653_v45  ;;  %v498_v47 = vpop.f32.mrf.mxu3 }
 0x142   : > { %v499_v13 = vadd.f32 %v498_v47, %v1121_v16  ;;  %v674_v16 = vld [vmem:[%s1224_s2 + $0x40] sm:$0xff] }
 0x143   : > { %702 = vst.msk [vmem:[%s1130_s23 + $0x18] sm:$0xff] %vm698_vm9, %v685_v46  ;;  %v363_v49 = vpop.f32.mrf.mxu0 }
 0x144   : > { %v481_v57 = vadd.f32 %v480_v42, %v363_v49  ;;  %v680_v42 = vld [vmem:[%s1224_s2 + $0x70] sm:$0xff] }
 0x146   : > { %v620_v50 = vpop.f32.mrf.mxu2 }
 0x147   : > { %v654_v52 = vadd.f32 %v620_v50, %v479_v48 }
 0x149   : > { %v686_v54 = vadd.f32 %v670_v51, %v654_v52  ;;  %v500_v55 = vpop.f32.mrf.mxu3  ;;  %v681_v51 = vld [vmem:[%s1224_s2 + $0x78] sm:$0xff] }
 0x14a   : > { %v501_v26 = vadd.f32 %v500_v55, %v1132_v23  ;;  %v675_v23 = vld [vmem:[%s1224_s2 + $0x48] sm:$0xff] }
 0x14b   : > { %703 = vst.msk [vmem:[%s1130_s23 + $0x20] sm:$0xff] %vm698_vm9, %v686_v54  ;;  %v366_v56 = vpop.f32.mrf.mxu0 }
 0x14c   : > { %v484_v0 = vadd.f32 %v483_v53, %v366_v56  ;;  %v495_v53 = vpop.f32.mrf.mxu1 }
 0x14e   : > { %v622_v58 = vpop.f32.mrf.mxu2 }
 0x14f   : > { %v655_v60 = vadd.f32 %v622_v58, %v481_v57 }
 0x151   : > { %v687_v61 = vadd.f32 %v671_v59, %v655_v60  ;;  %v503_v62 = vpop.f32.mrf.mxu3 }
 0x152   : > { %v504_v36 = vadd.f32 %v503_v62, %v1139_v31  ;;  %v676_v31 = vld [vmem:[%s1224_s2 + $0x50] sm:$0xff] }
 0x153   : > { %704 = vst.msk [vmem:[%s1130_s23 + $0x28] sm:$0xff] %vm698_vm9, %v687_v61  ;;  %v368_v1 = vpop.f32.mrf.mxu0 }
 0x154   : > { %v486_v9 = vadd.f32 %v485_v63, %v368_v1 }
 0x156   : > { %v625_v2 = vpop.f32.mrf.mxu2 }
 0x157   : > { %v656_v4 = vadd.f32 %v625_v2, %v484_v0 }
 0x159   : > { %v688_v5 = vadd.f32 %v672_v3, %v656_v4  ;;  %v505_v6 = vpop.f32.mrf.mxu3 }
 0x15a   : > { %v506_v48 = vadd.f32 %v505_v6, %v1146_v39  ;;  %v677_v39 = vld [vmem:[%s1224_s2 + $0x58] sm:$0xff] }
 0x15b   : > { %705 = vst.msk [vmem:[%s1130_s23 + $0x30] sm:$0xff] %vm698_vm9, %v688_v5  ;;  %v371_v8 = vpop.f32.mrf.mxu0 }
 0x15c   : > { %v489_v19 = vadd.f32 %v488_v7, %v371_v8 }
 0x15e   : > { %v627_v10 = vpop.f32.mrf.mxu2 }
 0x15f   : > { %v657_v12 = vadd.f32 %v627_v10, %v486_v9 }
 0x161   : > { %v689_v14 = vadd.f32 %v673_v11, %v657_v12  ;;  %v640_v15 = vpop.f32.mrf.mxu3 }
 0x162   : > { %v662_v18 = vadd.f32 %v640_v15, %v499_v13 }
 0x163   : > { %706 = vst.msk [vmem:[%s1130_s23 + $0x38] sm:$0xff] %vm698_vm9, %v689_v14  ;;  %v373_v22 = vpop.f32.mrf.mxu0 }
 0x164   : > { %v694_v20 = vadd.f32 %v678_v17, %v662_v18  ;;  %v491_v33 = vadd.f32 %v490_v21, %v373_v22 }
 0x166   : > { %711 = vst.msk [vmem:[%s1130_s23 + $0x60] sm:$0xff] %vm698_vm9, %v694_v20  ;;  %v630_v24 = vpop.f32.mrf.mxu2 }
 0x167   : > { %v658_v25 = vadd.f32 %v630_v24, %v489_v19 }
 0x169   : > { %v690_v27 = vadd.f32 %v674_v16, %v658_v25  ;;  %v642_v28 = vpop.f32.mrf.mxu3 }
 0x16a   : > { %v663_v30 = vadd.f32 %v642_v28, %v501_v26 }
 0x16b   : > { %707 = vst.msk [vmem:[%s1130_s23 + $0x40] sm:$0xff] %vm698_vm9, %v690_v27  ;;  %v376_v37 = vpop.f32.mrf.mxu0 }
 0x16c   : > { %v695_v32 = vadd.f32 %v679_v29, %v663_v30  ;;  %v494_v44 = vadd.f32 %v493_v38, %v376_v37 }
 0x16e   : > { %712 = vst.msk [vmem:[%s1130_s23 + $0x68] sm:$0xff] %vm698_vm9, %v695_v32  ;;  %v632_v34 = vpop.f32.mrf.mxu2 }
 0x16f   : > { %v659_v35 = vadd.f32 %v632_v34, %v491_v33 }
 0x171   : > { %v691_v40 = vadd.f32 %v675_v23, %v659_v35  ;;  %v645_v41 = vpop.f32.mrf.mxu3 }
 0x172   : > { %v664_v43 = vadd.f32 %v645_v41, %v504_v36 }
 0x173   : > { %708 = vst.msk [vmem:[%s1130_s23 + $0x48] sm:$0xff] %vm698_vm9, %v691_v40  ;;  %v378_v52 = vpop.f32.mrf.mxu0 }
 0x174   : > { %v696_v45 = vadd.f32 %v680_v42, %v664_v43  ;;  %v496_v56 = vadd.f32 %v495_v53, %v378_v52 }
 0x176   : > { %713 = vst.msk [vmem:[%s1130_s23 + $0x70] sm:$0xff] %vm698_vm9, %v696_v45  ;;  %v635_v46 = vpop.f32.mrf.mxu2 }
 0x177   : > { %v660_v47 = vadd.f32 %v635_v46, %v494_v44 }
 0x179   : > { %v692_v49 = vadd.f32 %v676_v31, %v660_v47  ;;  %v647_v50 = vpop.f32.mrf.mxu3 }
 0x17a   : > { %v665_v54 = vadd.f32 %v647_v50, %v506_v48 }
 0x17b   : > { %709 = vst.msk [vmem:[%s1130_s23 + $0x50] sm:$0xff] %vm698_vm9, %v692_v49 }
 0x17c   : > { %v697_v55 = vadd.f32 %v681_v51, %v665_v54 }
 0x17e   : > { %714 = vst.msk [vmem:[%s1130_s23 + $0x78] sm:$0xff] %vm698_vm9, %v697_v55  ;;  %v637_v57 = vpop.f32.mrf.mxu2 }
 0x17f   : > { %v661_v58 = vadd.f32 %v637_v57, %v496_v56 }
 0x181   : > { %v693_v59 = vadd.f32 %v677_v39, %v661_v58 }
 0x183   : > { %710 = vst.msk [vmem:[%s1130_s23 + $0x58] sm:$0xff] %vm698_vm9, %v693_v59 }
 0x184 PF: > { %s13_s12 = sadd.s32 1, %s987_s12  }
 0x185   : > { %p10_p4 = scmp.ge.s32.totalorder %s13_s12, 4  }
 0x187   :  { %12 = sbr.rel (!%p10_p4) target bundleno = 1 (0x1), region = 64 }

// kernel: affine_layer_fwd.51
= control target key start
LH: loop header
LB: loop body
LE: loop exit
PB: predicated region body
PF: predicated region fallthrough
CT: control target
= control target key end

     0   :  { %s706_s12 = smov 0   ;;  %s817_s0 = inlined_call_operand.vmem [shape: f32[2,32,6], index: 0, kind: input, shape index: {}]   ;;  %s818_s1 = inlined_call_operand.vmem [shape: bf16[3,64,32], index: 1, kind: input, shape index: {}]   ;;  %s819_s2 = inlined_call_operand.vmem [shape: f32[64,1], index: 2, kind: input, shape index: {}]   ;;  %s820_s3 = inlined_call_operand.vmem [shape: f32[2,64,4], index: 3, kind: output, shape index: {}]  }
   0x1 LB: > { %s554_s13 = sadd.s32 4294967295, %s681_s12   ;;  %p558_p0 = scmp.ge.s32.totalorder %s681_s12, 1  ;;  %s681_s12 = sphi %s706_s12, %s13_s12  }
   0x2   : > { %p137_p1 = scmp.lt.s32.totalorder %s681_s12, 3 }
   0x4   : > { %p138_p2 = pnand %p558_p0, %p137_p1 }
   0x5   : > { %p161_p3 = scmp.lt.s32.totalorder (!%p138_p2), %s554_s13, 1  ;;  %s683_s18 = smov (!%p138_p2), 127  }
   0x6   : > { %141 = sbr.rel (%p138_p2) target bundleno = 331 (0x14b), region = 32  ;;  %s684_s19 = smov (!%p138_p2), 126  }
   0xb   : > { %s822_s13 = smov (!%p161_p3, %s554_s13), 1  ;;  %v644_v22 = vld [vmem:[%s818_s1 + $0x8] sm:$0xff]  ;;  %vm245_vm4 = vcmask 261120   ;;  %v645_v23 = vld [vmem:[%s818_s1 + $0x10] sm:$0xff]  ;;  %v685_v27 = vmov 0   ;;  %v647_v28 = vld [vmem:[%s818_s1 + $0x20] sm:$0xff] }
   0xc   : > { %s641_s14 = sshll.u32 %s822_s13, 5  ;;  %v436_v25 = vld [vmem:[%s819_s2 + $0x10] sm:$0xff]  ;;  %673 = vset.pattern.permute.xlu0 %v685_v27  ;;  %674 = vset.pattern.permute.xlu1 %v685_v27  ;;  %v648_v29 = vld [vmem:[%s818_s1 + $0x28] sm:$0xff]  ;;  %v437_v31 = vld [vmem:[%s819_s2 + $0x18] sm:$0xff]  ;;  %s642_s8 = sshll.u32 %s822_s13, 6  ;;  %vm490_vm5 = vcmask 31744  }
   0xd   : > { %s165_s17 = scalar_lea.vmem %s817_s0, %s641_s14  ;;  %672 = vset.pattern.permute.xlu2 %v685_v27  ;;  %v646_v32 = vld [vmem:[%s818_s1 + $0x18] sm:$0xff]  ;;  %v652_v34 = vld [vmem:[%s818_s1 + $0x48] sm:$0xff]  ;;  %v434_v35 = vld [vmem:[%s819_s2] sm:$0xff]  ;;  %s796_s11 = scalar_lea.vmem %s820_s3, %s642_s8 }
   0xe   : > { %v174_v0 = vld [vmem:[%s165_s17 + $0x10] sm:$0xff]  ;;  %v175_v1 = vld [vmem:[%s165_s17 + $0x18] sm:$0xff]  ;;  %v172_v2 = vld [vmem:[%s165_s17] sm:$0xff]  ;;  %444 = vperm.xlu2 %672, %v434_v35  }
   0xf   : > { %vm178_vm0 = vcmp.ge.f32.partialorder %v174_v0, 0.0  ;;  %vm179_vm1 = vcmp.ge.f32.partialorder %v175_v1, 0.0  ;;  %v182_v3 = vmul.f32 0.1, %v174_v0  ;;  %v183_v4 = vmul.f32 0.1, %v175_v1 }
  0x10   : > { %v173_v5 = vld [vmem:[%s165_s17 + $0x8] sm:$0xff]  ;;  %vm176_vm2 = vcmp.ge.f32.partialorder %v172_v2, 0.0  ;;  %v180_v6 = vmul.f32 0.1, %v172_v2  ;;  %v441_v37 = vld [vmem:[%s819_s2 + $0x38] sm:$0xff]  ;;  %v649_v38 = vld [vmem:[%s818_s1 + $0x30] sm:$0xff] }
  0x11   : > { %v186_v7 = vsel %vm178_vm0, %v174_v0, %v182_v3  ;;  %v187_v8 = vsel %vm179_vm1, %v175_v1, %v183_v4  ;;  %vm177_vm3 = vcmp.ge.f32.partialorder %v173_v5, 0.0  ;;  %v181_v9 = vmul.f32 0.1, %v173_v5  ;;  %v439_v36 = vld [vmem:[%s819_s2 + $0x28] sm:$0xff]  ;;  %v643_v39 = vld [vmem:[%s818_s1] sm:$0xff]  ;;  %v653_v41 = vld [vmem:[%s818_s1 + $0x50] sm:$0xff] }
  0x12   : > { %v190_v10 = vpack.c.bf16 %v186_v7, %v186_v7  ;;  %v191_v11 = vpack.c.bf16 %v187_v8, %v187_v8  ;;  %v184_v12 = vsel %vm176_vm2, %v172_v2, %v180_v6  ;;  %v435_v40 = vld [vmem:[%s819_s2 + $0x8] sm:$0xff]  ;;  %v438_v42 = vld [vmem:[%s819_s2 + $0x20] sm:$0xff]  ;;  %v650_v43 = vld [vmem:[%s818_s1 + $0x38] sm:$0xff] }
  0x13   : > { %v185_v13 = vsel %vm177_vm3, %v173_v5, %v181_v9  ;;  %v188_v14 = vpack.c.bf16 %v184_v12, %v184_v12  ;;  %v651_v44 = vld [vmem:[%s818_s1 + $0x40] sm:$0xff]  ;;  %v440_v45 = vld [vmem:[%s819_s2 + $0x30] sm:$0xff]  ;;  %v654_v46 = vld [vmem:[%s818_s1 + $0x58] sm:$0xff] }
  0x14   : > { %v235_v15 = vunpack.c.l.b16 %v190_v10  ;;  %v236_v16 = vunpack.c.l.b16 %v191_v11  ;;  %v189_v17 = vpack.c.bf16 %v185_v13, %v185_v13 }
  0x15   : > { %v233_v18 = vunpack.c.l.b16 %v188_v14 }
  0x16   : > { %v238_v19 = vpack.c.b16 %v236_v16, %v235_v15  ;;  %v234_v20 = vunpack.c.l.b16 %v189_v17  ;;  %449 = vperm.xlu2 %672, %v435_v40  }
  0x18   : > { %241 = vrot.lane.b32.xlu0 %v238_v19, %s683_s18  ;;  %v237_v21 = vpack.c.b16 %v234_v20, %v233_v18  ;;  %657 = vmatpush.bf16.msra.mxu1 %v238_v19 }
  0x1a   : > { %239 = vrot.lane.b32.xlu1 %v237_v21, %s683_s18 }
  0x1c   : > { %658 = vmatpush.bf16.msra.mxu1 %v237_v21 }
  0x1e   : > { %464 = vperm.xlu2 %672, %v438_v42  }
  0x1f   : > { %608 = vmatmul.msk.bf16.vlgmr.msra.gmra.mxu1 %vm245_vm4, %v644_v22 }
  0x20   : > { %381 = vrot.lane.b32.xlu0 %v238_v19, %s684_s19 }
  0x22   : > { %379 = vrot.lane.b32.xlu1 %v237_v21, %s684_s19 }
  0x26   : > { %474 = vperm.xlu2 %672, %v440_v45  }
  0x28   : > { %454 = vperm.xlu0 %673, %v436_v25  }
  0x2a   : > { %459 = vperm.xlu1 %674, %v437_v31  }
  0x2f   : > { %609 = vmatmul.msk.bf16.gmra.mxu1 %vm245_vm4, %v645_v23 }
  0x30   : > { %479 = vperm.xlu0 %673, %v441_v37  }
  0x32   : > { %469 = vperm.xlu1 %674, %v439_v36  }
  0x3f   : > { %610 = vmatmul.msk.bf16.gmra.mxu1 %vm245_vm4, %v646_v32 }
  0x68   : > { %v445_v51 = vpop.permute.xlu2 %444 }
  0x70   : > { %v450_v60 = vpop.permute.xlu2 %449 }
  0x78   : > { %v465_v9 = vpop.permute.xlu2 %464 }
  0x8a   : > { %v242_v24 = vpop.permute.xlu0 %241 }
  0x8b   : > { %264 = vmatpush.bf16.msra.mxu0 %v242_v24  ;;  %655 = vmatpush.bf16.msra.mxu3 %v242_v24 }
  0x8c   : > { %v240_v26 = vpop.permute.xlu1 %239 }
  0x8f   : > { %265 = vmatpush.bf16.msra.mxu0 %v240_v26  ;;  %656 = vmatpush.bf16.msra.mxu3 %v240_v26 }
  0x92   : > { %v382_v30 = vpop.permute.xlu0 %381  ;;  %587 = vmatmul.msk.bf16.vlgmr.msra.gmra.mxu0 %vm245_vm4, %v647_v28  ;;  %588 = vmatmul.msk.bf16.vlgmr.msra.gmra.mxu3 %vm245_vm4, %v648_v29 }
  0x93   : > { %327 = vmatpush.bf16.msrb.mxu0 %v238_v19  ;;  %659 = vmatpush.bf16.msra.mxu2 %v382_v30 }
  0x94   : > { %v380_v33 = vpop.permute.xlu1 %379 }
  0x97   : > { %328 = vmatpush.bf16.msrb.mxu0 %v237_v21  ;;  %660 = vmatpush.bf16.msra.mxu2 %v380_v33 }
  0x9a   : > { %636 = vmatmul.msk.bf16.vlgmr.msra.gmra.mxu2 %vm245_vm4, %v652_v34  ;;  %v455_v54 = vpop.permute.xlu0 %454 }
  0x9b   : > { %403 = vmatpush.bf16.msra.mxu0 %v382_v30  ;;  %v475_v30 = vpop.permute.xlu2 %474 }
  0x9c   : > { %v335_v48 = vpop.f32.mrf.mxu1  ;;  %v460_v63 = vpop.permute.xlu1 %459 }
  0x9f   : > { %404 = vmatpush.bf16.msra.mxu0 %v380_v33 }
  0xa2   : > { %589 = vmatmul.msk.bf16.gmra.mxu3 %vm245_vm4, %v649_v38  ;;  %607 = vmatmul.msk.bf16.vlgmr.msrb.gmra.mxu0 %vm245_vm4, %v643_v39  ;;  %v480_v37 = vpop.permute.xlu0 %479 }
  0xa4   : > { %v337_v53 = vpop.f32.mrf.mxu1  ;;  %v470_v18 = vpop.permute.xlu1 %469 }
  0xaa   : > { %637 = vmatmul.msk.bf16.gmra.mxu2 %vm245_vm4, %v653_v41 }
  0xac   : > { %v340_v62 = vpop.f32.mrf.mxu1 }
  0xb2   : > { %590 = vmatmul.msk.bf16.gmra.mxu3 %vm245_vm4, %v650_v43  ;;  %635 = vmatmul.msk.bf16.vlgmr.msra.gmra.mxu0 %vm245_vm4, %v651_v44 }
  0xb4   : > { %v342_v11 = vpop.f32.mrf.mxu1 }
  0xba   : > { %638 = vmatmul.msk.bf16.gmra.mxu2 %vm245_vm4, %v654_v46 }
  0xbc   : > { %v345_v25 = vpop.f32.mrf.mxu1 }
  0xc4   : > { %v347_v33 = vpop.f32.mrf.mxu1 }
 0x10f   : > { %v267_v47 = vpop.f32.mrf.mxu0 }
 0x115   : > { %v272_v49 = vpop.f32.mrf.mxu3 }
 0x116   : > { %v336_v52 = vadd.f32 %v335_v48, %v272_v49 }
 0x117   : > { %v269_v50 = vpop.f32.mrf.mxu0 }
 0x11d   : > { %v274_v55 = vpop.f32.mrf.mxu3  ;;  %v411_v56 = vpop.f32.mrf.mxu2 }
 0x11e   : > { %v428_v57 = vadd.f32 %v411_v56, %v336_v52  ;;  %v338_v61 = vadd.f32 %v337_v53, %v274_v55 }
 0x11f   : > { %v330_v58 = vpop.f32.mrf.mxu0 }
 0x120   : > { %v484_v59 = vadd.f32 %v455_v54, %v428_v57  ;;  %v331_v8 = vadd.f32 %v330_v58, %v267_v47 }
 0x122   : > { %493 = vst.msk [vmem:[%s796_s11 + $0x10] sm:$0xff] %vm490_vm5, %v484_v59 }
 0x125   : > { %v277_v0 = vpop.f32.mrf.mxu3  ;;  %v413_v1 = vpop.f32.mrf.mxu2 }
 0x126   : > { %v429_v2 = vadd.f32 %v413_v1, %v338_v61  ;;  %v341_v5 = vadd.f32 %v340_v62, %v277_v0 }
 0x127   : > { %v332_v3 = vpop.f32.mrf.mxu0 }
 0x128   : > { %v485_v4 = vadd.f32 %v460_v63, %v429_v2  ;;  %v333_v19 = vadd.f32 %v332_v3, %v269_v50 }
 0x12a   : > { %494 = vst.msk [vmem:[%s796_s11 + $0x18] sm:$0xff] %vm490_vm5, %v485_v4 }
 0x12d   : > { %v279_v6 = vpop.f32.mrf.mxu3  ;;  %v416_v7 = vpop.f32.mrf.mxu2 }
 0x12e   : > { %v430_v10 = vadd.f32 %v416_v7, %v341_v5  ;;  %v343_v16 = vadd.f32 %v342_v11, %v279_v6 }
 0x12f   : > { %v406_v12 = vpop.f32.mrf.mxu0 }
 0x130   : > { %v486_v13 = vadd.f32 %v465_v9, %v430_v10  ;;  %v426_v14 = vadd.f32 %v406_v12, %v331_v8 }
 0x132   : > { %495 = vst.msk [vmem:[%s796_s11 + $0x20] sm:$0xff] %vm490_vm5, %v486_v13  ;;  %v482_v15 = vadd.f32 %v445_v51, %v426_v14 }
 0x134   : > { %491 = vst.msk [vmem:[%s796_s11] sm:$0xff] %vm490_vm5, %v482_v15 }
 0x135   : > { %v418_v17 = vpop.f32.mrf.mxu2  ;;  %v282_v21 = vpop.f32.mrf.mxu3 }
 0x136   : > { %v431_v20 = vadd.f32 %v418_v17, %v343_v16  ;;  %v346_v26 = vadd.f32 %v345_v25, %v282_v21 }
 0x137   : > { %v408_v22 = vpop.f32.mrf.mxu0 }
 0x138   : > { %v427_v23 = vadd.f32 %v408_v22, %v333_v19  ;;  %v487_v24 = vadd.f32 %v470_v18, %v431_v20 }
 0x13a   : > { %v483_v27 = vadd.f32 %v450_v60, %v427_v23  ;;  %496 = vst.msk [vmem:[%s796_s11 + $0x28] sm:$0xff] %vm490_vm5, %v487_v24 }
 0x13c   : > { %492 = vst.msk [vmem:[%s796_s11 + $0x8] sm:$0xff] %vm490_vm5, %v483_v27 }
 0x13d   : > { %v421_v28 = vpop.f32.mrf.mxu2  ;;  %v284_v32 = vpop.f32.mrf.mxu3 }
 0x13e   : > { %v432_v29 = vadd.f32 %v421_v28, %v346_v26  ;;  %v348_v34 = vadd.f32 %v347_v33, %v284_v32 }
 0x140   : > { %v488_v31 = vadd.f32 %v475_v30, %v432_v29 }
 0x142   : > { %497 = vst.msk [vmem:[%s796_s11 + $0x30] sm:$0xff] %vm490_vm5, %v488_v31 }
 0x145   : > { %v423_v35 = vpop.f32.mrf.mxu2 }
 0x146   : > { %v433_v36 = vadd.f32 %v423_v35, %v348_v34 }
 0x148   : > { %v489_v38 = vadd.f32 %v480_v37, %v433_v36 }
 0x14a   : > { %498 = vst.msk [vmem:[%s796_s11 + $0x38] sm:$0xff] %vm490_vm5, %v489_v38 }
 0x14b PF: > { %s13_s12 = sadd.s32 1, %s681_s12  }
 0x14c   : > { %p10_p4 = scmp.ge.s32.totalorder %s13_s12, 4  }
 0x14e   :  { %12 = sbr.rel (!%p10_p4) target bundleno = 1 (0x1), region = 64 }

// kernel: affine_layer_fwd.55
= control target key start
LH: loop header
LB: loop body
LE: loop exit
PB: predicated region body
PF: predicated region fallthrough
CT: control target
= control target key end

     0   :  { %s508_s12 = smov 0   ;;  %s569_s0 = inlined_call_operand.vmem [shape: f32[2,16,18], index: 0, kind: input, shape index: {}]   ;;  %s570_s1 = inlined_call_operand.vmem [shape: bf16[3,32,16], index: 1, kind: input, shape index: {}]   ;;  %s571_s2 = inlined_call_operand.vmem [shape: f32[32,1], index: 2, kind: input, shape index: {}]   ;;  %s572_s3 = inlined_call_operand.vmem [shape: f32[2,32,16], index: 3, kind: output, shape index: {}]  }
   0x1 LB: > { %s405_s13 = sadd.s32 4294967295, %s483_s12   ;;  %p409_p0 = scmp.ge.s32.totalorder %s483_s12, 1  ;;  %s483_s12 = sphi %s508_s12, %s13_s12  }
   0x2   : > { %p137_p1 = scmp.lt.s32.totalorder %s483_s12, 3 }
   0x4   : > { %p138_p2 = pnand %p409_p0, %p137_p1 }
   0x5   : > { %p161_p3 = scmp.lt.s32.totalorder (!%p138_p2), %s405_s13, 1  ;;  %s485_s18 = smov (!%p138_p2), 126  }
   0x6   : > { %141 = sbr.rel (%p138_p2) target bundleno = 303 (0x12f), region = 32  ;;  %s486_s19 = smov (!%p138_p2), 127  }
   0xb   : > { %s574_s13 = smov (!%p161_p3, %s405_s13), 1  ;;  %v456_v11 = vld [vmem:[%s570_s1] sm:$0xff]  ;;  %vm209_vm2 = vcmask 130048   ;;  %v457_v12 = vld [vmem:[%s570_s1 + $0x8] sm:$0xff]  ;;  %v320_v14 = vld [vmem:[%s571_s2 + $0x10] sm:$0xff]  ;;  %v487_v15 = vmov 0  }
   0xc   : > { %s454_s14 = sshll.u32 %s574_s13, 4  ;;  %v318_v13 = vld [vmem:[%s571_s2] sm:$0xff]  ;;  %474 = vset.pattern.permute.xlu1 %v487_v15  ;;  %475 = vset.pattern.permute.xlu2 %v487_v15  ;;  %v319_v16 = vld [vmem:[%s571_s2 + $0x8] sm:$0xff]  ;;  %v321_v17 = vld [vmem:[%s571_s2 + $0x18] sm:$0xff]  ;;  %s455_s15 = sshll.u32 %s574_s13, 5 }
   0xd   : > { %s165_s17 = scalar_lea.vmem %s569_s0, %s454_s14  ;;  %324 = vperm.xlu1 %474, %v318_v13   ;;  %334 = vperm.xlu2 %475, %v320_v14   ;;  %v460_v19 = vld [vmem:[%s570_s1 + $0x20] sm:$0xff]  ;;  %v458_v21 = vld [vmem:[%s570_s1 + $0x10] sm:$0xff]  ;;  %v459_v22 = vld [vmem:[%s570_s1 + $0x18] sm:$0xff] }
   0xe   : > { %v172_v0 = vld [vmem:[%s165_s17] sm:$0xff]  ;;  %v173_v1 = vld [vmem:[%s165_s17 + $0x8] sm:$0xff]  ;;  %476 = vset.pattern.permute.xlu0 %v487_v15 }
   0xf   : > { %vm174_vm0 = vcmp.ge.f32.partialorder %v172_v0, 0.0  ;;  %vm175_vm1 = vcmp.ge.f32.partialorder %v173_v1, 0.0  ;;  %v176_v2 = vmul.f32 0.1, %v172_v0  ;;  %v177_v3 = vmul.f32 0.1, %v173_v1 }
  0x10   : > { %v461_v23 = vld [vmem:[%s570_s1 + $0x28] sm:$0xff] }
  0x11   : > { %v178_v4 = vsel %vm174_vm0, %v172_v0, %v176_v2  ;;  %v179_v5 = vsel %vm175_vm1, %v173_v1, %v177_v3 }
  0x12   : > { %v180_v6 = vpack.c.bf16 %v178_v4, %v178_v4  ;;  %v181_v7 = vpack.c.bf16 %v179_v5, %v179_v5 }
  0x14   : > { %v203_v8 = vunpack.c.l.b16 %v180_v6  ;;  %v204_v9 = vunpack.c.l.b16 %v181_v7 }
  0x15   : > { %329 = vperm.xlu1 %474, %v319_v16   ;;  %339 = vperm.xlu2 %475, %v321_v17  }
  0x16   : > { %v205_v10 = vpack.c.b16 %v204_v9, %v203_v8 }
  0x18   : > { %286 = vrot.lane.b32.xlu0 %v205_v10, %s485_s18  ;;  %259 = vmatpush.bf16.msra.mxu1 %v205_v10  ;;  %s170_s18 = scalar_lea.vmem %s572_s3, %s455_s15 }
  0x1b   : > { %436 = vmatmul.msk.bf16.vlgmr.msra.gmra.mxu1 %vm209_vm2, %v456_v11 }
  0x20   : > { %206 = vrot.lane.b32.xlu0 %v205_v10, %s486_s19 }
  0x2b   : > { %437 = vmatmul.msk.bf16.gmra.mxu1 %vm209_vm2, %v457_v12 }
  0x67   : > { %v335_v41 = vpop.permute.xlu2 %334 }
  0x6f   : > { %v340_v50 = vpop.permute.xlu2 %339 }
  0x7f   : > { %v325_v28 = vpop.permute.xlu1 %324 }
  0x87   : > { %v330_v37 = vpop.permute.xlu1 %329 }
  0x8a   : > { %v287_v18 = vpop.permute.xlu0 %286 }
  0x8b   : > { %302 = vmatpush.bf16.msra.mxu2 %v287_v18 }
  0x8e   : > { %450 = vmatmul.msk.bf16.vlgmr.msra.gmra.mxu2 %vm209_vm2, %v460_v19 }
  0x92   : > { %v207_v20 = vpop.permute.xlu0 %206 }
  0x93   : > { %223 = vmatpush.bf16.msra.mxu0 %v207_v20  ;;  %462 = vmatpush.bf16.msra.mxu3 %v207_v20 }
  0x96   : > { %426 = vmatmul.msk.bf16.vlgmr.msra.gmra.mxu0 %vm209_vm2, %v458_v21  ;;  %427 = vmatmul.msk.bf16.vlgmr.msra.gmra.mxu3 %vm209_vm2, %v459_v22 }
  0x98   : > { %v261_v24 = vpop.f32.mrf.mxu1 }
  0x9e   : > { %451 = vmatmul.msk.bf16.gmra.mxu2 %vm209_vm2, %v461_v23 }
  0xa0   : > { %v263_v26 = vpop.f32.mrf.mxu1 }
  0xa8   : > { %v266_v36 = vpop.f32.mrf.mxu1 }
  0xb0   : > { %v268_v46 = vpop.f32.mrf.mxu1 }
 0x111   : > { %v304_v25 = vpop.f32.mrf.mxu2 }
 0x113   : > { %v225_v27 = vpop.f32.mrf.mxu0 }
 0x114   : > { %v262_v29 = vadd.f32 %v261_v24, %v225_v27 }
 0x116   : > { %v314_v30 = vadd.f32 %v304_v25, %v262_v29 }
 0x118   : > { %v342_v31 = vadd.f32 %v325_v28, %v314_v30 }
 0x119   : > { %v306_v32 = vpop.f32.mrf.mxu2  ;;  %v230_v33 = vpop.f32.mrf.mxu3 }
 0x11a   : > { %346 = vst.msk [vmem:[%s170_s18] sm:$0xff] %vm209_vm2, %v342_v31  ;;  %v267_v38 = vadd.f32 %v266_v36, %v230_v33 }
 0x11b   : > { %v227_v34 = vpop.f32.mrf.mxu0 }
 0x11c   : > { %v264_v35 = vadd.f32 %v263_v26, %v227_v34 }
 0x11e   : > { %v315_v39 = vadd.f32 %v306_v32, %v264_v35 }
 0x120   : > { %v343_v40 = vadd.f32 %v330_v37, %v315_v39 }
 0x121   : > { %v309_v42 = vpop.f32.mrf.mxu2  ;;  %v232_v45 = vpop.f32.mrf.mxu3 }
 0x122   : > { %347 = vst.msk [vmem:[%s170_s18 + $0x8] sm:$0xff] %vm209_vm2, %v343_v40  ;;  %v316_v43 = vadd.f32 %v309_v42, %v267_v38  ;;  %v269_v47 = vadd.f32 %v268_v46, %v232_v45 }
 0x124   : > { %v344_v44 = vadd.f32 %v335_v41, %v316_v43 }
 0x126   : > { %348 = vst.msk [vmem:[%s170_s18 + $0x10] sm:$0xff] %vm209_vm2, %v344_v44 }
 0x129   : > { %v311_v48 = vpop.f32.mrf.mxu2 }
 0x12a   : > { %v317_v49 = vadd.f32 %v311_v48, %v269_v47 }
 0x12c   : > { %v345_v51 = vadd.f32 %v340_v50, %v317_v49 }
 0x12e   : > { %349 = vst.msk [vmem:[%s170_s18 + $0x18] sm:$0xff] %vm209_vm2, %v345_v51 }
 0x12f PF: > { %s13_s12 = sadd.s32 1, %s483_s12  }
 0x130   : > { %p10_p4 = scmp.ge.s32.totalorder %s13_s12, 4  }
 0x132   :  { %12 = sbr.rel (!%p10_p4) target bundleno = 1 (0x1), region = 64 }

// kernel: affine_layer_fwd.58
= control target key start
LH: loop header
LB: loop body
LE: loop exit
PB: predicated region body
PF: predicated region fallthrough
CT: control target
= control target key end

     0   :  { %s428_s15 = smov 0   ;;  %s471_s0 = inlined_call_operand.vmem [shape: f32[2,8,70], index: 0, kind: input, shape index: {}]   ;;  %s472_s1 = inlined_call_operand.vmem [shape: bf16[3,8,8], index: 1, kind: input, shape index: {}]   ;;  %s473_s2 = inlined_call_operand.vmem [shape: f32[8,1], index: 2, kind: input, shape index: {}]   ;;  %s474_s3 = inlined_call_operand.vmem [shape: f32[2,8,64], index: 3, kind: input, shape index: {}]   ;;  %s475_s4 = inlined_call_operand.vmem [shape: f32[2,8,64], index: 4, kind: output, shape index: {}]  }
   0x1 LB: > { %s364_s16 = sadd.s32 4294967295, %s398_s15   ;;  %p368_p0 = scmp.ge.s32.totalorder %s398_s15, 1  ;;  %s398_s15 = sphi %s428_s15, %s14_s15  }
   0x2   : > { %p170_p1 = scmp.lt.s32.totalorder %s398_s15, 3 }
   0x4   : > { %p171_p2 = pnand %p368_p0, %p170_p1 }
   0x5   : > { %p198_p3 = scmp.lt.s32.totalorder (!%p171_p2), %s364_s16, 1  ;;  %s400_s21 = smov (!%p171_p2), 122  }
   0x6   : > { %174 = sbr.rel (%p171_p2) target bundleno = 286 (0x11e), region = 36  ;;  %s401_s22 = smov (!%p171_p2), 125  }
   0xb   : > { %s477_s16 = smov (!%p198_p3, %s364_s16), 1  ;;  %vm228_vm1 = vcmask 1043456   ;;  %v216_v7 = vld [vmem:[%s472_s1] sm:$0xf]  ;;  %vm224_vm2 = vcmask 64512   ;;  %v402_v9 = vmov 0  }
   0xc   : > { %s436_s17 = sshll.u32 %s477_s16, 3  ;;  %v288_v8 = vld [vmem:[%s473_s2] sm:$0xff]  ;;  %390 = vset.pattern.permute.xlu1 %v402_v9  ;;  %391 = vset.pattern.permute.xlu0 %v402_v9  ;;  %v375_v12 = vld [vmem:[%s472_s1 + $0x8] sm:$0xf]  ;;  %vm297_vm3 = vcmask 523264  }
   0xd   : > { %s201_s20 = scalar_lea.vmem %s471_s0, %s436_s17  ;;  %291 = vperm.xlu1 %390, %v288_v8   ;;  %v372_v15 = vld [vmem:[%s472_s1 + $0x4] sm:$0xf]  ;;  %s205_s7 = scalar_lea.vmem %s474_s3, %s436_s17 }
   0xe   : > { %v211_v0 = vld [vmem:[%s201_s20] sm:$0xff]  ;;  %s209_s10 = scalar_lea.vmem %s475_s4, %s436_s17 }
   0xf   : > { %vm212_vm0 = vcmp.ge.f32.partialorder %v211_v0, 0.0  ;;  %v213_v1 = vmul.f32 0.1, %v211_v0  ;;  %v295_v23 = vld [vmem:[%s205_s7] sm:$0xff] }
  0x11   : > { %v214_v2 = vsel %vm212_vm0, %v211_v0, %v213_v1 }
  0x12   : > { %v215_v3 = vpack.c.bf16 %v214_v2, %v214_v2 }
  0x14   : > { %v220_v4 = vunpack.c.l.b16 %v215_v3  ;;  %v249_v6 = vsel %vm228_vm1, %v215_v3, 0 }
  0x15   : > { %258 = vmatpush.bf16.msra.mxu1 %v249_v6 }
  0x16   : > { %v221_v5 = vpack.c.b16 %v220_v4, %v220_v4 }
  0x18   : > { %266 = vrot.lane.b32.xlu0 %v221_v5, %s400_s21  ;;  %374 = vmatmul.msk.bf16.vlgmr.msra.gmra.mxu1 %vm224_vm2, %v216_v7 }
  0x20   : > { %222 = vrot.lane.b32.xlu0 %v221_v5, %s401_s22 }
  0x7f   : > { %v292_v21 = vpop.permute.xlu1 %291 }
  0x8a   : > { %v267_v10 = vpop.permute.xlu0 %266 }
  0x8b   : > { %v272_v11 = vsel %vm228_vm1, %v267_v10, 0 }
  0x8c   : > { %281 = vmatpush.bf16.msra.mxu2 %v272_v11 }
  0x8f   : > { %376 = vmatmul.msk.bf16.vlgmr.msra.gmra.mxu2 %vm224_vm2, %v375_v12 }
  0x92   : > { %v223_v13 = vpop.permute.xlu0 %222 }
  0x93   : > { %v230_v14 = vsel %vm228_vm1, %v223_v13, 0 }
  0x94   : > { %239 = vmatpush.bf16.msra.mxu0 %v230_v14 }
  0x95   : > { %v260_v16 = vpop.f32.mrf.mxu1 }
  0x97   : > { %373 = vmatmul.msk.bf16.vlgmr.msra.gmra.mxu0 %vm224_vm2, %v372_v15 }
  0x9d   : > { %v262_v17 = vpop.f32.mrf.mxu1 }
 0x112   : > { %v283_v18 = vpop.f32.mrf.mxu2 }
 0x114   : > { %v241_v19 = vpop.f32.mrf.mxu0 }
 0x115   : > { %v261_v20 = vadd.f32 %v260_v16, %v241_v19 }
 0x117   : > { %v287_v22 = vadd.f32 %v283_v18, %v261_v20 }
 0x119   : > { %v294_v24 = vadd.f32 %v292_v21, %v287_v22 }
 0x11a   : > { %v285_v25 = vpop.f32.mrf.mxu2 }
 0x11b   : > { %v296_v26 = vadd.f32 %v295_v23, %v294_v24 }
 0x11c   : > { %v243_v27 = vpop.f32.mrf.mxu0 }
 0x11d   : > { %298 = vst.msk [vmem:[%s209_s10] sm:$0xff] %vm297_vm3, %v296_v26 }
 0x11e PF: > { %s14_s15 = sadd.s32 1, %s398_s15  }
 0x11f   : > { %p11_p4 = scmp.ge.s32.totalorder %s14_s15, 4  }
 0x121   :  { %13 = sbr.rel (!%p11_p4) target bundleno = 1 (0x1), region = 71 }

// kernel: affine_layer_fwd.57
= control target key start
LH: loop header
LB: loop body
LE: loop exit
PB: predicated region body
PF: predicated region fallthrough
CT: control target
= control target key end

     0   :  { %s428_s15 = smov 0   ;;  %s471_s0 = inlined_call_operand.vmem [shape: f32[2,8,66], index: 0, kind: input, shape index: {}]   ;;  %s472_s1 = inlined_call_operand.vmem [shape: bf16[3,8,8], index: 1, kind: input, shape index: {}]   ;;  %s473_s2 = inlined_call_operand.vmem [shape: f32[8,1], index: 2, kind: input, shape index: {}]   ;;  %s474_s3 = inlined_call_operand.vmem [shape: f32[2,8,64], index: 3, kind: input, shape index: {}]   ;;  %s475_s4 = inlined_call_operand.vmem [shape: f32[2,8,64], index: 4, kind: output, shape index: {}]  }
   0x1 LB: > { %s364_s16 = sadd.s32 4294967295, %s398_s15   ;;  %p368_p0 = scmp.ge.s32.totalorder %s398_s15, 1  ;;  %s398_s15 = sphi %s428_s15, %s14_s15  }
   0x2   : > { %p170_p1 = scmp.lt.s32.totalorder %s398_s15, 3 }
   0x4   : > { %p171_p2 = pnand %p368_p0, %p170_p1 }
   0x5   : > { %p198_p3 = scmp.lt.s32.totalorder (!%p171_p2), %s364_s16, 1  ;;  %s400_s21 = smov (!%p171_p2), 126  }
   0x6   : > { %174 = sbr.rel (%p171_p2) target bundleno = 286 (0x11e), region = 36  ;;  %s401_s22 = smov (!%p171_p2), 127  }
   0xb   : > { %s477_s16 = smov (!%p198_p3, %s364_s16), 1  ;;  %vm228_vm1 = vcmask 1043456   ;;  %v216_v7 = vld [vmem:[%s472_s1] sm:$0xf]  ;;  %vm224_vm2 = vcmask 64512   ;;  %v402_v9 = vmov 0  }
   0xc   : > { %s436_s17 = sshll.u32 %s477_s16, 3  ;;  %v288_v8 = vld [vmem:[%s473_s2] sm:$0xff]  ;;  %390 = vset.pattern.permute.xlu1 %v402_v9  ;;  %391 = vset.pattern.permute.xlu0 %v402_v9  ;;  %v375_v12 = vld [vmem:[%s472_s1 + $0x8] sm:$0xf]  ;;  %vm297_vm3 = vcmask 523264  }
   0xd   : > { %s201_s20 = scalar_lea.vmem %s471_s0, %s436_s17  ;;  %291 = vperm.xlu1 %390, %v288_v8   ;;  %v372_v15 = vld [vmem:[%s472_s1 + $0x4] sm:$0xf]  ;;  %s205_s7 = scalar_lea.vmem %s474_s3, %s436_s17 }
   0xe   : > { %v211_v0 = vld [vmem:[%s201_s20] sm:$0xff]  ;;  %s209_s10 = scalar_lea.vmem %s475_s4, %s436_s17 }
   0xf   : > { %vm212_vm0 = vcmp.ge.f32.partialorder %v211_v0, 0.0  ;;  %v213_v1 = vmul.f32 0.1, %v211_v0  ;;  %v295_v23 = vld [vmem:[%s205_s7] sm:$0xff] }
  0x11   : > { %v214_v2 = vsel %vm212_vm0, %v211_v0, %v213_v1 }
  0x12   : > { %v215_v3 = vpack.c.bf16 %v214_v2, %v214_v2 }
  0x14   : > { %v220_v4 = vunpack.c.l.b16 %v215_v3  ;;  %v249_v6 = vsel %vm228_vm1, %v215_v3, 0 }
  0x15   : > { %258 = vmatpush.bf16.msra.mxu1 %v249_v6 }
  0x16   : > { %v221_v5 = vpack.c.b16 %v220_v4, %v220_v4 }
  0x18   : > { %266 = vrot.lane.b32.xlu0 %v221_v5, %s400_s21  ;;  %374 = vmatmul.msk.bf16.vlgmr.msra.gmra.mxu1 %vm224_vm2, %v216_v7 }
  0x20   : > { %222 = vrot.lane.b32.xlu0 %v221_v5, %s401_s22 }
  0x7f   : > { %v292_v21 = vpop.permute.xlu1 %291 }
  0x8a   : > { %v267_v10 = vpop.permute.xlu0 %266 }
  0x8b   : > { %v272_v11 = vsel %vm228_vm1, %v267_v10, 0 }
  0x8c   : > { %281 = vmatpush.bf16.msra.mxu2 %v272_v11 }
  0x8f   : > { %376 = vmatmul.msk.bf16.vlgmr.msra.gmra.mxu2 %vm224_vm2, %v375_v12 }
  0x92   : > { %v223_v13 = vpop.permute.xlu0 %222 }
  0x93   : > { %v230_v14 = vsel %vm228_vm1, %v223_v13, 0 }
  0x94   : > { %239 = vmatpush.bf16.msra.mxu0 %v230_v14 }
  0x95   : > { %v260_v16 = vpop.f32.mrf.mxu1 }
  0x97   : > { %373 = vmatmul.msk.bf16.vlgmr.msra.gmra.mxu0 %vm224_vm2, %v372_v15 }
  0x9d   : > { %v262_v17 = vpop.f32.mrf.mxu1 }
 0x112   : > { %v283_v18 = vpop.f32.mrf.mxu2 }
 0x114   : > { %v241_v19 = vpop.f32.mrf.mxu0 }
 0x115   : > { %v261_v20 = vadd.f32 %v260_v16, %v241_v19 }
 0x117   : > { %v287_v22 = vadd.f32 %v283_v18, %v261_v20 }
 0x119   : > { %v294_v24 = vadd.f32 %v292_v21, %v287_v22 }
 0x11a   : > { %v285_v25 = vpop.f32.mrf.mxu2 }
 0x11b   : > { %v296_v26 = vadd.f32 %v295_v23, %v294_v24 }
 0x11c   : > { %v243_v27 = vpop.f32.mrf.mxu0 }
 0x11d   : > { %298 = vst.msk [vmem:[%s209_s10] sm:$0xff] %vm297_vm3, %v296_v26 }
 0x11e PF: > { %s14_s15 = sadd.s32 1, %s398_s15  }
 0x11f   : > { %p11_p4 = scmp.ge.s32.totalorder %s14_s15, 4  }
 0x121   :  { %13 = sbr.rel (!%p11_p4) target bundleno = 1 (0x1), region = 71 }

// kernel: affine_layer_fwd.59
= control target key start
LH: loop header
LB: loop body
LE: loop exit
PB: predicated region body
PF: predicated region fallthrough
CT: control target
= control target key end

     0   :  { %s304_s12 = smov 0   ;;  %s327_s0 = inlined_call_operand.vmem [shape: f32[2,8,64], index: 0, kind: input, shape index: {}]   ;;  %s328_s1 = inlined_call_operand.vmem [shape: bf16[1,8,8], index: 1, kind: input, shape index: {}]   ;;  %s329_s2 = inlined_call_operand.vmem [shape: f32[8,1], index: 2, kind: input, shape index: {}]   ;;  %s330_s3 = inlined_call_operand.vmem [shape: f32[2,8,64], index: 3, kind: output, shape index: {}]  }
   0x1 LB: > { %s255_s13 = sadd.s32 4294967295, %s281_s12   ;;  %p259_p0 = scmp.ge.s32.totalorder %s281_s12, 1  ;;  %s281_s12 = sphi %s304_s12, %s13_s12  }
   0x2   : > { %p136_p1 = scmp.lt.s32.totalorder %s281_s12, 3 }
   0x4   : > { %p137_p2 = pnand %p259_p0, %p136_p1 }
   0x5   : > { %p158_p3 = scmp.lt.s32.totalorder (!%p137_p2), %s255_s13, 1 }
   0x6   : > { %140 = sbr.rel (%p137_p2) target bundleno = 158 (0x9e), region = 32 }
   0xb   : > { %v283_v0 = vmov 0   ;;  %v173_v1 = vld [vmem:[%s329_s2] sm:$0xff]  ;;  %s332_s13 = smov (!%p158_p3, %s255_s13), 1  ;;  %vm183_vm1 = vcmask 1043456   ;;  %vm179_vm2 = vcmask 64512   ;;  %vm200_vm3 = vcmask 523264  }
   0xc   : > { %274 = vset.pattern.permute.xlu0 %v283_v0  ;;  %s260_s16 = sshll.u32 %s332_s13, 3  ;;  %v172_v7 = vld [vmem:[%s328_s1] sm:$0xf] }
   0xd   : > { %176 = vperm.xlu0 %274, %v173_v1   ;;  %s161_s19 = scalar_lea.vmem %s327_s0, %s260_s16  ;;  %s165_s24 = scalar_lea.vmem %s330_s3, %s260_s16 }
   0xe   : > { %v167_v2 = vld [vmem:[%s161_s19] sm:$0xff] }
   0xf   : > { %vm168_vm0 = vcmp.ge.f32.partialorder %v167_v2, 0.0  ;;  %v169_v3 = vmul.f32 0.1, %v167_v2 }
  0x11   : > { %v170_v4 = vsel %vm168_vm0, %v167_v2, %v169_v3 }
  0x12   : > { %v171_v5 = vpack.c.bf16 %v170_v4, %v170_v4 }
  0x14   : > { %v185_v6 = vsel %vm183_vm1, %v171_v5, 0 }
  0x15   : > { %194 = vmatpush.bf16.msra.mxu0 %v185_v6 }
  0x18   : > { %262 = vmatmul.msk.bf16.vlgmr.msra.gmra.mxu0 %vm179_vm2, %v172_v7 }
  0x7f   : > { %v177_v8 = vpop.permute.xlu0 %176 }
  0x95   : > { %v196_v9 = vpop.f32.mrf.mxu0 }
  0x96   : > { %v197_v10 = vadd.f32 %v196_v9, %v177_v8 }
  0x98   : > { %201 = vst.msk [vmem:[%s165_s24] sm:$0xff] %vm200_vm3, %v197_v10 }
  0x9d   : > { %v198_v11 = vpop.f32.mrf.mxu0 }
  0x9e PF: > { %s13_s12 = sadd.s32 1, %s281_s12  }
  0x9f   : > { %p10_p4 = scmp.ge.s32.totalorder %s13_s12, 4  }
  0xa1   :  { %12 = sbr.rel (!%p10_p4) target bundleno = 1 (0x1), region = 62 }

</bundles_post_ra>
